<compile_context>
chip_gen: v6e
topology: v6e:2x2x1
jax: 0.10.0
libtpu: 0.0.40
codegen_flags: <defaults>
</compile_context>

<pallas_src>
import functools

import numpy as np

import jax
import jax.numpy as jnp
from jax.experimental import pallas as pl
from jax.experimental.pallas import tpu as pltpu


_PAD = 16  # zero rows padded on each side of the pool1 scratch (>= 8 needed)


# ----------------------------- kernel bodies -------------------------------

def _convnet_kernel(xb_ref, w1_ref, b1_ref, w2_ref, b2_ref, o_ref, p1_ref,
                    *, c1, c2, m):
    """conv1+ReLU+pool1+conv2+ReLU+pool2 for one batch tile.

    xb_ref : [m, 64]          bf16  overlapping 8x8 input blocks (m = bt*49,
                                    one row per (image, 7x7 output cell))
    w1_ref : [64, 16*c1]      bf16  conv1 block weight, cols (hp,pe,pf,wp,ch)
    b1_ref : [1, 8*c1]        f32   conv1 bias tiled over (pe,pf,wp)
    w2_ref : [9, 4*c1, 4*c2]  bf16  conv2 block weight per (dh,dw) shift
    b2_ref : [1, 4*c2]        f32
    o_ref  : [m, c2]          bf16  pool2 features, rows = (image, h', w')
    p1_ref : [2*_PAD+m, 4*c1] bf16  scratch: pool1 in parity-split layout
    """
    # pad rows only need zeroing once (scratch persists across grid steps)
    @pl.when(pl.program_id(0) == 0)
    def _():
        p1_ref[0:_PAD, :] = jnp.zeros((_PAD, 4 * c1), jnp.bfloat16)
        p1_ref[_PAD + m:, :] = jnp.zeros((_PAD, 4 * c1), jnp.bfloat16)

    # conv1 + ReLU + pool1, chunked over the output-row parity hp: halves the
    # live f32 intermediate and makes every pool-max slice and every p1 store
    # a 128-lane-aligned block.
    half = 8 * c1
    for hp in range(2):
        a1 = jnp.dot(xb_ref[:, :], w1_ref[:, hp * half:(hp + 1) * half],
                     preferred_element_type=jnp.float32)        # [m, 8*c1]
        a1 = jnp.maximum(a1 + b1_ref[...], 0.0)
        blk = jnp.maximum(
            jnp.maximum(a1[:, 0:2 * c1], a1[:, 2 * c1:4 * c1]),
            jnp.maximum(a1[:, 4 * c1:6 * c1], a1[:, 6 * c1:8 * c1]))
        p1_ref[_PAD:_PAD + m, hp * 2 * c1:(hp + 1) * 2 * c1] = (
            blk.astype(jnp.bfloat16))

    # shift-validity masks from the in-tile row index (row % 49 -> cell h, w)
    rows = jax.lax.broadcasted_iota(jnp.int32, (m, 1), 0)
    cell = rows % 49
    cw = cell % 7
    ok_h = {-1: cell >= 7, 0: None, 1: cell < 42}
    ok_w = {-1: cw > 0, 0: None, 1: cw < 6}

    # conv2 + pool2: nine constant-shift reads of the padded pool1 scratch,
    # whole-row masked with jnp.where, accumulated on the MXU.
    acc = jnp.zeros((m, 4 * c2), jnp.float32)
    d = 0
    for dh in (-1, 0, 1):
        for dw in (-1, 0, 1):
            shift = dh * 7 + dw
            slab = p1_ref[_PAD + shift:_PAD + shift + m, :]     # [m, 4*c1]
            conds = [c for c in (ok_h[dh], ok_w[dw]) if c is not None]
            if conds:
                ok = conds[0] if len(conds) == 1 else conds[0] & conds[1]
                slab = jnp.where(ok, slab, 0.0)
            acc = acc + jnp.dot(slab, w2_ref[d],
                                preferred_element_type=jnp.float32)
            d += 1
    acc = jnp.maximum(acc + b2_ref[...], 0.0)                   # [m, 4*c2]

    # pool2 = max over the four (i, j) lane blocks (128-lane-wide max first)
    r = jnp.maximum(acc[:, :2 * c2], acc[:, 2 * c2:])
    o_ref[...] = jnp.maximum(r[:, :c2], r[:, c2:]).astype(o_ref.dtype)


def _mlp_head_kernel(f_ref, w1_ref, b1_ref, w2_ref, b2_ref, o_ref):
    """fc1 + ReLU + fc2 + log_softmax for one batch-row tile (weights resident).

    fc2 is lane-padded to 128 outputs (zero weight cols, -1e30 pad bias), so
    log_softmax over the full 128 lanes equals log_softmax over the real 10.
    """
    h = jnp.dot(f_ref[...], w1_ref[...], preferred_element_type=jnp.float32)
    h = jnp.maximum(h + b1_ref[...], 0.0)
    # TODO(synk): dropout branch (module default dropout=False) not implemented.
    logits = jnp.dot(h.astype(jnp.bfloat16), w2_ref[...],
                     preferred_element_type=jnp.float32) + b2_ref[...]
    mx = jnp.max(logits, axis=-1, keepdims=True)
    sh = logits - mx
    lse = jnp.log(jnp.sum(jnp.exp(sh), axis=-1, keepdims=True))
    o_ref[...] = sh - lse


# ----------------------------- pallas_call wrappers -------------------------

def _conv_stage(xb, w1, b1, w2, b2, *, bt, c1, c2):
    m_rows = xb.shape[0]                     # Bp * 49
    mt = bt * 49
    kern = functools.partial(_convnet_kernel, c1=c1, c2=c2, m=mt)
    return pl.pallas_call(
        kern,
        out_shape=jax.ShapeDtypeStruct((m_rows, c2), jnp.bfloat16),
        grid_spec=pltpu.PrefetchScalarGridSpec(
            num_scalar_prefetch=0,
            grid=(m_rows // mt,),
            in_specs=[
                pl.BlockSpec((mt, 64), lambda i: (i, 0)),            # input blocks
                pl.BlockSpec((64, 16 * c1), lambda i: (0, 0)),       # conv1 weight
                pl.BlockSpec((1, 8 * c1), lambda i: (0, 0)),         # conv1 bias
                pl.BlockSpec((9, 4 * c1, 4 * c2), lambda i: (0, 0, 0)),  # conv2 w
                pl.BlockSpec((1, 4 * c2), lambda i: (0, 0)),         # conv2 bias
            ],
            out_specs=pl.BlockSpec((mt, c2), lambda i: (i, 0)),
            scratch_shapes=[pltpu.VMEM((2 * _PAD + mt, 4 * c1), jnp.bfloat16)],
        ),
        compiler_params=pltpu.CompilerParams(
            dimension_semantics=("parallel",),
            vmem_limit_bytes=32 * 1024 * 1024,
        ),
    )(xb, w1, b1, w2, b2)


def _head_stage(feat, w1, b1, w2, b2, *, bt):
    bp, k = feat.shape
    n_fc = w1.shape[1]
    n_out = w2.shape[1]                      # 128 (lane-padded logits)
    return pl.pallas_call(
        _mlp_head_kernel,
        out_shape=jax.ShapeDtypeStruct((bp, n_out), jnp.float32),
        grid_spec=pltpu.PrefetchScalarGridSpec(
            num_scalar_prefetch=0,
            grid=(bp // bt,),
            in_specs=[
                pl.BlockSpec((bt, k), lambda i: (i, 0)),
                pl.BlockSpec((k, n_fc), lambda i: (0, 0)),
                pl.BlockSpec((1, n_fc), lambda i: (0, 0)),
                pl.BlockSpec((n_fc, n_out), lambda i: (0, 0)),
                pl.BlockSpec((1, n_out), lambda i: (0, 0)),
            ],
            out_specs=pl.BlockSpec((bt, n_out), lambda i: (i, 0)),
        ),
        compiler_params=pltpu.CompilerParams(
            dimension_semantics=("parallel",),
            vmem_limit_bytes=32 * 1024 * 1024,
        ),
    )(feat, w1, b1, w2, b2)


# ----------------------------- parameter handling ---------------------------

def init_params(key, n_filters1=64, n_filters2=64, n_fc=256):
    """PyTorch-default-style uniform(+/- 1/sqrt(fan_in)) init, NCHW weight layout."""
    ks = jax.random.split(key, 8)

    def u(kk, shape, fan_in):
        bound = 1.0 / float(fan_in) ** 0.5
        return jax.random.uniform(kk, shape, jnp.float32, -bound, bound)

    return dict(
        conv1_w=u(ks[0], (n_filters1, 1, 5, 5), 1 * 25),
        conv1_b=u(ks[1], (n_filters1,), 1 * 25),
        conv2_w=u(ks[2], (n_filters2, n_filters1, 5, 5), n_filters1 * 25),
        conv2_b=u(ks[3], (n_filters2,), n_filters1 * 25),
        fc1_w=u(ks[4], (n_fc, n_filters2 * 7 * 7), n_filters2 * 49),
        fc1_b=u(ks[5], (n_fc,), n_filters2 * 49),
        fc2_w=u(ks[6], (10, n_fc), n_fc),
        fc2_b=u(ks[7], (10,), n_fc),
    )


def prepare_params(params):
    """One-time repack of PyTorch-layout weights into kernel layouts."""
    w1, b1 = params["conv1_w"], params["conv1_b"]
    w2, b2 = params["conv2_w"], params["conv2_b"]
    c1, c2 = w1.shape[0], w2.shape[0]
    n_fc = params["fc1_w"].shape[0]

    # conv1 block weight [64 (=8x8 patch pixel), 16*c1]; columns ordered
    # (hp, pe, pf, wp, ch) so the kernel evaluates conv1 one output-row-parity
    # (hp) chunk at a time with lane-aligned pool maxes and pool1 stores.
    w1t = jnp.transpose(w1[:, 0], (1, 2, 0))                 # [5,5,c1] (ky,kx,c)
    u = np.arange(8)[:, None, None, None]
    v = np.arange(8)[None, :, None, None]
    a = np.arange(4)[None, None, :, None]
    b = np.arange(4)[None, None, None, :]
    dy, dx = u - a, v - b
    valid = (dy >= 0) & (dy < 5) & (dx >= 0) & (dx < 5)       # [8,8,4,4]
    w1full = jnp.where(jnp.asarray(valid)[..., None],
                       w1t[np.clip(dy, 0, 4), np.clip(dx, 0, 4)],
                       0.0)                                    # [8,8,4,4,c1]
    w1full = w1full.reshape(8, 8, 2, 2, 2, 2, c1)              # u,v,hp,pe,wp,pf,c
    w1full = jnp.transpose(w1full, (0, 1, 2, 3, 5, 4, 6))      # u,v,hp,pe,pf,wp,c
    w1big = w1full.reshape(64, 16 * c1)

    # conv2 block weights: [9 (dh,dw), 4*c1 (ph,pw,cin), 4*c2 (i,j,cout)]
    w2t = jnp.transpose(w2, (2, 3, 1, 0))                      # [5,5,cin,cout]
    dh = (np.arange(3) - 1)[:, None, None, None, None, None]
    dw = (np.arange(3) - 1)[None, :, None, None, None, None]
    ph = np.arange(2)[None, None, :, None, None, None]
    pw = np.arange(2)[None, None, None, :, None, None]
    ii = np.arange(2)[None, None, None, None, :, None]
    jj = np.arange(2)[None, None, None, None, None, :]
    dy2 = 2 * dh + ph - ii + 2
    dx2 = 2 * dw + pw - jj + 2
    valid2 = (dy2 >= 0) & (dy2 < 5) & (dx2 >= 0) & (dx2 < 5)   # [3,3,2,2,2,2]
    w2big = jnp.where(jnp.asarray(valid2)[..., None, None],
                      w2t[np.clip(dy2, 0, 4), np.clip(dx2, 0, 4)],
                      0.0)                                     # [...,cin,cout]
    w2big = jnp.transpose(w2big, (0, 1, 2, 3, 6, 4, 5, 7))     # dh,dw,ph,pw,cin,i,j,cout
    w2big = w2big.reshape(9, 4 * c1, 4 * c2)

    # fc1: permute input dim from NCHW flatten (c,h,w) to the kernel's (h,w,c)
    fc1_w = params["fc1_w"].reshape(n_fc, c2, 49)
    fc1_w = jnp.transpose(fc1_w, (2, 1, 0)).reshape(49 * c2, n_fc)
    # fc2: transpose and lane-pad to 128 outputs (zero weights, -1e30 pad bias)
    # so the final matmul and the head store are lane-dense.
    fc2_w = jnp.transpose(params["fc2_w"], (1, 0))             # [n_fc, 10]
    fc2_w = jnp.pad(fc2_w, ((0, 0), (0, 128 - 10)))
    fc2_b = jnp.pad(params["fc2_b"], (0, 128 - 10), constant_values=-1e30)

    return dict(
        w1big=w1big.astype(jnp.bfloat16),
        b1half=jnp.tile(b1, 8).reshape(1, 8 * c1).astype(jnp.float32),
        w2big=w2big.astype(jnp.bfloat16),
        b2big=jnp.tile(b2, 4).reshape(1, 4 * c2).astype(jnp.float32),
        fc1_w=fc1_w.astype(jnp.bfloat16),
        fc1_b=params["fc1_b"].reshape(1, n_fc).astype(jnp.float32),
        fc2_w=fc2_w.astype(jnp.bfloat16),
        fc2_b=fc2_b.reshape(1, 128).astype(jnp.float32),
    )


# ----------------------------- forward pass ---------------------------------

def _input_blocks(x_nchw):
    """[Bp,1,28,28] -> [Bp*49, 64] bf16 overlapping 8x8 input blocks
    (one row per (image, 7x7 output cell), column = patch pixel u*8+v)."""
    # TODO(synk): fold this patch extraction into the conv kernel (static
    # shifted reads of a padded [bt,32,32] block) to drop the XLA relayout.
    bp = x_nchw.shape[0]
    img = x_nchw.reshape(bp, 28, 28).astype(jnp.bfloat16)      # half-width prep
    xp = jnp.pad(img, ((0, 0), (2, 2), (2, 2)))                # [Bp,32,32]
    cols = []
    for u in range(8):
        for v in range(8):
            cols.append(xp[:, u:u + 28:4, v:v + 28:4])         # [Bp,7,7]
    return jnp.stack(cols, axis=-1).reshape(bp * 49, 64)


def mnist_forward(kp, x_nchw):
    """Matches MnistModel.forward; x_nchw: [B,1,28,28]; returns [B,10] log-probs."""
    B = x_nchw.shape[0]
    c1 = kp["b1half"].shape[1] // 8
    c2 = kp["b2big"].shape[1] // 4

    # conv-stage batch tiling: large tiles, but >= 2 grid steps when the batch
    # is big enough to shard the "parallel" axis over two TensorCores.
    if B <= 16:
        bt, bp = B, B
    elif B <= 64:
        bt = 16
        bp = -(-B // bt) * bt
    else:
        bt = 32
        bp = -(-B // bt) * bt
    if bp != B:
        x_nchw = jnp.pad(x_nchw, ((0, bp - B), (0, 0), (0, 0), (0, 0)))

    xb = _input_blocks(x_nchw)
    feat = _conv_stage(xb, kp["w1big"], kp["b1half"], kp["w2big"], kp["b2big"],
                       bt=bt, c1=c1, c2=c2)
    feat = feat.reshape(bp, 49 * c2)                           # (h,w,c) order

    # head tiling: 128-256 rows per step when the batch allows it (never 8)
    if bp <= 256:
        bt2 = bp
    elif bp % 256 == 0:
        bt2 = 256
    elif bp % 128 == 0:
        bt2 = 128
    else:
        bt2 = bt
    out = _head_stage(feat, kp["fc1_w"], kp["fc1_b"], kp["fc2_w"], kp["fc2_b"],
                      bt=bt2)
    return out[:B, :10]


# ----------------------------- pure-JAX reference ---------------------------

def _reference_forward(params, x):
    """Straightforward f32 JAX replica of MnistModel.forward (for validation)."""
    y = jax.lax.conv_general_dilated(
        x, params["conv1_w"], (1, 1), ((2, 2), (2, 2)),
        dimension_numbers=("NCHW", "OIHW", "NCHW"))
    y = jax.nn.relu(y + params["conv1_b"][None, :, None, None])
    y = jax.lax.reduce_window(y, -jnp.inf, jax.lax.max,
                              (1, 1, 2, 2), (1, 1, 2, 2), "VALID")
    y = jax.lax.conv_general_dilated(
        y, params["conv2_w"], (1, 1), ((2, 2), (2, 2)),
        dimension_numbers=("NCHW", "OIHW", "NCHW"))
    y = jax.nn.relu(y + params["conv2_b"][None, :, None, None])
    y = jax.lax.reduce_window(y, -jnp.inf, jax.lax.max,
                              (1, 1, 2, 2), (1, 1, 2, 2), "VALID")
    y = y.reshape(y.shape[0], -1)                              # (c, h, w) order
    y = jax.nn.relu(y @ params["fc1_w"].T + params["fc1_b"])
    y = y @ params["fc2_w"].T + params["fc2_b"]
    return jax.nn.log_softmax(y, axis=-1)


if __name__ == "__main__":
    key = jax.random.PRNGKey(0)
    pkey, xkey = jax.random.split(key)

    params = init_params(pkey)            # module defaults: 64, 64, 256
    kparams = prepare_params(params)      # one-time weight repack

    x = jax.random.normal(xkey, (2, 1, 28, 28), jnp.float32)   # NCHW like PyTorch
    out = jax.jit(mnist_forward)(kparams, x)
    jax.block_until_ready(out)

    assert out.shape == (2, 10)
    # log_softmax rows must exponentiate-and-sum to ~1
    assert bool(jnp.allclose(jnp.sum(jnp.exp(out), axis=-1), 1.0, atol=1e-3))
    # match the f32 reference to within bf16 conv-path tolerance
    ref = _reference_forward(params, x)
    assert bool(jnp.allclose(out, ref, atol=1e-1))
    print("KERNEL_OK")
</pallas_src>

<mosaic_0001>
module attributes {stable_mosaic.version = 11 : i64} {
  func.func @_mlp_head_kernel(%arg0: i32, %arg1: memref<2x3136xbf16, #tpu.memory_space<vmem>>, %arg2: memref<3136x256xbf16, #tpu.memory_space<vmem>>, %arg3: memref<1x256xf32, #tpu.memory_space<vmem>>, %arg4: memref<256x128xbf16, #tpu.memory_space<vmem>>, %arg5: memref<1x128xf32, #tpu.memory_space<vmem>>, %arg6: memref<2x128xf32, #tpu.memory_space<vmem>>) attributes {dimension_semantics = [#tpu.dimension_semantics<parallel>], iteration_bounds = array<i64: 1>, scalar_prefetch = 0 : i64, scratch_operands = 0 : i64, tpu.core_type = #tpu.core_type<tc>, window_params = [{transform_indices = @transform_0, window_bounds = array<i64: 2, 3136>}, {pipeline_mode = #tpu.pipeline_mode<synchronous>, transform_indices = @transform_1, window_bounds = array<i64: 3136, 256>}, {pipeline_mode = #tpu.pipeline_mode<synchronous>, transform_indices = @transform_2, window_bounds = array<i64: 1, 256>}, {pipeline_mode = #tpu.pipeline_mode<synchronous>, transform_indices = @transform_3, window_bounds = array<i64: 256, 128>}, {pipeline_mode = #tpu.pipeline_mode<synchronous>, transform_indices = @transform_4, window_bounds = array<i64: 1, 128>}, {transform_indices = @transform_5, window_bounds = array<i64: 2, 128>}]} {
    %c0 = arith.constant 0 : index
    %c0_0 = arith.constant 0 : index
    %0 = vector.load %arg1[%c0, %c0_0] : memref<2x3136xbf16, #tpu.memory_space<vmem>>, vector<2x3136xbf16>
    %c0_1 = arith.constant 0 : index
    %c0_2 = arith.constant 0 : index
    %1 = vector.load %arg2[%c0_1, %c0_2] : memref<3136x256xbf16, #tpu.memory_space<vmem>>, vector<3136x256xbf16>
    %cst = arith.constant dense<0.000000e+00> : vector<2x256xf32>
    %2 = tpu.matmul %0, %1, %cst {dimension_numbers = #tpu.dot_dimension_numbers<[1], [0], [0], [1], [0, 0, 1, 1], [], []>} : vector<2x3136xbf16>, vector<3136x256xbf16>, vector<2x256xf32> -> vector<2x256xf32>
    %c0_3 = arith.constant 0 : index
    %c0_4 = arith.constant 0 : index
    %3 = vector.load %arg3[%c0_3, %c0_4] : memref<1x256xf32, #tpu.memory_space<vmem>>, vector<1x256xf32>
    %4 = vector.broadcast %3 : vector<1x256xf32> to vector<2x256xf32>
    %5 = arith.addf %2, %4 : vector<2x256xf32>
    %cst_5 = arith.constant 0.000000e+00 : f32
    %6 = vector.broadcast %cst_5 : f32 to vector<2x256xf32>
    %7 = arith.maximumf %5, %6 : vector<2x256xf32>
    %8 = arith.truncf %7 : vector<2x256xf32> to vector<2x256xbf16>
    %c0_6 = arith.constant 0 : index
    %c0_7 = arith.constant 0 : index
    %9 = vector.load %arg4[%c0_6, %c0_7] : memref<256x128xbf16, #tpu.memory_space<vmem>>, vector<256x128xbf16>
    %cst_8 = arith.constant dense<0.000000e+00> : vector<2x128xf32>
    %10 = tpu.matmul %8, %9, %cst_8 {dimension_numbers = #tpu.dot_dimension_numbers<[1], [0], [0], [1], [0, 0, 1, 1], [], []>} : vector<2x256xbf16>, vector<256x128xbf16>, vector<2x128xf32> -> vector<2x128xf32>
    %c0_9 = arith.constant 0 : index
    %c0_10 = arith.constant 0 : index
    %11 = vector.load %arg5[%c0_9, %c0_10] : memref<1x128xf32, #tpu.memory_space<vmem>>, vector<1x128xf32>
    %12 = vector.broadcast %11 : vector<1x128xf32> to vector<2x128xf32>
    %13 = arith.addf %10, %12 : vector<2x128xf32>
    %cst_11 = arith.constant dense<0xFF800000> : vector<2xf32>
    %14 = vector.multi_reduction <maximumf>, %13, %cst_11 [1] : vector<2x128xf32> to vector<2xf32>
    %15 = vector.shape_cast %14 : vector<2xf32> to vector<2x1xf32>
    %16 = vector.broadcast %15 : vector<2x1xf32> to vector<2x128xf32>
    %17 = arith.subf %13, %16 : vector<2x128xf32>
    %18 = math.exp %17 : vector<2x128xf32>
    %cst_12 = arith.constant dense<0.000000e+00> : vector<2xf32>
    %19 = vector.multi_reduction <add>, %18, %cst_12 [1] : vector<2x128xf32> to vector<2xf32>
    %20 = vector.shape_cast %19 : vector<2xf32> to vector<2x1xf32>
    %21 = math.log %20 : vector<2x1xf32>
    %22 = vector.broadcast %21 : vector<2x1xf32> to vector<2x128xf32>
    %23 = arith.subf %17, %22 : vector<2x128xf32>
    %c0_13 = arith.constant 0 : index
    %c0_14 = arith.constant 0 : index
    %24 = vector.load %arg6[%c0_13, %c0_14] : memref<2x128xf32, #tpu.memory_space<vmem>>, vector<2x128xf32>
    tpu.vector_store %arg6[%c0_13, %c0_14], %23 {strides = array<i32>} : memref<2x128xf32, #tpu.memory_space<vmem>>, vector<2x128xf32>,
    return
  }
  func.func @transform_0(%arg0: i32) -> (i32, i32) {
    %c0_i32 = arith.constant 0 : i32
    %c0_i32_0 = arith.constant 0 : i32
    return %arg0, %c0_i32 : i32, i32
  }
  func.func @transform_1(%arg0: i32) -> (i32, i32) {
    %c0_i32 = arith.constant 0 : i32
    %c0_i32_0 = arith.constant 0 : i32
    %c0_i32_1 = arith.constant 0 : i32
    return %c0_i32, %c0_i32_0 : i32, i32
  }
  func.func @transform_2(%arg0: i32) -> (i32, i32) {
    %c0_i32 = arith.constant 0 : i32
    %c0_i32_0 = arith.constant 0 : i32
    %c0_i32_1 = arith.constant 0 : i32
    return %c0_i32, %c0_i32_0 : i32, i32
  }
  func.func @transform_3(%arg0: i32) -> (i32, i32) {
    %c0_i32 = arith.constant 0 : i32
    %c0_i32_0 = arith.constant 0 : i32
    %c0_i32_1 = arith.constant 0 : i32
    return %c0_i32, %c0_i32_0 : i32, i32
  }
  func.func @transform_4(%arg0: i32) -> (i32, i32) {
    %c0_i32 = arith.constant 0 : i32
    %c0_i32_0 = arith.constant 0 : i32
    %c0_i32_1 = arith.constant 0 : i32
    return %c0_i32, %c0_i32_0 : i32, i32
  }
  func.func @transform_5(%arg0: i32) -> (i32, i32) {
    %c0_i32 = arith.constant 0 : i32
    %c0_i32_0 = arith.constant 0 : i32
    return %arg0, %c0_i32 : i32, i32
  }
}

module attributes {stable_mosaic.version = 11 : i64} {
  func.func @_convnet_kernel(%arg0: i32, %arg1: memref<98x64xbf16, #tpu.memory_space<vmem>>, %arg2: memref<64x1024xbf16, #tpu.memory_space<vmem>>, %arg3: memref<1x512xf32, #tpu.memory_space<vmem>>, %arg4: memref<9x256x256xbf16, #tpu.memory_space<vmem>>, %arg5: memref<1x256xf32, #tpu.memory_space<vmem>>, %arg6: memref<98x64xbf16, #tpu.memory_space<vmem>>, %arg7: memref<130x256xbf16, #tpu.memory_space<vmem>>) attributes {dimension_semantics = [#tpu.dimension_semantics<parallel>], iteration_bounds = array<i64: 1>, scalar_prefetch = 0 : i64, scratch_operands = 1 : i64, tpu.core_type = #tpu.core_type<tc>, window_params = [{transform_indices = @transform_0, window_bounds = array<i64: 98, 64>}, {pipeline_mode = #tpu.pipeline_mode<synchronous>, transform_indices = @transform_1, window_bounds = array<i64: 64, 1024>}, {pipeline_mode = #tpu.pipeline_mode<synchronous>, transform_indices = @transform_2, window_bounds = array<i64: 1, 512>}, {pipeline_mode = #tpu.pipeline_mode<synchronous>, transform_indices = @transform_3, window_bounds = array<i64: 9, 256, 256>}, {pipeline_mode = #tpu.pipeline_mode<synchronous>, transform_indices = @transform_4, window_bounds = array<i64: 1, 256>}, {transform_indices = @transform_5, window_bounds = array<i64: 98, 64>}]} {
    %c0_i32 = arith.constant 0 : i32
    %0 = arith.cmpi eq, %arg0, %c0_i32 : i32
    %1 = arith.extui %0 : i1 to i32
    %c0_i32_0 = arith.constant 0 : i32
    %2 = arith.cmpi ne, %1, %c0_i32_0 : i32
    scf.if %2 {
      %cst_80 = arith.constant 0.000000e+00 : bf16
      %181 = vector.broadcast %cst_80 : bf16 to vector<16x256xbf16>
      %c0_81 = arith.constant 0 : index
      %c0_82 = arith.constant 0 : index
      %182 = vector.load %arg7[%c0_81, %c0_82] : memref<130x256xbf16, #tpu.memory_space<vmem>>, vector<16x256xbf16>
      tpu.vector_store %arg7[%c0_81, %c0_82], %181 {strides = array<i32>} : memref<130x256xbf16, #tpu.memory_space<vmem>>, vector<16x256xbf16>,
      %cst_83 = arith.constant 0.000000e+00 : bf16
      %183 = vector.broadcast %cst_83 : bf16 to vector<16x256xbf16>
      %c114 = arith.constant 114 : index
      %c0_84 = arith.constant 0 : index
      %184 = vector.load %arg7[%c114, %c0_84] : memref<130x256xbf16, #tpu.memory_space<vmem>>, vector<16x256xbf16>
      tpu.vector_store %arg7[%c114, %c0_84], %183 {strides = array<i32>} : memref<130x256xbf16, #tpu.memory_space<vmem>>, vector<16x256xbf16>,
    } else {
    }
    %c0 = arith.constant 0 : index
    %c0_1 = arith.constant 0 : index
    %3 = vector.load %arg1[%c0, %c0_1] : memref<98x64xbf16, #tpu.memory_space<vmem>>, vector<98x64xbf16>
    %c0_2 = arith.constant 0 : index
    %c0_3 = arith.constant 0 : index
    %4 = vector.load %arg2[%c0_2, %c0_3] : memref<64x1024xbf16, #tpu.memory_space<vmem>>, vector<64x512xbf16>
    %cst = arith.constant dense<0.000000e+00> : vector<98x512xf32>
    %5 = tpu.matmul %3, %4, %cst {dimension_numbers = #tpu.dot_dimension_numbers<[1], [0], [0], [1], [0, 0, 1, 1], [], []>} : vector<98x64xbf16>, vector<64x512xbf16>, vector<98x512xf32> -> vector<98x512xf32>
    %c0_4 = arith.constant 0 : index
    %c0_5 = arith.constant 0 : index
    %6 = vector.load %arg3[%c0_4, %c0_5] : memref<1x512xf32, #tpu.memory_space<vmem>>, vector<1x512xf32>
    %7 = vector.broadcast %6 : vector<1x512xf32> to vector<98x512xf32>
    %8 = arith.addf %5, %7 : vector<98x512xf32>
    %cst_6 = arith.constant 0.000000e+00 : f32
    %9 = vector.broadcast %cst_6 : f32 to vector<98x512xf32>
    %10 = arith.maximumf %8, %9 : vector<98x512xf32>
    %11 = vector.extract_strided_slice %10 {offsets = [0, 0], sizes = [98, 128], strides = [1, 1]} : vector<98x512xf32> to vector<98x128xf32>
    %12 = vector.extract_strided_slice %10 {offsets = [0, 128], sizes = [98, 128], strides = [1, 1]} : vector<98x512xf32> to vector<98x128xf32>
    %13 = arith.maximumf %11, %12 : vector<98x128xf32>
    %14 = vector.extract_strided_slice %10 {offsets = [0, 256], sizes = [98, 128], strides = [1, 1]} : vector<98x512xf32> to vector<98x128xf32>
    %15 = vector.extract_strided_slice %10 {offsets = [0, 384], sizes = [98, 128], strides = [1, 1]} : vector<98x512xf32> to vector<98x128xf32>
    %16 = arith.maximumf %14, %15 : vector<98x128xf32>
    %17 = arith.maximumf %13, %16 : vector<98x128xf32>
    %18 = arith.truncf %17 : vector<98x128xf32> to vector<98x128xbf16>
    %c16 = arith.constant 16 : index
    %c0_7 = arith.constant 0 : index
    %19 = vector.load %arg7[%c16, %c0_7] : memref<130x256xbf16, #tpu.memory_space<vmem>>, vector<98x128xbf16>
    tpu.vector_store %arg7[%c16, %c0_7], %18 {strides = array<i32>} : memref<130x256xbf16, #tpu.memory_space<vmem>>, vector<98x128xbf16>,
    %c0_8 = arith.constant 0 : index
    %c0_9 = arith.constant 0 : index
    %20 = vector.load %arg1[%c0_8, %c0_9] : memref<98x64xbf16, #tpu.memory_space<vmem>>, vector<98x64xbf16>
    %c0_10 = arith.constant 0 : index
    %c512 = arith.constant 512 : index
    %21 = vector.load %arg2[%c0_10, %c512] : memref<64x1024xbf16, #tpu.memory_space<vmem>>, vector<64x512xbf16>
    %cst_11 = arith.constant dense<0.000000e+00> : vector<98x512xf32>
    %22 = tpu.matmul %20, %21, %cst_11 {dimension_numbers = #tpu.dot_dimension_numbers<[1], [0], [0], [1], [0, 0, 1, 1], [], []>} : vector<98x64xbf16>, vector<64x512xbf16>, vector<98x512xf32> -> vector<98x512xf32>
    %c0_12 = arith.constant 0 : index
    %c0_13 = arith.constant 0 : index
    %23 = vector.load %arg3[%c0_12, %c0_13] : memref<1x512xf32, #tpu.memory_space<vmem>>, vector<1x512xf32>
    %24 = vector.broadcast %23 : vector<1x512xf32> to vector<98x512xf32>
    %25 = arith.addf %22, %24 : vector<98x512xf32>
    %cst_14 = arith.constant 0.000000e+00 : f32
    %26 = vector.broadcast %cst_14 : f32 to vector<98x512xf32>
    %27 = arith.maximumf %25, %26 : vector<98x512xf32>
    %28 = vector.extract_strided_slice %27 {offsets = [0, 0], sizes = [98, 128], strides = [1, 1]} : vector<98x512xf32> to vector<98x128xf32>
    %29 = vector.extract_strided_slice %27 {offsets = [0, 128], sizes = [98, 128], strides = [1, 1]} : vector<98x512xf32> to vector<98x128xf32>
    %30 = arith.maximumf %28, %29 : vector<98x128xf32>
    %31 = vector.extract_strided_slice %27 {offsets = [0, 256], sizes = [98, 128], strides = [1, 1]} : vector<98x512xf32> to vector<98x128xf32>
    %32 = vector.extract_strided_slice %27 {offsets = [0, 384], sizes = [98, 128], strides = [1, 1]} : vector<98x512xf32> to vector<98x128xf32>
    %33 = arith.maximumf %31, %32 : vector<98x128xf32>
    %34 = arith.maximumf %30, %33 : vector<98x128xf32>
    %35 = arith.truncf %34 : vector<98x128xf32> to vector<98x128xbf16>
    %c16_15 = arith.constant 16 : index
    %c128 = arith.constant 128 : index
    %36 = vector.load %arg7[%c16_15, %c128] : memref<130x256xbf16, #tpu.memory_space<vmem>>, vector<98x128xbf16>
    tpu.vector_store %arg7[%c16_15, %c128], %35 {strides = array<i32>} : memref<130x256xbf16, #tpu.memory_space<vmem>>, vector<98x128xbf16>,
    %37 = tpu.iota {dimensions = array<i32: 0>} : vector<98x1xi32>
    %c49_i32 = arith.constant 49 : i32
    %c0_i32_16 = arith.constant 0 : i32
    %38 = arith.cmpi eq, %c49_i32, %c0_i32_16 : i32
    %c1_i32 = arith.constant 1 : i32
    %39 = arith.select %38, %c1_i32, %c49_i32 : i32
    %40 = vector.broadcast %39 : i32 to vector<98x1xi32>
    %41 = arith.remsi %37, %40 : vector<98x1xi32>
    %c0_i32_17 = arith.constant 0 : i32
    %42 = vector.broadcast %c0_i32_17 : i32 to vector<98x1xi32>
    %43 = arith.cmpi ne, %41, %42 : vector<98x1xi32>
    %c0_i32_18 = arith.constant 0 : i32
    %44 = vector.broadcast %c0_i32_18 : i32 to vector<98x1xi32>
    %45 = arith.cmpi slt, %41, %44 : vector<98x1xi32>
    %c0_i32_19 = arith.constant 0 : i32
    %46 = arith.cmpi slt, %39, %c0_i32_19 : i32
    %47 = vector.broadcast %46 : i1 to vector<98x1xi1>
    %48 = vector.broadcast %47 : vector<98x1xi1> to vector<98x1xi1>
    %49 = arith.xori %45, %48 : vector<98x1xi1>
    %50 = arith.andi %49, %43 : vector<98x1xi1>
    %51 = vector.broadcast %39 : i32 to vector<98x1xi32>
    %52 = arith.addi %41, %51 : vector<98x1xi32>
    %53 = arith.select %50, %52, %41 : vector<98x1xi1>, vector<98x1xi32>
    %c7_i32 = arith.constant 7 : i32
    %c0_i32_20 = arith.constant 0 : i32
    %54 = arith.cmpi eq, %c7_i32, %c0_i32_20 : i32
    %c1_i32_21 = arith.constant 1 : i32
    %55 = arith.select %54, %c1_i32_21, %c7_i32 : i32
    %56 = vector.broadcast %55 : i32 to vector<98x1xi32>
    %57 = arith.remsi %53, %56 : vector<98x1xi32>
    %c0_i32_22 = arith.constant 0 : i32
    %58 = vector.broadcast %c0_i32_22 : i32 to vector<98x1xi32>
    %59 = arith.cmpi ne, %57, %58 : vector<98x1xi32>
    %c0_i32_23 = arith.constant 0 : i32
    %60 = vector.broadcast %c0_i32_23 : i32 to vector<98x1xi32>
    %61 = arith.cmpi slt, %57, %60 : vector<98x1xi32>
    %c0_i32_24 = arith.constant 0 : i32
    %62 = arith.cmpi slt, %55, %c0_i32_24 : i32
    %63 = vector.broadcast %62 : i1 to vector<98x1xi1>
    %64 = vector.broadcast %63 : vector<98x1xi1> to vector<98x1xi1>
    %65 = arith.xori %61, %64 : vector<98x1xi1>
    %66 = arith.andi %65, %59 : vector<98x1xi1>
    %67 = vector.broadcast %55 : i32 to vector<98x1xi32>
    %68 = arith.addi %57, %67 : vector<98x1xi32>
    %69 = arith.select %66, %68, %57 : vector<98x1xi1>, vector<98x1xi32>
    %c7_i32_25 = arith.constant 7 : i32
    %70 = vector.broadcast %c7_i32_25 : i32 to vector<98x1xi32>
    %71 = arith.cmpi sge, %53, %70 : vector<98x1xi32>
    %c42_i32 = arith.constant 42 : i32
    %72 = vector.broadcast %c42_i32 : i32 to vector<98x1xi32>
    %73 = arith.cmpi slt, %53, %72 : vector<98x1xi32>
    %c0_i32_26 = arith.constant 0 : i32
    %74 = vector.broadcast %c0_i32_26 : i32 to vector<98x1xi32>
    %75 = arith.cmpi sgt, %69, %74 : vector<98x1xi32>
    %c6_i32 = arith.constant 6 : i32
    %76 = vector.broadcast %c6_i32 : i32 to vector<98x1xi32>
    %77 = arith.cmpi slt, %69, %76 : vector<98x1xi32>
    %cst_27 = arith.constant 0.000000e+00 : f32
    %78 = vector.broadcast %cst_27 : f32 to vector<98x256xf32>
    %c8 = arith.constant 8 : index
    %c0_28 = arith.constant 0 : index
    %79 = vector.load %arg7[%c8, %c0_28] : memref<130x256xbf16, #tpu.memory_space<vmem>>, vector<98x256xbf16>
    %80 = arith.andi %71, %75 : vector<98x1xi1>
    %cst_29 = arith.constant 0.000000e+00 : f32
    %81 = arith.truncf %cst_29 : f32 to bf16
    %82 = vector.shape_cast %80 : vector<98x1xi1> to vector<98x1xi1>
    %83 = vector.broadcast %82 : vector<98x1xi1> to vector<98x256xi1>
    %84 = vector.broadcast %81 : bf16 to vector<98x256xbf16>
    %85 = arith.select %83, %79, %84 : vector<98x256xi1>, vector<98x256xbf16>
    %c0_30 = arith.constant 0 : index
    %c0_31 = arith.constant 0 : index
    %c0_32 = arith.constant 0 : index
    %86 = vector.load %arg4[%c0_30, %c0_31, %c0_32] : memref<9x256x256xbf16, #tpu.memory_space<vmem>>, vector<1x256x256xbf16>
    %87 = vector.shape_cast %86 : vector<1x256x256xbf16> to vector<256x256xbf16>
    %cst_33 = arith.constant dense<0.000000e+00> : vector<98x256xf32>
    %88 = tpu.matmul %85, %87, %cst_33 {dimension_numbers = #tpu.dot_dimension_numbers<[1], [0], [0], [1], [0, 0, 1, 1], [], []>} : vector<98x256xbf16>, vector<256x256xbf16>, vector<98x256xf32> -> vector<98x256xf32>
    %89 = arith.addf %78, %88 : vector<98x256xf32>
    %c9 = arith.constant 9 : index
    %c0_34 = arith.constant 0 : index
    %90 = vector.load %arg7[%c9, %c0_34] : memref<130x256xbf16, #tpu.memory_space<vmem>>, vector<98x256xbf16>
    %cst_35 = arith.constant 0.000000e+00 : f32
    %91 = arith.truncf %cst_35 : f32 to bf16
    %92 = vector.shape_cast %71 : vector<98x1xi1> to vector<98x1xi1>
    %93 = vector.broadcast %92 : vector<98x1xi1> to vector<98x256xi1>
    %94 = vector.broadcast %91 : bf16 to vector<98x256xbf16>
    %95 = arith.select %93, %90, %94 : vector<98x256xi1>, vector<98x256xbf16>
    %c1 = arith.constant 1 : index
    %c0_36 = arith.constant 0 : index
    %c0_37 = arith.constant 0 : index
    %96 = vector.load %arg4[%c1, %c0_36, %c0_37] : memref<9x256x256xbf16, #tpu.memory_space<vmem>>, vector<1x256x256xbf16>
    %97 = vector.shape_cast %96 : vector<1x256x256xbf16> to vector<256x256xbf16>
    %cst_38 = arith.constant dense<0.000000e+00> : vector<98x256xf32>
    %98 = tpu.matmul %95, %97, %cst_38 {dimension_numbers = #tpu.dot_dimension_numbers<[1], [0], [0], [1], [0, 0, 1, 1], [], []>} : vector<98x256xbf16>, vector<256x256xbf16>, vector<98x256xf32> -> vector<98x256xf32>
    %99 = arith.addf %89, %98 : vector<98x256xf32>
    %c10 = arith.constant 10 : index
    %c0_39 = arith.constant 0 : index
    %100 = vector.load %arg7[%c10, %c0_39] : memref<130x256xbf16, #tpu.memory_space<vmem>>, vector<98x256xbf16>
    %101 = arith.andi %71, %77 : vector<98x1xi1>
    %cst_40 = arith.constant 0.000000e+00 : f32
    %102 = arith.truncf %cst_40 : f32 to bf16
    %103 = vector.shape_cast %101 : vector<98x1xi1> to vector<98x1xi1>
    %104 = vector.broadcast %103 : vector<98x1xi1> to vector<98x256xi1>
    %105 = vector.broadcast %102 : bf16 to vector<98x256xbf16>
    %106 = arith.select %104, %100, %105 : vector<98x256xi1>, vector<98x256xbf16>
    %c2 = arith.constant 2 : index
    %c0_41 = arith.constant 0 : index
    %c0_42 = arith.constant 0 : index
    %107 = vector.load %arg4[%c2, %c0_41, %c0_42] : memref<9x256x256xbf16, #tpu.memory_space<vmem>>, vector<1x256x256xbf16>
    %108 = vector.shape_cast %107 : vector<1x256x256xbf16> to vector<256x256xbf16>
    %cst_43 = arith.constant dense<0.000000e+00> : vector<98x256xf32>
    %109 = tpu.matmul %106, %108, %cst_43 {dimension_numbers = #tpu.dot_dimension_numbers<[1], [0], [0], [1], [0, 0, 1, 1], [], []>} : vector<98x256xbf16>, vector<256x256xbf16>, vector<98x256xf32> -> vector<98x256xf32>
    %110 = arith.addf %99, %109 : vector<98x256xf32>
    %c15 = arith.constant 15 : index
    %c0_44 = arith.constant 0 : index
    %111 = vector.load %arg7[%c15, %c0_44] : memref<130x256xbf16, #tpu.memory_space<vmem>>, vector<98x256xbf16>
    %cst_45 = arith.constant 0.000000e+00 : f32
    %112 = arith.truncf %cst_45 : f32 to bf16
    %113 = vector.shape_cast %75 : vector<98x1xi1> to vector<98x1xi1>
    %114 = vector.broadcast %113 : vector<98x1xi1> to vector<98x256xi1>
    %115 = vector.broadcast %112 : bf16 to vector<98x256xbf16>
    %116 = arith.select %114, %111, %115 : vector<98x256xi1>, vector<98x256xbf16>
    %c3 = arith.constant 3 : index
    %c0_46 = arith.constant 0 : index
    %c0_47 = arith.constant 0 : index
    %117 = vector.load %arg4[%c3, %c0_46, %c0_47] : memref<9x256x256xbf16, #tpu.memory_space<vmem>>, vector<1x256x256xbf16>
    %118 = vector.shape_cast %117 : vector<1x256x256xbf16> to vector<256x256xbf16>
    %cst_48 = arith.constant dense<0.000000e+00> : vector<98x256xf32>
    %119 = tpu.matmul %116, %118, %cst_48 {dimension_numbers = #tpu.dot_dimension_numbers<[1], [0], [0], [1], [0, 0, 1, 1], [], []>} : vector<98x256xbf16>, vector<256x256xbf16>, vector<98x256xf32> -> vector<98x256xf32>
    %120 = arith.addf %110, %119 : vector<98x256xf32>
    %c16_49 = arith.constant 16 : index
    %c0_50 = arith.constant 0 : index
    %121 = vector.load %arg7[%c16_49, %c0_50] : memref<130x256xbf16, #tpu.memory_space<vmem>>, vector<98x256xbf16>
    %c4 = arith.constant 4 : index
    %c0_51 = arith.constant 0 : index
    %c0_52 = arith.constant 0 : index
    %122 = vector.load %arg4[%c4, %c0_51, %c0_52] : memref<9x256x256xbf16, #tpu.memory_space<vmem>>, vector<1x256x256xbf16>
    %123 = vector.shape_cast %122 : vector<1x256x256xbf16> to vector<256x256xbf16>
    %cst_53 = arith.constant dense<0.000000e+00> : vector<98x256xf32>
    %124 = tpu.matmul %121, %123, %cst_53 {dimension_numbers = #tpu.dot_dimension_numbers<[1], [0], [0], [1], [0, 0, 1, 1], [], []>} : vector<98x256xbf16>, vector<256x256xbf16>, vector<98x256xf32> -> vector<98x256xf32>
    %125 = arith.addf %120, %124 : vector<98x256xf32>
    %c17 = arith.constant 17 : index
    %c0_54 = arith.constant 0 : index
    %126 = vector.load %arg7[%c17, %c0_54] : memref<130x256xbf16, #tpu.memory_space<vmem>>, vector<98x256xbf16>
    %cst_55 = arith.constant 0.000000e+00 : f32
    %127 = arith.truncf %cst_55 : f32 to bf16
    %128 = vector.shape_cast %77 : vector<98x1xi1> to vector<98x1xi1>
    %129 = vector.broadcast %128 : vector<98x1xi1> to vector<98x256xi1>
    %130 = vector.broadcast %127 : bf16 to vector<98x256xbf16>
    %131 = arith.select %129, %126, %130 : vector<98x256xi1>, vector<98x256xbf16>
    %c5 = arith.constant 5 : index
    %c0_56 = arith.constant 0 : index
    %c0_57 = arith.constant 0 : index
    %132 = vector.load %arg4[%c5, %c0_56, %c0_57] : memref<9x256x256xbf16, #tpu.memory_space<vmem>>, vector<1x256x256xbf16>
    %133 = vector.shape_cast %132 : vector<1x256x256xbf16> to vector<256x256xbf16>
    %cst_58 = arith.constant dense<0.000000e+00> : vector<98x256xf32>
    %134 = tpu.matmul %131, %133, %cst_58 {dimension_numbers = #tpu.dot_dimension_numbers<[1], [0], [0], [1], [0, 0, 1, 1], [], []>} : vector<98x256xbf16>, vector<256x256xbf16>, vector<98x256xf32> -> vector<98x256xf32>
    %135 = arith.addf %125, %134 : vector<98x256xf32>
    %c22 = arith.constant 22 : index
    %c0_59 = arith.constant 0 : index
    %136 = vector.load %arg7[%c22, %c0_59] : memref<130x256xbf16, #tpu.memory_space<vmem>>, vector<98x256xbf16>
    %137 = arith.andi %73, %75 : vector<98x1xi1>
    %cst_60 = arith.constant 0.000000e+00 : f32
    %138 = arith.truncf %cst_60 : f32 to bf16
    %139 = vector.shape_cast %137 : vector<98x1xi1> to vector<98x1xi1>
    %140 = vector.broadcast %139 : vector<98x1xi1> to vector<98x256xi1>
    %141 = vector.broadcast %138 : bf16 to vector<98x256xbf16>
    %142 = arith.select %140, %136, %141 : vector<98x256xi1>, vector<98x256xbf16>
    %c6 = arith.constant 6 : index
    %c0_61 = arith.constant 0 : index
    %c0_62 = arith.constant 0 : index
    %143 = vector.load %arg4[%c6, %c0_61, %c0_62] : memref<9x256x256xbf16, #tpu.memory_space<vmem>>, vector<1x256x256xbf16>
    %144 = vector.shape_cast %143 : vector<1x256x256xbf16> to vector<256x256xbf16>
    %cst_63 = arith.constant dense<0.000000e+00> : vector<98x256xf32>
    %145 = tpu.matmul %142, %144, %cst_63 {dimension_numbers = #tpu.dot_dimension_numbers<[1], [0], [0], [1], [0, 0, 1, 1], [], []>} : vector<98x256xbf16>, vector<256x256xbf16>, vector<98x256xf32> -> vector<98x256xf32>
    %146 = arith.addf %135, %145 : vector<98x256xf32>
    %c23 = arith.constant 23 : index
    %c0_64 = arith.constant 0 : index
    %147 = vector.load %arg7[%c23, %c0_64] : memref<130x256xbf16, #tpu.memory_space<vmem>>, vector<98x256xbf16>
    %cst_65 = arith.constant 0.000000e+00 : f32
    %148 = arith.truncf %cst_65 : f32 to bf16
    %149 = vector.shape_cast %73 : vector<98x1xi1> to vector<98x1xi1>
    %150 = vector.broadcast %149 : vector<98x1xi1> to vector<98x256xi1>
    %151 = vector.broadcast %148 : bf16 to vector<98x256xbf16>
    %152 = arith.select %150, %147, %151 : vector<98x256xi1>, vector<98x256xbf16>
    %c7 = arith.constant 7 : index
    %c0_66 = arith.constant 0 : index
    %c0_67 = arith.constant 0 : index
    %153 = vector.load %arg4[%c7, %c0_66, %c0_67] : memref<9x256x256xbf16, #tpu.memory_space<vmem>>, vector<1x256x256xbf16>
    %154 = vector.shape_cast %153 : vector<1x256x256xbf16> to vector<256x256xbf16>
    %cst_68 = arith.constant dense<0.000000e+00> : vector<98x256xf32>
    %155 = tpu.matmul %152, %154, %cst_68 {dimension_numbers = #tpu.dot_dimension_numbers<[1], [0], [0], [1], [0, 0, 1, 1], [], []>} : vector<98x256xbf16>, vector<256x256xbf16>, vector<98x256xf32> -> vector<98x256xf32>
    %156 = arith.addf %146, %155 : vector<98x256xf32>
    %c24 = arith.constant 24 : index
    %c0_69 = arith.constant 0 : index
    %157 = vector.load %arg7[%c24, %c0_69] : memref<130x256xbf16, #tpu.memory_space<vmem>>, vector<98x256xbf16>
    %158 = arith.andi %73, %77 : vector<98x1xi1>
    %cst_70 = arith.constant 0.000000e+00 : f32
    %159 = arith.truncf %cst_70 : f32 to bf16
    %160 = vector.shape_cast %158 : vector<98x1xi1> to vector<98x1xi1>
    %161 = vector.broadcast %160 : vector<98x1xi1> to vector<98x256xi1>
    %162 = vector.broadcast %159 : bf16 to vector<98x256xbf16>
    %163 = arith.select %161, %157, %162 : vector<98x256xi1>, vector<98x256xbf16>
    %c8_71 = arith.constant 8 : index
    %c0_72 = arith.constant 0 : index
    %c0_73 = arith.constant 0 : index
    %164 = vector.load %arg4[%c8_71, %c0_72, %c0_73] : memref<9x256x256xbf16, #tpu.memory_space<vmem>>, vector<1x256x256xbf16>
    %165 = vector.shape_cast %164 : vector<1x256x256xbf16> to vector<256x256xbf16>
    %cst_74 = arith.constant dense<0.000000e+00> : vector<98x256xf32>
    %166 = tpu.matmul %163, %165, %cst_74 {dimension_numbers = #tpu.dot_dimension_numbers<[1], [0], [0], [1], [0, 0, 1, 1], [], []>} : vector<98x256xbf16>, vector<256x256xbf16>, vector<98x256xf32> -> vector<98x256xf32>
    %167 = arith.addf %156, %166 : vector<98x256xf32>
    %c0_75 = arith.constant 0 : index
    %c0_76 = arith.constant 0 : index
    %168 = vector.load %arg5[%c0_75, %c0_76] : memref<1x256xf32, #tpu.memory_space<vmem>>, vector<1x256xf32>
    %169 = vector.broadcast %168 : vector<1x256xf32> to vector<98x256xf32>
    %170 = arith.addf %167, %169 : vector<98x256xf32>
    %cst_77 = arith.constant 0.000000e+00 : f32
    %171 = vector.broadcast %cst_77 : f32 to vector<98x256xf32>
    %172 = arith.maximumf %170, %171 : vector<98x256xf32>
    %173 = vector.extract_strided_slice %172 {offsets = [0, 0], sizes = [98, 128], strides = [1, 1]} : vector<98x256xf32> to vector<98x128xf32>
    %174 = vector.extract_strided_slice %172 {offsets = [0, 128], sizes = [98, 128], strides = [1, 1]} : vector<98x256xf32> to vector<98x128xf32>
    %175 = arith.maximumf %173, %174 : vector<98x128xf32>
    %176 = vector.extract_strided_slice %175 {offsets = [0, 0], sizes = [98, 64], strides = [1, 1]} : vector<98x128xf32> to vector<98x64xf32>
    %177 = vector.extract_strided_slice %175 {offsets = [0, 64], sizes = [98, 64], strides = [1, 1]} : vector<98x128xf32> to vector<98x64xf32>
    %178 = arith.maximumf %176, %177 : vector<98x64xf32>
    %179 = arith.truncf %178 : vector<98x64xf32> to vector<98x64xbf16>
    %c0_78 = arith.constant 0 : index
    %c0_79 = arith.constant 0 : index
    %180 = vector.load %arg6[%c0_78, %c0_79] : memref<98x64xbf16, #tpu.memory_space<vmem>>, vector<98x64xbf16>
    tpu.vector_store %arg6[%c0_78, %c0_79], %179 {strides = array<i32>} : memref<98x64xbf16, #tpu.memory_space<vmem>>, vector<98x64xbf16>,
    return
  }
  func.func @transform_0(%arg0: i32) -> (i32, i32) {
    %c0_i32 = arith.constant 0 : i32
    %c0_i32_0 = arith.constant 0 : i32
    return %arg0, %c0_i32 : i32, i32
  }
  func.func @transform_1(%arg0: i32) -> (i32, i32) {
    %c0_i32 = arith.constant 0 : i32
    %c0_i32_0 = arith.constant 0 : i32
    %c0_i32_1 = arith.constant 0 : i32
    return %c0_i32, %c0_i32_0 : i32, i32
  }
  func.func @transform_2(%arg0: i32) -> (i32, i32) {
    %c0_i32 = arith.constant 0 : i32
    %c0_i32_0 = arith.constant 0 : i32
    %c0_i32_1 = arith.constant 0 : i32
    return %c0_i32, %c0_i32_0 : i32, i32
  }
  func.func @transform_3(%arg0: i32) -> (i32, i32, i32) {
    %c0_i32 = arith.constant 0 : i32
    %c0_i32_0 = arith.constant 0 : i32
    %c0_i32_1 = arith.constant 0 : i32
    %c0_i32_2 = arith.constant 0 : i32
    return %c0_i32, %c0_i32_0, %c0_i32_1 : i32, i32, i32
  }
  func.func @transform_4(%arg0: i32) -> (i32, i32) {
    %c0_i32 = arith.constant 0 : i32
    %c0_i32_0 = arith.constant 0 : i32
    %c0_i32_1 = arith.constant 0 : i32
    return %c0_i32, %c0_i32_0 : i32, i32
  }
  func.func @transform_5(%arg0: i32) -> (i32, i32) {
    %c0_i32 = arith.constant 0 : i32
    %c0_i32_0 = arith.constant 0 : i32
    return %arg0, %c0_i32 : i32, i32
  }
}

</mosaic_0001>

<bundles_post_ra>
// kernel: mnist_forward.3
= control target key start
LH: loop header
LB: loop body
LE: loop exit
PB: predicated region body
PF: predicated region fallthrough
CT: control target
= control target key end

     0   :  { %v420_v35 = vlaneseq  ;;  %v4392_v36 = vmov 1966171168   ;;  %s5743_s0 = inlined_call_operand.vmem [shape: bf16[2,3136], index: 0, kind: input, shape index: {}]   ;;  %s5744_s1 = inlined_call_operand.vmem [shape: bf16[3136,256], index: 1, kind: input, shape index: {}]   ;;  %s5745_s2 = inlined_call_operand.vmem [shape: f32[1,256], index: 2, kind: input, shape index: {}]   ;;  %s5746_s3 = inlined_call_operand.vmem [shape: bf16[256,128], index: 3, kind: input, shape index: {}]   ;;  %s5747_s4 = inlined_call_operand.vmem [shape: f32[1,128], index: 4, kind: input, shape index: {}]   ;;  %s5748_s5 = inlined_call_operand.hbm [shape: f32[2,128], index: 5, kind: output, shape index: {}]  }
   0x1   :  { %v3759_v0 = vld [vmem:[%s5744_s1 + $0x74] ss:$8 sps:$4 sm:$0xff]   ;;  %v3761_v1 = vld [vmem:[%s5744_s1 + $0x70] ss:$8 sps:$4 sm:$0xff]   ;;  %v3765_v4 = vld [vmem:[%s5744_s1 + $0x64] ss:$8 sps:$4 sm:$0xff]   ;;  %v436_v37 = vunpack.c.l.s4 %v4392_v36 }
   0x2   :  { %2583 = vmatprep.subr.bf16.mxu0 %v3759_v0  ;;  %v3762_v2 = vld [vmem:[%s5744_s1 + $0x174] ss:$8 sps:$4 sm:$0xff]   ;;  %v3764_v3 = vld [vmem:[%s5744_s1 + $0x170] ss:$8 sps:$4 sm:$0xff]   ;;  %v3767_v5 = vld [vmem:[%s5744_s1 + $0x60] ss:$8 sps:$4 sm:$0xff]  }
   0x3   :  { %2584 = vmatpush1.bf16.msra.mxu0 %v3761_v1  ;;  %2624 = vmatprep.subr.bf16.mxu1 %v3762_v2  ;;  %v3768_v6 = vld [vmem:[%s5744_s1 + $0x164] ss:$8 sps:$4 sm:$0xff]   ;;  %v3770_v7 = vld [vmem:[%s5744_s1 + $0x160] ss:$8 sps:$4 sm:$0xff]   ;;  %v3771_v8 = vld [vmem:[%s5744_s1 + $0x54] ss:$8 sps:$4 sm:$0xff]   ;;  %v437_v43 = vunpack.c.0.s8 %v436_v37 }
   0x4   :  { %2625 = vmatpush1.bf16.msra.mxu1 %v3764_v3  ;;  %2585 = vmatprep.subr.bf16.mxu0 %v3765_v4  ;;  %v3773_v9 = vld [vmem:[%s5744_s1 + $0x50] ss:$8 sps:$4 sm:$0xff]   ;;  %v3774_v10 = vld [vmem:[%s5744_s1 + $0x154] ss:$8 sps:$4 sm:$0xff]   ;;  %v3777_v11 = vld [vmem:[%s5744_s1 + $0x44] ss:$8 sps:$4 sm:$0xff]  }
   0x5   :  { %2626 = vmatprep.subr.bf16.mxu1 %v3768_v6  ;;  %v3776_v12 = vld [vmem:[%s5744_s1 + $0x150] ss:$8 sps:$4 sm:$0xff]   ;;  %v3780_v13 = vld [vmem:[%s5744_s1 + $0x144] ss:$8 sps:$4 sm:$0xff]   ;;  %v3779_v14 = vld [vmem:[%s5744_s1 + $0x40] ss:$8 sps:$4 sm:$0xff]  }
   0x6   :  { %v3783_v15 = vld [vmem:[%s5744_s1 + $0x34] ss:$8 sps:$4 sm:$0xff]   ;;  %v3782_v16 = vld [vmem:[%s5744_s1 + $0x140] ss:$8 sps:$4 sm:$0xff]   ;;  %v3785_v18 = vld [vmem:[%s5744_s1 + $0x30] ss:$8 sps:$4 sm:$0xff]  }
   0x7   :  { %2586 = vmatpush1.bf16.msra.mxu0 %v3767_v5  ;;  %v3786_v17 = vld [vmem:[%s5744_s1 + $0x134] ss:$8 sps:$4 sm:$0xff]   ;;  %v3789_v19 = vld [vmem:[%s5744_s1 + $0x24] ss:$8 sps:$4 sm:$0xff]   ;;  %v3788_v20 = vld [vmem:[%s5744_s1 + $0x130] ss:$8 sps:$4 sm:$0xff]  }
   0x8   :  { %2587 = vmatprep.subr.bf16.mxu0 %v3771_v8  ;;  %2627 = vmatpush1.bf16.msra.mxu1 %v3770_v7  ;;  %v3792_v21 = vld [vmem:[%s5744_s1 + $0x124] ss:$8 sps:$4 sm:$0xff]   ;;  %v3791_v22 = vld [vmem:[%s5744_s1 + $0x20] ss:$8 sps:$4 sm:$0xff]   ;;  %v3795_v23 = vld [vmem:[%s5744_s1 + $0x14] ss:$8 sps:$4 sm:$0xff]  }
   0x9   :  { %2628 = vmatprep.subr.bf16.mxu1 %v3774_v10  ;;  %v3794_v24 = vld [vmem:[%s5744_s1 + $0x120] ss:$8 sps:$4 sm:$0xff]   ;;  %v3798_v25 = vld [vmem:[%s5744_s1 + $0x114] ss:$8 sps:$4 sm:$0xff]   ;;  %v3797_v26 = vld [vmem:[%s5744_s1 + $0x10] ss:$8 sps:$4 sm:$0xff]  }
   0xa   :  { %v3801_v27 = vld [vmem:[%s5744_s1 + $0x4] ss:$8 sps:$4 sm:$0xff]   ;;  %v3800_v28 = vld [vmem:[%s5744_s1 + $0x110] ss:$8 sps:$4 sm:$0xff]   ;;  %v3803_v30 = vld [vmem:[%s5744_s1] ss:$8 sps:$4 sm:$0xff]  }
   0xb   :  { %2588 = vmatpush1.bf16.msra.mxu0 %v3773_v9  ;;  %v3804_v29 = vld [vmem:[%s5744_s1 + $0x104] ss:$8 sps:$4 sm:$0xff]   ;;  %v3807_v31 = vld [vmem:[%s5744_s1 + $0xf4] ss:$8 sps:$4 sm:$0xff]   ;;  %v3806_v32 = vld [vmem:[%s5744_s1 + $0x100] ss:$8 sps:$4 sm:$0xff]  }
   0xc   :  { %2589 = vmatprep.subr.bf16.mxu0 %v3777_v11  ;;  %2629 = vmatpush1.bf16.msra.mxu1 %v3776_v12  ;;  %v3810_v33 = vld [vmem:[%s5744_s1 + $0x1f4] ss:$8 sps:$4 sm:$0xff]   ;;  %v3809_v34 = vld [vmem:[%s5744_s1 + $0xf0] ss:$8 sps:$4 sm:$0xff]   ;;  %v3813_v38 = vld [vmem:[%s5744_s1 + $0xe4] ss:$8 sps:$4 sm:$0xff]  }
   0xd   :  { %2630 = vmatprep.subr.bf16.mxu1 %v3780_v13  ;;  %v3812_v39 = vld [vmem:[%s5744_s1 + $0x1f0] ss:$8 sps:$4 sm:$0xff]   ;;  %v3816_v40 = vld [vmem:[%s5744_s1 + $0x1e4] ss:$8 sps:$4 sm:$0xff]   ;;  %v3815_v41 = vld [vmem:[%s5744_s1 + $0xe0] ss:$8 sps:$4 sm:$0xff]  }
   0xe   :  { %v4542_v42 = vshrl.u32 %v420_v35, 7  ;;  %v3819_v44 = vld [vmem:[%s5744_s1 + $0xd4] ss:$8 sps:$4 sm:$0xff]   ;;  %v3818_v45 = vld [vmem:[%s5744_s1 + $0x1e0] ss:$8 sps:$4 sm:$0xff]  }
   0xf   :  { %2590 = vmatpush1.bf16.msra.mxu0 %v3779_v14  ;;  %v3822_v46 = vld [vmem:[%s5744_s1 + $0x1d4] ss:$8 sps:$4 sm:$0xff]   ;;  %v3821_v47 = vld [vmem:[%s5744_s1 + $0xd0] ss:$8 sps:$4 sm:$0xff]   ;;  %v3825_v49 = vld [vmem:[%s5744_s1 + $0xc4] ss:$8 sps:$4 sm:$0xff]  }
  0x10   :  { %2591 = vmatprep.subr.bf16.mxu0 %v3783_v15  ;;  %2631 = vmatpush1.bf16.msra.mxu1 %v3782_v16  ;;  %v4557_v48 = vsub.s32 %v437_v43, %v4542_v42  ;;  %v3824_v50 = vld [vmem:[%s5744_s1 + $0x1d0] ss:$8 sps:$4 sm:$0xff]   ;;  %v3828_v51 = vld [vmem:[%s5744_s1 + $0x1c4] ss:$8 sps:$4 sm:$0xff]   ;;  %v3827_v53 = vld [vmem:[%s5744_s1 + $0xc0] ss:$8 sps:$4 sm:$0xff]  }
  0x11   :  { %2632 = vmatprep.subr.bf16.mxu1 %v3786_v17  ;;  %v22_v52 = vld [vmem:[%s5743_s0] sm:$0xff]  ;;  %v3831_v55 = vld [vmem:[%s5744_s1 + $0xb4] ss:$8 sps:$4 sm:$0xff]   ;;  %v3833_v59 = vld [vmem:[%s5744_s1 + $0xb0] ss:$8 sps:$4 sm:$0xff]  }
  0x12   :  { %v441_v54 = vrot.slane %v22_v52, %v4557_v48  ;;  %v3830_v56 = vld [vmem:[%s5744_s1 + $0x1c0] ss:$8 sps:$4 sm:$0xff]   ;;  %v3834_v58 = vld [vmem:[%s5744_s1 + $0x1b4] ss:$8 sps:$4 sm:$0xff]   ;;  %v3837_v61 = vld [vmem:[%s5744_s1 + $0xa4] ss:$8 sps:$4 sm:$0xff]   ;;  %v434_v63 = vcombine.high %v22_v52, %v22_v52 }
  0x13   :  { %2592 = vmatpush1.bf16.msra.mxu0 %v3785_v18  ;;  %v3836_v62 = vld [vmem:[%s5744_s1 + $0x1b0] ss:$8 sps:$4 sm:$0xff]   ;;  %v3840_v1 = vld [vmem:[%s5744_s1 + $0x1a4] ss:$8 sps:$4 sm:$0xff]   ;;  %v3839_v2 = vld [vmem:[%s5744_s1 + $0xa0] ss:$8 sps:$4 sm:$0xff]  }
  0x14   :  { %2593 = vmatprep.subr.bf16.mxu0 %v3789_v19  ;;  %2633 = vmatpush1.bf16.msra.mxu1 %v3788_v20  ;;  %v449_v57 = vcombine.high %v441_v54, %v441_v54  ;;  %v3843_v3 = vld [vmem:[%s5744_s1 + $0x94] ss:$8 sps:$4 sm:$0xff]   ;;  %v3842_v4 = vld [vmem:[%s5744_s1 + $0x1a0] ss:$8 sps:$4 sm:$0xff]   ;;  %v4607_v5 = vrot.slane %v434_v63, %v4557_v48  ;;  %v3845_v7 = vld [vmem:[%s5744_s1 + $0x90] ss:$8 sps:$4 sm:$0xff]   ;;  %v457_v13 = vrot.slane %v441_v54, %v4557_v48 }
  0x15   :  { %2634 = vmatprep.subr.bf16.mxu1 %v3792_v21  ;;  %v3846_v6 = vld [vmem:[%s5744_s1 + $0x194] ss:$8 sps:$4 sm:$0xff]   ;;  %v3849_v8 = vld [vmem:[%s5744_s1 + $0x84] ss:$8 sps:$4 sm:$0xff]   ;;  %v3848_v9 = vld [vmem:[%s5744_s1 + $0x190] ss:$8 sps:$4 sm:$0xff]  }
  0x16   :  { %v471_v60 = vrot.slane %v449_v57, %v4557_v48  ;;  %v450_v10 = vcombine.high %v4607_v5, %v4607_v5  ;;  %v3852_v11 = vld [vmem:[%s5744_s1 + $0x184] ss:$8 sps:$4 sm:$0xff]   ;;  %v3851_v12 = vld [vmem:[%s5744_s1 + $0x80] ss:$8 sps:$4 sm:$0xff]   ;;  %v3858_v14 = vld [vmem:[%s5744_s1 + $0x274] ss:$8 sps:$4 sm:$0xff]   ;;  %v479_v19 = vcombine.high %v457_v13, %v457_v13 }
  0x17   :  { %2594 = vmatpush1.bf16.msra.mxu0 %v3791_v22  ;;  %v3855_v15 = vld [vmem:[%s5744_s1 + $0x180] ss:$8 sps:$4 sm:$0xff]   ;;  %v3861_v17 = vld [vmem:[%s5744_s1 + $0x374] ss:$8 sps:$4 sm:$0xff]   ;;  %v3856_v18 = vld [vmem:[%s5744_s1 + $0x270] ss:$8 sps:$4 sm:$0xff]  }
  0x18   :  { %2595 = vmatprep.subr.bf16.mxu0 %v3795_v23  ;;  %2635 = vmatpush1.bf16.msra.mxu1 %v3794_v24  ;;  %v481_v0 = vcombine.high %v471_v60, %v471_v60  ;;  %v478_v16 = vrot.slane %v450_v10, %v4557_v48  ;;  %v3864_v20 = vld [vmem:[%s5744_s1 + $0x264] ss:$8 sps:$4 sm:$0xff]   ;;  %v3859_v21 = vld [vmem:[%s5744_s1 + $0x370] ss:$8 sps:$4 sm:$0xff]   ;;  %v3862_v24 = vld [vmem:[%s5744_s1 + $0x260] ss:$8 sps:$4 sm:$0xff]  }
  0x19   :  { %2636 = vmatprep.subr.bf16.mxu1 %v3798_v25  ;;  %2615 = vmatprep.mubr.bf16.mxu0 %v471_v60  ;;  %v3867_v23 = vld [vmem:[%s5744_s1 + $0x364] ss:$8 sps:$4 sm:$0xff]   ;;  %v3870_v25 = vld [vmem:[%s5744_s1 + $0x254] ss:$8 sps:$4 sm:$0xff]   ;;  %v3880_v36 = vld [vmem:[%s5744_s1 + $0x230] ss:$8 sps:$4 sm:$0xff]  }
  0x1a   :  { %2656 = vmatprep.mubr.bf16.mxu1 %v481_v0  ;;  %v482_v22 = vcombine.high %v478_v16, %v478_v16  ;;  %v3885_v35 = vld [vmem:[%s5744_s1 + $0x334] ss:$8 sps:$4 sm:$0xff]   ;;  %v3888_v37 = vld [vmem:[%s5744_s1 + $0x224] ss:$8 sps:$4 sm:$0xff]   ;;  %v3889_v43 = vld [vmem:[%s5744_s1 + $0x320] ss:$8 sps:$4 sm:$0xff]  }
  0x1b   :  { %2596 = vmatpush1.bf16.msra.mxu0 %v3797_v26  ;;  %v3865_v26 = vld [vmem:[%s5744_s1 + $0x360] ss:$8 sps:$4 sm:$0xff]   ;;  %v3904_v54 = vld [vmem:[%s5744_s1 + $0x2f0] ss:$8 sps:$4 sm:$0xff]   ;;  %v3915_v57 = vld [vmem:[%s5744_s1 + $0x3e4] ss:$8 sps:$4 sm:$0xff]  }
  0x1c   :  { %2597 = vmatprep.subr.bf16.mxu0 %v3801_v27  ;;  %2637 = vmatpush1.bf16.msra.mxu1 %v3800_v28  ;;  %v3873_v27 = vld [vmem:[%s5744_s1 + $0x354] ss:$8 sps:$4 sm:$0xff]   ;;  %v3868_v28 = vld [vmem:[%s5744_s1 + $0x250] ss:$8 sps:$4 sm:$0xff]   ;;  %v3901_v52 = vld [vmem:[%s5744_s1 + $0x300] ss:$8 sps:$4 sm:$0xff]  }
  0x1d   :  { %2638 = vmatprep.subr.bf16.mxu1 %v3804_v29  ;;  %v3876_v29 = vld [vmem:[%s5744_s1 + $0x244] ss:$8 sps:$4 sm:$0xff]   ;;  %v3913_v60 = vld [vmem:[%s5744_s1 + $0x3e0] ss:$8 sps:$4 sm:$0xff]   ;;  %v3919_v0 = vld [vmem:[%s5744_s1 + $0x3d0] ss:$8 sps:$4 sm:$0xff]  }
  0x1e   :  { %v3924_v63 = vld [vmem:[%s5744_s1 + $0x2c4] ss:$8 sps:$4 sm:$0xff]  }
  0x1f   :  { %2598 = vmatpush1.bf16.msra.mxu0 %v3803_v30  ;;  %v3871_v30 = vld [vmem:[%s5744_s1 + $0x350] ss:$8 sps:$4 sm:$0xff]   ;;  %v3939_v10 = vld [vmem:[%s5744_s1 + $0x3a4] ss:$8 sps:$4 sm:$0xff]  }
  0x20   :  { %2599 = vmatprep.subr.bf16.mxu0 %v3807_v31  ;;  %2639 = vmatpush1.bf16.msra.mxu1 %v3806_v32  ;;  %v3879_v31 = vld [vmem:[%s5744_s1 + $0x344] ss:$8 sps:$4 sm:$0xff]   ;;  %v3874_v32 = vld [vmem:[%s5744_s1 + $0x240] ss:$8 sps:$4 sm:$0xff]  }
  0x21   :  { %2640 = vmatprep.subr.bf16.mxu1 %v3810_v33  ;;  %v3882_v33 = vld [vmem:[%s5744_s1 + $0x234] ss:$8 sps:$4 sm:$0xff]  }
  0x23   :  { %2600 = vmatpush2.bf16.msra.mxu0 %v3809_v34  ;;  %v3877_v34 = vld [vmem:[%s5744_s1 + $0x340] ss:$8 sps:$4 sm:$0xff]  }
  0x24   :  { %2601 = vmatprep.subr.bf16.mxu0 %v3813_v38  ;;  %2641 = vmatpush2.bf16.msra.mxu1 %v3812_v39  ;;  %v3883_v38 = vld [vmem:[%s5744_s1 + $0x330] ss:$8 sps:$4 sm:$0xff]   ;;  %v3891_v39 = vld [vmem:[%s5744_s1 + $0x324] ss:$8 sps:$4 sm:$0xff]  }
  0x25   :  { %2642 = vmatprep.subr.bf16.mxu1 %v3816_v40  ;;  %v3886_v40 = vld [vmem:[%s5744_s1 + $0x220] ss:$8 sps:$4 sm:$0xff]  }
  0x27   :  { %2602 = vmatpush2.bf16.msra.mxu0 %v3815_v41  ;;  %v3894_v41 = vld [vmem:[%s5744_s1 + $0x214] ss:$8 sps:$4 sm:$0xff]  }
  0x28   :  { %2603 = vmatprep.subr.bf16.mxu0 %v3819_v44  ;;  %2643 = vmatpush2.bf16.msra.mxu1 %v3818_v45  ;;  %v3897_v44 = vld [vmem:[%s5744_s1 + $0x314] ss:$8 sps:$4 sm:$0xff]   ;;  %v3892_v45 = vld [vmem:[%s5744_s1 + $0x210] ss:$8 sps:$4 sm:$0xff]  }
  0x29   :  { %2644 = vmatprep.subr.bf16.mxu1 %v3822_v46  ;;  %v3900_v46 = vld [vmem:[%s5744_s1 + $0x204] ss:$8 sps:$4 sm:$0xff]  }
  0x2b   :  { %2604 = vmatpush2.bf16.msra.mxu0 %v3821_v47  ;;  %v3895_v47 = vld [vmem:[%s5744_s1 + $0x310] ss:$8 sps:$4 sm:$0xff]  }
  0x2c   :  { %2605 = vmatprep.subr.bf16.mxu0 %v3825_v49  ;;  %2645 = vmatpush2.bf16.msra.mxu1 %v3824_v50  ;;  %v3903_v49 = vld [vmem:[%s5744_s1 + $0x304] ss:$8 sps:$4 sm:$0xff]   ;;  %v3898_v50 = vld [vmem:[%s5744_s1 + $0x200] ss:$8 sps:$4 sm:$0xff]  }
  0x2d   :  { %2646 = vmatprep.subr.bf16.mxu1 %v3828_v51  ;;  %v3906_v51 = vld [vmem:[%s5744_s1 + $0x2f4] ss:$8 sps:$4 sm:$0xff]  }
  0x2f   :  { %2606 = vmatpush2.bf16.msra.mxu0 %v3827_v53  ;;  %v3909_v53 = vld [vmem:[%s5744_s1 + $0x3f4] ss:$8 sps:$4 sm:$0xff]  }
  0x30   :  { %2607 = vmatprep.subr.bf16.mxu0 %v3831_v55  ;;  %2647 = vmatpush2.bf16.msra.mxu1 %v3830_v56  ;;  %v3912_v55 = vld [vmem:[%s5744_s1 + $0x2e4] ss:$8 sps:$4 sm:$0xff]   ;;  %v3907_v56 = vld [vmem:[%s5744_s1 + $0x3f0] ss:$8 sps:$4 sm:$0xff]  }
  0x31   :  { %2648 = vmatprep.subr.bf16.mxu1 %v3834_v58  ;;  %v3910_v58 = vld [vmem:[%s5744_s1 + $0x2e0] ss:$8 sps:$4 sm:$0xff]  }
  0x33   :  { %2608 = vmatpush2.bf16.msra.mxu0 %v3833_v59  ;;  %v3918_v59 = vld [vmem:[%s5744_s1 + $0x2d4] ss:$8 sps:$4 sm:$0xff]  }
  0x34   :  { %2609 = vmatprep.subr.bf16.mxu0 %v3837_v61  ;;  %2649 = vmatpush2.bf16.msra.mxu1 %v3836_v62  ;;  %v3921_v61 = vld [vmem:[%s5744_s1 + $0x3d4] ss:$8 sps:$4 sm:$0xff]   ;;  %v3916_v62 = vld [vmem:[%s5744_s1 + $0x2d0] ss:$8 sps:$4 sm:$0xff]  }
  0x35   :  { %2650 = vmatprep.subr.bf16.mxu1 %v3840_v1  ;;  %v3927_v1 = vld [vmem:[%s5744_s1 + $0x3c4] ss:$8 sps:$4 sm:$0xff]  }
  0x37   :  { %2610 = vmatpush2.bf16.msra.mxu0 %v3839_v2  ;;  %v3922_v2 = vld [vmem:[%s5744_s1 + $0x2c0] ss:$8 sps:$4 sm:$0xff]  }
  0x38   :  { %2611 = vmatprep.subr.bf16.mxu0 %v3843_v3  ;;  %2651 = vmatpush2.bf16.msra.mxu1 %v3842_v4  ;;  %v3930_v3 = vld [vmem:[%s5744_s1 + $0x2b4] ss:$8 sps:$4 sm:$0xff]   ;;  %v3925_v4 = vld [vmem:[%s5744_s1 + $0x3c0] ss:$8 sps:$4 sm:$0xff]  }
  0x39   :  { %2652 = vmatprep.subr.bf16.mxu1 %v3846_v6  ;;  %v3933_v6 = vld [vmem:[%s5744_s1 + $0x3b4] ss:$8 sps:$4 sm:$0xff]  }
  0x3b   :  { %2612 = vmatpush2.bf16.msra.mxu0 %v3845_v7  ;;  %v3928_v7 = vld [vmem:[%s5744_s1 + $0x2b0] ss:$8 sps:$4 sm:$0xff]  }
  0x3c   :  { %2613 = vmatprep.subr.bf16.mxu0 %v3849_v8  ;;  %2653 = vmatpush2.bf16.msra.mxu1 %v3848_v9  ;;  %v3936_v8 = vld [vmem:[%s5744_s1 + $0x2a4] ss:$8 sps:$4 sm:$0xff]   ;;  %v3931_v9 = vld [vmem:[%s5744_s1 + $0x3b0] ss:$8 sps:$4 sm:$0xff]  }
  0x3d   :  { %2654 = vmatprep.subr.bf16.mxu1 %v3852_v11  ;;  %v3934_v11 = vld [vmem:[%s5744_s1 + $0x2a0] ss:$8 sps:$4 sm:$0xff]  }
  0x3f   :  { %2614 = vmatpush2.bf16.msra.mxu0 %v3851_v12  ;;  %v3942_v12 = vld [vmem:[%s5744_s1 + $0x294] ss:$8 sps:$4 sm:$0xff]  }
  0x40   :  { %2665 = vmatprep.subr.bf16.mxu0 %v3858_v14  ;;  %2655 = vmatpush2.bf16.msra.mxu1 %v3855_v15  ;;  %v3945_v14 = vld [vmem:[%s5744_s1 + $0x394] ss:$8 sps:$4 sm:$0xff]   ;;  %v3940_v15 = vld [vmem:[%s5744_s1 + $0x290] ss:$8 sps:$4 sm:$0xff]  }
  0x41   :  { %2706 = vmatprep.subr.bf16.mxu1 %v3861_v17  ;;  %v3943_v17 = vld [vmem:[%s5744_s1 + $0x390] ss:$8 sps:$4 sm:$0xff]  }
  0x42   :  { %2616 = vmatmul.mubr.bf16.vlgmr.msra.gmra.mxu0 %v457_v13  ;;  %v3937_v13 = vld [vmem:[%s5744_s1 + $0x3a0] ss:$8 sps:$4 sm:$0xff]  }
  0x43   :  { %2666 = vmatpush1.bf16.msra.mxu0 %v3856_v18  ;;  %2697 = vmatprep.mubr.bf16.mxu0 %v478_v16  ;;  %v3948_v16 = vld [vmem:[%s5744_s1 + $0x284] ss:$8 sps:$4 sm:$0xff]  }
  0x44   :  { %2657 = vmatmul.mubr.bf16.vlgmr.msra.gmra.mxu1 %v479_v19  ;;  %2667 = vmatprep.subr.bf16.mxu0 %v3864_v20  ;;  %v3951_v18 = vld [vmem:[%s5744_s1 + $0x384] ss:$8 sps:$4 sm:$0xff]   ;;  %v3946_v19 = vld [vmem:[%s5744_s1 + $0x280] ss:$8 sps:$4 sm:$0xff]   ;;  %v464_v20 = vrot.slane %v4607_v5, %v4557_v48 }
  0x45   :  { %2707 = vmatpush1.bf16.msra.mxu1 %v3859_v21  ;;  %2738 = vmatprep.mubr.bf16.mxu1 %v482_v22  ;;  %v3954_v21 = vld [vmem:[%s5744_s1 + $0x474] ss:$8 sps:$4 sm:$0xff]   ;;  %v3949_v22 = vld [vmem:[%s5744_s1 + $0x380] ss:$8 sps:$4 sm:$0xff]  }
  0x46   :  { %2708 = vmatprep.subr.bf16.mxu1 %v3867_v23  ;;  %v3957_v23 = vld [vmem:[%s5744_s1 + $0x574] ss:$8 sps:$4 sm:$0xff]   ;;  %v480_v5 = vcombine.high %v464_v20, %v464_v20 }
  0x47   :  { %2668 = vmatpush1.bf16.msra.mxu0 %v3862_v24  ;;  %v3952_v24 = vld [vmem:[%s5744_s1 + $0x470] ss:$8 sps:$4 sm:$0xff]  }
  0x48   :  { %2669 = vmatprep.subr.bf16.mxu0 %v3870_v25  ;;  %v3960_v25 = vld [vmem:[%s5744_s1 + $0x464] ss:$8 sps:$4 sm:$0xff]  }
  0x49   :  { %2709 = vmatpush1.bf16.msra.mxu1 %v3865_v26  ;;  %v4843_v26 = vld [vmem:[%s5743_s0 + $0x8] sm:$0xff] }
  0x4a   :  { %2710 = vmatprep.subr.bf16.mxu1 %v3873_v27  ;;  %v3955_v27 = vld [vmem:[%s5744_s1 + $0x570] ss:$8 sps:$4 sm:$0xff]  }
  0x4b   :  { %2670 = vmatpush1.bf16.msra.mxu0 %v3868_v28  ;;  %v4850_v28 = vrot.slane %v4843_v26, %v4557_v48 }
  0x4c   :  { %2671 = vmatprep.subr.bf16.mxu0 %v3876_v29  ;;  %v3963_v29 = vld [vmem:[%s5744_s1 + $0x564] ss:$8 sps:$4 sm:$0xff]  }
  0x4d   :  { %2711 = vmatpush1.bf16.msra.mxu1 %v3871_v30  ;;  %v3958_v30 = vld [vmem:[%s5744_s1 + $0x460] ss:$8 sps:$4 sm:$0xff]  }
  0x4e   :  { %2712 = vmatprep.subr.bf16.mxu1 %v3879_v31  ;;  %v498_v31 = vcombine.high %v4850_v28, %v4850_v28 }
  0x4f   :  { %2672 = vmatpush1.bf16.msra.mxu0 %v3874_v32  ;;  %v3966_v32 = vld [vmem:[%s5744_s1 + $0x454] ss:$8 sps:$4 sm:$0xff]  }
  0x50   :  { %2673 = vmatprep.subr.bf16.mxu0 %v3882_v33  ;;  %v3961_v33 = vld [vmem:[%s5744_s1 + $0x560] ss:$8 sps:$4 sm:$0xff]  }
  0x51   :  { %2713 = vmatpush1.bf16.msra.mxu1 %v3877_v34  ;;  %v520_v34 = vrot.slane %v498_v31, %v4557_v48  ;;  %v4042_v31 = vld [vmem:[%s5744_s1 + $0x480] ss:$8 sps:$4 sm:$0xff]  }
  0x52   :  { %2714 = vmatprep.subr.bf16.mxu1 %v3885_v35  ;;  %v3969_v35 = vld [vmem:[%s5744_s1 + $0x554] ss:$8 sps:$4 sm:$0xff]  }
  0x53   :  { %2674 = vmatpush1.bf16.msra.mxu0 %v3880_v36  ;;  %v3964_v36 = vld [vmem:[%s5744_s1 + $0x450] ss:$8 sps:$4 sm:$0xff]  }
  0x54   :  { %2675 = vmatprep.subr.bf16.mxu0 %v3888_v37  ;;  %v530_v37 = vcombine.high %v520_v34, %v520_v34 }
  0x55   :  { %2715 = vmatpush1.bf16.msra.mxu1 %v3883_v38  ;;  %v3972_v38 = vld [vmem:[%s5744_s1 + $0x444] ss:$8 sps:$4 sm:$0xff]  }
  0x56   :  { %2716 = vmatprep.subr.bf16.mxu1 %v3891_v39  ;;  %v3967_v39 = vld [vmem:[%s5744_s1 + $0x550] ss:$8 sps:$4 sm:$0xff]  }
  0x57   :  { %2676 = vmatpush1.bf16.msra.mxu0 %v3886_v40  ;;  %v3975_v40 = vld [vmem:[%s5744_s1 + $0x544] ss:$8 sps:$4 sm:$0xff]  }
  0x58   :  { %2677 = vmatprep.subr.bf16.mxu0 %v3894_v41  ;;  %v3970_v41 = vld [vmem:[%s5744_s1 + $0x440] ss:$8 sps:$4 sm:$0xff]  }
  0x59   :  { %2717 = vmatpush1.bf16.msra.mxu1 %v3889_v43  ;;  %v3978_v43 = vld [vmem:[%s5744_s1 + $0x434] ss:$8 sps:$4 sm:$0xff]  }
  0x5a   :  { %2718 = vmatprep.subr.bf16.mxu1 %v3897_v44  ;;  %v3973_v44 = vld [vmem:[%s5744_s1 + $0x540] ss:$8 sps:$4 sm:$0xff]  }
  0x5b   :  { %2678 = vmatpush1.bf16.msra.mxu0 %v3892_v45  ;;  %v3981_v45 = vld [vmem:[%s5744_s1 + $0x534] ss:$8 sps:$4 sm:$0xff]  }
  0x5c   :  { %2679 = vmatprep.subr.bf16.mxu0 %v3900_v46  ;;  %v3976_v46 = vld [vmem:[%s5744_s1 + $0x430] ss:$8 sps:$4 sm:$0xff]  }
  0x5d   :  { %2719 = vmatpush1.bf16.msra.mxu1 %v3895_v47  ;;  %v3984_v47 = vld [vmem:[%s5744_s1 + $0x424] ss:$8 sps:$4 sm:$0xff]  }
  0x5e   :  { %2720 = vmatprep.subr.bf16.mxu1 %v3903_v49  ;;  %v3979_v49 = vld [vmem:[%s5744_s1 + $0x530] ss:$8 sps:$4 sm:$0xff]  }
  0x5f   :  { %2680 = vmatpush1.bf16.msra.mxu0 %v3898_v50  ;;  %v3987_v50 = vld [vmem:[%s5744_s1 + $0x524] ss:$8 sps:$4 sm:$0xff]  }
  0x60   :  { %2681 = vmatprep.subr.bf16.mxu0 %v3906_v51  ;;  %v3982_v51 = vld [vmem:[%s5744_s1 + $0x420] ss:$8 sps:$4 sm:$0xff]  }
  0x61   :  { %2721 = vmatpush1.bf16.msra.mxu1 %v3901_v52  ;;  %v3990_v52 = vld [vmem:[%s5744_s1 + $0x414] ss:$8 sps:$4 sm:$0xff]  }
  0x62   :  { %2722 = vmatprep.subr.bf16.mxu1 %v3909_v53  ;;  %v3985_v53 = vld [vmem:[%s5744_s1 + $0x520] ss:$8 sps:$4 sm:$0xff]  }
  0x63   :  { %2682 = vmatpush2.bf16.msra.mxu0 %v3904_v54  ;;  %v3993_v54 = vld [vmem:[%s5744_s1 + $0x514] ss:$8 sps:$4 sm:$0xff]  }
  0x64   :  { %2683 = vmatprep.subr.bf16.mxu0 %v3912_v55  ;;  %v3988_v55 = vld [vmem:[%s5744_s1 + $0x410] ss:$8 sps:$4 sm:$0xff]  }
  0x65   :  { %2723 = vmatpush2.bf16.msra.mxu1 %v3907_v56  ;;  %v3996_v56 = vld [vmem:[%s5744_s1 + $0x404] ss:$8 sps:$4 sm:$0xff]  }
  0x66   :  { %2724 = vmatprep.subr.bf16.mxu1 %v3915_v57  ;;  %v3991_v57 = vld [vmem:[%s5744_s1 + $0x510] ss:$8 sps:$4 sm:$0xff]  }
  0x67   :  { %2684 = vmatpush2.bf16.msra.mxu0 %v3910_v58  ;;  %v3999_v58 = vld [vmem:[%s5744_s1 + $0x504] ss:$8 sps:$4 sm:$0xff]  }
  0x68   :  { %2685 = vmatprep.subr.bf16.mxu0 %v3918_v59  ;;  %v3994_v59 = vld [vmem:[%s5744_s1 + $0x400] ss:$8 sps:$4 sm:$0xff]  }
  0x69   :  { %2725 = vmatpush2.bf16.msra.mxu1 %v3913_v60  ;;  %v4002_v60 = vld [vmem:[%s5744_s1 + $0x4f4] ss:$8 sps:$4 sm:$0xff]  }
  0x6a   :  { %2726 = vmatprep.subr.bf16.mxu1 %v3921_v61  ;;  %v3997_v61 = vld [vmem:[%s5744_s1 + $0x500] ss:$8 sps:$4 sm:$0xff]  }
  0x6b   :  { %2686 = vmatpush2.bf16.msra.mxu0 %v3916_v62  ;;  %v4005_v62 = vld [vmem:[%s5744_s1 + $0x5f4] ss:$8 sps:$4 sm:$0xff]  }
  0x6c   :  { %2687 = vmatprep.subr.bf16.mxu0 %v3924_v63  ;;  %v4000_v63 = vld [vmem:[%s5744_s1 + $0x4f0] ss:$8 sps:$4 sm:$0xff]  }
  0x6d   :  { %2727 = vmatpush2.bf16.msra.mxu1 %v3919_v0  ;;  %v4008_v0 = vld [vmem:[%s5744_s1 + $0x4e4] ss:$8 sps:$4 sm:$0xff]  }
  0x6e   :  { %2728 = vmatprep.subr.bf16.mxu1 %v3927_v1  ;;  %v4003_v1 = vld [vmem:[%s5744_s1 + $0x5f0] ss:$8 sps:$4 sm:$0xff]  }
  0x6f   :  { %2688 = vmatpush2.bf16.msra.mxu0 %v3922_v2  ;;  %v4011_v2 = vld [vmem:[%s5744_s1 + $0x5e4] ss:$8 sps:$4 sm:$0xff]  }
  0x70   :  { %2689 = vmatprep.subr.bf16.mxu0 %v3930_v3  ;;  %v4006_v3 = vld [vmem:[%s5744_s1 + $0x4e0] ss:$8 sps:$4 sm:$0xff]  }
  0x71   :  { %2729 = vmatpush2.bf16.msra.mxu1 %v3925_v4  ;;  %v4014_v4 = vld [vmem:[%s5744_s1 + $0x4d4] ss:$8 sps:$4 sm:$0xff]  }
  0x72   :  { %2730 = vmatprep.subr.bf16.mxu1 %v3933_v6  ;;  %v4009_v6 = vld [vmem:[%s5744_s1 + $0x5e0] ss:$8 sps:$4 sm:$0xff]  }
  0x73   :  { %2690 = vmatpush2.bf16.msra.mxu0 %v3928_v7  ;;  %v4017_v7 = vld [vmem:[%s5744_s1 + $0x5d4] ss:$8 sps:$4 sm:$0xff]  }
  0x74   :  { %2691 = vmatprep.subr.bf16.mxu0 %v3936_v8  ;;  %v4012_v8 = vld [vmem:[%s5744_s1 + $0x4d0] ss:$8 sps:$4 sm:$0xff]  }
  0x75   :  { %2731 = vmatpush2.bf16.msra.mxu1 %v3931_v9  ;;  %v4020_v9 = vld [vmem:[%s5744_s1 + $0x4c4] ss:$8 sps:$4 sm:$0xff]  }
  0x76   :  { %2732 = vmatprep.subr.bf16.mxu1 %v3939_v10  ;;  %v4015_v10 = vld [vmem:[%s5744_s1 + $0x5d0] ss:$8 sps:$4 sm:$0xff]  }
  0x77   :  { %2692 = vmatpush2.bf16.msra.mxu0 %v3934_v11  ;;  %v4023_v11 = vld [vmem:[%s5744_s1 + $0x5c4] ss:$8 sps:$4 sm:$0xff]  }
  0x78   :  { %2693 = vmatprep.subr.bf16.mxu0 %v3942_v12  ;;  %v4018_v12 = vld [vmem:[%s5744_s1 + $0x4c0] ss:$8 sps:$4 sm:$0xff]  }
  0x79   :  { %2733 = vmatpush2.bf16.msra.mxu1 %v3937_v13  ;;  %v4026_v13 = vld [vmem:[%s5744_s1 + $0x4b4] ss:$8 sps:$4 sm:$0xff]  }
  0x7a   :  { %2734 = vmatprep.subr.bf16.mxu1 %v3945_v14  ;;  %v4021_v14 = vld [vmem:[%s5744_s1 + $0x5c0] ss:$8 sps:$4 sm:$0xff]  }
  0x7b   :  { %2694 = vmatpush2.bf16.msra.mxu0 %v3940_v15  ;;  %v4029_v15 = vld [vmem:[%s5744_s1 + $0x5b4] ss:$8 sps:$4 sm:$0xff]  }
  0x7c   :  { %2695 = vmatprep.subr.bf16.mxu0 %v3948_v16  ;;  %v4024_v16 = vld [vmem:[%s5744_s1 + $0x4b0] ss:$8 sps:$4 sm:$0xff]  }
  0x7d   :  { %2735 = vmatpush2.bf16.msra.mxu1 %v3943_v17  ;;  %v4032_v17 = vld [vmem:[%s5744_s1 + $0x4a4] ss:$8 sps:$4 sm:$0xff]  }
  0x7e   :  { %2736 = vmatprep.subr.bf16.mxu1 %v3951_v18  ;;  %v4027_v18 = vld [vmem:[%s5744_s1 + $0x5b0] ss:$8 sps:$4 sm:$0xff]  }
  0x7f   :  { %2696 = vmatpush2.bf16.msra.mxu0 %v3946_v19  ;;  %v483_v19 = vcombine.high %v4843_v26, %v4843_v26  ;;  %v4044_v26 = vld [vmem:[%s5744_s1 + $0x484] ss:$8 sps:$4 sm:$0xff]  }
  0x80   :  { %2747 = vmatprep.subr.bf16.mxu0 %v3954_v21  ;;  %v4030_v21 = vld [vmem:[%s5744_s1 + $0x4a0] ss:$8 sps:$4 sm:$0xff]  }
  0x81   :  { %2737 = vmatpush2.bf16.msra.mxu1 %v3949_v22  ;;  %v4038_v22 = vld [vmem:[%s5744_s1 + $0x494] ss:$8 sps:$4 sm:$0xff]  }
  0x82   :  { %2698 = vmatmul.mubr.bf16.vlgmr.msra.gmra.mxu0 %v464_v20  ;;  %2788 = vmatprep.subr.bf16.mxu1 %v3957_v23  ;;  %v4035_v20 = vld [vmem:[%s5744_s1 + $0x5a4] ss:$8 sps:$4 sm:$0xff]   ;;  %v4033_v23 = vld [vmem:[%s5744_s1 + $0x5a0] ss:$8 sps:$4 sm:$0xff]  }
  0x83   :  { %2748 = vmatpush1.bf16.msra.mxu0 %v3952_v24  ;;  %2779 = vmatprep.mubr.bf16.mxu0 %v520_v34  ;;  %v5014_v24 = vrot.slane %v483_v19, %v4557_v48  ;;  %v4045_v34 = vld [vmem:[%s5744_s1 + $0x580] ss:$8 sps:$4 sm:$0xff]   ;;  %v4111_v19 = vld [vmem:[%s5744_s1 + $0x7d0] ss:$8 sps:$4 sm:$0xff]  }
  0x84   :  { %2739 = vmatmul.mubr.bf16.vlgmr.msra.gmra.mxu1 %v480_v5  ;;  %2749 = vmatprep.subr.bf16.mxu0 %v3960_v25  ;;  %v4041_v5 = vld [vmem:[%s5744_s1 + $0x594] ss:$8 sps:$4 sm:$0xff]   ;;  %v4036_v25 = vld [vmem:[%s5744_s1 + $0x490] ss:$8 sps:$4 sm:$0xff]  }
  0x85   :  { %2789 = vmatpush1.bf16.msra.mxu1 %v3955_v27  ;;  %2820 = vmatprep.mubr.bf16.mxu1 %v530_v37  ;;  %v4039_v27 = vld [vmem:[%s5744_s1 + $0x590] ss:$8 sps:$4 sm:$0xff]  }
  0x86   :  { %2790 = vmatprep.subr.bf16.mxu1 %v3963_v29  ;;  %v499_v29 = vcombine.high %v5014_v24, %v5014_v24 }
  0x87   :  { %2750 = vmatpush1.bf16.msra.mxu0 %v3958_v30  ;;  %v4047_v30 = vld [vmem:[%s5744_s1 + $0x584] ss:$8 sps:$4 sm:$0xff]  }
  0x88   :  { %2751 = vmatprep.subr.bf16.mxu0 %v3966_v32  ;;  %v506_v32 = vrot.slane %v4850_v28, %v4557_v48  ;;  %v4048_v28 = vld [vmem:[%s5744_s1 + $0x670] ss:$8 sps:$4 sm:$0xff]  }
  0x89   :  { %2791 = vmatpush1.bf16.msra.mxu1 %v3961_v33  ;;  %v4050_v33 = vld [vmem:[%s5744_s1 + $0x674] ss:$8 sps:$4 sm:$0xff]  }
  0x8a   :  { %2792 = vmatprep.subr.bf16.mxu1 %v3969_v35  ;;  %v527_v35 = vrot.slane %v499_v29, %v4557_v48  ;;  %v528_v37 = vcombine.high %v506_v32, %v506_v32  ;;  %v4131_v29 = vld [vmem:[%s5744_s1 + $0x7a4] ss:$8 sps:$4 sm:$0xff]  }
  0x8b   :  { %2752 = vmatpush1.bf16.msra.mxu0 %v3964_v36  ;;  %v4053_v36 = vld [vmem:[%s5744_s1 + $0x774] ss:$8 sps:$4 sm:$0xff]  }
  0x8c   :  { %2753 = vmatprep.subr.bf16.mxu0 %v3972_v38  ;;  %v4056_v38 = vld [vmem:[%s5744_s1 + $0x664] ss:$8 sps:$4 sm:$0xff]  }
  0x8d   :  { %2793 = vmatpush1.bf16.msra.mxu1 %v3967_v39  ;;  %v4051_v39 = vld [vmem:[%s5744_s1 + $0x770] ss:$8 sps:$4 sm:$0xff]  }
  0x8e   :  { %2794 = vmatprep.subr.bf16.mxu1 %v3975_v40  ;;  %v531_v40 = vcombine.high %v527_v35, %v527_v35 }
  0x8f   :  { %2754 = vmatpush1.bf16.msra.mxu0 %v3970_v41  ;;  %v4059_v41 = vld [vmem:[%s5744_s1 + $0x764] ss:$8 sps:$4 sm:$0xff]  }
  0x90   :  { %2755 = vmatprep.subr.bf16.mxu0 %v3978_v43  ;;  %v4054_v43 = vld [vmem:[%s5744_s1 + $0x660] ss:$8 sps:$4 sm:$0xff]  }
  0x91   :  { %2795 = vmatpush1.bf16.msra.mxu1 %v3973_v44  ;;  %v4062_v44 = vld [vmem:[%s5744_s1 + $0x654] ss:$8 sps:$4 sm:$0xff]  }
  0x92   :  { %2796 = vmatprep.subr.bf16.mxu1 %v3981_v45  ;;  %v4057_v45 = vld [vmem:[%s5744_s1 + $0x760] ss:$8 sps:$4 sm:$0xff]  }
  0x93   :  { %2756 = vmatpush1.bf16.msra.mxu0 %v3976_v46  ;;  %v4065_v46 = vld [vmem:[%s5744_s1 + $0x754] ss:$8 sps:$4 sm:$0xff]  }
  0x94   :  { %2757 = vmatprep.subr.bf16.mxu0 %v3984_v47  ;;  %v4060_v47 = vld [vmem:[%s5744_s1 + $0x650] ss:$8 sps:$4 sm:$0xff]  }
  0x95   :  { %2797 = vmatpush1.bf16.msra.mxu1 %v3979_v49  ;;  %v4068_v49 = vld [vmem:[%s5744_s1 + $0x644] ss:$8 sps:$4 sm:$0xff]  }
  0x96   :  { %2798 = vmatprep.subr.bf16.mxu1 %v3987_v50  ;;  %v4063_v50 = vld [vmem:[%s5744_s1 + $0x750] ss:$8 sps:$4 sm:$0xff]  }
  0x97   :  { %2758 = vmatpush1.bf16.msra.mxu0 %v3982_v51  ;;  %v4071_v51 = vld [vmem:[%s5744_s1 + $0x744] ss:$8 sps:$4 sm:$0xff]  }
  0x98   :  { %2759 = vmatprep.subr.bf16.mxu0 %v3990_v52  ;;  %v4066_v52 = vld [vmem:[%s5744_s1 + $0x640] ss:$8 sps:$4 sm:$0xff]  }
  0x99   :  { %2799 = vmatpush1.bf16.msra.mxu1 %v3985_v53  ;;  %v4074_v53 = vld [vmem:[%s5744_s1 + $0x634] ss:$8 sps:$4 sm:$0xff]  }
  0x9a   :  { %2800 = vmatprep.subr.bf16.mxu1 %v3993_v54  ;;  %v4069_v54 = vld [vmem:[%s5744_s1 + $0x740] ss:$8 sps:$4 sm:$0xff]  }
  0x9b   :  { %2760 = vmatpush1.bf16.msra.mxu0 %v3988_v55  ;;  %v4077_v55 = vld [vmem:[%s5744_s1 + $0x734] ss:$8 sps:$4 sm:$0xff]  }
  0x9c   :  { %2761 = vmatprep.subr.bf16.mxu0 %v3996_v56  ;;  %v4072_v56 = vld [vmem:[%s5744_s1 + $0x630] ss:$8 sps:$4 sm:$0xff]  }
  0x9d   :  { %2801 = vmatpush1.bf16.msra.mxu1 %v3991_v57  ;;  %v4080_v57 = vld [vmem:[%s5744_s1 + $0x624] ss:$8 sps:$4 sm:$0xff]  }
  0x9e   :  { %2802 = vmatprep.subr.bf16.mxu1 %v3999_v58  ;;  %v4075_v58 = vld [vmem:[%s5744_s1 + $0x730] ss:$8 sps:$4 sm:$0xff]  }
  0x9f   :  { %2762 = vmatpush1.bf16.msra.mxu0 %v3994_v59  ;;  %v4083_v59 = vld [vmem:[%s5744_s1 + $0x724] ss:$8 sps:$4 sm:$0xff]  }
  0xa0   :  { %2763 = vmatprep.subr.bf16.mxu0 %v4002_v60  ;;  %v4078_v60 = vld [vmem:[%s5744_s1 + $0x620] ss:$8 sps:$4 sm:$0xff]  }
  0xa1   :  { %2803 = vmatpush1.bf16.msra.mxu1 %v3997_v61  ;;  %v4086_v61 = vld [vmem:[%s5744_s1 + $0x614] ss:$8 sps:$4 sm:$0xff]  }
  0xa2   :  { %2804 = vmatprep.subr.bf16.mxu1 %v4005_v62  ;;  %v4081_v62 = vld [vmem:[%s5744_s1 + $0x720] ss:$8 sps:$4 sm:$0xff]  }
  0xa3   :  { %2764 = vmatpush2.bf16.msra.mxu0 %v4000_v63  ;;  %v4089_v63 = vld [vmem:[%s5744_s1 + $0x714] ss:$8 sps:$4 sm:$0xff]  }
  0xa4   :  { %2765 = vmatprep.subr.bf16.mxu0 %v4008_v0  ;;  %v4084_v0 = vld [vmem:[%s5744_s1 + $0x610] ss:$8 sps:$4 sm:$0xff]  }
  0xa5   :  { %2805 = vmatpush2.bf16.msra.mxu1 %v4003_v1  ;;  %v4092_v1 = vld [vmem:[%s5744_s1 + $0x604] ss:$8 sps:$4 sm:$0xff]  }
  0xa6   :  { %2806 = vmatprep.subr.bf16.mxu1 %v4011_v2  ;;  %v4087_v2 = vld [vmem:[%s5744_s1 + $0x710] ss:$8 sps:$4 sm:$0xff]  }
  0xa7   :  { %2766 = vmatpush2.bf16.msra.mxu0 %v4006_v3  ;;  %v4095_v3 = vld [vmem:[%s5744_s1 + $0x704] ss:$8 sps:$4 sm:$0xff]  }
  0xa8   :  { %2767 = vmatprep.subr.bf16.mxu0 %v4014_v4  ;;  %v4090_v4 = vld [vmem:[%s5744_s1 + $0x600] ss:$8 sps:$4 sm:$0xff]  }
  0xa9   :  { %2807 = vmatpush2.bf16.msra.mxu1 %v4009_v6  ;;  %v4098_v6 = vld [vmem:[%s5744_s1 + $0x6f4] ss:$8 sps:$4 sm:$0xff]  }
  0xaa   :  { %2808 = vmatprep.subr.bf16.mxu1 %v4017_v7  ;;  %v4093_v7 = vld [vmem:[%s5744_s1 + $0x700] ss:$8 sps:$4 sm:$0xff]  }
  0xab   :  { %2768 = vmatpush2.bf16.msra.mxu0 %v4012_v8  ;;  %v4101_v8 = vld [vmem:[%s5744_s1 + $0x7f4] ss:$8 sps:$4 sm:$0xff]  }
  0xac   :  { %2769 = vmatprep.subr.bf16.mxu0 %v4020_v9  ;;  %v4096_v9 = vld [vmem:[%s5744_s1 + $0x6f0] ss:$8 sps:$4 sm:$0xff]  }
  0xad   :  { %2809 = vmatpush2.bf16.msra.mxu1 %v4015_v10  ;;  %v4104_v10 = vld [vmem:[%s5744_s1 + $0x6e4] ss:$8 sps:$4 sm:$0xff]  }
  0xae   :  { %2810 = vmatprep.subr.bf16.mxu1 %v4023_v11  ;;  %v4099_v11 = vld [vmem:[%s5744_s1 + $0x7f0] ss:$8 sps:$4 sm:$0xff]  }
  0xaf   :  { %2770 = vmatpush2.bf16.msra.mxu0 %v4018_v12  ;;  %v4107_v12 = vld [vmem:[%s5744_s1 + $0x7e4] ss:$8 sps:$4 sm:$0xff]  }
  0xb0   :  { %2771 = vmatprep.subr.bf16.mxu0 %v4026_v13  ;;  %v4102_v13 = vld [vmem:[%s5744_s1 + $0x6e0] ss:$8 sps:$4 sm:$0xff]  }
  0xb1   :  { %2811 = vmatpush2.bf16.msra.mxu1 %v4021_v14  ;;  %v4110_v14 = vld [vmem:[%s5744_s1 + $0x6d4] ss:$8 sps:$4 sm:$0xff]  }
  0xb2   :  { %2812 = vmatprep.subr.bf16.mxu1 %v4029_v15  ;;  %v4105_v15 = vld [vmem:[%s5744_s1 + $0x7e0] ss:$8 sps:$4 sm:$0xff]  }
  0xb3   :  { %2772 = vmatpush2.bf16.msra.mxu0 %v4024_v16  ;;  %v4113_v16 = vld [vmem:[%s5744_s1 + $0x7d4] ss:$8 sps:$4 sm:$0xff]  }
  0xb4   :  { %2773 = vmatprep.subr.bf16.mxu0 %v4032_v17  ;;  %v4108_v17 = vld [vmem:[%s5744_s1 + $0x6d0] ss:$8 sps:$4 sm:$0xff]  }
  0xb5   :  { %2813 = vmatpush2.bf16.msra.mxu1 %v4027_v18  ;;  %v4116_v18 = vld [vmem:[%s5744_s1 + $0x6c4] ss:$8 sps:$4 sm:$0xff]  }
  0xb6   :  { %2814 = vmatprep.subr.bf16.mxu1 %v4035_v20  ;;  %v4119_v20 = vld [vmem:[%s5744_s1 + $0x7c4] ss:$8 sps:$4 sm:$0xff]  }
  0xb7   :  { %2774 = vmatpush2.bf16.msra.mxu0 %v4030_v21  ;;  %v4114_v21 = vld [vmem:[%s5744_s1 + $0x6c0] ss:$8 sps:$4 sm:$0xff]  }
  0xb8   :  { %2775 = vmatprep.subr.bf16.mxu0 %v4038_v22  ;;  %v4122_v22 = vld [vmem:[%s5744_s1 + $0x6b4] ss:$8 sps:$4 sm:$0xff]  }
  0xb9   :  { %2815 = vmatpush2.bf16.msra.mxu1 %v4033_v23  ;;  %v4117_v23 = vld [vmem:[%s5744_s1 + $0x7c0] ss:$8 sps:$4 sm:$0xff]  }
  0xba   :  { %2816 = vmatprep.subr.bf16.mxu1 %v4041_v5  ;;  %v4125_v5 = vld [vmem:[%s5744_s1 + $0x7b4] ss:$8 sps:$4 sm:$0xff]  }
  0xbb   :  { %2776 = vmatpush2.bf16.msra.mxu0 %v4036_v25  ;;  %v4120_v25 = vld [vmem:[%s5744_s1 + $0x6b0] ss:$8 sps:$4 sm:$0xff]  }
  0xbc   :  { %2777 = vmatprep.subr.bf16.mxu0 %v4044_v26  ;;  %v4128_v26 = vld [vmem:[%s5744_s1 + $0x6a4] ss:$8 sps:$4 sm:$0xff]  }
  0xbd   :  { %2817 = vmatpush2.bf16.msra.mxu1 %v4039_v27  ;;  %v4123_v27 = vld [vmem:[%s5744_s1 + $0x7b0] ss:$8 sps:$4 sm:$0xff]  }
  0xbe   :  { %2818 = vmatprep.subr.bf16.mxu1 %v4047_v30  ;;  %v5207_v30 = vld [vmem:[%s5743_s0 + $0x10] sm:$0xff] }
  0xbf   :  { %2778 = vmatpush2.bf16.msra.mxu0 %v4042_v31  ;;  %v4126_v31 = vld [vmem:[%s5744_s1 + $0x6a0] ss:$8 sps:$4 sm:$0xff]  }
  0xc0   :  { %2829 = vmatprep.subr.bf16.mxu0 %v4050_v33  ;;  %v4129_v33 = vld [vmem:[%s5744_s1 + $0x7a0] ss:$8 sps:$4 sm:$0xff]  }
  0xc1   :  { %2819 = vmatpush2.bf16.msra.mxu1 %v4045_v34  ;;  %v5220_v34 = vrot.slane %v5207_v30, %v4557_v48 }
  0xc2   :  { %2780 = vmatmul.mubr.bf16.vlgmr.msra.gmra.mxu0 %v506_v32  ;;  %2870 = vmatprep.subr.bf16.mxu1 %v4053_v36  ;;  %v4134_v32 = vld [vmem:[%s5744_s1 + $0x694] ss:$8 sps:$4 sm:$0xff]   ;;  %v4132_v36 = vld [vmem:[%s5744_s1 + $0x690] ss:$8 sps:$4 sm:$0xff]  }
  0xc3   :  { %2830 = vmatpush1.bf16.msra.mxu0 %v4048_v28  ;;  %2861 = vmatprep.mubr.bf16.mxu0 %v527_v35  ;;  %v4137_v35 = vld [vmem:[%s5744_s1 + $0x794] ss:$8 sps:$4 sm:$0xff]   ;;  %v4140_v28 = vld [vmem:[%s5744_s1 + $0x684] ss:$8 sps:$4 sm:$0xff]  }
  0xc4   :  { %2821 = vmatmul.mubr.bf16.vlgmr.msra.gmra.mxu1 %v528_v37  ;;  %2831 = vmatprep.subr.bf16.mxu0 %v4056_v38  ;;  %v4135_v37 = vld [vmem:[%s5744_s1 + $0x790] ss:$8 sps:$4 sm:$0xff]   ;;  %v547_v38 = vcombine.high %v5220_v34, %v5220_v34 }
  0xc5   :  { %2871 = vmatpush1.bf16.msra.mxu1 %v4051_v39  ;;  %2902 = vmatprep.mubr.bf16.mxu1 %v531_v40  ;;  %v4143_v39 = vld [vmem:[%s5744_s1 + $0x784] ss:$8 sps:$4 sm:$0xff]   ;;  %v4138_v40 = vld [vmem:[%s5744_s1 + $0x680] ss:$8 sps:$4 sm:$0xff]  }
  0xc6   :  { %2872 = vmatprep.subr.bf16.mxu1 %v4059_v41  ;;  %v418_v41 = vld [vmem:[%s5745_s2] sm:$0x3] }
  0xc7   :  { %2832 = vmatpush1.bf16.msra.mxu0 %v4054_v43  ;;  %v422_v43 = vsub.s32 0, %v4542_v42 }
  0xc8   :  { %2833 = vmatprep.subr.bf16.mxu0 %v4062_v44  ;;  %v513_v44 = vrot.slane %v5014_v24, %v4557_v48 }
  0xc9   :  { %2873 = vmatpush1.bf16.msra.mxu1 %v4057_v45  ;;  %v4147_v45 = vld [vmem:[%s5744_s1 + $0x874] ss:$8 sps:$4 sm:$0xff]   ;;  %v423_v24 = vrot.slane %v418_v41, %v422_v43 }
  0xca   :  { %2874 = vmatprep.subr.bf16.mxu1 %v4065_v46  ;;  %v4141_v46 = vld [vmem:[%s5744_s1 + $0x780] ss:$8 sps:$4 sm:$0xff]  }
  0xcb   :  { %2834 = vmatpush1.bf16.msra.mxu0 %v4060_v47  ;;  %v426_v47 = vsub.s32 1, %v4542_v42 }
  0xcc   :  { %2835 = vmatprep.subr.bf16.mxu0 %v4068_v49  ;;  %v569_v49 = vrot.slane %v547_v38, %v4557_v48 }
  0xcd   :  { %2875 = vmatpush1.bf16.msra.mxu1 %v4063_v50  ;;  %v4150_v50 = vld [vmem:[%s5744_s1 + $0x974] ss:$8 sps:$4 sm:$0xff]   ;;  %v427_v42 = vrot.slane %v418_v41, %v426_v47 }
  0xce   :  { %2876 = vmatprep.subr.bf16.mxu1 %v4071_v51  ;;  %v4145_v51 = vld [vmem:[%s5744_s1 + $0x870] ss:$8 sps:$4 sm:$0xff]  }
  0xcf   :  { %2836 = vmatpush1.bf16.msra.mxu0 %v4066_v52  ;;  %v529_v52 = vcombine.high %v513_v44, %v513_v44 }
  0xd0   :  { %2837 = vmatprep.subr.bf16.mxu0 %v4074_v53  ;;  %v4153_v53 = vld [vmem:[%s5744_s1 + $0x864] ss:$8 sps:$4 sm:$0xff]  }
  0xd1   :  { %2877 = vmatpush1.bf16.msra.mxu1 %v4069_v54  ;;  %v4148_v54 = vld [vmem:[%s5744_s1 + $0x970] ss:$8 sps:$4 sm:$0xff]  }
  0xd2   :  { %2878 = vmatprep.subr.bf16.mxu1 %v4077_v55  ;;  %v579_v55 = vcombine.high %v569_v49, %v569_v49 }
  0xd3   :  { %2838 = vmatpush1.bf16.msra.mxu0 %v4072_v56 }
  0xd4   :  { %2839 = vmatprep.subr.bf16.mxu0 %v4080_v57  ;;  %v4151_v57 = vld [vmem:[%s5744_s1 + $0x860] ss:$8 sps:$4 sm:$0xff]  }
  0xd5   :  { %2879 = vmatpush1.bf16.msra.mxu1 %v4075_v58  ;;  %v4156_v58 = vld [vmem:[%s5744_s1 + $0x964] ss:$8 sps:$4 sm:$0xff]  }
  0xd6   :  { %2880 = vmatprep.subr.bf16.mxu1 %v4083_v59 }
  0xd7   :  { %2840 = vmatpush1.bf16.msra.mxu0 %v4078_v60  ;;  %v4154_v60 = vld [vmem:[%s5744_s1 + $0x960] ss:$8 sps:$4 sm:$0xff]  }
  0xd8   :  { %2841 = vmatprep.subr.bf16.mxu0 %v4086_v61 }
  0xd9   :  { %2881 = vmatpush1.bf16.msra.mxu1 %v4081_v62 }
  0xda   :  { %2882 = vmatprep.subr.bf16.mxu1 %v4089_v63  ;;  %v4159_v63 = vld [vmem:[%s5744_s1 + $0x854] ss:$8 sps:$4 sm:$0xff]  }
  0xdb   :  { %2842 = vmatpush1.bf16.msra.mxu0 %v4084_v0 }
  0xdc   :  { %2843 = vmatprep.subr.bf16.mxu0 %v4092_v1 }
  0xdd   :  { %2883 = vmatpush1.bf16.msra.mxu1 %v4087_v2  ;;  %v4157_v2 = vld [vmem:[%s5744_s1 + $0x850] ss:$8 sps:$4 sm:$0xff]  }
  0xde   :  { %2884 = vmatprep.subr.bf16.mxu1 %v4095_v3  ;;  %v4162_v3 = vld [vmem:[%s5744_s1 + $0x954] ss:$8 sps:$4 sm:$0xff]  }
  0xdf   :  { %2844 = vmatpush1.bf16.msra.mxu0 %v4090_v4 }
  0xe0   :  { %2845 = vmatprep.subr.bf16.mxu0 %v4098_v6 }
  0xe1   :  { %2885 = vmatpush1.bf16.msra.mxu1 %v4093_v7 }
  0xe2   :  { %2886 = vmatprep.subr.bf16.mxu1 %v4101_v8  ;;  %v4160_v8 = vld [vmem:[%s5744_s1 + $0x950] ss:$8 sps:$4 sm:$0xff]  }
  0xe3   :  { %2846 = vmatpush2.bf16.msra.mxu0 %v4096_v9 }
  0xe4   :  { %2847 = vmatprep.subr.bf16.mxu0 %v4104_v10  ;;  %v4165_v10 = vld [vmem:[%s5744_s1 + $0x844] ss:$8 sps:$4 sm:$0xff]  }
  0xe5   :  { %2887 = vmatpush2.bf16.msra.mxu1 %v4099_v11 }
  0xe6   :  { %2888 = vmatprep.subr.bf16.mxu1 %v4107_v12  ;;  %v4168_v12 = vld [vmem:[%s5744_s1 + $0x944] ss:$8 sps:$4 sm:$0xff]  }
  0xe7   :  { %2848 = vmatpush2.bf16.msra.mxu0 %v4102_v13  ;;  %v4163_v13 = vld [vmem:[%s5744_s1 + $0x840] ss:$8 sps:$4 sm:$0xff]  }
  0xe8   :  { %2849 = vmatprep.subr.bf16.mxu0 %v4110_v14 }
  0xe9   :  { %2889 = vmatpush2.bf16.msra.mxu1 %v4105_v15  ;;  %v4166_v15 = vld [vmem:[%s5744_s1 + $0x940] ss:$8 sps:$4 sm:$0xff]  }
  0xea   :  { %2890 = vmatprep.subr.bf16.mxu1 %v4113_v16  ;;  %v4171_v16 = vld [vmem:[%s5744_s1 + $0x834] ss:$8 sps:$4 sm:$0xff]  }
  0xeb   :  { %2850 = vmatpush2.bf16.msra.mxu0 %v4108_v17  ;;  %v4174_v17 = vld [vmem:[%s5744_s1 + $0x934] ss:$8 sps:$4 sm:$0xff]  }
  0xec   :  { %2851 = vmatprep.subr.bf16.mxu0 %v4116_v18  ;;  %v4169_v18 = vld [vmem:[%s5744_s1 + $0x830] ss:$8 sps:$4 sm:$0xff]  }
  0xed   :  { %2891 = vmatpush2.bf16.msra.mxu1 %v4111_v19  ;;  %v4172_v19 = vld [vmem:[%s5744_s1 + $0x930] ss:$8 sps:$4 sm:$0xff]  }
  0xee   :  { %2892 = vmatprep.subr.bf16.mxu1 %v4119_v20  ;;  %v4177_v20 = vld [vmem:[%s5744_s1 + $0x824] ss:$8 sps:$4 sm:$0xff]  }
  0xef   :  { %2852 = vmatpush2.bf16.msra.mxu0 %v4114_v21  ;;  %v4180_v21 = vld [vmem:[%s5744_s1 + $0x924] ss:$8 sps:$4 sm:$0xff]  }
  0xf0   :  { %2853 = vmatprep.subr.bf16.mxu0 %v4122_v22 }
  0xf1   :  { %2893 = vmatpush2.bf16.msra.mxu1 %v4117_v23 }
  0xf2   :  { %2894 = vmatprep.subr.bf16.mxu1 %v4125_v5 }
  0xf3   :  { %2854 = vmatpush2.bf16.msra.mxu0 %v4120_v25 }
  0xf4   :  { %2855 = vmatprep.subr.bf16.mxu0 %v4128_v26 }
  0xf5   :  { %2895 = vmatpush2.bf16.msra.mxu1 %v4123_v27 }
  0xf6   :  { %2896 = vmatprep.subr.bf16.mxu1 %v4131_v29 }
  0xf7   :  { %2856 = vmatpush2.bf16.msra.mxu0 %v4126_v31 }
  0xf8   :  { %2857 = vmatprep.subr.bf16.mxu0 %v4134_v32 }
  0xf9   :  { %2897 = vmatpush2.bf16.msra.mxu1 %v4129_v33 }
  0xfa   :  { %2898 = vmatprep.subr.bf16.mxu1 %v4137_v35 }
  0xfb   :  { %2858 = vmatpush2.bf16.msra.mxu0 %v4132_v36 }
  0xfc   :  { %2859 = vmatprep.subr.bf16.mxu0 %v4140_v28 }
  0xfd   :  { %2899 = vmatpush2.bf16.msra.mxu1 %v4135_v37 }
  0xfe   :  { %2900 = vmatprep.subr.bf16.mxu1 %v4143_v39 }
  0xff   :  { %2860 = vmatpush2.bf16.msra.mxu0 %v4138_v40 }
 0x100   :  { %2911 = vmatprep.subr.bf16.mxu0 %v4147_v45 }
 0x101   :  { %2901 = vmatpush2.bf16.msra.mxu1 %v4141_v46 }
 0x102   :  { %v2617_v56 = vpop.f32.mrf.mxu0  ;;  %2862 = vmatmul.mubr.bf16.vlgmr.msra.gmra.mxu0 %v513_v44  ;;  %2952 = vmatprep.subr.bf16.mxu1 %v4150_v50 }
 0x103   :  { %v2618_v59 = vadd.f32 %v2617_v56, %v423_v24  ;;  %2912 = vmatpush1.bf16.msra.mxu0 %v4145_v51  ;;  %2943 = vmatprep.mubr.bf16.mxu0 %v569_v49 }
 0x104   :  { %v2619_v61 = vpop.f32.mrf.mxu0  ;;  %v2658_v62 = vpop.f32.mrf.mxu1  ;;  %2903 = vmatmul.mubr.bf16.vlgmr.msra.gmra.mxu1 %v529_v52  ;;  %2913 = vmatprep.subr.bf16.mxu0 %v4153_v53 }
 0x105   :  { %v2620_v0 = vadd.f32 %v2619_v61, %v427_v42  ;;  %v5280_v1 = vadd.f32 %v2658_v62, %v2618_v59  ;;  %2953 = vmatpush1.bf16.msra.mxu1 %v4148_v54  ;;  %2984 = vmatprep.mubr.bf16.mxu1 %v579_v55 }
 0x106   :  { %v2621_v4 = vpop.f32.mrf.mxu0  ;;  %v2660_v6 = vpop.f32.mrf.mxu1  ;;  %2954 = vmatprep.subr.bf16.mxu1 %v4156_v58 }
 0x107   :  { %v5288_v7 = vadd.f32 %v2660_v6, %v2620_v0  ;;  %2914 = vmatpush1.bf16.msra.mxu0 %v4151_v57 }
 0x108   :  { %v2622_v9 = vpop.f32.mrf.mxu0  ;;  %2915 = vmatprep.subr.bf16.mxu0 %v4159_v63  ;;  %v2662_v11 = vpop.f32.mrf.mxu1 }
 0x109   :  { %2955 = vmatpush1.bf16.msra.mxu1 %v4154_v60 }
 0x10a   :  { %2956 = vmatprep.subr.bf16.mxu1 %v4162_v3  ;;  %v2663_v14 = vpop.f32.mrf.mxu1 }
 0x10b   :  { %2916 = vmatpush1.bf16.msra.mxu0 %v4157_v2 }
 0x10c   :  { %2917 = vmatprep.subr.bf16.mxu0 %v4165_v10 }
 0x10d   :  { %2957 = vmatpush1.bf16.msra.mxu1 %v4160_v8 }
 0x10e   :  { %2958 = vmatprep.subr.bf16.mxu1 %v4168_v12 }
 0x10f   :  { %2918 = vmatpush1.bf16.msra.mxu0 %v4163_v13 }
 0x110   :  { %2919 = vmatprep.subr.bf16.mxu0 %v4171_v16 }
 0x111   :  { %2959 = vmatpush1.bf16.msra.mxu1 %v4166_v15 }
 0x112   :  { %2960 = vmatprep.subr.bf16.mxu1 %v4174_v17 }
 0x113   :  { %10 = vsyncpa [#allocation3], 0  ;;  %2920 = vmatpush1.bf16.msra.mxu0 %v4169_v18  ;;  %v4175_v22 = vld [vmem:[%s5744_s1 + $0x820] ss:$8 sps:$4 sm:$0xff]   ;;  %v4183_v23 = vld [vmem:[%s5744_s1 + $0x814] ss:$8 sps:$4 sm:$0xff]   ;;  %v532_v55 = vcombine.high %v5207_v30, %v5207_v30  ;;  %v555_v4 = vrot.slane %v5220_v34, %v4557_v48 }
 0x114   :  { %2921 = vmatprep.subr.bf16.mxu0 %v4177_v20  ;;  %v4178_v5 = vld [vmem:[%s5744_s1 + $0x920] ss:$8 sps:$4 sm:$0xff]   ;;  %v4186_v25 = vld [vmem:[%s5744_s1 + $0x914] ss:$8 sps:$4 sm:$0xff]   ;;  %v4181_v26 = vld [vmem:[%s5744_s1 + $0x810] ss:$8 sps:$4 sm:$0xff]  }
 0x115   :  { %2961 = vmatpush1.bf16.msra.mxu1 %v4172_v19  ;;  %v4189_v27 = vld [vmem:[%s5744_s1 + $0x804] ss:$8 sps:$4 sm:$0xff]   ;;  %v4184_v29 = vld [vmem:[%s5744_s1 + $0x910] ss:$8 sps:$4 sm:$0xff]   ;;  %v4187_v32 = vld [vmem:[%s5744_s1 + $0x800] ss:$8 sps:$4 sm:$0xff]   ;;  %v5431_v59 = vrot.slane %v532_v55, %v4557_v48  ;;  %v577_v11 = vcombine.high %v555_v4, %v555_v4 }
 0x116   :  { %2962 = vmatprep.subr.bf16.mxu1 %v4180_v21  ;;  %v4192_v31 = vld [vmem:[%s5744_s1 + $0x904] ss:$8 sps:$4 sm:$0xff]   ;;  %v4195_v33 = vld [vmem:[%s5744_s1 + $0x8f4] ss:$8 sps:$4 sm:$0xff]   ;;  %v4190_v35 = vld [vmem:[%s5744_s1 + $0x900] ss:$8 sps:$4 sm:$0xff]  }
 0x117   :  { %2922 = vmatpush1.bf16.msra.mxu0 %v4175_v22  ;;  %v4198_v36 = vld [vmem:[%s5744_s1 + $0x9f4] ss:$8 sps:$4 sm:$0xff]   ;;  %v4193_v28 = vld [vmem:[%s5744_s1 + $0x8f0] ss:$8 sps:$4 sm:$0xff]   ;;  %v4201_v37 = vld [vmem:[%s5744_s1 + $0x8e4] ss:$8 sps:$4 sm:$0xff]   ;;  %v548_v0 = vcombine.high %v5431_v59, %v5431_v59 }
 0x118   :  { %2923 = vmatprep.subr.bf16.mxu0 %v4183_v23  ;;  %v4196_v38 = vld [vmem:[%s5744_s1 + $0x9f0] ss:$8 sps:$4 sm:$0xff]   ;;  %v4204_v39 = vld [vmem:[%s5744_s1 + $0x9e4] ss:$8 sps:$4 sm:$0xff]   ;;  %v4199_v40 = vld [vmem:[%s5744_s1 + $0x8e0] ss:$8 sps:$4 sm:$0xff]  }
 0x119   :  { %2963 = vmatpush1.bf16.msra.mxu1 %v4178_v5  ;;  %v4207_v41 = vld [vmem:[%s5744_s1 + $0x8d4] ss:$8 sps:$4 sm:$0xff]   ;;  %v4202_v43 = vld [vmem:[%s5744_s1 + $0x9e0] ss:$8 sps:$4 sm:$0xff]   ;;  %v4205_v45 = vld [vmem:[%s5744_s1 + $0x8d0] ss:$8 sps:$4 sm:$0xff]   ;;  %v576_v9 = vrot.slane %v548_v0, %v4557_v48 }
 0x11a   :  { %2964 = vmatprep.subr.bf16.mxu1 %v4186_v25  ;;  %v4210_v44 = vld [vmem:[%s5744_s1 + $0x9d4] ss:$8 sps:$4 sm:$0xff]   ;;  %v4213_v46 = vld [vmem:[%s5744_s1 + $0x8c4] ss:$8 sps:$4 sm:$0xff]   ;;  %v4208_v47 = vld [vmem:[%s5744_s1 + $0x9d0] ss:$8 sps:$4 sm:$0xff]  }
 0x11b   :  { %2924 = vmatpush1.bf16.msra.mxu0 %v4181_v26  ;;  %v4216_v49 = vld [vmem:[%s5744_s1 + $0x9c4] ss:$8 sps:$4 sm:$0xff]   ;;  %v4211_v50 = vld [vmem:[%s5744_s1 + $0x8c0] ss:$8 sps:$4 sm:$0xff]   ;;  %v4219_v24 = vld [vmem:[%s5744_s1 + $0x8b4] ss:$8 sps:$4 sm:$0xff]   ;;  %v580_v14 = vcombine.high %v576_v9, %v576_v9 }
 0x11c   :  { %2925 = vmatprep.subr.bf16.mxu0 %v4189_v27  ;;  %v4214_v51 = vld [vmem:[%s5744_s1 + $0x9c0] ss:$8 sps:$4 sm:$0xff]   ;;  %v4222_v52 = vld [vmem:[%s5744_s1 + $0x9b4] ss:$8 sps:$4 sm:$0xff]   ;;  %v4217_v53 = vld [vmem:[%s5744_s1 + $0x8b0] ss:$8 sps:$4 sm:$0xff]  }
 0x11d   :  { %2965 = vmatpush1.bf16.msra.mxu1 %v4184_v29  ;;  %v4225_v42 = vld [vmem:[%s5744_s1 + $0x8a4] ss:$8 sps:$4 sm:$0xff]   ;;  %v4220_v54 = vld [vmem:[%s5744_s1 + $0x9b0] ss:$8 sps:$4 sm:$0xff]   ;;  %v4223_v57 = vld [vmem:[%s5744_s1 + $0x8a0] ss:$8 sps:$4 sm:$0xff]  }
 0x11e   :  { %2966 = vmatprep.subr.bf16.mxu1 %v4192_v31  ;;  %v4228_v56 = vld [vmem:[%s5744_s1 + $0x9a4] ss:$8 sps:$4 sm:$0xff]   ;;  %v4231_v58 = vld [vmem:[%s5744_s1 + $0x894] ss:$8 sps:$4 sm:$0xff]   ;;  %v4226_v30 = vld [vmem:[%s5744_s1 + $0x9a0] ss:$8 sps:$4 sm:$0xff]  }
 0x11f   :  { %2926 = vmatpush1.bf16.msra.mxu0 %v4187_v32  ;;  %v4234_v60 = vld [vmem:[%s5744_s1 + $0x994] ss:$8 sps:$4 sm:$0xff]   ;;  %v4229_v61 = vld [vmem:[%s5744_s1 + $0x890] ss:$8 sps:$4 sm:$0xff]   ;;  %v4237_v62 = vld [vmem:[%s5744_s1 + $0x884] ss:$8 sps:$4 sm:$0xff]  }
 0x120   :  { %2927 = vmatprep.subr.bf16.mxu0 %v4195_v33  ;;  %v4232_v63 = vld [vmem:[%s5744_s1 + $0x990] ss:$8 sps:$4 sm:$0xff]   ;;  %v4240_v2 = vld [vmem:[%s5744_s1 + $0x984] ss:$8 sps:$4 sm:$0xff]   ;;  %v4235_v3 = vld [vmem:[%s5744_s1 + $0x880] ss:$8 sps:$4 sm:$0xff]  }
 0x121   :  { %2967 = vmatpush1.bf16.msra.mxu1 %v4190_v35  ;;  %v4243_v6 = vld [vmem:[%s5744_s1 + $0xa74] ss:$8 sps:$4 sm:$0xff]   ;;  %v4238_v8 = vld [vmem:[%s5744_s1 + $0x980] ss:$8 sps:$4 sm:$0xff]   ;;  %v4241_v34 = vld [vmem:[%s5744_s1 + $0xa70] ss:$8 sps:$4 sm:$0xff]  }
 0x122   :  { %2968 = vmatprep.subr.bf16.mxu1 %v4198_v36  ;;  %v4246_v10 = vld [vmem:[%s5744_s1 + $0xb74] ss:$8 sps:$4 sm:$0xff]   ;;  %v4249_v12 = vld [vmem:[%s5744_s1 + $0xa64] ss:$8 sps:$4 sm:$0xff]   ;;  %v4244_v13 = vld [vmem:[%s5744_s1 + $0xb70] ss:$8 sps:$4 sm:$0xff]  }
 0x123   :  { %2928 = vmatpush2.bf16.msra.mxu0 %v4193_v28  ;;  %v4252_v16 = vld [vmem:[%s5744_s1 + $0xb64] ss:$8 sps:$4 sm:$0xff]   ;;  %v4247_v18 = vld [vmem:[%s5744_s1 + $0xa60] ss:$8 sps:$4 sm:$0xff]   ;;  %v4255_v21 = vld [vmem:[%s5744_s1 + $0xa54] ss:$8 sps:$4 sm:$0xff]  }
 0x124   :  { %2929 = vmatprep.subr.bf16.mxu0 %v4201_v37  ;;  %v4258_v26 = vld [vmem:[%s5744_s1 + $0xb54] ss:$8 sps:$4 sm:$0xff]   ;;  %v4261_v31 = vld [vmem:[%s5744_s1 + $0xa44] ss:$8 sps:$4 sm:$0xff]   ;;  %v4256_v33 = vld [vmem:[%s5744_s1 + $0xb50] ss:$8 sps:$4 sm:$0xff]  }
 0x125   :  { %2969 = vmatpush2.bf16.msra.mxu1 %v4196_v38  ;;  %v4264_v35 = vld [vmem:[%s5744_s1 + $0xb44] ss:$8 sps:$4 sm:$0xff]   ;;  %v4259_v28 = vld [vmem:[%s5744_s1 + $0xa40] ss:$8 sps:$4 sm:$0xff]   ;;  %v4267_v37 = vld [vmem:[%s5744_s1 + $0xa34] ss:$8 sps:$4 sm:$0xff]  }
 0x126   :  { %2970 = vmatprep.subr.bf16.mxu1 %v4204_v39  ;;  %v4262_v38 = vld [vmem:[%s5744_s1 + $0xb40] ss:$8 sps:$4 sm:$0xff]   ;;  %v4270_v39 = vld [vmem:[%s5744_s1 + $0xb34] ss:$8 sps:$4 sm:$0xff]   ;;  %v4301_v0 = vld [vmem:[%s5744_s1 + $0xad0] ss:$8 sps:$4 sm:$0xff]  }
 0x127   :  { %2930 = vmatpush2.bf16.msra.mxu0 %v4199_v40  ;;  %v4265_v40 = vld [vmem:[%s5744_s1 + $0xa30] ss:$8 sps:$4 sm:$0xff]   ;;  %v4294_v55 = vld [vmem:[%s5744_s1 + $0xbf4] ss:$8 sps:$4 sm:$0xff]   ;;  %vm2579_vm0 = vcmask 523264   ;;  %vm3295_vm1 = vcmask 1041408  }
 0x128   :  { %2931 = vmatprep.subr.bf16.mxu0 %v4207_v41  ;;  %v4273_v41 = vld [vmem:[%s5744_s1 + $0xa24] ss:$8 sps:$4 sm:$0xff]   ;;  %s4394_s6 = smov [#allocation2]  }
 0x129   :  { %2971 = vmatpush2.bf16.msra.mxu1 %v4202_v43  ;;  %v4268_v43 = vld [vmem:[%s5744_s1 + $0xb30] ss:$8 sps:$4 sm:$0xff]   ;;  %s3315_s7 = sshll.u32 %s4394_s6, 4  ;;  %s3316_s7 = int_to_ptr.vmem [resolvable:$true] %s3315_s7 }
 0x12a   :  { %2972 = vmatprep.subr.bf16.mxu1 %v4210_v44  ;;  %v4276_v44 = vld [vmem:[%s5744_s1 + $0xb24] ss:$8 sps:$4 sm:$0xff]   ;;  %p4375_p1 = scmp.lt.s32.totalorder %s3316_s7, %s3316_s7 }
 0x12b   :  { %2932 = vmatpush2.bf16.msra.mxu0 %v4205_v45  ;;  %v4271_v45 = vld [vmem:[%s5744_s1 + $0xa20] ss:$8 sps:$4 sm:$0xff]  }
 0x12c   :  { %2933 = vmatprep.subr.bf16.mxu0 %v4213_v46  ;;  %v4279_v46 = vld [vmem:[%s5744_s1 + $0xa14] ss:$8 sps:$4 sm:$0xff]  }
 0x12d   :  { %2973 = vmatpush2.bf16.msra.mxu1 %v4208_v47  ;;  %v4274_v47 = vld [vmem:[%s5744_s1 + $0xb20] ss:$8 sps:$4 sm:$0xff]  }
 0x12e   :  { %2974 = vmatprep.subr.bf16.mxu1 %v4216_v49  ;;  %v4282_v49 = vld [vmem:[%s5744_s1 + $0xb14] ss:$8 sps:$4 sm:$0xff]  }
 0x12f   :  { %2934 = vmatpush2.bf16.msra.mxu0 %v4211_v50  ;;  %v4277_v50 = vld [vmem:[%s5744_s1 + $0xa10] ss:$8 sps:$4 sm:$0xff]  }
 0x130   :  { %2935 = vmatprep.subr.bf16.mxu0 %v4219_v24  ;;  %v4285_v24 = vld [vmem:[%s5744_s1 + $0xa04] ss:$8 sps:$4 sm:$0xff]  }
 0x131   :  { %2975 = vmatpush2.bf16.msra.mxu1 %v4214_v51  ;;  %v4280_v51 = vld [vmem:[%s5744_s1 + $0xb10] ss:$8 sps:$4 sm:$0xff]  }
 0x132   :  { %2976 = vmatprep.subr.bf16.mxu1 %v4222_v52  ;;  %v4288_v52 = vld [vmem:[%s5744_s1 + $0xb04] ss:$8 sps:$4 sm:$0xff]  }
 0x133   :  { %2936 = vmatpush2.bf16.msra.mxu0 %v4217_v53  ;;  %v4283_v53 = vld [vmem:[%s5744_s1 + $0xa00] ss:$8 sps:$4 sm:$0xff]  }
 0x134   :  { %2937 = vmatprep.subr.bf16.mxu0 %v4225_v42  ;;  %v4291_v42 = vld [vmem:[%s5744_s1 + $0xaf4] ss:$8 sps:$4 sm:$0xff]  }
 0x135   :  { %2977 = vmatpush2.bf16.msra.mxu1 %v4220_v54  ;;  %v4286_v54 = vld [vmem:[%s5744_s1 + $0xb00] ss:$8 sps:$4 sm:$0xff]  }
 0x136   :  { %2978 = vmatprep.subr.bf16.mxu1 %v4228_v56  ;;  %v4289_v56 = vld [vmem:[%s5744_s1 + $0xaf0] ss:$8 sps:$4 sm:$0xff]  }
 0x137   :  { %2938 = vmatpush2.bf16.msra.mxu0 %v4223_v57  ;;  %v4297_v57 = vld [vmem:[%s5744_s1 + $0xae4] ss:$8 sps:$4 sm:$0xff]  }
 0x138   :  { %2939 = vmatprep.subr.bf16.mxu0 %v4231_v58  ;;  %v4292_v58 = vld [vmem:[%s5744_s1 + $0xbf0] ss:$8 sps:$4 sm:$0xff]  }
 0x139   :  { %2979 = vmatpush2.bf16.msra.mxu1 %v4226_v30  ;;  %v4300_v30 = vld [vmem:[%s5744_s1 + $0xbe4] ss:$8 sps:$4 sm:$0xff]  }
 0x13a   :  { %2980 = vmatprep.subr.bf16.mxu1 %v4234_v60  ;;  %v4295_v60 = vld [vmem:[%s5744_s1 + $0xae0] ss:$8 sps:$4 sm:$0xff]  }
 0x13b   :  { %2940 = vmatpush2.bf16.msra.mxu0 %v4229_v61  ;;  %v4303_v61 = vld [vmem:[%s5744_s1 + $0xad4] ss:$8 sps:$4 sm:$0xff]  }
 0x13c   :  { %2941 = vmatprep.subr.bf16.mxu0 %v4237_v62  ;;  %v4298_v62 = vld [vmem:[%s5744_s1 + $0xbe0] ss:$8 sps:$4 sm:$0xff]  }
 0x13d   :  { %2981 = vmatpush2.bf16.msra.mxu1 %v4232_v63  ;;  %v4306_v63 = vld [vmem:[%s5744_s1 + $0xbd4] ss:$8 sps:$4 sm:$0xff]  }
 0x13e   :  { %2982 = vmatprep.subr.bf16.mxu1 %v4240_v2  ;;  %v4309_v2 = vld [vmem:[%s5744_s1 + $0xac4] ss:$8 sps:$4 sm:$0xff]  }
 0x13f   :  { %2942 = vmatpush2.bf16.msra.mxu0 %v4235_v3  ;;  %v4304_v3 = vld [vmem:[%s5744_s1 + $0xbd0] ss:$8 sps:$4 sm:$0xff]  }
 0x140   :  { %2993 = vmatprep.subr.bf16.mxu0 %v4243_v6  ;;  %v4307_v6 = vld [vmem:[%s5744_s1 + $0xac0] ss:$8 sps:$4 sm:$0xff]  }
 0x141   :  { %2983 = vmatpush2.bf16.msra.mxu1 %v4238_v8  ;;  %v4315_v8 = vld [vmem:[%s5744_s1 + $0xab4] ss:$8 sps:$4 sm:$0xff]  }
 0x142   :  { %v2699_v15 = vpop.f32.mrf.mxu0  ;;  %2944 = vmatmul.mubr.bf16.vlgmr.msra.gmra.mxu0 %v555_v4  ;;  %3034 = vmatprep.subr.bf16.mxu1 %v4246_v10  ;;  %v4312_v4 = vld [vmem:[%s5744_s1 + $0xbc4] ss:$8 sps:$4 sm:$0xff]   ;;  %v4318_v10 = vld [vmem:[%s5744_s1 + $0xbb4] ss:$8 sps:$4 sm:$0xff]  }
 0x143   :  { %v2700_v17 = vadd.f32 %v2699_v15, %v5280_v1  ;;  %2994 = vmatpush1.bf16.msra.mxu0 %v4241_v34  ;;  %3025 = vmatprep.mubr.bf16.mxu0 %v576_v9  ;;  %v4250_v1 = vld [vmem:[%s5744_s1 + $0xb60] ss:$8 sps:$4 sm:$0xff]   ;;  %v4313_v34 = vld [vmem:[%s5744_s1 + $0xab0] ss:$8 sps:$4 sm:$0xff]   ;;  %v4327_v15 = vld [vmem:[%s5744_s1 + $0xa94] ss:$8 sps:$4 sm:$0xff]  }
 0x144   :  { %v2701_v19 = vpop.f32.mrf.mxu0  ;;  %v2740_v20 = vpop.f32.mrf.mxu1  ;;  %2985 = vmatmul.mubr.bf16.vlgmr.msra.gmra.mxu1 %v577_v11  ;;  %2995 = vmatprep.subr.bf16.mxu0 %v4249_v12  ;;  %v4310_v9 = vld [vmem:[%s5744_s1 + $0xbc0] ss:$8 sps:$4 sm:$0xff]   ;;  %v4321_v11 = vld [vmem:[%s5744_s1 + $0xaa4] ss:$8 sps:$4 sm:$0xff]   ;;  %v4316_v12 = vld [vmem:[%s5744_s1 + $0xbb0] ss:$8 sps:$4 sm:$0xff]  }
 0x145   :  { %v2702_v22 = vadd.f32 %v2701_v19, %v5288_v7  ;;  %v5485_v23 = vadd.f32 %v2740_v20, %v2700_v17  ;;  %3035 = vmatpush1.bf16.msra.mxu1 %v4244_v13  ;;  %3066 = vmatprep.mubr.bf16.mxu1 %v580_v14  ;;  %v4253_v7 = vld [vmem:[%s5744_s1 + $0xa50] ss:$8 sps:$4 sm:$0xff]   ;;  %v4324_v13 = vld [vmem:[%s5744_s1 + $0xba4] ss:$8 sps:$4 sm:$0xff]   ;;  %v4319_v14 = vld [vmem:[%s5744_s1 + $0xaa0] ss:$8 sps:$4 sm:$0xff]  }
 0x146   :  { %v2703_v5 = vpop.f32.mrf.mxu0  ;;  %v2742_v25 = vpop.f32.mrf.mxu1  ;;  %3036 = vmatprep.subr.bf16.mxu1 %v4252_v16  ;;  %v4322_v16 = vld [vmem:[%s5744_s1 + $0xba0] ss:$8 sps:$4 sm:$0xff]   ;;  %v4330_v17 = vld [vmem:[%s5744_s1 + $0xb94] ss:$8 sps:$4 sm:$0xff]   ;;  %v4333_v19 = vld [vmem:[%s5744_s1 + $0xa84] ss:$8 sps:$4 sm:$0xff]  }
 0x147   :  { %v5493_v27 = vadd.f32 %v2742_v25, %v2702_v22  ;;  %2996 = vmatpush1.bf16.msra.mxu0 %v4247_v18  ;;  %v4325_v18 = vld [vmem:[%s5744_s1 + $0xa90] ss:$8 sps:$4 sm:$0xff]   ;;  %v4331_v22 = vld [vmem:[%s5744_s1 + $0xa80] ss:$8 sps:$4 sm:$0xff]   ;;  %v4340_v5 = vld [vmem:[%s5744_s1 + $0xc34] ss:$8 sps:$4 sm:$0xff]  }
 0x148   :  { %v2704_v29 = vpop.f32.mrf.mxu0  ;;  %2997 = vmatprep.subr.bf16.mxu0 %v4255_v21  ;;  %v2744_v32 = vpop.f32.mrf.mxu1  ;;  %v4328_v20 = vld [vmem:[%s5744_s1 + $0xb90] ss:$8 sps:$4 sm:$0xff]   ;;  %v4336_v21 = vld [vmem:[%s5744_s1 + $0xb84] ss:$8 sps:$4 sm:$0xff]   ;;  %v4334_v25 = vld [vmem:[%s5744_s1 + $0xb80] ss:$8 sps:$4 sm:$0xff]  }
 0x149   :  { %3037 = vmatpush1.bf16.msra.mxu1 %v4250_v1  ;;  %v562_v1 = vrot.slane %v5431_v59, %v4557_v48  ;;  %v4343_v59 = vld [vmem:[%s5744_s1 + $0xc24] ss:$8 sps:$4 sm:$0xff]   ;;  %v4341_v32 = vld [vmem:[%s5744_s1 + $0xc20] ss:$8 sps:$4 sm:$0xff]  }
 0x14a   :  { %3038 = vmatprep.subr.bf16.mxu1 %v4258_v26  ;;  %v2745_v36 = vpop.f32.mrf.mxu1  ;;  %v4338_v26 = vld [vmem:[%s5744_s1 + $0xc30] ss:$8 sps:$4 sm:$0xff]  }
 0x14b   :  { %2998 = vmatpush1.bf16.msra.mxu0 %v4253_v7  ;;  %v578_v7 = vcombine.high %v562_v1, %v562_v1 }
 0x14c   :  { %2999 = vmatprep.subr.bf16.mxu0 %v4261_v31 }
 0x14d   :  { %3039 = vmatpush1.bf16.msra.mxu1 %v4256_v33  ;;  %v4393_v33 = vmov 0  }
 0x14e   :  { %3040 = vmatprep.subr.bf16.mxu1 %v4264_v35 }
 0x14f   :  { %3000 = vmatpush1.bf16.msra.mxu0 %v4259_v28  ;;  %v4346_v28 = vld [vmem:[%s5744_s1 + $0xc14] ss:$8 sps:$4 sm:$0xff]  }
 0x150   :  { %3001 = vmatprep.subr.bf16.mxu0 %v4267_v37 }
 0x151   :  { %3041 = vmatpush1.bf16.msra.mxu1 %v4262_v38 }
 0x152   :  { %3042 = vmatprep.subr.bf16.mxu1 %v4270_v39 }
 0x153   :  { %3002 = vmatpush1.bf16.msra.mxu0 %v4265_v40 }
 0x154   :  { %3003 = vmatprep.subr.bf16.mxu0 %v4273_v41  ;;  %v4344_v41 = vld [vmem:[%s5744_s1 + $0xc10] ss:$8 sps:$4 sm:$0xff]  }
 0x155   :  { %3043 = vmatpush1.bf16.msra.mxu1 %v4268_v43 }
 0x156   :  { %3044 = vmatprep.subr.bf16.mxu1 %v4276_v44  ;;  %v4349_v44 = vld [vmem:[%s5744_s1 + $0xc04] ss:$8 sps:$4 sm:$0xff]  }
 0x157   :  { %3004 = vmatpush1.bf16.msra.mxu0 %v4271_v45 }
 0x158   :  { %3005 = vmatprep.subr.bf16.mxu0 %v4279_v46 }
 0x159   :  { %3045 = vmatpush1.bf16.msra.mxu1 %v4274_v47  ;;  %v4351_v47 = vld [vmem:[%s5746_s3 + $0x38] sm:$0xff]  }
 0x15a   :  { %3046 = vmatprep.subr.bf16.mxu1 %v4282_v49  ;;  %v4352_v49 = vld [vmem:[%s5746_s3 + $0x70] sm:$0xff]  }
 0x15b   :  { %3006 = vmatpush1.bf16.msra.mxu0 %v4277_v50  ;;  %v4347_v50 = vld [vmem:[%s5744_s1 + $0xc00] ss:$8 sps:$4 sm:$0xff]  }
 0x15c   :  { %3007 = vmatprep.subr.bf16.mxu0 %v4285_v24  ;;  %v3323_v24 = vld.sshfl [vmem:[%s5743_s0 + $0x18] sm:$0x1 pattern:$0x75316420] }
 0x15d   :  { %3047 = vmatpush1.bf16.msra.mxu1 %v4280_v51  ;;  %v4353_v51 = vld [vmem:[%s5746_s3 + $0x30] sm:$0xff]  }
 0x15e   :  { %3048 = vmatprep.subr.bf16.mxu1 %v4288_v52  ;;  %v594_v52 = vrot.slane %v3323_v24, %v4557_v48 }
 0x15f   :  { %3008 = vmatpush1.bf16.msra.mxu0 %v4283_v53 }
 0x160   :  { %3009 = vmatprep.subr.bf16.mxu0 %v4291_v42  ;;  %v4354_v42 = vld [vmem:[%s5746_s3 + $0x68] sm:$0xff]  }
 0x161   :  { %3049 = vmatpush1.bf16.msra.mxu1 %v4286_v54 }
 0x162   :  { %3050 = vmatprep.subr.bf16.mxu1 %v4294_v55  ;;  %v4355_v55 = vld [vmem:[%s5746_s3 + $0x28] sm:$0xff]  }
 0x163   :  { %3010 = vmatpush2.bf16.msra.mxu0 %v4289_v56 }
 0x164   :  { %3011 = vmatprep.subr.bf16.mxu0 %v4297_v57 }
 0x165   :  { %3051 = vmatpush2.bf16.msra.mxu1 %v4292_v58 }
 0x166   :  { %3052 = vmatprep.subr.bf16.mxu1 %v4300_v30 }
 0x167   :  { %3012 = vmatpush2.bf16.msra.mxu0 %v4295_v60 }
 0x168   :  { %3013 = vmatprep.subr.bf16.mxu0 %v4303_v61  ;;  %v4356_v61 = vld [vmem:[%s5746_s3 + $0x60] sm:$0xff]  }
 0x169   :  { %3053 = vmatpush2.bf16.msra.mxu1 %v4298_v62 }
 0x16a   :  { %3054 = vmatprep.subr.bf16.mxu1 %v4306_v63  ;;  %v4357_v63 = vld [vmem:[%s5746_s3 + $0x20] sm:$0xff]  }
 0x16b   :  { %3014 = vmatpush2.bf16.msra.mxu0 %v4301_v0 }
 0x16c   :  { %3015 = vmatprep.subr.bf16.mxu0 %v4309_v2 }
 0x16d   :  { %3055 = vmatpush2.bf16.msra.mxu1 %v4304_v3  ;;  %v4358_v3 = vld [vmem:[%s5746_s3 + $0x58] sm:$0xff]  }
 0x16e   :  { %3056 = vmatprep.subr.bf16.mxu1 %v4312_v4  ;;  %v4359_v4 = vld [vmem:[%s5746_s3 + $0x18] sm:$0xff]  }
 0x16f   :  { %3016 = vmatpush2.bf16.msra.mxu0 %v4307_v6 }
 0x170   :  { %3017 = vmatprep.subr.bf16.mxu0 %v4315_v8  ;;  %v4360_v8 = vld [vmem:[%s5746_s3 + $0x50] sm:$0xff]  }
 0x171   :  { %3057 = vmatpush2.bf16.msra.mxu1 %v4310_v9  ;;  %v4361_v9 = vld [vmem:[%s5746_s3 + $0x10] sm:$0xff]  }
 0x172   :  { %3058 = vmatprep.subr.bf16.mxu1 %v4318_v10  ;;  %v4362_v10 = vld [vmem:[%s5746_s3 + $0x48] sm:$0xff]  }
 0x173   :  { %3018 = vmatpush2.bf16.msra.mxu0 %v4313_v34  ;;  %v4363_v34 = vld [vmem:[%s5746_s3 + $0x8] sm:$0xff]  }
 0x174   :  { %3019 = vmatprep.subr.bf16.mxu0 %v4321_v11  ;;  %v4364_v11 = vld [vmem:[%s5746_s3 + $0x40] sm:$0xff]  }
 0x175   :  { %3059 = vmatpush2.bf16.msra.mxu1 %v4316_v12  ;;  %v4365_v12 = vld [vmem:[%s5746_s3] sm:$0xff]  }
 0x176   :  { %3060 = vmatprep.subr.bf16.mxu1 %v4324_v13 }
 0x177   :  { %3020 = vmatpush2.bf16.msra.mxu0 %v4319_v14 }
 0x178   :  { %3021 = vmatprep.subr.bf16.mxu0 %v4327_v15 }
 0x179   :  { %3061 = vmatpush2.bf16.msra.mxu1 %v4322_v16 }
 0x17a   :  { %3062 = vmatprep.subr.bf16.mxu1 %v4330_v17 }
 0x17b   :  { %3022 = vmatpush2.bf16.msra.mxu0 %v4325_v18 }
 0x17c   :  { %3023 = vmatprep.subr.bf16.mxu0 %v4333_v19 }
 0x17d   :  { %3063 = vmatpush2.bf16.msra.mxu1 %v4328_v20 }
 0x17e   :  { %3064 = vmatprep.subr.bf16.mxu1 %v4336_v21 }
 0x17f   :  { %3024 = vmatpush2.bf16.msra.mxu0 %v4331_v22 }
 0x180   :  { %3083 = vmatprep.subr.bf16.mxu0 %v4340_v5 }
 0x181   :  { %3065 = vmatpush2.bf16.msra.mxu1 %v4334_v25 }
 0x182   :  { %v2781_v29 = vpop.f32.mrf.mxu0  ;;  %3026 = vmatmul.mubr.bf16.vlgmr.msra.gmra.mxu0 %v562_v1 }
 0x183   :  { %v2782_v31 = vadd.f32 %v2781_v29, %v5485_v23  ;;  %3084 = vmatpush1.bf16.msra.mxu0 %v4338_v26  ;;  %3107 = vmatprep.mubr.bf16.mxu0 %v4393_v33 }
 0x184   :  { %v2783_v35 = vpop.f32.mrf.mxu0  ;;  %v2822_v36 = vpop.f32.mrf.mxu1  ;;  %3067 = vmatmul.mubr.bf16.vlgmr.msra.gmra.mxu1 %v578_v7  ;;  %3085 = vmatprep.subr.bf16.mxu0 %v4343_v59 }
 0x185   :  { %v2784_v37 = vadd.f32 %v2783_v35, %v5493_v27  ;;  %v2823_v38 = vadd.f32 %v2822_v36, %v2782_v31  ;;  %v4350_v27 = vld [vmem:[%s5746_s3 + $0x78] sm:$0xff]  }
 0x186   :  { %v2785_v39 = vpop.f32.mrf.mxu0  ;;  %v2824_v23 = vpop.f32.mrf.mxu1  ;;  %3734 = vmatprep.subr.bf16.mxu1 %v4350_v27 }
 0x187   :  { %v2825_v40 = vadd.f32 %v2824_v23, %v2784_v37  ;;  %3086 = vmatpush1.bf16.msra.mxu0 %v4341_v32  ;;  %3735 = vmatpush3.bf16.msra.mxu1 %v4351_v47 }
 0x188   :  { %v2786_v43 = vpop.f32.mrf.mxu0  ;;  %3087 = vmatprep.subr.bf16.mxu0 %v4346_v28  ;;  %v2826_v45 = vpop.f32.mrf.mxu1  ;;  %3736 = vmatprep.subr.bf16.mxu1 %v4352_v49 }
 0x18a   :  { %v2827_v46 = vpop.f32.mrf.mxu1 }
 0x18b   :  { %3088 = vmatpush1.bf16.msra.mxu0 %v4344_v41  ;;  %3737 = vmatpush3.bf16.msra.mxu1 %v4353_v51 }
 0x18c   :  { %3089 = vmatprep.subr.bf16.mxu0 %v4349_v44  ;;  %3738 = vmatprep.subr.bf16.mxu1 %v4354_v42 }
 0x18f   :  { %3090 = vmatpush1.bf16.msra.mxu0 %v4347_v50  ;;  %3739 = vmatpush3.bf16.msra.mxu1 %v4355_v55  ;;  %v3717_v50 = vld [vmem:[%s5747_s4] ss:$0 sm:$0xff]  ;;  %s4370_s4 = scalar_lea.vmem %s3316_s7, 32 }
 0x190   :  { %3740 = vmatprep.subr.bf16.mxu1 %v4356_v61  ;;  %p4371_p0 = scmp.ne.s32.totalorder %s3316_s7, %s4370_s4  ;;  %p4376_p2 = scmp.lt.s32.totalorder %s4370_s4, %s4370_s4 }
 0x192   :  { %3716 = vmatmul.mubr.msk.bf16.vlgmr.msra.gmra.mxu0 %vm2579_vm0, %v594_v52  ;;  %p4377_p3 = por %p4376_p2, %p4375_p1 }
 0x193   :  { %3741 = vmatpush3.bf16.msra.mxu1 %v4357_v63 }
 0x194   :  { %3742 = vmatprep.subr.bf16.mxu1 %v4358_v3  ;;  %p4378_p4 = pnand %p4377_p3, %p4371_p0 }
 0x197   :  { %3743 = vmatpush3.bf16.msra.mxu1 %v4359_v4 }
 0x198   :  { %3744 = vmatprep.subr.bf16.mxu1 %v4360_v8 }
 0x19b   :  { %3745 = vmatpush3.bf16.msra.mxu1 %v4361_v9 }
 0x19c   :  { %3746 = vmatprep.subr.bf16.mxu1 %v4362_v10 }
 0x19f   :  { %3747 = vmatpush3.bf16.msra.mxu1 %v4363_v34 }
 0x1a0   :  { %3748 = vmatprep.subr.bf16.mxu1 %v4364_v11 }
 0x1a3   :  { %3749 = vmatpush3.bf16.msra.mxu1 %v4365_v12 }
 0x1c2   :  { %v2863_v53 = vpop.f32.mrf.mxu0 }
 0x1c3   :  { %v2864_v54 = vadd.f32 %v2863_v53, %v2823_v38 }
 0x1c4   :  { %v2865_v56 = vpop.f32.mrf.mxu0  ;;  %v2904_v57 = vpop.f32.mrf.mxu1 }
 0x1c5   :  { %v2866_v58 = vadd.f32 %v2865_v56, %v2825_v40  ;;  %v2905_v48 = vadd.f32 %v2904_v57, %v2864_v54 }
 0x1c6   :  { %v2867_v30 = vpop.f32.mrf.mxu0  ;;  %v2906_v60 = vpop.f32.mrf.mxu1 }
 0x1c7   :  { %v2907_v62 = vadd.f32 %v2906_v60, %v2866_v58 }
 0x1c8   :  { %v2868_v0 = vpop.f32.mrf.mxu0  ;;  %v2908_v2 = vpop.f32.mrf.mxu1 }
 0x1ca   :  { %v2909_v6 = vpop.f32.mrf.mxu1 }
 0x202   :  { %v2945_v13 = vpop.f32.mrf.mxu0 }
 0x203   :  { %v2946_v14 = vadd.f32 %v2945_v13, %v2905_v48 }
 0x204   :  { %v2947_v15 = vpop.f32.mrf.mxu0  ;;  %v2986_v16 = vpop.f32.mrf.mxu1 }
 0x205   :  { %v2948_v17 = vadd.f32 %v2947_v15, %v2907_v62  ;;  %v2987_v18 = vadd.f32 %v2986_v16, %v2946_v14 }
 0x206   :  { %v2949_v19 = vpop.f32.mrf.mxu0  ;;  %v2988_v20 = vpop.f32.mrf.mxu1 }
 0x207   :  { %v2989_v21 = vadd.f32 %v2988_v20, %v2948_v17 }
 0x208   :  { %v2950_v22 = vpop.f32.mrf.mxu0  ;;  %v2990_v1 = vpop.f32.mrf.mxu1 }
 0x20a   :  { %v2991_v5 = vpop.f32.mrf.mxu1 }
 0x242   :  { %v3027_v25 = vpop.f32.mrf.mxu0 }
 0x243   :  { %v3028_v35 = vadd.f32 %v3027_v25, %v2987_v18 }
 0x244   :  { %v3029_v26 = vpop.f32.mrf.mxu0  ;;  %v3068_v7 = vpop.f32.mrf.mxu1 }
 0x245   :  { %v3030_v36 = vadd.f32 %v3029_v26, %v2989_v21  ;;  %v3069_v28 = vadd.f32 %v3068_v7, %v3028_v35 }
 0x246   :  { %v3031_v59 = vpop.f32.mrf.mxu0  ;;  %v3070_v29 = vpop.f32.mrf.mxu1 }
 0x247   :  { %v3071_v38 = vadd.f32 %v3070_v29, %v3030_v36 }
 0x248   :  { %v3032_v31 = vpop.f32.mrf.mxu0  ;;  %v3072_v32 = vpop.f32.mrf.mxu1 }
 0x24a   :  { %v3073_v33 = vpop.f32.mrf.mxu1 }
 0x252   :  { %v3109_v37 = vpop.f32.mrf.mxu0 }
 0x253   :  { %v3110_v39 = vadd.f32 %v3109_v37, %v3069_v28 }
 0x254   :  { %v3111_v23 = vpop.f32.mrf.mxu0 }
 0x255   :  { %v3112_v40 = vadd.f32 %v3111_v23, %v3071_v38  ;;  %v3116_v41 = vmax.f32 %v3110_v39, 0.0 }
 0x256   :  { %v3113_v43 = vpop.f32.mrf.mxu0 }
 0x257   :  { %v3117_v44 = vmax.f32 %v3112_v40, 0.0  ;;  %v3118_v27 = vpack.c.bf16 %v3116_v41, %v3116_v41 }
 0x258   :  { %v3114_v45 = vpop.f32.mrf.mxu0 }
 0x259   :  { %v3119_v46 = vpack.c.bf16 %v3117_v44, %v3117_v44 }
 0x25b   :  { %3287 = vmatprep.mubr.bf16.mxu1 %v3119_v46 }
 0x25c   :  { %3288 = vmatmul.mubr.bf16.vlgmr.msra.gmra.mxu1 %v3118_v27 }
 0x31c   :  { %v3750_v47 = vpop.f32.mrf.mxu1 }
 0x31e   :  { %v3751_v49 = vpop.f32.mrf.mxu1 }
 0x31f   :  { %v3752_v24 = vadd.f32 %v3751_v49, %v3750_v47 }
 0x320   :  { %v3753_v51 = vpop.f32.mrf.mxu1 }
 0x321   :  { %v3290_v52 = vadd.f32 %v3752_v24, %v3717_v50 }
 0x322   :  { %v3754_v53 = vpop.f32.mrf.mxu1 }
 0x323   :  { %v3296_v42 = vsel %vm3295_vm1, %v3290_v52, -inf }
 0x324   :  { %3297 = vmax.xlane.f32.xlu0 %v3296_v42 }
 0x3ad   :  { %v3298_v54 = vpop.xlane.xlu0 %3297 }
 0x3ae   :  { %v3299_v55 = vsub.f32 %v3290_v52, %v3298_v54 }
 0x3b0   :  { %v3300_v56 = vmul.f32 1.442695, %v3299_v55 }
 0x3b2   :  { %4366 = vpow2.f32 %v3300_v56 }
 0x3bf   :  { %v4367_v57 = vpop.eup %4366 }
 0x3c0   :  { %v3302_v58 = vsel %vm3295_vm1, %v4367_v57, 0.0 }
 0x3c1   :  { %3303 = vadd.xlane.f32.xlu0 %v3302_v58 }
 0x44a   :  { %v3304_v48 = vpop.xlane.xlu0 %3303 }
 0x44b   :  { %4368 = vlog2.f32 %v3304_v48 }
 0x458   :  { %v4369_v30 = vpop.eup %4368 }
 0x459   :  { %v3306_v60 = vmul.f32 0.6931472, %v4369_v30 }
 0x45b   :  { %v3307_v61 = vsub.f32 %v3299_v55, %v3306_v60 }
 0x45d   :  { %3308 = vst [vmem:[#allocation2] sm:$0x3] %v3307_v61 }
 0x45e   :  { %4381 = shalt.err (!%p4378_p4)
}
 0x45f   :  { %3318 = dma.vmem_to_hbm [thread:$0]  %s3316_s7, 32, %s5748_s5, [#allocation3]  }
 0x460   :  { %4390 = dma.done.wait [#allocation3], 32  }
 0x461   :  { %4391 = vsyncadd [#allocation3], 4294967264 }
 0x462   :  { %3322 = vsyncpa [#allocation3], 1 }

// kernel: mnist_forward.2
= control target key start
LH: loop header
LB: loop body
LE: loop exit
PB: predicated region body
PF: predicated region fallthrough
CT: control target
= control target key end

     0   :  { %v8482_v3 = vmov 0   ;;  %vm196_vm0 = vcmask 523264   ;;  %s13875_s1 = inlined_call_operand.vmem [shape: bf16[64,1024], index: 1, kind: input, shape index: {}]   ;;  %s13876_s0 = inlined_call_operand.vmem [shape: bf16[98,64], index: 0, kind: input, shape index: {}]   ;;  %s13877_s3 = inlined_call_operand.vmem [shape: bf16[9,256,256], index: 3, kind: input, shape index: {}]   ;;  %s13878_s2 = inlined_call_operand.vmem [shape: f32[1,512], index: 2, kind: input, shape index: {}]   ;;  %s13879_s4 = inlined_call_operand.vmem [shape: f32[1,256], index: 4, kind: input, shape index: {}]   ;;  %s13880_s5 = inlined_call_operand.vmem [shape: bf16[98,64], index: 5, kind: output, shape index: {}]  }
   0x1   :  { %v57_v0 = vld [vmem:[%s13875_s1 + $0xc0] sm:$0xff]  ;;  %280 = vmatprep.mubr.bf16.mxu1 %v8482_v3  ;;  %27 = vst [vmem:[#allocation2] sm:$0xff] %v8482_v3  ;;  %28 = vst [vmem:[#allocation2 + $0x8] sm:$0xff] %v8482_v3  ;;  %250 = vmatprep.mubr.bf16.mxu0 %v8482_v3  ;;  %v58_v16 = vld [vmem:[%s13875_s1 + $0xc8] sm:$0xff] }
   0x2   :  { %v59_v1 = vld [vmem:[%s13875_s1 + $0xe0] sm:$0xff]  ;;  %29 = vst [vmem:[#allocation2 + $0x70] sm:$0xee] %v8482_v3  ;;  %30 = vst [vmem:[#allocation2 + $0x78] sm:$0xff] %v8482_v3  ;;  %v60_v17 = vld [vmem:[%s13875_s1 + $0xe8] sm:$0xff] }
   0x3   :  { %v53_v2 = vld [vmem:[%s13875_s1 + $0x80] sm:$0xff]  ;;  %v7082_v4 = vcombine.high %v57_v0, %v59_v1  ;;  %v7081_v5 = vcombine.low %v57_v0, %v59_v1  ;;  %v7084_v19 = vcombine.high %v58_v16, %v60_v17  ;;  %v54_v20 = vld [vmem:[%s13875_s1 + $0x88] sm:$0xff]  ;;  %v602_v22 = vld [vmem:[%s13875_s1 + $0xd0] sm:$0xff]  ;;  %v7083_v27 = vcombine.low %v58_v16, %v60_v17 }
   0x4   :  { %v55_v6 = vld [vmem:[%s13875_s1 + $0xa0] sm:$0xff]  ;;  %v56_v21 = vld [vmem:[%s13875_s1 + $0xa8] sm:$0xff]  ;;  %v604_v23 = vld [vmem:[%s13875_s1 + $0xf0] sm:$0xff] }
   0x5   :  { %v7078_v7 = vcombine.high %v53_v2, %v55_v6  ;;  %v49_v8 = vld [vmem:[%s13875_s1 + $0x40] sm:$0xff]  ;;  %7899 = vmatprep.subr.bf16.mxu1 %v7082_v4  ;;  %226 = vmatprep.subr.bf16.mxu0 %v7082_v4  ;;  %v7077_v10 = vcombine.low %v53_v2, %v55_v6  ;;  %v8565_v24 = vld [vmem:[%s13876_s0 + $0x18] sm:$0xff]   ;;  %v7132_v26 = vcombine.high %v602_v22, %v604_v23  ;;  %v598_v28 = vld [vmem:[%s13875_s1 + $0x90] sm:$0xff] }
   0x6   :  { %v51_v9 = vld [vmem:[%s13875_s1 + $0x60] sm:$0xff]  ;;  %7903 = vmatpush1.bf16.msra.mxu1 %v7081_v5  ;;  %227 = vmatpush1.bf16.msra.mxu0 %v7081_v5  ;;  %v600_v29 = vld [vmem:[%s13875_s1 + $0xb0] sm:$0xff]  ;;  %v7080_v30 = vcombine.high %v54_v20, %v56_v21  ;;  %v50_v31 = vld [vmem:[%s13875_s1 + $0x48] sm:$0xff]  ;;  %v7131_v33 = vcombine.low %v602_v22, %v604_v23  ;;  %v7079_v35 = vcombine.low %v54_v20, %v56_v21  ;;  %v63_v21 = vlaneseq }
   0x7   :  { %7900 = vmatprep.subr.bf16.mxu1 %v7078_v7  ;;  %v7074_v11 = vcombine.high %v49_v8, %v51_v9  ;;  %v45_v12 = vld [vmem:[%s13875_s1] sm:$0xff]  ;;  %228 = vmatprep.subr.bf16.mxu0 %v7078_v7  ;;  %v7073_v14 = vcombine.low %v49_v8, %v51_v9  ;;  %v52_v32 = vld [vmem:[%s13875_s1 + $0x68] sm:$0xff]  ;;  %v7128_v34 = vcombine.high %v598_v28, %v600_v29  ;;  %v594_v42 = vld [vmem:[%s13875_s1 + $0x50] sm:$0xff] }
   0x8   :  { %v47_v13 = vld [vmem:[%s13875_s1 + $0x20] sm:$0xff]  ;;  %v46_v36 = vld [vmem:[%s13875_s1 + $0x8] sm:$0xff]  ;;  %v7076_v38 = vcombine.high %v50_v31, %v52_v32  ;;  %v7127_v41 = vcombine.low %v598_v28, %v600_v29  ;;  %v596_v43 = vld [vmem:[%s13875_s1 + $0x70] sm:$0xff]  ;;  %v7075_v44 = vcombine.low %v50_v31, %v52_v32 }
   0x9   :  { %v7070_v15 = vcombine.high %v45_v12, %v47_v13  ;;  %v7069_v18 = vcombine.low %v45_v12, %v47_v13  ;;  %v8570_v25 = vld [vmem:[%s13876_s0] sm:$0xff]   ;;  %v48_v39 = vld [vmem:[%s13875_s1 + $0x28] sm:$0xff]  ;;  %v590_v46 = vld [vmem:[%s13875_s1 + $0x10] sm:$0xff]  ;;  %v7124_v50 = vcombine.high %v594_v42, %v596_v43  ;;  %v7123_v51 = vcombine.low %v594_v42, %v596_v43 }
   0xa   :  { %7904 = vmatpush1.bf16.msra.mxu1 %v7077_v10  ;;  %229 = vmatpush1.bf16.msra.mxu0 %v7077_v10  ;;  %v8595_v37 = vld [vmem:[%s13876_s0 + $0x20] sm:$0xff]   ;;  %v8604_v40 = vld [vmem:[%s13876_s0 + $0x8] sm:$0xff]   ;;  %v7072_v45 = vcombine.high %v46_v36, %v48_v39  ;;  %v592_v47 = vld [vmem:[%s13875_s1 + $0x30] sm:$0xff]  ;;  %v7071_v52 = vcombine.low %v46_v36, %v48_v39 }
   0xb   :  { %7901 = vmatprep.subr.bf16.mxu1 %v7074_v11  ;;  %230 = vmatprep.subr.bf16.mxu0 %v7074_v11  ;;  %v603_v48 = vld [vmem:[%s13875_s1 + $0xd8] sm:$0xff]  ;;  %v7120_v53 = vcombine.high %v590_v46, %v592_v47  ;;  %v8633_v55 = vld [vmem:[%s13876_s0 + $0x28] sm:$0xff]   ;;  %v7997_v56 = vld [vmem:[%s13876_s0 + $0x10] sm:$0xff]   ;;  %v7119_v57 = vcombine.low %v590_v46, %v592_v47 }
   0xc   :  { %v605_v49 = vld [vmem:[%s13875_s1 + $0xf8] sm:$0xff]  ;;  %v7994_v58 = vld [vmem:[%s13876_s0 + $0x30] ss:$0 sps:$4 sm:$0x11]   ;;  %v7998_v59 = vld [vmem:[%s13876_s0] sm:$0xff]  }
   0xd   :  { %v7134_v54 = vcombine.high %v603_v48, %v605_v49  ;;  %v599_v60 = vld [vmem:[%s13875_s1 + $0x98] sm:$0xff]  ;;  %v7999_v62 = vld [vmem:[%s13876_s0 + $0x8] sm:$0xff]   ;;  %v7133_v63 = vcombine.low %v603_v48, %v605_v49  ;;  %v8000_v8 = vld [vmem:[%s13876_s0 + $0x10] sm:$0xff]  }
   0xe   :  { %7905 = vmatpush1.bf16.msra.mxu1 %v7073_v14  ;;  %231 = vmatpush1.bf16.msra.mxu0 %v7073_v14  ;;  %v601_v61 = vld [vmem:[%s13875_s1 + $0xb8] sm:$0xff]  ;;  %v8002_v13 = vld [vmem:[%s13876_s0 + $0x20] sm:$0xff]   ;;  %v8003_v14 = vld [vmem:[%s13876_s0 + $0x28] sm:$0xff]  }
   0xf   :  { %7902 = vmatprep.subr.bf16.mxu1 %v7070_v15  ;;  %232 = vmatprep.subr.bf16.mxu0 %v7070_v15  ;;  %v7130_v0 = vcombine.high %v599_v60, %v601_v61  ;;  %v595_v1 = vld [vmem:[%s13875_s1 + $0x58] sm:$0xff]  ;;  %v7129_v4 = vcombine.low %v599_v60, %v601_v61  ;;  %v8713_v15 = vld [vmem:[%s13876_s0 + $0x30] ss:$0 sps:$4 sm:$0x11]   ;;  %v8016_v23 = vld [vmem:[%s13877_s3 + $0x44] ss:$8 sps:$4 sm:$0xff]  }
  0x10   :  { %v597_v2 = vld [vmem:[%s13875_s1 + $0x78] sm:$0xff]  ;;  %v8025_v32 = vld [vmem:[%s13877_s3 + $0x164] ss:$8 sps:$4 sm:$0xff]   ;;  %v8026_v39 = vld [vmem:[%s13877_s3 + $0x20] ss:$8 sps:$4 sm:$0xff]  }
  0x11   :  { %v7126_v5 = vcombine.high %v595_v1, %v597_v2  ;;  %v591_v6 = vld [vmem:[%s13875_s1 + $0x18] sm:$0xff]  ;;  %v7125_v9 = vcombine.low %v595_v1, %v597_v2  ;;  %v8037_v48 = vld [vmem:[%s13877_s3 + $0x144] ss:$8 sps:$4 sm:$0xff]  }
  0x12   :  { %7906 = vmatpush1.bf16.msra.mxu1 %v7069_v18  ;;  %233 = vmatpush1.bf16.msra.mxu0 %v7069_v18  ;;  %v593_v7 = vld [vmem:[%s13875_s1 + $0x38] sm:$0xff]  ;;  %v8010_v18 = vld [vmem:[%s13877_s3 + $0x64] ss:$8 sps:$4 sm:$0xff]  }
  0x13   :  { %327 = vmatprep.subr.bf16.mxu1 %v7084_v19  ;;  %770 = vmatprep.subr.bf16.mxu0 %v7132_v26  ;;  %v7122_v10 = vcombine.high %v591_v6, %v593_v7  ;;  %v7121_v11 = vcombine.low %v591_v6, %v593_v7  ;;  %v8001_v12 = vld [vmem:[%s13876_s0 + $0x18] sm:$0xff]   ;;  %v8008_v19 = vld [vmem:[%s13877_s3 + $0x60] ss:$8 sps:$4 sm:$0xff]   ;;  %v8049_v7 = vld [vmem:[%s13877_s3 + $0x124] ss:$8 sps:$4 sm:$0xff]  }
  0x14   :  { %v8007_v16 = vld [vmem:[%s13877_s3 + $0x74] ss:$8 sps:$4 sm:$0xff]   ;;  %v8005_v17 = vld [vmem:[%s13877_s3 + $0x70] ss:$8 sps:$4 sm:$0xff]  }
  0x15   :  { %7088 = vmatmul.mubr.msk.bf16.vlgmr.msra.gmra.mxu1 %vm196_vm0, %v8565_v24  ;;  %7085 = vmatmul.mubr.msk.bf16.vlgmr.msra.gmra.mxu0 %vm196_vm0, %v8570_v25  ;;  %v8013_v20 = vld [vmem:[%s13877_s3 + $0x54] ss:$8 sps:$4 sm:$0xff]   ;;  %v8011_v22 = vld [vmem:[%s13877_s3 + $0x50] ss:$8 sps:$4 sm:$0xff]  }
  0x16   :  { %328 = vmatpush1.bf16.msra.mxu1 %v7083_v27  ;;  %290 = vmatprep.mubr.bf16.mxu1 %v8482_v3  ;;  %v8019_v26 = vld [vmem:[%s13877_s3 + $0x174] ss:$8 sps:$4 sm:$0xff]   ;;  %v8017_v27 = vld [vmem:[%s13877_s3 + $0x170] ss:$8 sps:$4 sm:$0xff]  }
  0x17   :  { %329 = vmatprep.subr.bf16.mxu1 %v7080_v30  ;;  %260 = vmatprep.mubr.bf16.mxu0 %v8482_v3  ;;  %v8022_v30 = vld [vmem:[%s13877_s3 + $0x34] ss:$8 sps:$4 sm:$0xff]   ;;  %v8020_v31 = vld [vmem:[%s13877_s3 + $0x30] ss:$8 sps:$4 sm:$0xff]  }
  0x18   :  { %771 = vmatpush1.bf16.msra.mxu0 %v7131_v33  ;;  %v8029_v42 = vld [vmem:[%s13877_s3 + $0x150] ss:$8 sps:$4 sm:$0xff]   ;;  %v8034_v46 = vld [vmem:[%s13877_s3 + $0x14] ss:$8 sps:$4 sm:$0xff]  }
  0x19   :  { %772 = vmatprep.subr.bf16.mxu0 %v7128_v34  ;;  %v8023_v34 = vld [vmem:[%s13877_s3 + $0x160] ss:$8 sps:$4 sm:$0xff]   ;;  %v8032_v47 = vld [vmem:[%s13877_s3 + $0x10] ss:$8 sps:$4 sm:$0xff]   ;;  %v8046_v2 = vld [vmem:[%s13877_s3 + $0xf4] ss:$8 sps:$4 sm:$0xff]  }
  0x1a   :  { %330 = vmatpush1.bf16.msra.mxu1 %v7079_v35  ;;  %v8041_v60 = vld [vmem:[%s13877_s3 + $0x130] ss:$8 sps:$4 sm:$0xff]  }
  0x1b   :  { %331 = vmatprep.subr.bf16.mxu1 %v7076_v38  ;;  %v8028_v38 = vld [vmem:[%s13877_s3 + $0x24] ss:$8 sps:$4 sm:$0xff]   ;;  %v8044_v6 = vld [vmem:[%s13877_s3 + $0xf0] ss:$8 sps:$4 sm:$0xff]  }
  0x1c   :  { %773 = vmatpush1.bf16.msra.mxu0 %v7127_v41 }
  0x1d   :  { %7089 = vmatmul.mubr.msk.bf16.gmra.mxu1 %vm196_vm0, %v8595_v37  ;;  %7086 = vmatmul.mubr.msk.bf16.gmra.mxu0 %vm196_vm0, %v8604_v40 }
  0x1e   :  { %300 = vmatprep.mubr.bf16.mxu1 %v8482_v3  ;;  %332 = vmatpush1.bf16.msra.mxu1 %v7075_v44 }
  0x1f   :  { %333 = vmatprep.subr.bf16.mxu1 %v7072_v45  ;;  %270 = vmatprep.mubr.bf16.mxu0 %v8482_v3 }
  0x20   :  { %774 = vmatprep.subr.bf16.mxu0 %v7124_v50  ;;  %v8035_v50 = vld [vmem:[%s13877_s3 + $0x140] ss:$8 sps:$4 sm:$0xff]  }
  0x21   :  { %775 = vmatpush1.bf16.msra.mxu0 %v7123_v51 }
  0x22   :  { %334 = vmatpush1.bf16.msra.mxu1 %v7071_v52  ;;  %776 = vmatprep.subr.bf16.mxu0 %v7120_v53 }
  0x23   :  { %871 = vmatprep.subr.bf16.mxu1 %v7134_v54 }
  0x25   :  { %7090 = vmatmul.mubr.msk.bf16.gmra.mxu1 %vm196_vm0, %v8633_v55  ;;  %7087 = vmatmul.mubr.msk.bf16.gmra.mxu0 %vm196_vm0, %v7997_v56 }
  0x26   :  { %310 = vmatprep.mubr.bf16.mxu1 %v8482_v3  ;;  %777 = vmatpush1.bf16.msra.mxu0 %v7119_v57 }
  0x27   :  { %794 = vmatprep.mubr.bf16.mxu0 %v8482_v3  ;;  %2320 = vmatprep.subr.bf16.mxu0 %v8019_v26 }
  0x2d   :  { %7091 = vmatmul.mubr.msk.bf16.gmra.mxu1 %vm196_vm0, %v7994_v58  ;;  %7135 = vmatmul.mubr.msk.bf16.vlgmr.msra.gmra.mxu0 %vm196_vm0, %v7998_v59 }
  0x2e   :  { %351 = vmatprep.mubr.bf16.mxu1 %v8482_v3  ;;  %804 = vmatprep.mubr.bf16.mxu0 %v8482_v3 }
  0x2f   :  { %2321 = vmatpush1.bf16.msra.mxu0 %v8017_v27 }
  0x30   :  { %2322 = vmatprep.subr.bf16.mxu0 %v8025_v32  ;;  %v8059_v32 = vld [vmem:[%s13877_s3 + $0x100] ss:$8 sps:$4 sm:$0xff]  }
  0x33   :  { %2323 = vmatpush1.bf16.msra.mxu0 %v8023_v34 }
  0x35   :  { %7092 = vmatmul.mubr.msk.bf16.vlgmr.msra.gmra.mxu1 %vm196_vm0, %v8570_v25  ;;  %7136 = vmatmul.mubr.msk.bf16.gmra.mxu0 %vm196_vm0, %v7999_v62  ;;  %v8014_v25 = vld [vmem:[%s13877_s3 + $0x40] ss:$8 sps:$4 sm:$0xff]  }
  0x36   :  { %872 = vmatpush1.bf16.msra.mxu1 %v7133_v63  ;;  %361 = vmatprep.mubr.bf16.mxu1 %v8482_v3 }
  0x37   :  { %873 = vmatprep.subr.bf16.mxu1 %v7130_v0  ;;  %814 = vmatprep.mubr.bf16.mxu0 %v8482_v3 }
  0x3a   :  { %874 = vmatpush1.bf16.msra.mxu1 %v7129_v4 }
  0x3b   :  { %875 = vmatprep.subr.bf16.mxu1 %v7126_v5 }
  0x3d   :  { %7093 = vmatmul.mubr.msk.bf16.gmra.mxu1 %vm196_vm0, %v8604_v40  ;;  %7137 = vmatmul.mubr.msk.bf16.gmra.mxu0 %vm196_vm0, %v8000_v8  ;;  %v8031_v40 = vld [vmem:[%s13877_s3 + $0x154] ss:$8 sps:$4 sm:$0xff]  }
  0x3e   :  { %371 = vmatprep.mubr.bf16.mxu1 %v8482_v3  ;;  %876 = vmatpush1.bf16.msra.mxu1 %v7125_v9 }
  0x3f   :  { %877 = vmatprep.subr.bf16.mxu1 %v7122_v10  ;;  %824 = vmatprep.mubr.bf16.mxu0 %v8482_v3  ;;  %v8047_v10 = vld [vmem:[%s13877_s3 + $0x120] ss:$8 sps:$4 sm:$0xff]  }
  0x40   :  { %2324 = vmatprep.subr.bf16.mxu0 %v8031_v40  ;;  %v8062_v40 = vld [vmem:[%s13877_s3 + $0xc0] ss:$8 sps:$4 sm:$0xff]  }
  0x41   :  { %2325 = vmatpush1.bf16.msra.mxu0 %v8029_v42 }
  0x42   :  { %878 = vmatpush1.bf16.msra.mxu1 %v7121_v11  ;;  %2326 = vmatprep.subr.bf16.mxu0 %v8037_v48 }
  0x43   :  { %2648 = vmatprep.subr.bf16.mxu1 %v8007_v16  ;;  %v8052_v16 = vld [vmem:[%s13877_s3 + $0xe4] ss:$8 sps:$4 sm:$0xff]  }
  0x45   :  { %7094 = vmatmul.mubr.msk.bf16.gmra.mxu1 %vm196_vm0, %v7997_v56  ;;  %7138 = vmatmul.mubr.msk.bf16.gmra.mxu0 %vm196_vm0, %v8001_v12  ;;  %v8040_v56 = vld [vmem:[%s13877_s3 + $0x4] ss:$8 sps:$4 sm:$0xff]  }
  0x46   :  { %381 = vmatprep.mubr.bf16.mxu1 %v8482_v3  ;;  %834 = vmatprep.mubr.bf16.mxu0 %v8482_v3 }
  0x47   :  { %2327 = vmatpush1.bf16.msra.mxu0 %v8035_v50 }
  0x4d   :  { %7095 = vmatmul.mubr.msk.bf16.gmra.mxu1 %vm196_vm0, %v8565_v24  ;;  %7139 = vmatmul.mubr.msk.bf16.gmra.mxu0 %vm196_vm0, %v8002_v13  ;;  %v8753_v24 = vshrl.u32 %v63_v21, 7  ;;  %v8053_v21 = vld [vmem:[%s13877_s3 + $0x110] ss:$8 sps:$4 sm:$0xff]  }
  0x4e   :  { %391 = vmatprep.mubr.bf16.mxu1 %v8482_v3  ;;  %844 = vmatprep.mubr.bf16.mxu0 %v8482_v3 }
  0x4f   :  { %14042 = vst [vmem:[#allocation3_spill] sm:$0xff] %v8753_v24  ;;  %v8765_v28 = vmul.u32.u64.low 2804876602, %v8753_v24  ;;  %v8766_v29 = vmul.u32.u64.high 2804876602, %v8753_v24, %v8765_v28  ;;  %v1123_v33 = vadd.s32 8, %v8753_v24  ;;  %v1124_v45 = vadd.s32 16, %v8753_v24 }
  0x50   :  { %v1125_v53 = vadd.s32 24, %v8753_v24  ;;  %v8058_v28 = vld [vmem:[%s13877_s3 + $0xd4] ss:$8 sps:$4 sm:$0xff]  }
  0x51   :  { %v1141_v35 = vshrl.u32 %v8766_v29, 5 }
  0x52   :  { %v8836_v0 = vmul.u32.u64.low 2804876602, %v1125_v53  ;;  %v8837_v1 = vmul.u32.u64.high 2804876602, %v1125_v53, %v8836_v0 }
  0x53   :  { %v1142_v41 = vmul.u32 49, %v1141_v35  ;;  %v8079_v0 = vld [vmem:[%s13877_s3 + $0x1d4] ss:$8 sps:$4 sm:$0xff]  }
  0x55   :  { %7096 = vmatmul.mubr.msk.bf16.gmra.mxu1 %vm196_vm0, %v8595_v37  ;;  %7140 = vmatmul.mubr.msk.bf16.gmra.mxu0 %vm196_vm0, %v8003_v14  ;;  %v8784_v36 = vmul.u32.u64.low 2804876602, %v1123_v33  ;;  %v8785_v37 = vmul.u32.u64.high 2804876602, %v1123_v33, %v8784_v36  ;;  %v1143_v43 = vsub.s32 %v8753_v24, %v1142_v41  ;;  %v8067_v41 = vld [vmem:[%s13877_s3 + $0x1f4] ss:$8 sps:$4 sm:$0xff]  }
  0x56   :  { %401 = vmatprep.mubr.bf16.mxu1 %v8482_v3  ;;  %854 = vmatprep.mubr.bf16.mxu0 %v8482_v3 }
  0x57   :  { %v1152_v44 = vshrl.u32 %v8785_v37, 5  ;;  %vm1278_vm1 = vcmp.ne.s32.totalorder %v1143_v43, 0  ;;  %vm1291_vm2 = vcmp.lt.s32.totalorder %v1143_v43, 0  ;;  %v1317_v51 = vadd.s32 49, %v1143_v43 }
  0x58   :  { %vm1304_vm3 = vmand %vm1291_vm2, %vm1278_vm1 }
  0x59   :  { %v1153_v49 = vmul.u32 49, %v1152_v44  ;;  %v8823_v57 = vsel %vm1304_vm3, %v1317_v51, %v1143_v43  ;;  %v8065_v44 = vld [vmem:[%s13877_s3 + $0x1f0] ss:$8 sps:$4 sm:$0xff]  }
  0x5a   :  { %14043 = vst [vmem:[#allocation4_spill] sm:$0xff] %v8823_v57  ;;  %vm1343_vm1 = vcmp.lt.s32.totalorder %v8823_v57, 0  ;;  %vm13882_vm2 = vcmp.ge.s32.totalorder %v8823_v57, 7 }
  0x5b   :  { %v1154_v52 = vsub.s32 %v1123_v33, %v1153_v49  ;;  %v8070_v49 = vld [vmem:[%s13877_s3 + $0xb4] ss:$8 sps:$4 sm:$0xff]  }
  0x5d   :  { %7097 = vmatmul.mubr.msk.bf16.gmra.mxu1 %vm196_vm0, %v8633_v55  ;;  %7141 = vmatmul.mubr.msk.bf16.gmra.mxu0 %vm196_vm0, %v8713_v15  ;;  %v8817_v54 = vmul.u32.u64.low 2804876602, %v1124_v45  ;;  %v8818_v55 = vmul.u32.u64.high 2804876602, %v1124_v45, %v8817_v54  ;;  %vm1279_vm4 = vcmp.ne.s32.totalorder %v1154_v52, 0  ;;  %vm1292_vm5 = vcmp.lt.s32.totalorder %v1154_v52, 0 }
  0x5e   :  { %411 = vmatprep.mubr.bf16.mxu1 %v8482_v3  ;;  %vm1305_vm6 = vmand %vm1292_vm5, %vm1279_vm4  ;;  %v1318_v61 = vadd.s32 49, %v1154_v52 }
  0x5f   :  { %v1163_v63 = vshrl.u32 %v8818_v55, 5  ;;  %v8071_v55 = vld [vmem:[%s13877_s3 + $0x1e0] ss:$8 sps:$4 sm:$0xff]  }
  0x60   :  { %v8842_v4 = vsel %vm1305_vm6, %v1318_v61, %v1154_v52  ;;  %v8068_v52 = vld [vmem:[%s13877_s3 + $0xb0] ss:$8 sps:$4 sm:$0xff]   ;;  %v8076_v61 = vld [vmem:[%s13877_s3 + $0xa4] ss:$8 sps:$4 sm:$0xff]  }
  0x61   :  { %14044 = vst [vmem:[#allocation5_spill] sm:$0xff] %v8842_v4  ;;  %v1164_v9 = vmul.u32 49, %v1163_v63  ;;  %v8074_v63 = vld [vmem:[%s13877_s3 + $0xa0] ss:$8 sps:$4 sm:$0xff]  }
  0x65   :  { %7098 = vmatmul.mubr.msk.bf16.gmra.mxu1 %vm196_vm0, %v7994_v58  ;;  %v8038_v58 = vld [vmem:[%s13877_s3] ss:$8 sps:$4 sm:$0xff]  }
  0x66   :  { %895 = vmatprep.mubr.bf16.mxu1 %v8482_v3 }
  0x6d   :  { %7142 = vmatmul.mubr.msk.bf16.vlgmr.msra.gmra.mxu1 %vm196_vm0, %v7998_v59  ;;  %v8043_v59 = vld [vmem:[%s13877_s3 + $0x134] ss:$8 sps:$4 sm:$0xff]  }
  0x6e   :  { %905 = vmatprep.mubr.bf16.mxu1 %v8482_v3  ;;  %2649 = vmatpush1.bf16.msra.mxu1 %v8005_v17  ;;  %v8050_v17 = vld [vmem:[%s13877_s3 + $0xe0] ss:$8 sps:$4 sm:$0xff]  }
  0x6f   :  { %2650 = vmatprep.subr.bf16.mxu1 %v8010_v18  ;;  %2328 = vmatprep.subr.bf16.mxu0 %v8043_v59  ;;  %v8055_v18 = vld [vmem:[%s13877_s3 + $0x114] ss:$8 sps:$4 sm:$0xff]  }
  0x70   :  { %2329 = vmatpush1.bf16.msra.mxu0 %v8041_v60 }
  0x71   :  { %2330 = vmatprep.subr.bf16.mxu0 %v8049_v7 }
  0x72   :  { %2651 = vmatpush1.bf16.msra.mxu1 %v8008_v19 }
  0x73   :  { %2652 = vmatprep.subr.bf16.mxu1 %v8013_v20 }
  0x74   :  { %2331 = vmatpush1.bf16.msra.mxu0 %v8047_v10  ;;  %v8080_v10 = vld [vmem:[%s13877_s3 + $0x90] ss:$8 sps:$4 sm:$0xff]  }
  0x75   :  { %7143 = vmatmul.mubr.msk.bf16.gmra.mxu1 %vm196_vm0, %v7999_v62  ;;  %v1344_v62 = vsub.s32 0, %v8823_v57  ;;  %2332 = vmatprep.subr.bf16.mxu0 %v8055_v18  ;;  %v8086_v18 = vld [vmem:[%s13877_s3 + $0x80] ss:$8 sps:$4 sm:$0xff]  }
  0x76   :  { %915 = vmatprep.mubr.bf16.mxu1 %v8482_v3  ;;  %2653 = vmatpush1.bf16.msra.mxu1 %v8011_v22 }
  0x77   :  { %2654 = vmatprep.subr.bf16.mxu1 %v8016_v23  ;;  %v8845_v5 = vmin.u32 %v1344_v62, %v8823_v57 }
  0x78   :  { %2333 = vmatpush1.bf16.msra.mxu0 %v8053_v21  ;;  %v8089_v21 = vld [vmem:[%s13877_s3 + $0x1b0] ss:$8 sps:$4 sm:$0xff]  }
  0x7a   :  { %2655 = vmatpush1.bf16.msra.mxu1 %v8014_v25 }
  0x7b   :  { %2656 = vmatprep.subr.bf16.mxu1 %v8022_v30  ;;  %v8056_v30 = vld [vmem:[%s13877_s3 + $0xd0] ss:$8 sps:$4 sm:$0xff]  }
  0x7d   :  { %7144 = vmatmul.mubr.msk.bf16.gmra.mxu1 %vm196_vm0, %v8000_v8  ;;  %v1358_v8 = vsub.s32 0, %v8842_v4 }
  0x7e   :  { %925 = vmatprep.mubr.bf16.mxu1 %v8482_v3  ;;  %2657 = vmatpush1.bf16.msra.mxu1 %v8020_v31  ;;  %v8061_v31 = vld [vmem:[%s13877_s3 + $0x104] ss:$8 sps:$4 sm:$0xff]  }
  0x7f   :  { %2658 = vmatprep.subr.bf16.mxu1 %v8028_v38  ;;  %2334 = vmatprep.subr.bf16.mxu0 %v8061_v31  ;;  %v8064_v38 = vld [vmem:[%s13877_s3 + $0xc4] ss:$8 sps:$4 sm:$0xff]  }
  0x80   :  { %2335 = vmatpush1.bf16.msra.mxu0 %v8059_v32  ;;  %v8094_v32 = vld [vmem:[%s13877_s3 + $0x374] ss:$8 sps:$4 sm:$0xff]  }
  0x81   :  { %2336 = vmatprep.subr.bf16.mxu0 %v8067_v41  ;;  %v9030_v41 = vadd.s32 40, %v8753_v24 }
  0x82   :  { %2659 = vmatpush1.bf16.msra.mxu1 %v8026_v39 }
  0x83   :  { %2660 = vmatprep.subr.bf16.mxu1 %v8034_v46 }
  0x84   :  { %2337 = vmatpush2.bf16.msra.mxu0 %v8065_v44  ;;  %v8097_v44 = vld [vmem:[%s13877_s3 + $0x1a4] ss:$8 sps:$4 sm:$0xff]  }
  0x85   :  { %7145 = vmatmul.mubr.msk.bf16.gmra.mxu1 %vm196_vm0, %v8001_v12  ;;  %v8858_v11 = vmul.u32.u64.low 2454267026, %v8845_v5  ;;  %v8859_v12 = vmul.u32.u64.high 2454267026, %v8845_v5, %v8858_v11 }
  0x86   :  { %935 = vmatprep.mubr.bf16.mxu1 %v8482_v3  ;;  %2661 = vmatpush1.bf16.msra.mxu1 %v8032_v47 }
  0x87   :  { %2662 = vmatprep.subr.bf16.mxu1 %v8040_v56  ;;  %vm1349_vm7 = vc.u32 %v8858_v11, 2454267026  ;;  %v8085_v11 = vld [vmem:[%s13877_s3 + $0x1c4] ss:$8 sps:$4 sm:$0xff]  }
  0x88   :  { %v1350_v19 = vsel %vm1349_vm7, 1, %v8482_v3 }
  0x89   :  { %v1351_v22 = vadd.s32 %v8859_v12, %v1350_v19  ;;  %v8083_v12 = vld [vmem:[%s13877_s3 + $0x1c0] ss:$8 sps:$4 sm:$0xff]   ;;  %v8091_v19 = vld [vmem:[%s13877_s3 + $0x1b4] ss:$8 sps:$4 sm:$0xff]  }
  0x8a   :  { %2663 = vmatpush1.bf16.msra.mxu1 %v8038_v58 }
  0x8b   :  { %2664 = vmatprep.subr.bf16.mxu1 %v8046_v2  ;;  %v1352_v29 = vshrl.u32 %v1351_v22, 2 }
  0x8d   :  { %7146 = vmatmul.mubr.msk.bf16.gmra.mxu1 %vm196_vm0, %v8002_v13  ;;  %v7163_v13 = vmin.u32 %v1358_v8, %v8842_v4  ;;  %v1353_v34 = vmul.u32 7, %v1352_v29  ;;  %v8082_v8 = vld [vmem:[%s13877_s3 + $0x94] ss:$8 sps:$4 sm:$0xff]   ;;  %v9005_v29 = vadd.s32 32, %v8753_v24 }
  0x8e   :  { %945 = vmatprep.mubr.bf16.mxu1 %v8482_v3  ;;  %2665 = vmatpush2.bf16.msra.mxu1 %v8044_v6 }
  0x8f   :  { %2666 = vmatprep.subr.bf16.mxu1 %v8052_v16  ;;  %v8877_v23 = vmul.u32.u64.low 2454267026, %v7163_v13  ;;  %v8878_v25 = vmul.u32.u64.high 2454267026, %v7163_v13, %v8877_v23  ;;  %v1354_v47 = vsub.s32 %v8845_v5, %v1353_v34  ;;  %v61_v34 = vld [vmem:[%s13878_s2] sm:$0xf] }
  0x91   :  { %vm1363_vm11 = vc.u32 %v8877_v23, 2454267026  ;;  %v1355_v58 = vsub.s32 0, %v1354_v47 }
  0x92   :  { %2667 = vmatpush2.bf16.msra.mxu1 %v8050_v17  ;;  %v1364_v33 = vsel %vm1363_vm11, 1, %v8482_v3  ;;  %vm13884_vm11 = vcmp.ge.s32.totalorder %v8842_v4, 7 }
  0x93   :  { %2668 = vmatprep.subr.bf16.mxu1 %v8058_v28  ;;  %v1365_v35 = vadd.s32 %v8878_v25, %v1364_v33  ;;  %v1356_v7 = vsel %vm1343_vm1, %v1355_v58, %v1354_v47  ;;  %v8993_v25 = vld [vmem:[#allocation2] sm:$0xff] }
  0x94   :  { %vm1525_vm5 = vcmp.ne.s32.totalorder %v1356_v7, 0  ;;  %vm1538_vm6 = vcmp.lt.s32.totalorder %v1356_v7, 0  ;;  %v1564_v16 = vadd.s32 7, %v1356_v7 }
  0x95   :  { %7147 = vmatmul.mubr.msk.bf16.gmra.mxu1 %vm196_vm0, %v8003_v14  ;;  %v1165_v14 = vsub.s32 %v1124_v45, %v1164_v9  ;;  %v1366_v42 = vshrl.u32 %v1365_v35, 2  ;;  %v9018_v35 = vsub.s32 1, %v8753_v24 }
  0x96   :  { %955 = vmatprep.mubr.bf16.mxu1 %v8482_v3  ;;  %2669 = vmatpush2.bf16.msra.mxu1 %v8056_v30  ;;  %v9008_v30 = vsub.s32 0, %v8753_v24 }
  0x97   :  { %vm1280_vm8 = vcmp.ne.s32.totalorder %v1165_v14, 0  ;;  %vm1293_vm9 = vcmp.lt.s32.totalorder %v1165_v14, 0  ;;  %v1319_v27 = vadd.s32 49, %v1165_v14  ;;  %2670 = vmatprep.subr.bf16.mxu1 %v8064_v38  ;;  %v1367_v48 = vmul.u32 7, %v1366_v42  ;;  %14052 = vst [vmem:[#allocation11_spill] sm:$0xff] %v9018_v35 }
  0x98   :  { %vm1306_vm10 = vmand %vm1293_vm9, %vm1280_vm8  ;;  %14051 = vst [vmem:[#allocation10_spill] sm:$0xff] %v9008_v30  ;;  %v9077_v58 = vrot.slane %v61_v34, %v9018_v35 }
  0x99   :  { %v8894_v37 = vsel %vm1306_vm10, %v1319_v27, %v1165_v14  ;;  %v1368_v54 = vsub.s32 %v7163_v13, %v1367_v48  ;;  %vm8971_vm8 = vmpackc.low %vm13882_vm2, %vm13882_vm2  ;;  %v77_v48 = vsub.s32 3, %v8753_v24 }
  0x9a   :  { %14045 = vst [vmem:[#allocation6_spill] sm:$0xff] %v8894_v37  ;;  %v1372_v39 = vsub.s32 0, %v8894_v37  ;;  %2671 = vmatpush2.bf16.msra.mxu1 %v8062_v40  ;;  %vm1551_vm10 = vmand %vm1538_vm6, %vm1525_vm5  ;;  %vm1371_vm1 = vcmp.lt.s32.totalorder %v8894_v37, 0  ;;  %vm1806_vm5 = vsmask.f32 4368 }
  0x9b   :  { %2672 = vmatprep.subr.bf16.mxu1 %v8070_v49  ;;  %v1369_v59 = vsub.s32 0, %v1368_v54  ;;  %v8998_v27 = vsel %vm1551_vm10, %v1564_v16, %v1356_v7  ;;  %v8109_v16 = vld [vmem:[%s13877_s3 + $0x184] ss:$8 sps:$4 sm:$0xff]  }
  0x9c   :  { %v8912_v45 = vmin.u32 %v1372_v39, %v8894_v37  ;;  %14050 = vst [vmem:[#allocation9_spill] sm:$0xff] %v8998_v27  ;;  %v8095_v39 = vld [vmem:[%s13877_s3 + $0x1a0] ss:$8 sps:$4 sm:$0xff]   ;;  %vm13883_vm10 = vcmp.lt.s32.totalorder %v8998_v27, 6 }
  0x9d   :  { %7148 = vmatmul.mubr.msk.bf16.gmra.mxu1 %vm196_vm0, %v8713_v15  ;;  %v1174_v15 = vshrl.u32 %v8837_v1, 5  ;;  %vm1357_vm0 = vcmp.lt.s32.totalorder %v8842_v4, 0  ;;  %v8077_v1 = vld [vmem:[%s13877_s3 + $0x1d0] ss:$8 sps:$4 sm:$0xff]  }
  0x9e   :  { %v8920_v50 = vmul.u32.u64.low 2454267026, %v8912_v45  ;;  %v8921_v51 = vmul.u32.u64.high 2454267026, %v8912_v45, %v8920_v50  ;;  %2673 = vmatpush2.bf16.msra.mxu1 %v8068_v52  ;;  %v1370_v2 = vsel %vm1357_vm0, %v1369_v59, %v1368_v54  ;;  %v606_v54 = vld [vmem:[%s13878_s2] sm:$0xf]  ;;  %v9227_v52 = vadd.s32 56, %v8753_v24 }
  0x9f   :  { %v1175_v20 = vmul.u32 49, %v1174_v15  ;;  %2674 = vmatprep.subr.bf16.mxu1 %v8076_v61  ;;  %vm1526_vm3 = vcmp.ne.s32.totalorder %v1370_v2, 0  ;;  %vm1539_vm4 = vcmp.lt.s32.totalorder %v1370_v2, 0  ;;  %v1565_v13 = vadd.s32 7, %v1370_v2  ;;  %v8088_v15 = vld [vmem:[%s13877_s3 + $0x84] ss:$8 sps:$4 sm:$0xff]  }
  0xa0   :  { %vm1377_vm15 = vc.u32 %v8920_v50, 2454267026  ;;  %vm1552_vm9 = vmand %vm1539_vm4, %vm1526_vm3  ;;  %vm1805_vm4 = vsmask.f32 256  ;;  %14081 = vst [vmem:[#allocation18_spill] sm:$0xff] %v9227_v52 }
  0xa1   :  { %v1176_v26 = vsub.s32 %v1125_v53, %v1175_v20  ;;  %v8073_v53 = vld [vmem:[%s13877_s3 + $0x1e4] ss:$8 sps:$4 sm:$0xff]   ;;  %v1378_v60 = vsel %vm1377_vm15, 1, %v8482_v3  ;;  %v8991_v23 = vsel %vm1552_vm9, %v1565_v13, %v1370_v2 }
  0xa2   :  { %2338 = vmatprep.subr.bf16.mxu0 %v8073_v53  ;;  %v1379_v62 = vadd.s32 %v8921_v51, %v1378_v60  ;;  %2675 = vmatpush2.bf16.msra.mxu1 %v8074_v63  ;;  %14049 = vst [vmem:[#allocation8_spill] sm:$0xff] %v8991_v23  ;;  %vm13886_vm15 = vcmp.gt.s32.totalorder %v8991_v23, 0  ;;  %v9061_v53 = vrot.slane %v61_v34, %v9008_v30  ;;  %v8101_v60 = vld [vmem:[%s13877_s3 + $0x190] ss:$8 sps:$4 sm:$0xff]  }
  0xa3   :  { %vm1281_vm12 = vcmp.ne.s32.totalorder %v1176_v26, 0  ;;  %vm1294_vm13 = vcmp.lt.s32.totalorder %v1176_v26, 0  ;;  %v1320_v36 = vadd.s32 49, %v1176_v26  ;;  %2339 = vmatpush2.bf16.msra.mxu0 %v8071_v55  ;;  %2676 = vmatprep.subr.bf16.mxu1 %v8082_v8  ;;  %vm9069_vm6 = vmpackc.low %vm13886_vm15, %vm13886_vm15 }
  0xa4   :  { %vm1307_vm14 = vmand %vm1294_vm13, %vm1281_vm12  ;;  %2340 = vmatprep.subr.bf16.mxu0 %v8079_v0  ;;  %v1380_v9 = vshrl.u32 %v1379_v62, 2  ;;  %vm13885_vm13 = vcmp.lt.s32.totalorder %v8991_v23, 6  ;;  %v9095_v62 = vmul.u32.u64.low 2804876602, %v9030_v41  ;;  %v9096_v63 = vmul.u32.u64.high 2804876602, %v9030_v41, %v9095_v62 }
  0xa5   :  { %v8906_v43 = vsel %vm1307_vm14, %v1320_v36, %v1176_v26  ;;  %v1792_v26 = vsel %vm8971_vm8, 65537, %v8993_v25  ;;  %vm1780_vm12 = vmpackc.low %vm13884_vm11, %vm13884_vm11  ;;  %v73_v36 = vsub.s32 2, %v8753_v24  ;;  %vm13881_vm14 = vcmp.gt.s32.totalorder %v8998_v27, 0 }
  0xa6   :  { %14046 = vst [vmem:[#allocation7_spill] sm:$0xff] %v8906_v43  ;;  %v1386_v46 = vsub.s32 0, %v8906_v43  ;;  %2677 = vmatpush2.bf16.msra.mxu1 %v8080_v10  ;;  %v1381_v17 = vmul.u32 7, %v1380_v9  ;;  %v1809_v31 = vshrl.u32 %v1792_v26, 16  ;;  %v9023_v38 = vsel %vm1780_vm12, 65537, %v8993_v25  ;;  %vm9036_vm0 = vmand %vm13884_vm11, %vm13885_vm13 }
  0xa7   :  { %2341 = vmatpush2.bf16.msra.mxu0 %v8077_v1  ;;  %2678 = vmatprep.subr.bf16.mxu1 %v8088_v15  ;;  %v1812_v50 = vshll.u32 %v1792_v26, 16  ;;  %v1817_v51 = vshrl.u32 %v9023_v38, 16  ;;  %vm9056_vm3 = vmpackc.low %vm13881_vm14, %vm13881_vm14  ;;  %v9098_v0 = vrot.slane %v61_v34, %v73_v36  ;;  %vm13945_vm8 = vcmp.lt.s32.totalorder %v8842_v4, 42  ;;  %v8107_v15 = vld [vmem:[%s13877_s3 + $0x180] ss:$8 sps:$4 sm:$0xff]  }
  0xa8   :  { %v8933_v56 = vmin.u32 %v1386_v46, %v8906_v43  ;;  %2342 = vmatprep.subr.bf16.mxu0 %v8085_v11  ;;  %v9046_v46 = vmul.u32.u64.low 2804876602, %v9005_v29  ;;  %v9047_v47 = vmul.u32.u64.high 2804876602, %v9005_v29, %v9046_v46  ;;  %v9050_v49 = vrot.slane %v1809_v31, 7  ;;  %vm2790_vm9 = vmpackc.low %vm9036_vm0, %vm9036_vm0 }
  0xa9   :  { %v3348_v1 = vsel %vm9056_vm3, 65537, %v8993_v25  ;;  %vm9112_vm12 = vmor %vm1805_vm4, %vm1806_vm5  ;;  %v3349_v7 = vsel %vm9069_vm6, 65537, %v8993_v25  ;;  %v9124_v9 = vrot.slane %v1817_v51, 7  ;;  %v1820_v10 = vshll.u32 %v9023_v38, 16 }
  0xaa   :  { %v8952_v5 = vmul.u32.u64.low 2454267026, %v8933_v56  ;;  %v8953_v6 = vmul.u32.u64.high 2454267026, %v8933_v56, %v8952_v5  ;;  %2679 = vmatpush2.bf16.msra.mxu1 %v8086_v18  ;;  %v1814_v8 = vor.u32 %v1812_v50, %v9050_v49  ;;  %v9129_v11 = vrot.slane %v606_v54, %v9008_v30  ;;  %vm9138_vm5 = vmand %vm13945_vm8, %vm13886_vm15 }
  0xab   :  { %2343 = vmatpush2.bf16.msra.mxu0 %v8083_v12  ;;  %3908 = vmatprep.subr.bf16.mxu1 %v8094_v32  ;;  %v9132_v12 = vrot.slane %v606_v54, %v9018_v35  ;;  %v3365_v13 = vshll.u32 %v3348_v1, 16  ;;  %v3374_v18 = vshll.u32 %v3349_v7, 16  ;;  %v9160_v26 = vrot.slane %v606_v54, %v77_v48 }
  0xac   :  { %vm1391_vm7 = vc.u32 %v8952_v5, 2454267026  ;;  %2344 = vmatprep.subr.bf16.mxu0 %v8091_v19  ;;  %v9107_v5 = vrot.slane %v61_v34, %v77_v48  ;;  %v3378_v19 = vshrl.u32 %v3349_v7, 16  ;;  %v1822_v31 = vor.u32 %v1820_v10, %v9124_v9 }
  0xad   :  { %v1392_v20 = vsel %vm1391_vm7, 1, %v8482_v3  ;;  %v1382_v3 = vsub.s32 %v8912_v45, %v1381_v17  ;;  %vm9083_vm7 = vmand %vm13882_vm2, %vm13881_vm14  ;;  %v3368_v17 = vshrl.u32 %v3348_v1, 16  ;;  %vm1923_vm11 = vcmp.ne.s16.totalorder %v1814_v8, 0 }
  0xae   :  { %v1393_v22 = vadd.s32 %v8953_v6, %v1392_v20  ;;  %v14061_v6 = vmov 0  ;;  %vm9152_vm14 = vmpackc.low %vm13883_vm10, %vm13883_vm10  ;;  %vm1592_vm10 = vcmp.ge.s32.totalorder %v8894_v37, 7  ;;  %v9178_v32 = vsel %vm2790_vm9, 65537, %v8993_v25 }
  0xaf   :  { %2345 = vmatpush2.bf16.msra.mxu0 %v8089_v21  ;;  %v1383_v40 = vsub.s32 0, %v1382_v3  ;;  %v14062_v6 = vsel %vm9112_vm12, 4294967295, %v14061_v6  ;;  %vm9166_vm2 = vmpackc.low %vm13885_vm13, %vm13885_vm13  ;;  %14070 = vst [vmem:[#allocation13_spill] sm:$0xff] %v9178_v32  ;;  %vm1593_vm0 = vcmp.ge.s32.totalorder %v8906_v43, 7  ;;  %v9194_v38 = vrot.slane %v3365_v13, 5 }
  0xb0   :  { %v1394_v28 = vshrl.u32 %v1393_v22, 2  ;;  %2346 = vmatprep.subr.bf16.mxu0 %v8097_v44  ;;  %14063 = vst [vmem:[#allocation12_spill] sm:$0xff] %v14062_v6  ;;  %v9158_v22 = vrot.slane %v606_v54, %v73_v36  ;;  %v1185_v36 = vshrl.u32 %v9047_v47, 5  ;;  %v3380_v42 = vrot.slane %v3378_v19, 4  ;;  %vm9201_vm9 = vmpackc.low %vm1592_vm10, %vm1592_vm10 }
  0xb1   :  { %v9092_v61 = vsel %vm1371_vm1, %v1383_v40, %v1382_v3  ;;  %vm1385_vm1 = vcmp.lt.s32.totalorder %v8906_v43, 0  ;;  %v1815_v3 = vrot.slane %v9050_v49, 4  ;;  %14073 = vst [vmem:[#allocation14_spill] sm:$0xff] %v9194_v38  ;;  %v9196_v40 = vrot.slane %v3374_v18, 5 }
  0xb2   :  { %v1395_v33 = vmul.u32 7, %v1394_v28  ;;  %vm1527_vm4 = vcmp.ne.s32.totalorder %v9092_v61, 0  ;;  %vm1540_vm6 = vcmp.lt.s32.totalorder %v9092_v61, 0  ;;  %v9213_v48 = vsel %vm9166_vm2, 65537, %v8993_v25 }
  0xb3   :  { %2347 = vmatpush2.bf16.msra.mxu0 %v8095_v39  ;;  %vm9188_vm3 = vmand %vm1540_vm6, %vm1527_vm4  ;;  %v3370_v39 = vrot.slane %v3368_v17, 4  ;;  %14074 = vst [vmem:[#allocation15_spill] sm:$0xff] %v9196_v40  ;;  %v1196_v50 = vshrl.u32 %v9096_v63, 5  ;;  %v9224_v51 = vadd.s32 48, %v8753_v24  ;;  %v9231_v54 = vsel %vm9112_vm12, %v1815_v3, %v1822_v31 }
  0xb4   :  { %v1396_v45 = vsub.s32 %v8933_v56, %v1395_v33  ;;  %v8103_v56 = vld [vmem:[%s13877_s3 + $0x194] ss:$8 sps:$4 sm:$0xff]   ;;  %v1566_v33 = vadd.s32 7, %v9092_v61  ;;  %14077 = vst [vmem:[#allocation16_spill] sm:$0xff] %v9213_v48  ;;  %vm9218_vm4 = vmpackc.low %vm13945_vm8, %vm13945_vm8  ;;  %v9252_v7 = vsel %vm9152_vm14, 65537, %v8993_v25  ;;  %v1186_v10 = vmul.u32 49, %v1185_v36 }
  0xb5   :  { %2348 = vmatprep.subr.bf16.mxu0 %v8103_v56  ;;  %14080 = vst [vmem:[#allocation17_spill] sm:$0xff] %v9224_v51  ;;  %14082 = vst [vmem:[#allocation19_spill] sm:$0xff] %v9231_v54  ;;  %v3371_v13 = vor.u32 %v3370_v39, %v9194_v38  ;;  %v3381_v8 = vor.u32 %v3380_v42, %v9196_v40  ;;  %v1197_v3 = vmul.u32 49, %v1196_v50 }
  0xb6   :  { %v1397_v2 = vsub.s32 0, %v1396_v45  ;;  %v9243_v62 = vsel %vm9188_vm3, %v1566_v33, %v9092_v61  ;;  %14087 = vst [vmem:[#allocation22_spill] sm:$0xff] %v9252_v7  ;;  %v1794_v61 = vsel %vm9201_vm9, 65537, %v8993_v25  ;;  %v9299_v44 = vsub.s32 %v9005_v29, %v1186_v10 }
  0xb7   :  { %2349 = vmatpush2.bf16.msra.mxu0 %v8101_v60  ;;  %14085 = vst [vmem:[#allocation20_spill] sm:$0xff] %v9243_v62  ;;  %vm13939_vm14 = vcmp.lt.s32.totalorder %v9243_v62, 6  ;;  %v1826_v33 = vshrl.u32 %v1794_v61, 16  ;;  %v9329_v50 = vmul.u32.u64.low 2804876602, %v9224_v51  ;;  %v9330_v14 = vmul.u32.u64.high 2804876602, %v9224_v51, %v9329_v50 }
  0xb8   :  { %v1398_v21 = vsel %vm1385_vm1, %v1397_v2, %v1396_v45  ;;  %2350 = vmatprep.subr.bf16.mxu0 %v8109_v16  ;;  %vm5155_vm1 = vmpackc.low %vm9138_vm5, %vm9138_vm5  ;;  %v8115_v45 = vld [vmem:[%s13877_s3 + $0x274] ss:$8 sps:$4 sm:$0xff]   ;;  %v9247_v2 = vsel %vm1923_vm11, %v8993_v25, 0  ;;  %v9266_v16 = vsel %vm9218_vm4, 65537, %v8993_v25  ;;  %vm1282_vm9 = vcmp.ne.s32.totalorder %v9299_v44, 0 }
  0xb9   :  { %vm1528_vm13 = vcmp.ne.s32.totalorder %v1398_v21, 0  ;;  %vm1541_vm15 = vcmp.lt.s32.totalorder %v1398_v21, 0  ;;  %v1567_v60 = vadd.s32 7, %v1398_v21  ;;  %14086 = vst [vmem:[#allocation21_spill] sm:$0xff] %v9247_v2  ;;  %14088 = vst [vmem:[#allocation23_spill] sm:$0xff] %v9266_v16  ;;  %v9282_v20 = vsel %vm5155_vm1, 65537, %v8993_v25 }
  0xba   :  { %vm9236_vm2 = vmand %vm1541_vm15, %vm1528_vm13  ;;  %14091 = vst [vmem:[#allocation25_spill] sm:$0xff] %v9282_v20  ;;  %v5740_v42 = vshrl.u32 %v9266_v16, 16  ;;  %vm1295_vm4 = vcmp.lt.s32.totalorder %v9299_v44, 0 }
  0xbb   :  { %2351 = vmatpush2.bf16.msra.mxu0 %v8107_v15  ;;  %vm1782_vm13 = vmpackc.low %vm1593_vm0, %vm1593_vm0  ;;  %v4484_v15 = vshrl.u32 %v9213_v48, 16  ;;  %v9287_v28 = vsel %vm9236_vm2, %v1567_v60, %v1398_v21  ;;  %v9301_v21 = vrot.slane %v3371_v13, 4  ;;  %v9324_v13 = vsub.s32 %v9030_v41, %v1197_v3 }
  0xbc   :  { %3168 = vmatprep.subr.bf16.mxu0 %v8115_v45  ;;  %vm14089_vm11 = vmpackc.low %vm9083_vm7, %vm9083_vm7  ;;  %14092 = vst [vmem:[#allocation26_spill] sm:$0xff] %v9287_v28  ;;  %v9290_v59 = vsel %vm1782_vm13, 65537, %v8993_v25  ;;  %v9303_v45 = vrot.slane %v3381_v8, 4  ;;  %vm1618_vm7 = vcmp.gt.s32.totalorder %v9243_v62, 0  ;;  %vm13944_vm3 = vcmp.lt.s32.totalorder %v9287_v28, 6 }
  0xbd   :  { %v9274_v19 = vsel %vm14089_vm11, %v8993_v25, 0  ;;  %14093 = vst [vmem:[#allocation27_spill] sm:$0xff] %v9301_v21  ;;  %v9305_v49 = vrot.slane %v4484_v15, 7  ;;  %vm9312_vm15 = vmand %vm1592_vm10, %vm13939_vm14  ;;  %v1835_v10 = vshrl.u32 %v9290_v59, 16  ;;  %v9326_v8 = vrot.slane %v1826_v33, 7 }
  0xbe   :  { %14090 = vst [vmem:[#allocation24_spill] sm:$0xff] %v9274_v19  ;;  %14094 = vst [vmem:[#allocation28_spill] sm:$0xff] %v9303_v45  ;;  %v1829_v15 = vshll.u32 %v1794_v61, 16  ;;  %v9336_v30 = vrot.slane %v5740_v42, 4  ;;  %vm1619_vm5 = vcmp.gt.s32.totalorder %v9287_v28, 0  ;;  %v9354_v3 = vadd.s32 49, %v9299_v44 }
  0xbf   :  { %14095 = vst [vmem:[#allocation29_spill] sm:$0xff] %v9305_v49  ;;  %vm2791_vm6 = vmpackc.low %vm9312_vm15, %vm9312_vm15  ;;  %v1838_v50 = vshll.u32 %v9290_v59, 16  ;;  %v9372_v20 = vadd.s32 49, %v9324_v13  ;;  %v9381_v59 = vadd.s32 64, %v8753_v24  ;;  %vm1283_vm11 = vcmp.ne.s32.totalorder %v9324_v13, 0 }
  0xc0   :  { %14098 = vst [vmem:[#allocation30_spill] sm:$0xff] %v9336_v30  ;;  %vm9347_vm1 = vmpackc.low %vm1618_vm7, %vm1618_vm7  ;;  %v9376_v30 = vmul.u32.u64.low 2804876602, %v9227_v52  ;;  %v9377_v16 = vmul.u32.u64.high 2804876602, %v9227_v52, %v9376_v30  ;;  %v9389_v57 = vsel %vm2791_vm6, 65537, %v8993_v25  ;;  %vm1296_vm15 = vcmp.lt.s32.totalorder %v9324_v13, 0 }
  0xc1   :  { %vm9367_vm2 = vmand %vm1593_vm0, %vm13944_vm3  ;;  %14103 = vst [vmem:[#allocation31_spill] sm:$0xff] %v9381_v59  ;;  %v9395_v30 = vadd.s32 72, %v8753_v24 }
  0xc2   :  { %14104 = vst [vmem:[#allocation32_spill] sm:$0xff] %v9389_v57  ;;  %vm2792_vm13 = vmpackc.low %vm9367_vm2, %vm9367_vm2 }
  0xc3   :  { %14105 = vst [vmem:[#allocation33_spill] sm:$0xff] %v9395_v30  ;;  %vm9412_vm6 = vmpackc.low %vm1619_vm5, %vm1619_vm5 }
  0xc4   :  { %vm9452_vm2 = vmpackc.low %vm13944_vm3, %vm13944_vm3 }
  0xd5   :  { %v9208_v46 = vpop.f32.mrf.mxu1  ;;  %v252_v47 = vpop.f32.mrf.mxu0 }
  0xd6   :  { %v253_v39 = vadd.f32 %v252_v47, %v9061_v53  ;;  %v283_v33 = vadd.f32 %v9208_v46, %v9061_v53  ;;  %v1831_v46 = vor.u32 %v1829_v15, %v9326_v8  ;;  %v3350_v15 = vsel %vm9347_vm1, 65537, %v8993_v25  ;;  %vm9440_vm1 = vmpackc.low %vm13939_vm14, %vm13939_vm14 }
  0xd7   :  { %v284_v63 = vpop.f32.mrf.mxu1  ;;  %v254_v1 = vpop.f32.mrf.mxu0  ;;  %v3388_v21 = vshrl.u32 %v3350_v15, 16 }
  0xd8   :  { %v285_v41 = vadd.f32 %v284_v63, %v9077_v58  ;;  %v255_v61 = vadd.f32 %v254_v1, %v9077_v58  ;;  %v9360_v1 = vrot.slane %v1835_v10, 7  ;;  %v420_v7 = vmax.f32 %v253_v39, 0.0 }
  0xd9   :  { %v286_v17 = vpop.f32.mrf.mxu1  ;;  %v256_v18 = vpop.f32.mrf.mxu0  ;;  %v444_v56 = vmax.f32 %v283_v33, 0.0 }
  0xda   :  { %v445_v27 = vmax.f32 %v285_v41, 0.0  ;;  %v287_v38 = vadd.f32 %v286_v17, %v9061_v53  ;;  %v421_v39 = vmax.f32 %v255_v61, 0.0  ;;  %v9399_v48 = vadd.f32 %v256_v18, %v9061_v53 }
  0xdb   :  { %v288_v34 = vpop.f32.mrf.mxu1  ;;  %v9293_v36 = vpop.f32.mrf.mxu0  ;;  %v1833_v41 = vrot.slane %v9326_v8, 4  ;;  %v1840_v17 = vor.u32 %v1838_v50, %v9360_v1  ;;  %v14108_v61 = vrot.slane %v9124_v9, 4  ;;  %v9434_v9 = vsel %vm2792_vm13, 65537, %v8993_v25 }
  0xdc   :  { %v289_v47 = vadd.f32 %v288_v34, %v9077_v58  ;;  %v3384_v34 = vshll.u32 %v3350_v15, 16  ;;  %v259_v24 = vadd.f32 %v9293_v36, %v9077_v58  ;;  %14110 = vst [vmem:[#allocation35_spill] sm:$0xff] %v9434_v9  ;;  %v9444_v36 = vmax.f32 %v444_v56, %v445_v27 }
  0xdd   :  { %v9316_v60 = vpop.f32.mrf.mxu1  ;;  %v9318_v29 = vpop.f32.mrf.mxu0  ;;  %v9420_v33 = vsel %vm9112_vm12, %v14108_v61, %v1831_v46  ;;  %v448_v15 = vmax.f32 %v287_v38, 0.0  ;;  %v9446_v61 = vmax.f32 %v420_v7, %v421_v39  ;;  %v424_v40 = vmax.f32 %v9399_v48, 0.0 }
  0xde   :  { %14109 = vst [vmem:[#allocation34_spill] sm:$0xff] %v9420_v33  ;;  %v449_v46 = vmax.f32 %v289_v47, 0.0  ;;  %v293_v57 = vadd.f32 %v9316_v60, %v9061_v53  ;;  %v9464_v38 = vsel %vm9112_vm12, %v1833_v41, %v1840_v17  ;;  %v3351_v48 = vsel %vm9412_vm6, 65537, %v8993_v25  ;;  %vm9486_vm6 = vmand %vm1295_vm4, %vm1282_vm9 }
  0xdf   :  { %v294_v55 = vpop.f32.mrf.mxu1  ;;  %v9333_v31 = vpop.f32.mrf.mxu0  ;;  %14115 = vst [vmem:[#allocation36_spill] sm:$0xff] %v9464_v38  ;;  %v263_v7 = vadd.f32 %v9318_v29, %v9061_v53  ;;  %v9473_v56 = vrot.slane %v3384_v34, 5  ;;  %v3390_v60 = vrot.slane %v3388_v21, 4  ;;  %v425_v17 = vmax.f32 %v259_v24, 0.0  ;;  %vm9516_vm4 = vmand %vm1296_vm15, %vm1283_vm11 }
  0xe0   :  { %v295_v8 = vadd.f32 %v294_v55, %v9077_v58  ;;  %v265_v39 = vadd.f32 %v9333_v31, %v9077_v58  ;;  %vm13942_vm13 = vcmp.lt.s32.totalorder %v8894_v37, 42  ;;  %v9496_v24 = vsel %vm9440_vm1, 65537, %v8993_v25 }
  0xe1   :  { %v296_v63 = vpop.f32.mrf.mxu1  ;;  %v9358_v42 = vpop.f32.mrf.mxu0  ;;  %14116 = vst [vmem:[#allocation37_spill] sm:$0xff] %v9473_v56  ;;  %14119 = vst [vmem:[#allocation38_spill] sm:$0xff] %v9496_v24  ;;  %v452_v18 = vmax.f32 %v293_v57, 0.0  ;;  %vm13943_vm9 = vcmp.lt.s32.totalorder %v8906_v43, 42  ;;  %v3398_v4 = vshrl.u32 %v3351_v48, 16  ;;  %v3391_v9 = vor.u32 %v3390_v60, %v9473_v56 }
  0xe2   :  { %v453_v47 = vmax.f32 %v295_v8, 0.0  ;;  %v297_v2 = vadd.f32 %v296_v63, %v9061_v53  ;;  %v267_v21 = vadd.f32 %v9358_v42, %v9061_v53  ;;  %v3394_v63 = vshll.u32 %v3351_v48, 16  ;;  %vm9573_vm11 = vmand %vm13942_vm13, %vm1618_vm7 }
  0xe3   :  { %v298_v10 = vpop.f32.mrf.mxu1  ;;  %v268_v32 = vpop.f32.mrf.mxu0  ;;  %v428_v42 = vmax.f32 %v263_v7, 0.0  ;;  %v429_v23 = vmax.f32 %v265_v39, 0.0  ;;  %v9510_v57 = vmax.f32 %v424_v40, %v425_v17  ;;  %v3400_v17 = vrot.slane %v3398_v4, 4  ;;  %vm9595_vm15 = vmand %vm13943_vm9, %vm1619_vm5 }
  0xe4   :  { %v299_v19 = vadd.f32 %v298_v10, %v9077_v58  ;;  %v9498_v10 = vmax.f32 %v448_v15, %v449_v46  ;;  %v269_v8 = vadd.f32 %v268_v32, %v9077_v58  ;;  %v9506_v55 = vmax.f32 %v452_v18, %v453_v47  ;;  %vm5156_vm1 = vmpackc.low %vm9573_vm11, %vm9573_vm11 }
  0xe5   :  { %v302_v49 = vpop.f32.mrf.mxu1  ;;  %v272_v45 = vpop.f32.mrf.mxu0  ;;  %v456_v54 = vmax.f32 %v297_v2, 0.0  ;;  %v432_v48 = vmax.f32 %v267_v21, 0.0  ;;  %v9524_v2 = vrot.slane %v3394_v63, 5  ;;  %v9530_v56 = vmax.f32 %v428_v42, %v429_v23  ;;  %vm9695_vm11 = vmpackc.low %vm13943_vm9, %vm13943_vm9 }
  0xe6   :  { %v457_v46 = vmax.f32 %v299_v19, 0.0  ;;  %v9522_v7 = vadd.f32 %v272_v45, %v9061_v53  ;;  %v433_v40 = vmax.f32 %v269_v8, 0.0  ;;  %v9532_v51 = vrot.slane %v3391_v9, 4 }
  0xe7   :  { %v304_v50 = vpop.f32.mrf.mxu1  ;;  %v9426_v30 = vpop.f32.mrf.mxu0  ;;  %14122 = vst [vmem:[#allocation39_spill] sm:$0xff] %v9524_v2  ;;  %v9548_v4 = vsel %vm9486_vm6, %v9354_v3, %v9299_v44  ;;  %v9557_v9 = vsel %vm9516_vm4, %v9372_v20, %v9324_v13  ;;  %v3401_v44 = vor.u32 %v3400_v17, %v9524_v2  ;;  %vm9646_vm4 = vmpackc.low %vm13942_vm13, %vm13942_vm13 }
  0xe8   :  { %v305_v18 = vadd.f32 %v304_v50, %v9077_v58  ;;  %14123 = vst [vmem:[#allocation40_spill] sm:$0xff] %v9532_v51  ;;  %v9535_v45 = vmax.f32 %v456_v54, %v457_v46  ;;  %14125 = vst [vmem:[#allocation42_spill] sm:$0xff] %v9548_v4  ;;  %v436_v50 = vmax.f32 %v9522_v7, 0.0  ;;  %v275_v54 = vadd.f32 %v9426_v30, %v9077_v58 }
  0xe9   :  { %v9458_v59 = vpop.f32.mrf.mxu1  ;;  %v9460_v27 = vpop.f32.mrf.mxu0  ;;  %14126 = vst [vmem:[#allocation43_spill] sm:$0xff] %v9557_v9  ;;  %v1400_v3 = vsub.s32 0, %v9548_v4  ;;  %vm13949_vm8 = vcmp.lt.s32.totalorder %v9557_v9, 42 }
  0xea   :  { %v461_v42 = vmax.f32 %v305_v18, 0.0  ;;  %v9579_v13 = vadd.f32 %v9458_v59, %v9061_v53  ;;  %v437_v17 = vmax.f32 %v275_v54, 0.0 }
  0xeb   :  { %v9477_v41 = vpop.f32.mrf.mxu1  ;;  %v9479_v38 = vpop.f32.mrf.mxu0 }
  0xed   :  { %v9500_v34 = vpop.f32.mrf.mxu1  ;;  %v796_v33 = vpop.f32.mrf.mxu0 }
  0xee   :  { %v797_v29 = vadd.f32 %v796_v33, %v9129_v11  ;;  %v303_v33 = vadd.f32 %v302_v49, %v9061_v53  ;;  %v4493_v49 = vshrl.u32 %v9496_v24, 16 }
  0xef   :  { %v9508_v15 = vpop.f32.mrf.mxu1  ;;  %v798_v52 = vpop.f32.mrf.mxu0 }
  0xf0   :  { %v964_v39 = vmax.f32 %v797_v29, 0.0  ;;  %v799_v60 = vadd.f32 %v798_v52, %v9132_v12  ;;  %v9542_v52 = vsel %vm9452_vm2, 65537, %v8993_v25  ;;  %v460_v23 = vmax.f32 %v303_v33, 0.0  ;;  %vm5157_vm2 = vmpackc.low %vm9595_vm15, %vm9595_vm15 }
  0xf1   :  { %v316_v19 = vpop.f32.mrf.mxu1  ;;  %v9527_v47 = vpop.f32.mrf.mxu0  ;;  %14124 = vst [vmem:[#allocation41_spill] sm:$0xff] %v9542_v52  ;;  %v9559_v29 = vmax.f32 %v432_v48, %v433_v40  ;;  %v9567_v33 = vrot.slane %v4493_v49, 7  ;;  %v9583_v48 = vadd.f32 %v9460_v27, %v9061_v53  ;;  %v9586_v40 = vmin.u32 %v1400_v3, %v9548_v4 }
  0xf2   :  { %v965_v63 = vmax.f32 %v799_v60, 0.0  ;;  %v9613_v49 = vrot.slane %v3401_v44, 4  ;;  %v4502_v2 = vshrl.u32 %v9542_v52, 16  ;;  %vm1413_vm15 = vcmp.lt.s32.totalorder %v9557_v9, 0 }
  0xf3   :  { %v317_v21 = vpop.f32.mrf.mxu1  ;;  %v9537_v19 = vpop.f32.mrf.mxu0  ;;  %14128 = vst [vmem:[#allocation45_spill] sm:$0xff] %v9567_v33 }
  0xf4   :  { %v9561_v8 = vmax.f32 %v964_v39, %v965_v63  ;;  %v1414_v39 = vsub.s32 0, %v9557_v9  ;;  %14133 = vst [vmem:[#allocation46_spill] sm:$0xff] %v9613_v49 }
  0xf5   :  { %v353_v35 = vpop.f32.mrf.mxu1  ;;  %v806_v31 = vpop.f32.mrf.mxu0 }
  0xf6   :  { %14127 = vst [vmem:[#allocation44_spill] sm:$0xff] %v9561_v8  ;;  %v354_v46 = vadd.f32 %v353_v35, %v9098_v0  ;;  %v807_v30 = vadd.f32 %v806_v31, %v9129_v11  ;;  %v9606_v54 = vmul.u32.u64.low 2454267026, %v9586_v40  ;;  %v9607_v35 = vmul.u32.u64.high 2454267026, %v9586_v40, %v9606_v54 }
  0xf7   :  { %v355_v32 = vpop.f32.mrf.mxu1  ;;  %v808_v7 = vpop.f32.mrf.mxu0  ;;  %v9610_v31 = vmin.u32 %v1414_v39, %v9557_v9 }
  0xf8   :  { %v356_v60 = vadd.f32 %v355_v32, %v9107_v5  ;;  %v972_v18 = vmax.f32 %v807_v30, 0.0  ;;  %v809_v21 = vadd.f32 %v808_v7, %v9132_v12  ;;  %v422_v3 = vmax.f32 %v354_v46, 0.0 }
  0xf9   :  { %v357_v27 = vpop.f32.mrf.mxu1  ;;  %v9600_v63 = vpop.f32.mrf.mxu0  ;;  %v9615_v7 = vmax.f32 %v460_v23, %v461_v42  ;;  %vm1405_vm6 = vc.u32 %v9606_v54, 2454267026  ;;  %v9661_v54 = vadd.f32 %v9500_v34, %v9061_v53  ;;  %v9680_v53 = vsel %vm5157_vm2, 65537, %v8993_v25 }
  0xfa   :  { %v423_v30 = vmax.f32 %v356_v60, 0.0  ;;  %v358_v32 = vadd.f32 %v357_v27, %v9098_v0  ;;  %v973_v33 = vmax.f32 %v809_v21, 0.0  ;;  %14139 = vst [vmem:[#allocation50_spill] sm:$0xff] %v9680_v53  ;;  %vm13951_vm2 = vcmp.ge.s32.totalorder %v9557_v9, 7 }
  0xfb   :  { %v359_v24 = vpop.f32.mrf.mxu1  ;;  %v9617_v51 = vpop.f32.mrf.mxu0  ;;  %v9629_v21 = vmul.u32.u64.low 2454267026, %v9610_v31  ;;  %v9630_v49 = vmul.u32.u64.high 2454267026, %v9610_v31, %v9629_v21 }
  0xfc   :  { %v485_v39 = vmax.f32 %v422_v3, %v423_v30  ;;  %v360_v44 = vadd.f32 %v359_v24, %v9107_v5  ;;  %v426_v23 = vmax.f32 %v358_v32, 0.0  ;;  %v9626_v60 = vmax.f32 %v972_v18, %v973_v33 }
  0xfd   :  { %v363_v42 = vpop.f32.mrf.mxu1  ;;  %v816_v27 = vpop.f32.mrf.mxu0  ;;  %v309_v24 = vadd.f32 %v9477_v41, %v9077_v58  ;;  %v9637_v30 = vmax.f32 %v436_v50, %v437_v17  ;;  %v9640_v32 = vrot.slane %v4502_v2, 7  ;;  %v1406_v41 = vsel %vm1405_vm6, 1, %v8993_v25 }
  0xfe   :  { %14134 = vst [vmem:[#allocation47_spill] sm:$0xff] %v9626_v60  ;;  %v498_v28 = vmax.f32 %v9446_v61, %v485_v39  ;;  %v427_v52 = vmax.f32 %v360_v44, 0.0  ;;  %v364_v62 = vadd.f32 %v363_v42, %v9098_v0  ;;  %v817_v46 = vadd.f32 %v816_v27, %v9129_v11 }
  0xff   :  { %v365_v3 = vpop.f32.mrf.mxu1  ;;  %v818_v18 = vpop.f32.mrf.mxu0  ;;  %14135 = vst [vmem:[#allocation48_spill] sm:$0xff] %v9640_v32  ;;  %v279_v17 = vadd.f32 %v9479_v38, %v9077_v58  ;;  %vm1419_vm14 = vc.u32 %v9629_v21, 2454267026 }
 0x100   :  { %v7860_v60 = vpack.c.bf16 %v498_v28, %v498_v28  ;;  %v486_v8 = vmax.f32 %v426_v23, %v427_v52  ;;  %v366_v61 = vadd.f32 %v365_v3, %v9107_v5  ;;  %v980_v2 = vmax.f32 %v817_v46, 0.0 }
 0x101   :  { %v367_v50 = vpop.f32.mrf.mxu1  ;;  %v819_v28 = vadd.f32 %v818_v18, %v9132_v12  ;;  %v9655_v52 = vpop.f32.mrf.mxu0  ;;  %v430_v23 = vmax.f32 %v364_v62, 0.0  ;;  %v465_v3 = vmax.f32 %v309_v24, 0.0 }
 0x102   :  { %564 = vst [vmem:[#allocation2 + $0x10] sm:$0xf] %v7860_v60  ;;  %v499_v44 = vmax.f32 %v9510_v57, %v486_v8  ;;  %v431_v42 = vmax.f32 %v366_v61, 0.0  ;;  %v368_v27 = vadd.f32 %v367_v50, %v9098_v0  ;;  %v9671_v57 = vsel %vm5156_vm1, 65537, %v8993_v25 }
 0x103   :  { %v369_v33 = vpop.f32.mrf.mxu1  ;;  %v981_v38 = vmax.f32 %v819_v28, 0.0  ;;  %v9663_v46 = vpop.f32.mrf.mxu0  ;;  %14138 = vst [vmem:[#allocation49_spill] sm:$0xff] %v9671_v57  ;;  %v1407_v61 = vadd.s32 %v9607_v35, %v1406_v41  ;;  %v1420_v50 = vsel %vm1419_vm14, 1, %v8993_v25  ;;  %vm1399_vm14 = vcmp.lt.s32.totalorder %v9548_v4, 0 }
 0x104   :  { %v7861_v62 = vpack.c.bf16 %v499_v44, %v499_v44  ;;  %v487_v8 = vmax.f32 %v430_v23, %v431_v42  ;;  %v370_v60 = vadd.f32 %v369_v33, %v9107_v5  ;;  %v434_v34 = vmax.f32 %v368_v27, 0.0 }
 0x105   :  { %v373_v24 = vpop.f32.mrf.mxu1  ;;  %v9682_v18 = vmax.f32 %v980_v2, %v981_v38  ;;  %v826_v20 = vpop.f32.mrf.mxu0  ;;  %v441_v42 = vmax.f32 %v279_v17, 0.0  ;;  %v1408_v53 = vshrl.u32 %v1407_v61, 2  ;;  %vm1594_vm1 = vcmp.ge.s32.totalorder %v9548_v4, 7 }
 0x106   :  { %565 = vst [vmem:[#allocation2 + $0x18] sm:$0xf] %v7861_v62  ;;  %v500_v33 = vmax.f32 %v9530_v56, %v487_v8  ;;  %v435_v28 = vmax.f32 %v370_v60, 0.0  ;;  %v374_v44 = vadd.f32 %v373_v24, %v9098_v0  ;;  %v827_v59 = vadd.f32 %v826_v20, %v9129_v11 }
 0x107   :  { %v375_v23 = vpop.f32.mrf.mxu1  ;;  %v828_v27 = vpop.f32.mrf.mxu0  ;;  %v9702_v56 = vsel %vm9646_vm4, 65537, %v8993_v25  ;;  %v1421_v62 = vadd.s32 %v9630_v49, %v1420_v50  ;;  %v14143_v8 = vmax.f32 %v9579_v13, 0.0  ;;  %v468_v49 = vmax.f32 %v9661_v54, 0.0 }
 0x108   :  { %14142 = vst [vmem:[#allocation51_spill] sm:$0xff] %v9702_v56  ;;  %v7862_v21 = vpack.c.bf16 %v500_v33, %v500_v33  ;;  %v488_v41 = vmax.f32 %v434_v34, %v435_v28  ;;  %v376_v17 = vadd.f32 %v375_v23, %v9107_v5  ;;  %v988_v20 = vmax.f32 %v827_v59, 0.0 }
 0x109   :  { %v9708_v60 = vmax.f32 %v14143_v8, %v465_v3  ;;  %v377_v24 = vpop.f32.mrf.mxu1  ;;  %v829_v38 = vadd.f32 %v828_v27, %v9132_v12  ;;  %v9711_v2 = vpop.f32.mrf.mxu0  ;;  %v438_v39 = vmax.f32 %v374_v44, 0.0  ;;  %v315_v13 = vadd.f32 %v9508_v15, %v9077_v58  ;;  %v9725_v8 = vld [vmem:[#allocation2] sm:$0xff] }
 0x10a   :  { %566 = vst [vmem:[#allocation2 + $0x20] sm:$0xf] %v7862_v21  ;;  %v501_v25 = vmax.f32 %v9559_v29, %v488_v41  ;;  %v439_v34 = vmax.f32 %v376_v17, 0.0  ;;  %v378_v33 = vadd.f32 %v377_v24, %v9098_v0  ;;  %v14144_v3 = vmax.f32 %v9583_v48, 0.0 }
 0x10b   :  { %v379_v28 = vpop.f32.mrf.mxu1  ;;  %v989_v59 = vmax.f32 %v829_v38, 0.0  ;;  %v9720_v23 = vpop.f32.mrf.mxu0  ;;  %v1422_v44 = vshrl.u32 %v1421_v62, 2  ;;  %v9730_v58 = vsel %vm9695_vm11, 65537, %v9725_v8  ;;  %v1409_v15 = vmul.u32 7, %v1408_v53 }
 0x10c   :  { %v477_v50 = vmax.f32 %v14144_v3, %v441_v42  ;;  %v7863_v61 = vpack.c.bf16 %v501_v25, %v501_v25  ;;  %v489_v27 = vmax.f32 %v438_v39, %v439_v34  ;;  %v380_v29 = vadd.f32 %v379_v28, %v9107_v5  ;;  %14145 = vst [vmem:[#allocation52_spill] sm:$0xff] %v9730_v58 }
 0x10d   :  { %v442_v21 = vmax.f32 %v378_v33, 0.0  ;;  %v383_v41 = vpop.f32.mrf.mxu1  ;;  %v9723_v17 = vmax.f32 %v988_v20, %v989_v59  ;;  %v836_v54 = vpop.f32.mrf.mxu0  ;;  %v469_v24 = vmax.f32 %v315_v13, 0.0  ;;  %v9737_v25 = vadd.f32 %v9527_v47, %v9129_v11 }
 0x10e   :  { %567 = vst [vmem:[#allocation2 + $0x28] sm:$0xf] %v7863_v61  ;;  %v502_v48 = vmax.f32 %v9637_v30, %v489_v27  ;;  %v443_v42 = vmax.f32 %v380_v29, 0.0  ;;  %v384_v38 = vadd.f32 %v383_v41, %v9098_v0  ;;  %v837_v62 = vadd.f32 %v836_v54, %v9129_v11 }
 0x10f   :  { %v385_v20 = vpop.f32.mrf.mxu1  ;;  %v5750_v35 = vshrl.u32 %v9702_v56, 16  ;;  %v838_v34 = vpop.f32.mrf.mxu0  ;;  %v1423_v3 = vmul.u32 7, %v1422_v44  ;;  %v1410_v47 = vsub.s32 %v9586_v40, %v1409_v15  ;;  %v803_v44 = vadd.f32 %v9537_v19, %v9132_v12 }
 0x110   :  { %v7864_v53 = vpack.c.bf16 %v502_v48, %v502_v48  ;;  %v490_v33 = vmax.f32 %v442_v21, %v443_v42  ;;  %v386_v30 = vadd.f32 %v385_v20, %v9107_v5  ;;  %v996_v59 = vmax.f32 %v837_v62, 0.0 }
 0x111   :  { %v387_v28 = vpop.f32.mrf.mxu1  ;;  %v839_v13 = vadd.f32 %v838_v34, %v9132_v12  ;;  %v9744_v27 = vpop.f32.mrf.mxu0  ;;  %v446_v41 = vmax.f32 %v384_v38, 0.0  ;;  %v9748_v21 = vmax.f32 %v468_v49, %v469_v24  ;;  %v5760_v62 = vshrl.u32 %v9730_v58, 16 }
 0x112   :  { %568 = vst [vmem:[#allocation2 + $0x30] sm:$0xf] %v7864_v53  ;;  %v503_v29 = vmax.f32 %v477_v50, %v490_v33  ;;  %v447_v54 = vmax.f32 %v386_v30, 0.0  ;;  %v388_v48 = vadd.f32 %v387_v28, %v9098_v0  ;;  %v1424_v50 = vsub.s32 %v9610_v31, %v1423_v3 }
 0x113   :  { %v389_v42 = vpop.f32.mrf.mxu1  ;;  %v997_v20 = vmax.f32 %v839_v13, 0.0  ;;  %v9753_v34 = vpop.f32.mrf.mxu0  ;;  %v968_v38 = vmax.f32 %v9737_v25, 0.0  ;;  %v1411_v19 = vsub.s32 0, %v1410_v47  ;;  %v9767_v31 = vadd.f32 %v9600_v63, %v9129_v11 }
 0x114   :  { %v7865_v61 = vpack.c.bf16 %v503_v29, %v503_v29  ;;  %v491_v39 = vmax.f32 %v446_v41, %v447_v54  ;;  %v390_v40 = vadd.f32 %v389_v42, %v9107_v5  ;;  %v450_v33 = vmax.f32 %v388_v48, 0.0 }
 0x115   :  { %v393_v15 = vpop.f32.mrf.mxu1  ;;  %v9758_v49 = vmax.f32 %v996_v59, %v997_v20  ;;  %v9760_v24 = vpop.f32.mrf.mxu0  ;;  %v969_v29 = vmax.f32 %v803_v44, 0.0  ;;  %v9771_v25 = vadd.f32 %v9617_v51, %v9132_v12  ;;  %v9773_v3 = vrot.slane %v5750_v35, 4 }
 0x116   :  { %569 = vst [vmem:[#allocation2 + $0x38] sm:$0xf] %v7865_v61  ;;  %v504_v53 = vmax.f32 %v9444_v36, %v491_v39  ;;  %v451_v30 = vmax.f32 %v390_v40, 0.0  ;;  %v394_v28 = vadd.f32 %v393_v15, %v9098_v0  ;;  %v1425_v41 = vsub.s32 0, %v1424_v50 }
 0x117   :  { %v395_v13 = vpop.f32.mrf.mxu1  ;;  %14146 = vst [vmem:[#allocation53_spill] sm:$0xff] %v9773_v3  ;;  %v9775_v59 = vpop.f32.mrf.mxu0  ;;  %v9778_v48 = vrot.slane %v5760_v62, 4  ;;  %v1412_v63 = vsel %vm1399_vm14, %v1411_v19, %v1410_v47  ;;  %v9788_v15 = vmax.f32 %v968_v38, %v969_v29  ;;  %v9800_v38 = vadd.f32 %v9655_v52, %v9129_v11  ;;  %vm9810_vm14 = vmpackc.low %vm1594_vm1, %vm1594_vm1 }
 0x118   :  { %v7866_v61 = vpack.c.bf16 %v504_v53, %v504_v53  ;;  %v492_v36 = vmax.f32 %v450_v33, %v451_v30  ;;  %v396_v39 = vadd.f32 %v395_v13, %v9107_v5  ;;  %v454_v42 = vmax.f32 %v394_v28, 0.0 }
 0x119   :  { %v397_v54 = vpop.f32.mrf.mxu1  ;;  %14147 = vst [vmem:[#allocation54_spill] sm:$0xff] %v9778_v48  ;;  %v9784_v51 = vpop.f32.mrf.mxu0  ;;  %v9804_v13 = vadd.f32 %v9663_v46, %v9132_v12  ;;  %vm1529_vm6 = vcmp.ne.s32.totalorder %v1412_v63, 0  ;;  %vm1542_vm4 = vcmp.lt.s32.totalorder %v1412_v63, 0  ;;  %vm13950_vm11 = vcmp.lt.s32.totalorder %v9548_v4, 42 }
 0x11a   :  { %570 = vst [vmem:[#allocation2 + $0x40] sm:$0xf] %v7866_v61  ;;  %v505_v35 = vmax.f32 %v9498_v10, %v492_v36  ;;  %v455_v44 = vmax.f32 %v396_v39, 0.0  ;;  %v398_v20 = vadd.f32 %v397_v54, %v9098_v0  ;;  %v1426_v10 = vsel %vm1413_vm15, %v1425_v41, %v1424_v50  ;;  %vm9821_vm15 = vmpackc.low %vm13951_vm2, %vm13951_vm2 }
 0x11b   :  { %v399_v40 = vpop.f32.mrf.mxu1  ;;  %v9793_v19 = vpop.f32.mrf.mxu0  ;;  %v9827_v54 = vadd.f32 %v9711_v2, %v9129_v11  ;;  %vm1530_vm13 = vcmp.ne.s32.totalorder %v1426_v10, 0  ;;  %vm1543_vm9 = vcmp.lt.s32.totalorder %v1426_v10, 0  ;;  %vm9834_vm3 = vmand %vm1542_vm4, %vm1529_vm6  ;;  %v1796_v2 = vsel %vm9810_vm14, 65537, %v9725_v8 }
 0x11c   :  { %v7867_v53 = vpack.c.bf16 %v505_v35, %v505_v35  ;;  %v493_v33 = vmax.f32 %v454_v42, %v455_v44  ;;  %v400_v30 = vadd.f32 %v399_v40, %v9107_v5  ;;  %v458_v61 = vmax.f32 %v398_v20, 0.0  ;;  %vm1556_vm6 = vmand %vm1543_vm9, %vm1530_vm13 }
 0x11d   :  { %v403_v28 = vpop.f32.mrf.mxu1  ;;  %v9814_v50 = vpop.f32.mrf.mxu0  ;;  %v1568_v35 = vadd.s32 7, %v1412_v63  ;;  %v992_v47 = vmax.f32 %v9827_v54, 0.0  ;;  %v843_v54 = vadd.f32 %v9753_v34, %v9132_v12  ;;  %vm9874_vm13 = vmpackc.low %vm13950_vm11, %vm13950_vm11 }
 0x11e   :  { %571 = vst [vmem:[#allocation2 + $0x48] sm:$0xf] %v7867_v53  ;;  %v506_v52 = vmax.f32 %v9506_v55, %v493_v33  ;;  %v459_v36 = vmax.f32 %v400_v30, 0.0  ;;  %v404_v46 = vadd.f32 %v403_v28, %v9098_v0  ;;  %v1569_v30 = vadd.s32 7, %v1426_v10  ;;  %vm9885_vm4 = vmpackc.low %vm13949_vm8, %vm13949_vm8 }
 0x11f   :  { %v405_v41 = vpop.f32.mrf.mxu1  ;;  %v9829_v55 = vpop.f32.mrf.mxu0  ;;  %v1797_v28 = vsel %vm9821_vm15, 65537, %v9725_v8  ;;  %v985_v33 = vmax.f32 %v9804_v13, 0.0  ;;  %v9854_v39 = vsel %vm9834_vm3, %v1568_v35, %v1412_v63  ;;  %v841_v13 = vadd.f32 %v9744_v27, %v9129_v11 }
 0x120   :  { %v7868_v42 = vpack.c.bf16 %v506_v52, %v506_v52  ;;  %v494_v44 = vmax.f32 %v458_v61, %v459_v36  ;;  %v406_v20 = vadd.f32 %v405_v41, %v9107_v5  ;;  %v462_v36 = vmax.f32 %v404_v46, 0.0  ;;  %14154 = vst [vmem:[#allocation55_spill] sm:$0xff] %v9854_v39 }
 0x121   :  { %v407_v53 = vpop.f32.mrf.mxu1  ;;  %v860_v52 = vpop.f32.mrf.mxu0  ;;  %v9863_v40 = vsel %vm1556_vm6, %v1569_v30, %v1426_v10  ;;  %vm1620_vm3 = vcmp.gt.s32.totalorder %v9854_v39, 0  ;;  %v1001_v10 = vmax.f32 %v843_v54, 0.0  ;;  %v14163_v54 = vmax.f32 %v9800_v38, 0.0 }
 0x122   :  { %572 = vst [vmem:[#allocation2 + $0x50] sm:$0xf] %v7868_v42  ;;  %v507_v61 = vmax.f32 %v9535_v45, %v494_v44  ;;  %v463_v41 = vmax.f32 %v406_v20, 0.0  ;;  %v408_v62 = vadd.f32 %v407_v53, %v9098_v0  ;;  %v1844_v52 = vshrl.u32 %v1796_v2, 16  ;;  %14155 = vst [vmem:[#allocation56_spill] sm:$0xff] %v9863_v40 }
 0x123   :  { %v409_v29 = vpop.f32.mrf.mxu1  ;;  %v861_v42 = vpop.f32.mrf.mxu0  ;;  %v1853_v44 = vshrl.u32 %v1797_v28, 16  ;;  %v833_v53 = vadd.f32 %v9720_v23, %v9132_v12  ;;  %v1847_v23 = vshll.u32 %v1796_v2, 16  ;;  %v847_v2 = vadd.f32 %v9760_v24, %v9129_v11  ;;  %vm3339_vm14 = vmpackc.low %vm1620_vm3, %vm1620_vm3 }
 0x124   :  { %v7869_v48 = vpack.c.bf16 %v507_v61, %v507_v61  ;;  %v495_v45 = vmax.f32 %v462_v36, %v463_v41  ;;  %v410_v46 = vadd.f32 %v409_v29, %v9107_v5  ;;  %v466_v35 = vmax.f32 %v408_v62, 0.0 }
 0x125   :  { %v413_v20 = vpop.f32.mrf.mxu1  ;;  %v1846_v29 = vrot.slane %v1844_v52, 7  ;;  %v1856_v42 = vshll.u32 %v1797_v28, 16  ;;  %v9869_v34 = vrot.slane %v1853_v44, 7  ;;  %v1000_v62 = vmax.f32 %v841_v13, 0.0 }
 0x126   :  { %573 = vst [vmem:[#allocation2 + $0x58] sm:$0xf] %v7869_v48  ;;  %v508_v63 = vmax.f32 %v9615_v7, %v495_v45  ;;  %v467_v61 = vmax.f32 %v410_v46, 0.0  ;;  %v414_v36 = vadd.f32 %v413_v20, %v9098_v0  ;;  %v993_v48 = vmax.f32 %v833_v53, 0.0 }
 0x127   :  { %v415_v41 = vpop.f32.mrf.mxu1  ;;  %vm13952_vm9 = vcmp.gt.s32.totalorder %v9863_v40, 0  ;;  %v14160_v46 = vmax.f32 %v9771_v25, 0.0  ;;  %v14161_v44 = vmax.f32 %v9767_v31, 0.0  ;;  %v1851_v13 = vrot.slane %v1846_v29, 4 }
 0x128   :  { %v7870_v57 = vpack.c.bf16 %v508_v63, %v508_v63  ;;  %v496_v27 = vmax.f32 %v466_v35, %v467_v61  ;;  %v416_v58 = vadd.f32 %v415_v41, %v9107_v5  ;;  %v470_v5 = vmax.f32 %v414_v36, 0.0  ;;  %vm3340_vm15 = vmpackc.low %vm13952_vm9, %vm13952_vm9 }
 0x129   :  { %v417_v0 = vpop.f32.mrf.mxu1  ;;  %v9893_v24 = vmax.f32 %v14161_v44, %v14160_v46  ;;  %v1858_v25 = vor.u32 %v1856_v42, %v9869_v34  ;;  %v9907_v63 = vmax.f32 %v14163_v54, %v985_v33  ;;  %v9911_v35 = vmax.f32 %v1000_v62, %v1001_v10 }
 0x12a   :  { %574 = vst [vmem:[#allocation2 + $0x60] sm:$0xf] %v7870_v57  ;;  %v509_v30 = vmax.f32 %v9708_v60, %v496_v27  ;;  %v471_v28 = vmax.f32 %v416_v58, 0.0  ;;  %v1842_v57 = vrot.slane %v9360_v1, 4  ;;  %v1849_v60 = vor.u32 %v1847_v23, %v1846_v29 }
 0x12b   :  { %v418_v45 = vpop.f32.mrf.mxu1  ;;  %v9902_v58 = vsel %vm9874_vm13, 65537, %v9725_v8  ;;  %v9909_v1 = vmax.f32 %v992_v47, %v993_v48  ;;  %v1004_v61 = vmax.f32 %v847_v2, 0.0  ;;  %v9919_v29 = vsel %vm3339_vm14, 65537, %v9725_v8 }
 0x12c   :  { %14162 = vst [vmem:[#allocation57_spill] sm:$0xff] %v9902_v58  ;;  %v7871_v20 = vpack.c.bf16 %v509_v30, %v509_v30  ;;  %v497_v53 = vmax.f32 %v470_v5, %v471_v28  ;;  %v9924_v47 = vsel %vm9885_vm4, 65537, %v9725_v8  ;;  %v9928_v33 = vsel %vm9112_vm12, %v1842_v57, %v1849_v60 }
 0x12d   :  { %v897_v31 = vpop.f32.mrf.mxu1  ;;  %14164 = vst [vmem:[#allocation58_spill] sm:$0xff] %v9924_v47  ;;  %v857_v42 = vadd.f32 %v9814_v50, %v9129_v11  ;;  %v9938_v0 = vsel %vm9112_vm12, %v1851_v13, %v1858_v25  ;;  %v9941_v48 = vsel %vm3340_vm15, 65537, %v9725_v8  ;;  %v14165_v28 = vshrl.u32 %v9330_v14, 5  ;;  %v14166_v13 = vld [vmem:[#allocation17_spill] sm:$0xff] }
 0x12e   :  { %575 = vst [vmem:[#allocation2 + $0x68] sm:$0xf] %v7871_v20  ;;  %v510_v36 = vmax.f32 %v9748_v21, %v497_v53  ;;  %v898_v41 = vadd.f32 %v897_v31, %v9158_v22  ;;  %v849_v21 = vadd.f32 %v9775_v59, %v9132_v12  ;;  %v851_v59 = vadd.f32 %v9784_v51, %v9129_v11 }
 0x12f   :  { %v899_v38 = vpop.f32.mrf.mxu1  ;;  %v1208_v52 = vmul.u32 49, %v14165_v28  ;;  %v1218_v45 = vshrl.u32 %v9377_v16, 5  ;;  %v1012_v60 = vmax.f32 %v857_v42, 0.0  ;;  %v859_v20 = vadd.f32 %v9829_v55, %v9132_v12  ;;  %v14168_v42 = vld [vmem:[#allocation18_spill] sm:$0xff] }
 0x130   :  { %v7872_v27 = vpack.c.bf16 %v510_v36, %v510_v36  ;;  %v900_v7 = vadd.f32 %v899_v38, %v9160_v26  ;;  %v966_v62 = vmax.f32 %v898_v41, 0.0  ;;  %v1005_v30 = vmax.f32 %v849_v21, 0.0  ;;  %v14167_v41 = vld [vmem:[#allocation44_spill] sm:$0xff] }
 0x131   :  { %v901_v10 = vpop.f32.mrf.mxu1  ;;  %v853_v51 = vadd.f32 %v9793_v19, %v9132_v12  ;;  %v1209_v14 = vsub.s32 %v14166_v13, %v1208_v52  ;;  %v1008_v16 = vmax.f32 %v851_v59, 0.0  ;;  %v1219_v54 = vmul.u32 49, %v1218_v45 }
 0x132   :  { %576 = vst [vmem:[#allocation2 + $0x70] sm:$0x1] %v7872_v27  ;;  %v967_v50 = vmax.f32 %v900_v7, 0.0  ;;  %v902_v5 = vadd.f32 %v901_v10, %v9158_v22  ;;  %v9951_v57 = vmax.f32 %v1004_v61, %v1005_v30  ;;  %v1013_v36 = vmax.f32 %v859_v20, 0.0  ;;  %v14169_v30 = vld [vmem:[#allocation19_spill] sm:$0xff] }
 0x133   :  { %v903_v46 = vpop.f32.mrf.mxu1  ;;  %vm1284_vm6 = vcmp.ne.s32.totalorder %v1209_v14, 0  ;;  %v1220_v27 = vsub.s32 %v14168_v42, %v1219_v54  ;;  %vm1297_vm13 = vcmp.lt.s32.totalorder %v1209_v14, 0  ;;  %v1323_v7 = vadd.s32 49, %v1209_v14 }
 0x134   :  { %v1029_v53 = vmax.f32 %v966_v62, %v967_v50  ;;  %v904_v11 = vadd.f32 %v903_v46, %v9160_v26  ;;  %v970_v25 = vmax.f32 %v902_v5, 0.0  ;;  %v9962_v62 = vmax.f32 %v1012_v60, %v1013_v36  ;;  %vm1310_vm14 = vmand %vm1297_vm13, %vm1284_vm6  ;;  %v14178_v36 = vld [vmem:[#allocation34_spill] sm:$0xff] }
 0x135   :  { %v907_v31 = vpop.f32.mrf.mxu1  ;;  %vm1924_vm4 = vcmp.ne.s16.totalorder %v14169_v30, 0  ;;  %v1009_v59 = vmax.f32 %v853_v51, 0.0  ;;  %vm1285_vm15 = vcmp.ne.s32.totalorder %v1220_v27, 0  ;;  %vm1298_vm8 = vcmp.lt.s32.totalorder %v1220_v27, 0 }
 0x136   :  { %v1042_v61 = vmax.f32 %v14167_v41, %v1029_v53  ;;  %v971_v38 = vmax.f32 %v904_v11, 0.0  ;;  %v908_v21 = vadd.f32 %v907_v31, %v9158_v22  ;;  %v1324_v5 = vadd.s32 49, %v1220_v27  ;;  %vm1311_vm11 = vmand %vm1298_vm8, %vm1285_vm15  ;;  %v14171_v53 = vld [vmem:[#allocation8_spill] sm:$0xff]  ;;  %v14173_v11 = vld [vmem:[#allocation5_spill] sm:$0xff] }
 0x137   :  { %v909_v55 = vpop.f32.mrf.mxu1  ;;  %v9966_v28 = vsel %vm1310_vm14, %v1323_v7, %v1209_v14  ;;  %vm14172_vm2 = vcmp.gt.s32.totalorder %v14171_v53, 0  ;;  %vm14174_vm9 = vcmp.ge.s32.totalorder %v14173_v11, 7  ;;  %vm1925_vm8 = vcmp.ne.s16.totalorder %v14178_v36, 0  ;;  %vm10029_vm15 = vmand %vm1592_vm10, %vm1618_vm7  ;;  %v14188_v41 = vld [vmem:[#allocation24_spill] sm:$0xff] }
 0x138   :  { %v7873_v12 = vpack.c.bf16 %v1042_v61, %v1042_v61  ;;  %v1030_v19 = vmax.f32 %v970_v25, %v971_v38  ;;  %v910_v10 = vadd.f32 %v909_v55, %v9160_v26  ;;  %14170 = vst [vmem:[#allocation17_spill] sm:$0xff] %v9966_v28  ;;  %v974_v45 = vmax.f32 %v908_v21, 0.0  ;;  %vm9974_vm6 = vmand %vm14174_vm9, %vm14172_vm2 }
 0x139   :  { %v911_v50 = vpop.f32.mrf.mxu1  ;;  %v9979_v14 = vsel %vm1311_vm11, %v1324_v5, %v1220_v27  ;;  %vm13954_vm13 = vcmp.ge.s32.totalorder %v9966_v28, 7  ;;  %v9993_v21 = vmax.f32 %v1008_v16, %v1009_v59  ;;  %v14181_v27 = vld [vmem:[#allocation47_spill] sm:$0xff]  ;;  %vm1695_vm14 = vmpackc.low %vm9974_vm6, %vm9974_vm6 }
 0x13a   :  { %1108 = vst [vmem:[#allocation2 + $0x14] sm:$0xf] %v7873_v12  ;;  %v1043_v52 = vmax.f32 %v9788_v15, %v1030_v19  ;;  %v975_v46 = vmax.f32 %v910_v10, 0.0  ;;  %v912_v60 = vadd.f32 %v911_v50, %v9158_v22  ;;  %14177 = vst [vmem:[#allocation44_spill] sm:$0xff] %v9979_v14  ;;  %v1428_v15 = vsub.s32 0, %v9966_v28 }
 0x13b   :  { %v913_v20 = vpop.f32.mrf.mxu1  ;;  %vm9989_vm2 = vmpackc.low %vm13954_vm13, %vm13954_vm13  ;;  %v1442_v42 = vsub.s32 0, %v9979_v14  ;;  %vm13953_vm11 = vcmp.ge.s32.totalorder %v9979_v14, 7 }
 0x13c   :  { %v7874_v25 = vpack.c.bf16 %v1043_v52, %v1043_v52  ;;  %v1031_v31 = vmax.f32 %v974_v45, %v975_v46  ;;  %v914_v54 = vadd.f32 %v913_v20, %v9160_v26  ;;  %v9996_v55 = vmin.u32 %v1428_v15, %v9966_v28  ;;  %vm10005_vm9 = vmpackc.low %vm13953_vm11, %vm13953_vm11 }
 0x13d   :  { %v917_v38 = vpop.f32.mrf.mxu1  ;;  %v978_v12 = vmax.f32 %v912_v60, 0.0  ;;  %v10017_v52 = vmin.u32 %v1442_v42, %v9979_v14  ;;  %v10022_v45 = vsel %vm9989_vm2, 65537, %v9725_v8  ;;  %vm1696_vm10 = vmpackc.low %vm10029_vm15, %vm10029_vm15  ;;  %vm13957_vm15 = vcmp.lt.s32.totalorder %v9854_v39, 6 }
 0x13e   :  { %1109 = vst [vmem:[#allocation2 + $0x1c] sm:$0xf] %v7874_v25  ;;  %v1044_v7 = vmax.f32 %v14181_v27, %v1031_v31  ;;  %v979_v19 = vmax.f32 %v914_v54, 0.0  ;;  %v918_v10 = vadd.f32 %v917_v38, %v9158_v22  ;;  %v14187_v54 = vld [vmem:[#allocation36_spill] sm:$0xff]  ;;  %vm10070_vm7 = vmand %vm1593_vm0, %vm1619_vm5  ;;  %vm13975_vm5 = vsmask.f32 7424 }
 0x13f   :  { %v919_v59 = vpop.f32.mrf.mxu1  ;;  %v10013_v50 = vmul.u32.u64.low 2454267026, %v9996_v55  ;;  %v10014_v5 = vmul.u32.u64.high 2454267026, %v9996_v55, %v10013_v50  ;;  %vm1926_vm11 = vcmp.ne.s16.totalorder %v14187_v54, 0  ;;  %vm1697_vm0 = vmpackc.low %vm10070_vm7, %vm10070_vm7  ;;  %v8112_v54 = vld [vmem:[%s13877_s3 + $0x344] ss:$8 sps:$4 sm:$0xff]   ;;  %vm1427_vm7 = vcmp.lt.s32.totalorder %v9966_v28, 0 }
 0x140   :  { %v7875_v46 = vpack.c.bf16 %v1044_v7, %v1044_v7  ;;  %v1032_v60 = vmax.f32 %v978_v12, %v979_v19  ;;  %v982_v20 = vmax.f32 %v918_v10, 0.0  ;;  %v920_v15 = vadd.f32 %v919_v59, %v9160_v26 }
 0x141   :  { %v921_v38 = vpop.f32.mrf.mxu1  ;;  %v1643_v42 = vld [vmem:[#allocation2 + $0x10] sm:$0xff]  ;;  %vm1433_vm13 = vc.u32 %v10013_v50, 2454267026  ;;  %v10035_v61 = vmul.u32.u64.low 2454267026, %v10017_v52  ;;  %v10036_v27 = vmul.u32.u64.high 2454267026, %v10017_v52, %v10035_v61  ;;  %v10042_v7 = vsel %vm10005_vm9, 65537, %v9725_v8 }
 0x142   :  { %1110 = vst [vmem:[#allocation2 + $0x24] sm:$0xf] %v7875_v46  ;;  %v1045_v12 = vmax.f32 %v9893_v24, %v1032_v60  ;;  %v983_v19 = vmax.f32 %v920_v15, 0.0  ;;  %v922_v10 = vadd.f32 %v921_v38, %v9158_v22  ;;  %v1708_v59 = vsel %vm1695_vm14, %v1643_v42, 0  ;;  %v8092_v24 = vld [vmem:[%s13877_s3 + $0x370] ss:$8 sps:$4 sm:$0xff]  }
 0x143   :  { %v923_v50 = vpop.f32.mrf.mxu1  ;;  %v1937_v23 = vsel %vm1924_vm4, %v1643_v42, 0  ;;  %v7253_v16 = vcombine.low %v14188_v41, %v1708_v59  ;;  %v7254_v13 = vcombine.high %v14188_v41, %v1708_v59  ;;  %v1434_v51 = vsel %vm1433_vm13, 1, %v9725_v8  ;;  %v8100_v38 = vld [vmem:[%s13877_s3 + $0x364] ss:$8 sps:$4 sm:$0xff]   ;;  %vm10104_vm13 = vmand %vm1594_vm1, %vm1620_vm3 }
 0x144   :  { %v7876_v46 = vpack.c.bf16 %v1045_v12, %v1045_v12  ;;  %v1033_v60 = vmax.f32 %v982_v20, %v983_v19  ;;  %v986_v15 = vmax.f32 %v922_v10, 0.0  ;;  %v924_v30 = vadd.f32 %v923_v50, %v9160_v26  ;;  %v14192_v12 = vld [vmem:[#allocation21_spill] sm:$0xff]  ;;  %vm1698_vm2 = vmpackc.low %vm10104_vm13, %vm10104_vm13 }
 0x145   :  { %vm1927_vm4 = vcmp.ne.s16.totalorder %v9928_v33, 0  ;;  %v927_v59 = vpop.f32.mrf.mxu1  ;;  %v7207_v20 = vcombine.low %v14192_v12, %v1937_v23  ;;  %v7208_v19 = vcombine.high %v14192_v12, %v1937_v23  ;;  %2680 = vmatprep.mubr.bf16.mxu1 %v7254_v13  ;;  %v1644_v10 = vld [vmem:[#allocation2 + $0x18] sm:$0xff]  ;;  %v10078_v50 = vadd.s32 %v10014_v5, %v1434_v51  ;;  %v8098_v51 = vld [vmem:[%s13877_s3 + $0x360] ss:$8 sps:$4 sm:$0xff]  }
 0x146   :  { %vm1447_vm6 = vc.u32 %v10035_v61, 2454267026  ;;  %1111 = vst [vmem:[#allocation2 + $0x2c] sm:$0xf] %v7876_v46  ;;  %v1046_v44 = vmax.f32 %v9682_v18, %v1033_v60  ;;  %v987_v2 = vmax.f32 %v924_v30, 0.0  ;;  %v928_v37 = vadd.f32 %v927_v59, %v9158_v22  ;;  %2681 = vmatmul.mubr.bf16.vlgmr.msra.gmra.mxu1 %v7253_v16 }
 0x147   :  { %v1709_v23 = vsel %vm1696_vm10, %v1644_v10, 0  ;;  %v2037_v13 = vshrl.u32 %v7207_v20, 16  ;;  %v2039_v12 = vshll.u32 %v7207_v20, 16  ;;  %3909 = vmatpush1.bf16.msra.mxu1 %v8092_v24  ;;  %v929_v5 = vpop.f32.mrf.mxu1  ;;  %v1938_v18 = vsel %vm1925_vm8, %v1644_v10, 0  ;;  %v8106_v24 = vld [vmem:[%s13877_s3 + $0x354] ss:$8 sps:$4 sm:$0xff]  }
 0x148   :  { %v2049_v16 = vshrl.u32 %v7208_v19, 16  ;;  %v7877_v46 = vpack.c.bf16 %v1046_v44, %v1046_v44  ;;  %v1034_v31 = vmax.f32 %v986_v15, %v987_v2  ;;  %v990_v60 = vmax.f32 %v928_v37, 0.0  ;;  %3910 = vmatprep.subr.bf16.mxu1 %v8100_v38 }
 0x149   :  { %v930_v30 = vadd.f32 %v929_v5, %v9160_v26  ;;  %vm1928_vm8 = vcmp.ne.s16.totalorder %v9938_v0, 0  ;;  %v2041_v2 = vrot.slane %v2039_v12, 1  ;;  %v931_v37 = vpop.f32.mrf.mxu1  ;;  %v1645_v44 = vld [vmem:[#allocation2 + $0x20] sm:$0xff]  ;;  %v2051_v36 = vshll.u32 %v7208_v19, 16 }
 0x14a   :  { %v1436_v15 = vshrl.u32 %v10078_v50, 2  ;;  %v10113_v38 = vsel %vm1447_vm6, 1, %v9725_v8  ;;  %1112 = vst [vmem:[#allocation2 + $0x34] sm:$0xf] %v7877_v46  ;;  %v1047_v20 = vmax.f32 %v9907_v63, %v1034_v31  ;;  %v932_v5 = vadd.f32 %v931_v37, %v9158_v22  ;;  %v8104_v8 = vld [vmem:[%s13877_s3 + $0x350] ss:$8 sps:$4 sm:$0xff]  }
 0x14b   :  { %v991_v10 = vmax.f32 %v930_v30, 0.0  ;;  %v1710_v12 = vsel %vm1697_vm0, %v1645_v44, 0  ;;  %3911 = vmatpush1.bf16.msra.mxu1 %v8098_v51  ;;  %v933_v19 = vpop.f32.mrf.mxu1  ;;  %v1939_v50 = vsel %vm1926_vm11, %v1645_v44, 0  ;;  %v2053_v46 = vrot.slane %v2051_v36, 1 }
 0x14c   :  { %v7256_v61 = vcombine.high %v1709_v23, %v1710_v12  ;;  %v7255_v63 = vcombine.low %v1709_v23, %v1710_v12  ;;  %v7878_v31 = vpack.c.bf16 %v1047_v20, %v1047_v20  ;;  %v994_v30 = vmax.f32 %v932_v5, 0.0  ;;  %3912 = vmatprep.subr.bf16.mxu1 %v8106_v24 }
 0x14d   :  { %v1035_v42 = vmax.f32 %v990_v60, %v991_v10  ;;  %v934_v51 = vadd.f32 %v933_v19, %v9160_v26  ;;  %vm14195_vm11 = vcmp.gt.s32.totalorder %v9863_v40, 0  ;;  %vm14196_vm9 = vcmp.ge.s32.totalorder %v9557_v9, 7  ;;  %v937_v37 = vpop.f32.mrf.mxu1  ;;  %v1646_v24 = vld [vmem:[#allocation2 + $0x28] sm:$0xff] }
 0x14e   :  { %vm10138_vm14 = vmand %vm14196_vm9, %vm14195_vm11  ;;  %v10142_v44 = vcombine.low %v1938_v18, %v1939_v50  ;;  %2690 = vmatprep.mubr.bf16.mxu1 %v7256_v61  ;;  %v7210_v60 = vcombine.high %v1938_v18, %v1939_v50  ;;  %v2054_v36 = vor.u32 %v2053_v46, %v2049_v16  ;;  %v2042_v20 = vor.u32 %v2041_v2, %v2037_v13  ;;  %v8110_v13 = vld [vmem:[%s13877_s3 + $0x340] ss:$8 sps:$4 sm:$0xff]  }
 0x14f   :  { %1113 = vst [vmem:[#allocation2 + $0x3c] sm:$0xf] %v7878_v31  ;;  %v1048_v10 = vmax.f32 %v9723_v17, %v1035_v42  ;;  %v995_v5 = vmax.f32 %v934_v51, 0.0  ;;  %v938_v12 = vadd.f32 %v937_v37, %v9158_v22  ;;  %2691 = vmatmul.mubr.bf16.gmra.mxu1 %v7255_v63  ;;  %v1711_v19 = vsel %vm1698_vm2, %v1646_v24, 0  ;;  %v939_v25 = vpop.f32.mrf.mxu1  ;;  %vm1699_vm10 = vmpackc.low %vm10138_vm14, %vm10138_vm14  ;;  %v8118_v63 = vld [vmem:[%s13877_s3 + $0x334] ss:$8 sps:$4 sm:$0xff]  }
 0x150   :  { %3913 = vmatpush1.bf16.msra.mxu1 %v8104_v8  ;;  %v2056_v18 = vshll.u32 %v7210_v60, 16  ;;  %v2044_v16 = vshll.u32 %v10142_v44, 16  ;;  %v1940_v17 = vsel %vm1927_vm4, %v1646_v24, 0  ;;  %v2068_v59 = vshrl.u32 %v7210_v60, 16  ;;  %v8113_v60 = vld [vmem:[%s13877_s3 + $0x270] ss:$8 sps:$4 sm:$0xff]   ;;  %vm10224_vm4 = vmand %vm1594_vm1, %vm13957_vm15 }
 0x151   :  { %v7879_v2 = vpack.c.bf16 %v1048_v10, %v1048_v10  ;;  %v1036_v50 = vmax.f32 %v994_v30, %v995_v5  ;;  %v998_v61 = vmax.f32 %v938_v12, 0.0  ;;  %v940_v8 = vadd.f32 %v939_v25, %v9160_v26  ;;  %3914 = vmatprep.subr.bf16.mxu1 %v8112_v54  ;;  %v941_v46 = vpop.f32.mrf.mxu1  ;;  %v1647_v33 = vld [vmem:[#allocation2 + $0x30] sm:$0xff]  ;;  %v8121_v12 = vld [vmem:[%s13877_s3 + $0x264] ss:$8 sps:$4 sm:$0xff]   ;;  %vm14201_vm1 = vmmov %vm14196_vm9 }
 0x152   :  { %v2058_v31 = vrot.slane %v2056_v18, 1  ;;  %v2046_v42 = vrot.slane %v2044_v16, 1  ;;  %vm13956_vm6 = vcmp.lt.s32.totalorder %v9863_v40, 6  ;;  %v2060_v51 = vshrl.u32 %v10142_v44, 16  ;;  %vm2793_vm13 = vmpackc.low %vm10224_vm4, %vm10224_vm4 }
 0x153   :  { %v1437_v37 = vmul.u32 7, %v1436_v15  ;;  %1114 = vst [vmem:[#allocation2 + $0x44] sm:$0xf] %v7879_v2  ;;  %v1049_v30 = vmax.f32 %v9909_v1, %v1036_v50  ;;  %v999_v25 = vmax.f32 %v940_v8, 0.0  ;;  %v942_v54 = vadd.f32 %v941_v46, %v9158_v22  ;;  %v943_v15 = vpop.f32.mrf.mxu1  ;;  %vm10244_vm0 = vmand %vm14201_vm1, %vm13956_vm6 }
 0x154   :  { %v1712_v24 = vsel %vm1699_vm10, %v1647_v33, 0  ;;  %v2059_v10 = vsel %vm13975_vm5, %v2054_v36, %v2058_v31  ;;  %3915 = vmatpush1.bf16.msra.mxu1 %v8110_v13  ;;  %v2047_v44 = vsel %vm13975_vm5, %v2042_v20, %v2046_v42  ;;  %v1941_v1 = vsel %vm1928_vm8, %v1647_v33, 0  ;;  %v8116_v36 = vld [vmem:[%s13877_s3 + $0x330] ss:$8 sps:$4 sm:$0xff]   ;;  %v8124_v13 = vld [vmem:[%s13877_s3 + $0x324] ss:$8 sps:$4 sm:$0xff]   ;;  %vm2794_vm14 = vmpackc.low %vm10244_vm0, %vm10244_vm0 }
 0x155   :  { %v7258_v5 = vcombine.high %v1711_v19, %v1712_v24  ;;  %v7880_v18 = vpack.c.bf16 %v1049_v30, %v1049_v30  ;;  %v1037_v16 = vmax.f32 %v998_v61, %v999_v25  ;;  %v1002_v2 = vmax.f32 %v942_v54, 0.0  ;;  %2352 = vmatprep.mubr.bf16.mxu0 %v2059_v10  ;;  %3916 = vmatprep.subr.bf16.mxu1 %v8118_v63  ;;  %v947_v20 = vpop.f32.mrf.mxu1  ;;  %vm10282_vm10 = vmpackc.low %vm13957_vm15, %vm13957_vm15 }
 0x156   :  { %v944_v23 = vadd.f32 %v943_v15, %v9160_v26  ;;  %2353 = vmatmul.mubr.bf16.vlgmr.msra.gmra.mxu0 %v2047_v44  ;;  %v7257_v0 = vcombine.low %v1711_v19, %v1712_v24  ;;  %v10192_v50 = vcombine.high %v1940_v17, %v1941_v1  ;;  %v2070_v61 = vor.u32 %v2068_v59, %v2058_v31  ;;  %v8119_v19 = vld [vmem:[%s13877_s3 + $0x260] ss:$8 sps:$4 sm:$0xff]   ;;  %v8127_v31 = vld [vmem:[%s13877_s3 + $0x254] ss:$8 sps:$4 sm:$0xff]  }
 0x157   :  { %2700 = vmatprep.mubr.bf16.mxu1 %v7258_v5  ;;  %v1862_v8 = vshrl.u32 %v10022_v45, 16  ;;  %1115 = vst [vmem:[#allocation2 + $0x4c] sm:$0xf] %v7880_v18  ;;  %v1050_v46 = vmax.f32 %v9758_v49, %v1037_v16  ;;  %3169 = vmatpush1.bf16.msra.mxu0 %v8113_v60  ;;  %v948_v63 = vadd.f32 %v947_v20, %v9158_v22  ;;  %v949_v25 = vpop.f32.mrf.mxu1  ;;  %v8122_v44 = vld [vmem:[%s13877_s3 + $0x320] ss:$8 sps:$4 sm:$0xff]   ;;  %vm1441_vm11 = vcmp.lt.s32.totalorder %v9979_v14, 0 }
 0x158   :  { %v1003_v33 = vmax.f32 %v944_v23, 0.0  ;;  %v10200_v30 = vcombine.low %v1940_v17, %v1941_v1  ;;  %2701 = vmatmul.mubr.bf16.gmra.mxu1 %v7257_v0  ;;  %3170 = vmatprep.subr.bf16.mxu0 %v8121_v12  ;;  %v2072_v59 = vshll.u32 %v10192_v50, 16  ;;  %v2062_v49 = vor.u32 %v2060_v51, %v2046_v42 }
 0x159   :  { %v1438_v54 = vsub.s32 %v9996_v55, %v1437_v37  ;;  %v1449_v60 = vadd.s32 %v10036_v27, %v10113_v38  ;;  %v7881_v24 = vpack.c.bf16 %v1050_v46, %v1050_v46  ;;  %v1006_v15 = vmax.f32 %v948_v63, 0.0  ;;  %3917 = vmatpush1.bf16.msra.mxu1 %v8116_v36  ;;  %v951_v1 = vpop.f32.mrf.mxu1  ;;  %v8130_v27 = vld [vmem:[%s13877_s3 + $0x314] ss:$8 sps:$4 sm:$0xff]   ;;  %v8128_v63 = vld [vmem:[%s13877_s3 + $0x310] ss:$8 sps:$4 sm:$0xff]  }
 0x15a   :  { %v1038_v10 = vmax.f32 %v1002_v2, %v1003_v33  ;;  %v950_v17 = vadd.f32 %v949_v25, %v9160_v26  ;;  %3918 = vmatprep.subr.bf16.mxu1 %v8124_v13  ;;  %v10213_v5 = vrot.slane %v2072_v59, 1  ;;  %v2064_v42 = vshll.u32 %v10200_v30, 16 }
 0x15b   :  { %v1439_v55 = vsub.s32 0, %v1438_v54  ;;  %v1450_v51 = vshrl.u32 %v1449_v60, 2  ;;  %1116 = vst [vmem:[#allocation2 + $0x54] sm:$0xf] %v7881_v24  ;;  %3171 = vmatpush1.bf16.msra.mxu0 %v8119_v19  ;;  %v952_v18 = vadd.f32 %v951_v1, %v9158_v22  ;;  %v10229_v16 = vrot.slane %v1862_v8, 7  ;;  %v953_v23 = vpop.f32.mrf.mxu1 }
 0x15c   :  { %v1051_v38 = vmax.f32 %v9911_v35, %v1038_v10  ;;  %v1007_v12 = vmax.f32 %v950_v17, 0.0  ;;  %v2075_v2 = vsel %vm13975_vm5, %v2070_v61, %v10213_v5  ;;  %v8125_v35 = vld [vmem:[%s13877_s3 + $0x250] ss:$8 sps:$4 sm:$0xff]   ;;  %3172 = vmatprep.subr.bf16.mxu0 %v8127_v31  ;;  %v10236_v36 = vrot.slane %v2064_v42, 1  ;;  %v8133_v19 = vld [vmem:[%s13877_s3 + $0x244] ss:$8 sps:$4 sm:$0xff]  }
 0x15d   :  { %v1440_v20 = vsel %vm1427_vm7, %v1439_v55, %v1438_v54  ;;  %v1451_v0 = vmul.u32 7, %v1450_v51  ;;  %v1010_v46 = vmax.f32 %v952_v18, 0.0  ;;  %2362 = vmatprep.mubr.bf16.mxu0 %v2075_v2  ;;  %3919 = vmatpush1.bf16.msra.mxu1 %v8122_v44  ;;  %v954_v33 = vadd.f32 %v953_v23, %v9160_v26  ;;  %v957_v59 = vpop.f32.mrf.mxu1  ;;  %v8136_v54 = vld [vmem:[%s13877_s3 + $0x304] ss:$8 sps:$4 sm:$0xff]   ;;  %vm10301_vm7 = vmpackc.low %vm13956_vm6, %vm13956_vm6 }
 0x15e   :  { %v7882_v13 = vpack.c.bf16 %v1051_v38, %v1051_v38  ;;  %v1039_v61 = vmax.f32 %v1006_v15, %v1007_v12  ;;  %v2067_v25 = vsel %vm13975_vm5, %v2062_v49, %v10236_v36  ;;  %vm1531_vm8 = vcmp.ne.s32.totalorder %v1440_v20, 0  ;;  %3920 = vmatprep.subr.bf16.mxu1 %v8130_v27  ;;  %v8134_v27 = vld [vmem:[%s13877_s3 + $0x300] ss:$8 sps:$4 sm:$0xff]   ;;  %v8139_v38 = vld [vmem:[%s13877_s3 + $0x234] ss:$8 sps:$4 sm:$0xff]  }
 0x15f   :  { %v1452_v31 = vsub.s32 %v10017_v52, %v1451_v0  ;;  %vm1544_vm2 = vcmp.lt.s32.totalorder %v1440_v20, 0  ;;  %v1011_v24 = vmax.f32 %v954_v33, 0.0  ;;  %2363 = vmatmul.mubr.bf16.gmra.mxu0 %v2067_v25  ;;  %v1570_v10 = vadd.s32 7, %v1440_v20  ;;  %v959_v44 = vpop.f32.mrf.mxu1 }
 0x160   :  { %1117 = vst [vmem:[#allocation2 + $0x5c] sm:$0xf] %v7882_v13  ;;  %v1052_v60 = vmax.f32 %v9951_v57, %v1039_v61  ;;  %vm1557_vm9 = vmand %vm1544_vm2, %vm1531_vm8  ;;  %3173 = vmatpush1.bf16.msra.mxu0 %v8125_v35  ;;  %v1860_v49 = vrot.slane %v9869_v34, 4  ;;  %v1865_v15 = vshll.u32 %v10022_v45, 16  ;;  %v1871_v17 = vshrl.u32 %v10042_v7, 16 }
 0x161   :  { %v1453_v52 = vsub.s32 0, %v1452_v31  ;;  %v8131_v57 = vld [vmem:[%s13877_s3 + $0x240] ss:$8 sps:$4 sm:$0xff]   ;;  %v14204_v1 = vshll.u32 %v9919_v29, 16  ;;  %v1040_v45 = vmax.f32 %v1010_v46, %v1011_v24  ;;  %v10286_v51 = vsel %vm1557_vm9, %v1570_v10, %v1440_v20  ;;  %3174 = vmatprep.subr.bf16.mxu0 %v8133_v19  ;;  %3921 = vmatpush1.bf16.msra.mxu1 %v8128_v63  ;;  %v961_v20 = vpop.f32.mrf.mxu1  ;;  %v8137_v19 = vld [vmem:[%s13877_s3 + $0x230] ss:$8 sps:$4 sm:$0xff]  }
 0x162   :  { %v7883_v34 = vpack.c.bf16 %v1052_v60, %v1052_v60  ;;  %14207 = vst [vmem:[#allocation18_spill] sm:$0xff] %v10286_v51  ;;  %v14208_v12 = vshrl.u32 %v9919_v29, 16  ;;  %vm1622_vm1 = vcmp.gt.s32.totalorder %v10286_v51, 0  ;;  %v1867_v23 = vor.u32 %v1865_v15, %v10229_v16  ;;  %3922 = vmatprep.subr.bf16.mxu1 %v8136_v54  ;;  %v8142_v29 = vld [vmem:[%s13877_s3 + $0x3f4] ss:$8 sps:$4 sm:$0xff]   ;;  %v10342_v10 = vld [vmem:[#allocation2] sm:$0xff] }
 0x163   :  { %v10277_v42 = vrot.slane %v14204_v1, 5  ;;  %v1454_v35 = vsel %vm1441_vm11, %v1453_v52, %v1452_v31  ;;  %v1053_v0 = vmax.f32 %v9993_v21, %v1040_v45  ;;  %vm14211_vm11 = vcmp.ge.s32.totalorder %v9966_v28, 7  ;;  %v962_v25 = vpop.f32.mrf.mxu1  ;;  %v8148_v24 = vld [vmem:[%s13877_s3 + $0x3e4] ss:$8 sps:$4 sm:$0xff]   ;;  %v1648_v52 = vld [vmem:[#allocation2 + $0x38] sm:$0xff] }
 0x164   :  { %v10296_v18 = vrot.slane %v14208_v12, 4  ;;  %1118 = vst [vmem:[#allocation2 + $0x64] sm:$0xf] %v7883_v34  ;;  %vm1532_vm8 = vcmp.ne.s32.totalorder %v1454_v35, 0  ;;  %vm1545_vm2 = vcmp.lt.s32.totalorder %v1454_v35, 0  ;;  %v1571_v13 = vadd.s32 7, %v1454_v35  ;;  %vm10317_vm9 = vmand %vm14211_vm11, %vm1622_vm1  ;;  %3175 = vmatpush1.bf16.msra.mxu0 %v8131_v57 }
 0x165   :  { %vm1558_vm6 = vmand %vm1545_vm2, %vm1532_vm8  ;;  %v1868_v46 = vsel %vm9112_vm12, %v1860_v49, %v1867_v23  ;;  %v1869_v33 = vrot.slane %v10229_v16, 4  ;;  %v10324_v63 = vrot.slane %v1871_v17, 7  ;;  %v1874_v21 = vshll.u32 %v10042_v7, 16  ;;  %3176 = vmatprep.subr.bf16.mxu0 %v8139_v38  ;;  %3923 = vmatpush1.bf16.msra.mxu1 %v8134_v27  ;;  %v8140_v16 = vld [vmem:[%s13877_s3 + $0x3f0] ss:$8 sps:$4 sm:$0xff]   ;;  %v1649_v49 = vld [vmem:[#allocation2 + $0x40] sm:$0xff] }
 0x166   :  { %v7884_v31 = vpack.c.bf16 %v1053_v0, %v1053_v0  ;;  %v958_v54 = vadd.f32 %v957_v59, %v9158_v22  ;;  %v10331_v60 = vsel %vm1558_vm6, %v1571_v13, %v1454_v35  ;;  %v8145_v7 = vld [vmem:[%s13877_s3 + $0x224] ss:$8 sps:$4 sm:$0xff]   ;;  %v10350_v22 = vsel %vm2793_vm13, 65537, %v10342_v10  ;;  %vm1700_vm8 = vmpackc.low %vm10317_vm9, %vm10317_vm9  ;;  %3924 = vmatprep.subr.bf16.mxu1 %v8142_v29  ;;  %v8143_v38 = vld [vmem:[%s13877_s3 + $0x220] ss:$8 sps:$4 sm:$0xff]  }
 0x167   :  { %14214 = vst [vmem:[#allocation19_spill] sm:$0xff] %v10331_v60  ;;  %v5770_v59 = vshrl.u32 %v9902_v58, 16  ;;  %vm1623_vm6 = vcmp.gt.s32.totalorder %v10331_v60, 0  ;;  %v1876_v15 = vor.u32 %v1874_v21, %v10324_v63  ;;  %v10364_v37 = vsel %vm2794_vm14, 65537, %v10342_v10  ;;  %v8146_v0 = vld [vmem:[%s13877_s3 + $0x3e0] ss:$8 sps:$4 sm:$0xff]  }
 0x168   :  { %v14215_v17 = vshll.u32 %v9941_v48, 16  ;;  %v10373_v1 = vsel %vm10282_vm10, 65537, %v10342_v10  ;;  %1119 = vst [vmem:[#allocation2 + $0x6c] sm:$0xf] %v7884_v31  ;;  %vm14217_vm4 = vcmp.ge.s32.totalorder %v9979_v14, 7  ;;  %vm1929_vm2 = vcmp.ne.s16.totalorder %v1868_v46, 0  ;;  %3177 = vmatpush1.bf16.msra.mxu0 %v8137_v19 }
 0x169   :  { %14216 = vst [vmem:[#allocation34_spill] sm:$0xff] %v10373_v1  ;;  %vm1662_vm13 = vmand %vm14217_vm4, %vm1623_vm6  ;;  %v3411_v8 = vor.u32 %v10296_v18, %v10277_v42  ;;  %v14218_v34 = vshrl.u32 %v9941_v48, 16  ;;  %v1877_v27 = vsel %vm9112_vm12, %v1869_v33, %v1876_v15  ;;  %v960_v55 = vadd.f32 %v959_v44, %v9160_v26  ;;  %3178 = vmatprep.subr.bf16.mxu0 %v8145_v7  ;;  %v8151_v18 = vld [vmem:[%s13877_s3 + $0x214] ss:$8 sps:$4 sm:$0xff]   ;;  %v8157_v15 = vld [vmem:[%s13877_s3 + $0x204] ss:$8 sps:$4 sm:$0xff]  }
 0x16a   :  { %v10368_v57 = vrot.slane %v14215_v17, 5  ;;  %vm1701_vm0 = vmpackc.low %vm1662_vm13, %vm1662_vm13  ;;  %vm14219_vm14 = vcmp.lt.s32.totalorder %v9548_v4, 42  ;;  %v1014_v48 = vmax.f32 %v958_v54, 0.0  ;;  %v1713_v26 = vsel %vm1700_vm8, %v1648_v52, 0  ;;  %3925 = vmatpush2.bf16.msra.mxu1 %v8140_v16  ;;  %v8154_v19 = vld [vmem:[%s13877_s3 + $0x3d4] ss:$8 sps:$4 sm:$0xff]  }
 0x16b   :  { %v3420_v45 = vrot.slane %v14218_v34, 4  ;;  %vm10393_vm10 = vmand %vm14219_vm14, %vm1620_vm3  ;;  %v1714_v44 = vsel %vm1701_vm0, %v1649_v49, 0  ;;  %vm1930_vm11 = vcmp.ne.s16.totalorder %v1877_v27, 0  ;;  %v1942_v35 = vsel %vm1929_vm2, %v1648_v52, 0  ;;  %3926 = vmatprep.subr.bf16.mxu1 %v8148_v24  ;;  %v8149_v16 = vld [vmem:[%s13877_s3 + $0x210] ss:$8 sps:$4 sm:$0xff]  }
 0x16c   :  { %v1943_v23 = vsel %vm1930_vm11, %v1649_v49, 0  ;;  %v7260_v29 = vcombine.high %v1713_v26, %v1714_v44  ;;  %v7259_v20 = vcombine.low %v1713_v26, %v1714_v44  ;;  %v10413_v61 = vsel %vm10301_vm7, 65537, %v10342_v10  ;;  %vm5158_vm7 = vmpackc.low %vm10393_vm10, %vm10393_vm10  ;;  %3179 = vmatpush1.bf16.msra.mxu0 %v8143_v38  ;;  %v14227_v24 = vld [vmem:[#allocation31_spill] sm:$0xff]  ;;  %v8152_v27 = vld [vmem:[%s13877_s3 + $0x3d0] ss:$8 sps:$4 sm:$0xff]  }
 0x16d   :  { %14222 = vst [vmem:[#allocation47_spill] sm:$0xff] %v10413_v61  ;;  %vm14223_vm3 = vcmp.gt.s32.totalorder %v9863_v40, 0  ;;  %vm14224_vm9 = vcmp.lt.s32.totalorder %v9557_v9, 42  ;;  %v1015_v33 = vmax.f32 %v960_v55, 0.0  ;;  %v10423_v21 = vcombine.high %v1942_v35, %v1943_v23  ;;  %3180 = vmatprep.subr.bf16.mxu0 %v8151_v18  ;;  %v8155_v18 = vld [vmem:[%s13877_s3 + $0x200] ss:$8 sps:$4 sm:$0xff]  }
 0x16e   :  { %vm10419_vm8 = vmand %vm14224_vm9, %vm14223_vm3  ;;  %v3421_v2 = vor.u32 %v3420_v45, %v10368_v57  ;;  %v4511_v31 = vshrl.u32 %v10373_v1, 16  ;;  %2710 = vmatprep.mubr.bf16.mxu1 %v7260_v29  ;;  %v10434_v54 = vcombine.low %v1942_v35, %v1943_v23  ;;  %vm13977_vm4 = vcmp.lt.s32.totalorder %v9966_v28, 42  ;;  %3927 = vmatpush2.bf16.msra.mxu1 %v8146_v0  ;;  %v8173_v13 = vld [vmem:[%s13877_s3 + $0x2d0] ss:$8 sps:$4 sm:$0xff]   ;;  %v14259_v40 = vld [vmem:[#allocation39_spill] sm:$0xff] }
 0x16f   :  { %2711 = vmatmul.mubr.bf16.gmra.mxu1 %v7259_v20  ;;  %v1041_v7 = vmax.f32 %v1014_v48, %v1015_v33  ;;  %v10441_v52 = vmul.u32.u64.low 2804876602, %v14227_v24  ;;  %v10442_v49 = vmul.u32.u64.high 2804876602, %v14227_v24, %v10441_v52  ;;  %v10447_v17 = vrot.slane %v3411_v8, 4  ;;  %vm5159_vm13 = vmpackc.low %vm10419_vm8, %vm10419_vm8  ;;  %3928 = vmatprep.subr.bf16.mxu1 %v8154_v19  ;;  %v8160_v48 = vld [vmem:[%s13877_s3 + $0x3c4] ss:$8 sps:$4 sm:$0xff]   ;;  %v14260_v4 = vld [vmem:[#allocation40_spill] sm:$0xff] }
 0x170   :  { %v4520_v45 = vshrl.u32 %v10413_v61, 16  ;;  %vm13978_vm2 = vcmp.lt.s32.totalorder %v9979_v14, 42  ;;  %v10464_v8 = vsel %vm5158_vm7, 65537, %v10342_v10  ;;  %vm13973_vm0 = vcmp.lt.s32.totalorder %v10286_v51, 6  ;;  %vm10480_vm10 = vmpackc.low %vm13977_vm4, %vm13977_vm4  ;;  %3181 = vmatpush1.bf16.msra.mxu0 %v8149_v16  ;;  %v8163_v33 = vld [vmem:[%s13877_s3 + $0x2f4] ss:$8 sps:$4 sm:$0xff]  }
 0x171   :  { %14228 = vst [vmem:[#allocation36_spill] sm:$0xff] %v10464_v8  ;;  %v1054_v55 = vmax.f32 %v9962_v62, %v1041_v7  ;;  %v2088_v38 = vshll.u32 %v10423_v21, 16  ;;  %v10472_v26 = vrot.slane %v3421_v2, 4  ;;  %v10474_v44 = vrot.slane %v4511_v31, 7  ;;  %vm10501_vm11 = vmpackc.low %vm13978_vm2, %vm13978_vm2  ;;  %3182 = vmatprep.subr.bf16.mxu0 %v8157_v15  ;;  %v8158_v16 = vld [vmem:[%s13877_s3 + $0x3c0] ss:$8 sps:$4 sm:$0xff]  }
 0x172   :  { %vm13976_vm14 = vcmp.lt.s32.totalorder %v10331_v60, 6  ;;  %v2080_v62 = vshll.u32 %v10434_v54, 16  ;;  %v10495_v23 = vsel %vm5159_vm13, 65537, %v10342_v10  ;;  %v5780_v29 = vshrl.u32 %v9924_v47, 16  ;;  %3929 = vmatpush2.bf16.msra.mxu1 %v8152_v27  ;;  %v8175_v2 = vld [vmem:[%s13877_s3 + $0x2d4] ss:$8 sps:$4 sm:$0xff]  }
 0x173   :  { %14229 = vst [vmem:[#allocation24_spill] sm:$0xff] %v10474_v44  ;;  %14232 = vst [vmem:[#allocation21_spill] sm:$0xff] %v10495_v23  ;;  %v2084_v0 = vshrl.u32 %v10192_v50, 16  ;;  %v10509_v46 = vrot.slane %v4520_v45, 7  ;;  %vm14236_vm3 = vcmp.ge.s32.totalorder %v9966_v28, 7  ;;  %v7885_v31 = vpack.c.bf16 %v1054_v55, %v1054_v55  ;;  %3930 = vmatprep.subr.bf16.mxu1 %v8160_v48 }
 0x174   :  { %vm10516_vm9 = vmand %vm14236_vm3, %vm13973_vm0  ;;  %v2076_v50 = vshrl.u32 %v10200_v30, 16  ;;  %v10526_v7 = vrot.slane %v5770_v59, 4  ;;  %vm14240_vm8 = vcmp.ge.s32.totalorder %v9979_v14, 7  ;;  %v10538_v45 = vrot.slane %v2088_v38, 1  ;;  %v8166_v59 = vld [vmem:[%s13877_s3 + $0x3b4] ss:$8 sps:$4 sm:$0xff]   ;;  %3183 = vmatpush1.bf16.msra.mxu0 %v8155_v18 }
 0x175   :  { %14235 = vst [vmem:[#allocation31_spill] sm:$0xff] %v10509_v46  ;;  %vm10533_vm7 = vmand %vm14240_vm8, %vm13976_vm14  ;;  %v2086_v30 = vor.u32 %v2084_v0, %v10213_v5  ;;  %v10547_v55 = vsel %vm10480_vm10, 65537, %v10342_v10  ;;  %v10550_v52 = vrot.slane %v2080_v62, 1  ;;  %v8161_v5 = vld [vmem:[%s13877_s3 + $0x2f0] ss:$8 sps:$4 sm:$0xff]   ;;  %v10555_v38 = vrot.slane %v5780_v29, 4  ;;  %3184 = vmatprep.subr.bf16.mxu0 %v8163_v33 }
 0x176   :  { %14239 = vst [vmem:[#allocation59_spill] sm:$0xff] %v10526_v7  ;;  %14243 = vst [vmem:[#allocation60_spill] sm:$0xff] %v10547_v55  ;;  %v2078_v19 = vor.u32 %v2076_v50, %v10236_v36  ;;  %v10563_v48 = vsel %vm10501_vm11, 65537, %v10342_v10  ;;  %v1229_v12 = vshrl.u32 %v10442_v49, 5  ;;  %v8169_v62 = vld [vmem:[%s13877_s3 + $0x2e4] ss:$8 sps:$4 sm:$0xff]   ;;  %3931 = vmatpush2.bf16.msra.mxu1 %v8158_v16 }
 0x177   :  { %1120 = vst [vmem:[#allocation2 + $0x74] sm:$0x1] %v7885_v31  ;;  %14244 = vst [vmem:[#allocation61_spill] sm:$0xff] %v10555_v38  ;;  %v2091_v36 = vsel %vm13975_vm5, %v2086_v30, %v10538_v45  ;;  %v14246_v29 = vld [vmem:[#allocation33_spill] sm:$0xff]  ;;  %v8167_v33 = vld [vmem:[%s13877_s3 + $0x2e0] ss:$8 sps:$4 sm:$0xff]   ;;  %3932 = vmatprep.subr.bf16.mxu1 %v8166_v59 }
 0x178   :  { %vm2795_vm13 = vmpackc.low %vm10516_vm9, %vm10516_vm9  ;;  %14245 = vst [vmem:[#allocation62_spill] sm:$0xff] %v10563_v48  ;;  %2372 = vmatprep.mubr.bf16.mxu0 %v2091_v36  ;;  %v2083_v18 = vsel %vm13975_vm5, %v2078_v19, %v10550_v52  ;;  %v10577_v20 = vmul.u32.u64.low 2804876602, %v14246_v29  ;;  %v10578_v0 = vmul.u32.u64.high 2804876602, %v14246_v29, %v10577_v20  ;;  %v8164_v49 = vld [vmem:[%s13877_s3 + $0x3b0] ss:$8 sps:$4 sm:$0xff]   ;;  %v5790_v50 = vshrl.u32 %v10547_v55, 16  ;;  %3185 = vmatpush2.bf16.msra.mxu0 %v8161_v5 }
 0x179   :  { %vm2796_vm10 = vmpackc.low %vm10533_vm7, %vm10533_vm7  ;;  %2373 = vmatmul.mubr.bf16.gmra.mxu0 %v2083_v18  ;;  %v1230_v30 = vmul.u32 49, %v1229_v12  ;;  %v14247_v19 = vld [vmem:[#allocation3_spill] sm:$0xff]  ;;  %v5800_v18 = vshrl.u32 %v10563_v48, 16  ;;  %vm3361_vm3 = vsmask.f32 3328  ;;  %v10612_v12 = vsel %vm2795_vm13, 65537, %v10342_v10  ;;  %3186 = vmatprep.subr.bf16.mxu0 %v8169_v62 }
 0x17a   :  { %v10589_v36 = vadd.s32 80, %v14247_v19  ;;  %v8172_v16 = vld [vmem:[%s13877_s3 + $0x3a4] ss:$8 sps:$4 sm:$0xff]   ;;  %vm10597_vm11 = vmpackc.low %vm1622_vm1, %vm1622_vm1  ;;  %vm3362_vm8 = vsmask.f32 7440  ;;  %v10620_v5 = vsel %vm2796_vm10, 65537, %v10342_v10  ;;  %3933 = vmatpush2.bf16.msra.mxu1 %v8164_v49 }
 0x17b   :  { %v8170_v59 = vld [vmem:[%s13877_s3 + $0x3a0] ss:$8 sps:$4 sm:$0xff]   ;;  %v1231_v27 = vsub.s32 %v14227_v24, %v1230_v30  ;;  %v10624_v31 = vadd.s32 88, %v14247_v19  ;;  %vm10626_vm15 = vmor %vm3361_vm3, %vm3362_vm8  ;;  %v1240_v34 = vshrl.u32 %v10578_v0, 5  ;;  %v14256_v49 = vld [vmem:[#allocation37_spill] sm:$0xff]  ;;  %3934 = vmatprep.subr.bf16.mxu1 %v8172_v16  ;;  %v3354_v11 = vsel %vm10597_vm11, 65537, %v10342_v10 }
 0x17c   :  { %v10635_v15 = vmul.u32.u64.low 2804876602, %v10589_v36  ;;  %v10636_v25 = vmul.u32.u64.high 2804876602, %v10589_v36, %v10635_v15  ;;  %v14252_v24 = vld [vmem:[#allocation15_spill] sm:$0xff]  ;;  %vm10648_vm9 = vmpackc.low %vm1623_vm6, %vm1623_vm6  ;;  %v8178_v62 = vld [vmem:[%s13877_s3 + $0x394] ss:$8 sps:$4 sm:$0xff]   ;;  %v10662_v53 = vrot.slane %v5790_v50, 4  ;;  %3187 = vmatpush2.bf16.msra.mxu0 %v8167_v33 }
 0x17d   :  { %v14253_v30 = vld [vmem:[#allocation27_spill] sm:$0xff]  ;;  %vm1286_vm7 = vcmp.ne.s32.totalorder %v1231_v27, 0  ;;  %vm1299_vm13 = vcmp.lt.s32.totalorder %v1231_v27, 0  ;;  %v1325_v0 = vadd.s32 49, %v1231_v27  ;;  %v14257_v15 = vld [vmem:[#allocation28_spill] sm:$0xff]  ;;  %v1241_v9 = vmul.u32 49, %v1240_v34  ;;  %3188 = vmatprep.subr.bf16.mxu0 %v8175_v2  ;;  %vm10704_vm8 = vmpackc.low %vm13973_vm0, %vm13973_vm0 }
 0x17e   :  { %14258 = vst [vmem:[#allocation33_spill] sm:$0xff] %v10662_v53  ;;  %vm1312_vm10 = vmand %vm1299_vm13, %vm1286_vm7  ;;  %v8176_v16 = vld [vmem:[%s13877_s3 + $0x390] ss:$8 sps:$4 sm:$0xff]   ;;  %v10673_v20 = vrot.slane %v5800_v18, 4  ;;  %v8181_v34 = vld [vmem:[%s13877_s3 + $0x2c4] ss:$8 sps:$4 sm:$0xff]   ;;  %3935 = vmatpush2.bf16.msra.mxu1 %v8170_v59 }
 0x17f   :  { %v10675_v50 = vsel %vm1312_vm10, %v1325_v0, %v1231_v27  ;;  %v10683_v33 = vsel %vm10648_vm9, 65537, %v10342_v10  ;;  %v1242_v39 = vsub.s32 %v14246_v29, %v1241_v9  ;;  %v8179_v27 = vld [vmem:[%s13877_s3 + $0x2c0] ss:$8 sps:$4 sm:$0xff]   ;;  %v3424_v18 = vshll.u32 %v3354_v11, 16  ;;  %3936 = vmatprep.subr.bf16.mxu1 %v8178_v62  ;;  %v8184_v9 = vld [vmem:[%s13877_s3 + $0x384] ss:$8 sps:$4 sm:$0xff]   ;;  %vm10804_vm0 = vmpackc.low %vm13976_vm14, %vm13976_vm14 }
 0x180   :  { %14261 = vst [vmem:[#allocation3_spill] sm:$0xff] %v10673_v20  ;;  %14262 = vst [vmem:[#allocation15_spill] sm:$0xff] %v10675_v50  ;;  %v1456_v41 = vsub.s32 0, %v10675_v50  ;;  %vm1598_vm11 = vcmp.ge.s32.totalorder %v10675_v50, 7  ;;  %v3428_v2 = vshrl.u32 %v3354_v11, 16  ;;  %3189 = vmatpush2.bf16.msra.mxu0 %v8173_v13  ;;  %v1251_v48 = vshrl.u32 %v10636_v25, 5 }
 0x181   :  { %vm1787_vm3 = vmpackc.low %vm1598_vm11, %vm1598_vm11  ;;  %v10695_v43 = vmul.u32.u64.low 2804876602, %v10624_v31  ;;  %v10696_v0 = vmul.u32.u64.high 2804876602, %v10624_v31, %v10695_v43  ;;  %vm1287_vm9 = vcmp.ne.s32.totalorder %v1242_v39, 0  ;;  %vm1300_vm7 = vcmp.lt.s32.totalorder %v1242_v39, 0  ;;  %v8182_v62 = vld [vmem:[%s13877_s3 + $0x380] ss:$8 sps:$4 sm:$0xff]   ;;  %3190 = vmatprep.subr.bf16.mxu0 %v8181_v34 }
 0x182   :  { %v1326_v11 = vadd.s32 49, %v1242_v39  ;;  %v10709_v59 = vmin.u32 %v1456_v41, %v10675_v50  ;;  %vm1313_vm13 = vmand %vm1300_vm7, %vm1287_vm9  ;;  %v1800_v20 = vsel %vm1787_vm3, 65537, %v10342_v10  ;;  %v8187_v41 = vld [vmem:[%s13877_s3 + $0x2b4] ss:$8 sps:$4 sm:$0xff]   ;;  %3937 = vmatpush2.bf16.msra.mxu1 %v8176_v16  ;;  %v8185_v23 = vld [vmem:[%s13877_s3 + $0x2b0] ss:$8 sps:$4 sm:$0xff]  }
 0x183   :  { %v1880_v38 = vshrl.u32 %v1800_v20, 16  ;;  %v10730_v43 = vrot.slane %v3424_v18, 5  ;;  %v10735_v25 = vsel %vm10704_vm8, 65537, %v10342_v10  ;;  %3938 = vmatprep.subr.bf16.mxu1 %v8184_v9  ;;  %v8190_v16 = vld [vmem:[%s13877_s3 + $0x574] ss:$8 sps:$4 sm:$0xff]   ;;  %v1878_v34 = vrot.slane %v10324_v63, 4  ;;  %vm10817_vm14 = vmand %vm13977_vm4, %vm1622_vm1 }
 0x184   :  { %v10721_v8 = vsel %vm1313_vm13, %v1326_v11, %v1242_v39  ;;  %v10724_v13 = vmul.u32.u64.low 2454267026, %v10709_v59  ;;  %v10725_v53 = vmul.u32.u64.high 2454267026, %v10709_v59, %v10724_v13  ;;  %14266 = vst [vmem:[#allocation37_spill] sm:$0xff] %v10735_v25  ;;  %v1883_v29 = vshll.u32 %v1800_v20, 16  ;;  %3191 = vmatpush2.bf16.msra.mxu0 %v8179_v27  ;;  %vm10841_vm4 = vmand %vm13978_vm2, %vm1623_vm6 }
 0x185   :  { %14265 = vst [vmem:[#allocation27_spill] sm:$0xff] %v10721_v8  ;;  %v1470_v39 = vsub.s32 0, %v10721_v8  ;;  %vm13974_vm10 = vcmp.ge.s32.totalorder %v10721_v8, 7  ;;  %v1882_v18 = vrot.slane %v1880_v38, 7  ;;  %v10746_v11 = vrot.slane %v3428_v2, 4  ;;  %3192 = vmatprep.subr.bf16.mxu0 %v8187_v41  ;;  %v10762_v41 = vld [vmem:[#allocation2 + $0x48] sm:$0xff] }
 0x186   :  { %vm1461_vm3 = vc.u32 %v10724_v13, 2454267026  ;;  %vm1788_vm9 = vmpackc.low %vm13974_vm10, %vm13974_vm10  ;;  %v8193_v13 = vld [vmem:[%s13877_s3 + $0x2a4] ss:$8 sps:$4 sm:$0xff]   ;;  %v1252_v20 = vmul.u32 49, %v1251_v48  ;;  %3939 = vmatpush2.bf16.msra.mxu1 %v8182_v62  ;;  %v14267_v48 = vld [vmem:[#allocation29_spill] sm:$0xff] }
 0x187   :  { %v1462_v7 = vsel %vm1461_vm3, 1, %v10342_v10  ;;  %v10750_v9 = vmin.u32 %v1470_v39, %v10721_v8  ;;  %v1801_v55 = vsel %vm1788_vm9, 65537, %v10342_v10  ;;  %v1885_v63 = vor.u32 %v1883_v29, %v1882_v18  ;;  %4986 = vmatprep.subr.bf16.mxu1 %v8190_v16  ;;  %v14268_v62 = vld [vmem:[#allocation16_spill] sm:$0xff] }
 0x188   :  { %v1463_v47 = vadd.s32 %v10725_v53, %v1462_v7  ;;  %v1889_v38 = vshrl.u32 %v1801_v55, 16  ;;  %v1892_v58 = vshll.u32 %v1801_v55, 16  ;;  %v1262_v39 = vshrl.u32 %v10696_v0, 5  ;;  %3193 = vmatpush2.bf16.msra.mxu0 %v8185_v23  ;;  %v8191_v7 = vld [vmem:[%s13877_s3 + $0x2a0] ss:$8 sps:$4 sm:$0xff]  }
 0x189   :  { %v10758_v27 = vmul.u32.u64.low 2454267026, %v10750_v9  ;;  %v10759_v2 = vmul.u32.u64.high 2454267026, %v10750_v9, %v10758_v27  ;;  %v1886_v56 = vsel %vm9112_vm12, %v1878_v34, %v1885_v63  ;;  %v1887_v61 = vrot.slane %v1882_v18, 4  ;;  %3194 = vmatprep.subr.bf16.mxu0 %v8193_v13  ;;  %v8199_v0 = vld [vmem:[%s13877_s3 + $0x294] ss:$8 sps:$4 sm:$0xff]  }
 0x18a   :  { %v1464_v3 = vshrl.u32 %v1463_v47, 2  ;;  %v10766_v53 = vrot.slane %v1889_v38, 7  ;;  %v14269_v55 = vshll.u32 %v14268_v62, 16  ;;  %vm1931_vm7 = vcmp.ne.s16.totalorder %v1886_v56, 0  ;;  %v10785_v38 = vld [vmem:[#allocation2 + $0x50] sm:$0xff] }
 0x18b   :  { %vm1475_vm8 = vc.u32 %v10758_v27, 2454267026  ;;  %v2100_v47 = vshrl.u32 %v10423_v21, 16  ;;  %v2092_v18 = vshrl.u32 %v10434_v54, 16  ;;  %vm1455_vm13 = vcmp.lt.s32.totalorder %v10675_v50, 0 }
 0x18c   :  { %v10774_v29 = vor.u32 %v14269_v55, %v14267_v48  ;;  %v1465_v16 = vmul.u32 7, %v1464_v3  ;;  %v1476_v23 = vsel %vm1475_vm8, 1, %v10342_v10  ;;  %v1894_v34 = vor.u32 %v1892_v58, %v10766_v53  ;;  %3195 = vmatpush2.bf16.msra.mxu0 %v8191_v7  ;;  %v8197_v54 = vld [vmem:[%s13877_s3 + $0x290] ss:$8 sps:$4 sm:$0xff]  }
 0x18d   :  { %v1477_v63 = vadd.s32 %v10759_v2, %v1476_v23  ;;  %v1253_v21 = vsub.s32 %v10589_v36, %v1252_v20  ;;  %v1263_v13 = vmul.u32 49, %v1262_v39  ;;  %vm13979_vm3 = vcmp.lt.s32.totalorder %v10675_v50, 42  ;;  %3196 = vmatprep.subr.bf16.mxu0 %v8199_v0 }
 0x18e   :  { %14270 = vst [vmem:[#allocation28_spill] sm:$0xff] %v10774_v29  ;;  %v1466_v27 = vsub.s32 %v10709_v59, %v1465_v16  ;;  %v1895_v3 = vsel %vm9112_vm12, %v1887_v61, %v1894_v34  ;;  %v1944_v58 = vsel %vm1931_vm7, %v10762_v41, 0  ;;  %v8205_v59 = vld [vmem:[%s13877_s3 + $0x284] ss:$8 sps:$4 sm:$0xff]   ;;  %v8203_v34 = vld [vmem:[%s13877_s3 + $0x280] ss:$8 sps:$4 sm:$0xff]  }
 0x18f   :  { %v1478_v2 = vshrl.u32 %v1477_v63, 2  ;;  %vm1932_vm9 = vcmp.ne.s16.totalorder %v1895_v3, 0  ;;  %v1264_v36 = vsub.s32 %v10624_v31, %v1263_v13  ;;  %vm1288_vm8 = vcmp.ne.s32.totalorder %v1253_v21, 0 }
 0x190   :  { %v1467_v61 = vsub.s32 0, %v1466_v27  ;;  %v1945_v20 = vsel %vm1932_vm9, %v10785_v38, 0  ;;  %vm1301_vm7 = vcmp.lt.s32.totalorder %v1253_v21, 0  ;;  %v1327_v39 = vadd.s32 49, %v1253_v21  ;;  %3197 = vmatpush2.bf16.msra.mxu0 %v8197_v54 }
 0x191   :  { %v1479_v7 = vmul.u32 7, %v1478_v2  ;;  %v10809_v31 = vcombine.high %v1944_v58, %v1945_v20  ;;  %v10811_v62 = vcombine.low %v1944_v58, %v1945_v20  ;;  %vm1289_vm10 = vcmp.ne.s32.totalorder %v1264_v36, 0  ;;  %vm1314_vm5 = vmand %vm1301_vm7, %vm1288_vm8  ;;  %3198 = vmatprep.subr.bf16.mxu0 %v8205_v59 }
 0x192   :  { %v1468_v0 = vsel %vm1455_vm13, %v1467_v61, %v1466_v27  ;;  %vm1302_vm9 = vcmp.lt.s32.totalorder %v1264_v36, 0  ;;  %v1328_v16 = vadd.s32 49, %v1264_v36  ;;  %v10823_v23 = vsel %vm1314_vm5, %v1327_v39, %v1253_v21  ;;  %v8211_v27 = vld [vmem:[%s13877_s3 + $0x474] ss:$8 sps:$4 sm:$0xff]  }
 0x193   :  { %14275 = vst [vmem:[#allocation39_spill] sm:$0xff] %v10823_v23  ;;  %v1480_v63 = vsub.s32 %v10750_v9, %v1479_v7  ;;  %vm1533_vm8 = vcmp.ne.s32.totalorder %v1468_v0, 0  ;;  %vm1546_vm7 = vcmp.lt.s32.totalorder %v1468_v0, 0  ;;  %v1572_v13 = vadd.s32 7, %v1468_v0  ;;  %vm1315_vm1 = vmand %vm1302_vm9, %vm1289_vm10 }
 0x194   :  { %vm1469_vm13 = vcmp.lt.s32.totalorder %v10721_v8, 0  ;;  %vm1559_vm5 = vmand %vm1546_vm7, %vm1533_vm8  ;;  %v2104_v21 = vshll.u32 %v10809_v31, 16  ;;  %v2096_v3 = vshll.u32 %v10811_v62, 16  ;;  %v10835_v58 = vsel %vm1315_vm1, %v1328_v16, %v1264_v36  ;;  %3199 = vmatpush2.bf16.msra.mxu0 %v8203_v34 }
 0x195   :  { %14276 = vst [vmem:[#allocation40_spill] sm:$0xff] %v10835_v58  ;;  %v1481_v54 = vsub.s32 0, %v1480_v63  ;;  %v10845_v2 = vsel %vm1559_vm5, %v1572_v13, %v1468_v0  ;;  %v2102_v59 = vor.u32 %v2100_v47, %v10538_v45  ;;  %v1484_v61 = vsub.s32 0, %v10823_v23  ;;  %vm5160_vm10 = vmpackc.low %vm10817_vm14, %vm10817_vm14  ;;  %4295 = vmatprep.subr.bf16.mxu0 %v8211_v27 }
 0x196   :  { %14279 = vst [vmem:[#allocation16_spill] sm:$0xff] %v10845_v2  ;;  %vm13980_vm9 = vcmp.lt.s32.totalorder %v10721_v8, 42  ;;  %v10853_v36 = vrot.slane %v2104_v21, 1  ;;  %v2094_v20 = vor.u32 %v2092_v18, %v10550_v52  ;;  %v10856_v39 = vrot.slane %v2096_v3, 1  ;;  %vm10864_vm8 = vmpackc.low %vm13979_vm3, %vm13979_vm3 }
 0x197   :  { %v1482_v7 = vsel %vm1469_vm13, %v1481_v54, %v1480_v63  ;;  %vm13981_vm6 = vcmp.gt.s32.totalorder %v10845_v2, 0  ;;  %v7172_v47 = vmin.u32 %v1484_v61, %v10823_v23  ;;  %v1498_v0 = vsub.s32 0, %v10835_v58 }
 0x198   :  { %vm1534_vm7 = vcmp.ne.s32.totalorder %v1482_v7, 0  ;;  %vm1547_vm1 = vcmp.lt.s32.totalorder %v1482_v7, 0  ;;  %v1573_v52 = vadd.s32 7, %v1482_v7  ;;  %vm10874_vm13 = vmand %vm1598_vm11, %vm13981_vm6  ;;  %vm14284_vm5 = vsmask.f32 7424 }
 0x199   :  { %v2107_v16 = vsel %vm14284_vm5, %v2102_v59, %v10853_v36  ;;  %vm1560_vm2 = vmand %vm1547_vm1, %vm1534_vm7  ;;  %v10882_v63 = vmul.u32.u64.low 2454267026, %v7172_v47  ;;  %v10883_v13 = vmul.u32.u64.high 2454267026, %v7172_v47, %v10882_v63  ;;  %v10886_v27 = vadd.s32 96, %v14247_v19 }
 0x19a   :  { %2382 = vmatprep.mubr.bf16.mxu0 %v2107_v16  ;;  %vm14285_vm3 = vmmov %vm14284_vm5  ;;  %v10891_v21 = vsel %vm10804_vm0, 65537, %v10342_v10  ;;  %v4529_v3 = vshrl.u32 %v10735_v25, 16  ;;  %v10894_v54 = vsel %vm1560_vm2, %v1573_v52, %v1482_v7  ;;  %v10904_v19 = vmin.u32 %v1498_v0, %v10835_v58  ;;  %v11098_v25 = vld [vmem:[#allocation2 + $0x60] sm:$0xff] }
 0x19b   :  { %v2099_v34 = vsel %vm14285_vm3, %v2094_v20, %v10856_v39  ;;  %14286 = vst [vmem:[#allocation63_spill] sm:$0xff] %v10891_v21  ;;  %14287 = vst [vmem:[#allocation64_spill] sm:$0xff] %v10894_v54  ;;  %v14290_v61 = vshll.u32 %v10683_v33, 16  ;;  %v14291_v20 = vshrl.u32 %v10683_v33, 16  ;;  %vm1625_vm2 = vcmp.gt.s32.totalorder %v10894_v54, 0 }
 0x19c   :  { %vm10899_vm7 = vmpackc.low %vm13980_vm9, %vm13980_vm9  ;;  %2383 = vmatmul.mubr.bf16.gmra.mxu0 %v2099_v34  ;;  %vm1489_vm3 = vc.u32 %v10882_v63, 2454267026  ;;  %vm13995_vm1 = vcmp.lt.s32.totalorder %v10845_v2, 6  ;;  %vm14292_vm5 = vcmp.ge.s32.totalorder %v10721_v8, 7  ;;  %v4538_v52 = vshrl.u32 %v10891_v21, 16 }
 0x19d   :  { %v10908_v56 = vrot.slane %v14290_v61, 5  ;;  %v3440_v16 = vrot.slane %v14291_v20, 4  ;;  %vm1702_vm0 = vmpackc.low %vm10874_vm13, %vm10874_vm13  ;;  %v1490_v7 = vsel %vm1489_vm3, 1, %v10342_v10  ;;  %v3431_v61 = vor.u32 %v10746_v11, %v10730_v43 }
 0x19e   :  { %vm1664_vm9 = vmand %vm14292_vm5, %vm1625_vm2  ;;  %v10923_v0 = vmul.u32.u64.low 2454267026, %v10904_v19  ;;  %v10924_v33 = vmul.u32.u64.high 2454267026, %v10904_v19, %v10923_v0  ;;  %v1491_v18 = vadd.s32 %v10883_v13, %v1490_v7  ;;  %v1715_v20 = vsel %vm1702_vm0, %v10762_v41, 0 }
 0x19f   :  { %vm1703_vm6 = vmpackc.low %vm1664_vm9, %vm1664_vm9  ;;  %v10929_v34 = vmul.u32.u64.low 2804876602, %v10886_v27  ;;  %v10930_v63 = vmul.u32.u64.high 2804876602, %v10886_v27, %v10929_v34  ;;  %v10952_v41 = vsel %vm10864_vm8, 65537, %v10342_v10  ;;  %v10972_v59 = vrot.slane %v4529_v3, 7 }
 0x1a0   :  { %vm5161_vm13 = vmpackc.low %vm10841_vm4, %vm10841_vm4  ;;  %v1716_v14 = vsel %vm1703_vm6, %v10785_v38, 0  ;;  %vm1503_vm3 = vc.u32 %v10923_v0, 2454267026  ;;  %v1492_v11 = vshrl.u32 %v1491_v18, 2  ;;  %v3441_v34 = vor.u32 %v3440_v16, %v10908_v56  ;;  %14295 = vst [vmem:[#allocation65_spill] sm:$0xff] %v10952_v41 }
 0x1a1   :  { %v7262_v60 = vcombine.high %v1715_v20, %v1716_v14  ;;  %vm10943_vm9 = vmand %vm1598_vm11, %vm13995_vm1  ;;  %v7261_v7 = vcombine.low %v1715_v20, %v1716_v14  ;;  %v1504_v9 = vsel %vm1503_vm3, 1, %v10342_v10  ;;  %v10957_v38 = vsel %vm10899_vm7, 65537, %v10342_v10  ;;  %14299 = vst [vmem:[#allocation69_spill] sm:$0xff] %v10972_v59 }
 0x1a2   :  { %14296 = vst [vmem:[#allocation66_spill] sm:$0xff] %v10957_v38  ;;  %v1505_v0 = vadd.s32 %v10924_v33, %v1504_v9  ;;  %v10966_v14 = vsel %vm5160_vm10, 65537, %v10342_v10  ;;  %v10969_v16 = vsel %vm5161_vm13, 65537, %v10342_v10  ;;  %vm13988_vm4 = vcmp.lt.s32.totalorder %v10894_v54, 6  ;;  %vm2797_vm14 = vmpackc.low %vm10943_vm9, %vm10943_vm9 }
 0x1a3   :  { %14297 = vst [vmem:[#allocation67_spill] sm:$0xff] %v10966_v14  ;;  %14298 = vst [vmem:[#allocation68_spill] sm:$0xff] %v10969_v16  ;;  %2720 = vmatprep.mubr.bf16.mxu1 %v7262_v60  ;;  %v1493_v45 = vmul.u32 7, %v1492_v11  ;;  %v10975_v33 = vrot.slane %v4538_v52, 7  ;;  %v5810_v55 = vshrl.u32 %v10952_v41, 16  ;;  %v5820_v9 = vshrl.u32 %v10957_v38, 16 }
 0x1a4   :  { %2721 = vmatmul.mubr.bf16.gmra.mxu1 %v7261_v7  ;;  %v1506_v60 = vshrl.u32 %v1505_v0, 2  ;;  %v10983_v11 = vrot.slane %v3431_v61, 4  ;;  %v10985_v3 = vrot.slane %v3441_v34, 4  ;;  %vm14301_vm11 = vmmov %vm14292_vm5  ;;  %v10998_v7 = vsel %vm2797_vm14, 65537, %v10342_v10  ;;  %v14304_v0 = vld [vmem:[#allocation14_spill] sm:$0xff] }
 0x1a5   :  { %14300 = vst [vmem:[#allocation70_spill] sm:$0xff] %v10975_v33  ;;  %v1494_v28 = vsub.s32 %v7172_v47, %v1493_v45  ;;  %vm10993_vm10 = vmand %vm14301_vm11, %vm13988_vm4  ;;  %vm1483_vm6 = vcmp.lt.s32.totalorder %v10823_v23, 0  ;;  %vm1600_vm8 = vcmp.ge.s32.totalorder %v10823_v23, 7  ;;  %v1273_v47 = vshrl.u32 %v10930_v63, 5  ;;  %v3295_v14 = vld [vmem:[#allocation2 + $0x8] sm:$0x88] }
 0x1a6   :  { %vm13989_vm7 = vcmp.ge.s32.totalorder %v10835_v58, 7  ;;  %vm3492_vm0 = vcmp.ne.s16.totalorder %v14304_v0, 0  ;;  %vm2798_vm5 = vmpackc.low %vm10993_vm10, %vm10993_vm10  ;;  %v11009_v45 = vrot.slane %v5810_v55, 4  ;;  %v11012_v52 = vrot.slane %v5820_v9, 4  ;;  %v11096_v0 = vld [vmem:[#allocation2 + $0x58] sm:$0xff] }
 0x1a7   :  { %v1495_v34 = vsub.s32 0, %v1494_v28  ;;  %v1507_v20 = vmul.u32 7, %v1506_v60  ;;  %vm1497_vm13 = vcmp.lt.s32.totalorder %v10835_v58, 0  ;;  %vm1789_vm3 = vmpackc.low %vm1600_vm8, %vm1600_vm8  ;;  %v1896_v61 = vrot.slane %v10766_v53, 4 }
 0x1a8   :  { %14305 = vst [vmem:[#allocation14_spill] sm:$0xff] %v11009_v45  ;;  %14306 = vst [vmem:[#allocation71_spill] sm:$0xff] %v11012_v52  ;;  %v1274_v55 = vmul.u32 49, %v1273_v47  ;;  %v2116_v9 = vshrl.u32 %v10809_v31, 16  ;;  %vm14307_vm11 = vcmp.gt.s32.totalorder %v10845_v2, 0  ;;  %v1802_v53 = vsel %vm1789_vm3, 65537, %v10342_v10 }
 0x1a9   :  { %v1496_v51 = vsel %vm1483_vm6, %v1495_v34, %v1494_v28  ;;  %v1508_v16 = vsub.s32 %v10904_v19, %v1507_v20  ;;  %vm1790_vm14 = vmpackc.low %vm13989_vm7, %vm13989_vm7  ;;  %v14310_v20 = vsel %vm10626_vm15, %v14253_v30, %v14252_v24  ;;  %v1898_v34 = vshrl.u32 %v1802_v53, 16 }
 0x1aa   :  { %vm1535_vm9 = vcmp.ne.s32.totalorder %v1496_v51, 0  ;;  %vm11028_vm6 = vmpackc.low %vm14307_vm11, %vm14307_vm11  ;;  %vm1548_vm4 = vcmp.lt.s32.totalorder %v1496_v51, 0  ;;  %v1574_v60 = vadd.s32 7, %v1496_v51  ;;  %v1803_v19 = vsel %vm1790_vm14, 65537, %v10342_v10 }
 0x1ab   :  { %vm11039_vm7 = vcmp.ne.s16.totalorder %v14310_v20, 0  ;;  %v1509_v47 = vsub.s32 0, %v1508_v16  ;;  %vm1561_vm11 = vmand %vm1548_vm4, %vm1535_vm9  ;;  %v1901_v18 = vshll.u32 %v1802_v53, 16  ;;  %v1907_v63 = vshrl.u32 %v1803_v19, 16 }
 0x1ac   :  { %v11049_v52 = vsel %vm2798_vm5, 65537, %v10342_v10  ;;  %vm3344_vm3 = vmpackc.low %vm1625_vm2, %vm1625_vm2  ;;  %v11054_v24 = vsel %vm1561_vm11, %v1574_v60, %v1496_v51  ;;  %v1910_v30 = vshll.u32 %v1803_v19, 16  ;;  %v3356_v53 = vsel %vm11028_vm6, 65537, %v10342_v10 }
 0x1ad   :  { %14313 = vst [vmem:[#allocation72_spill] sm:$0xff] %v11054_v24  ;;  %v1510_v13 = vsel %vm1497_vm13, %v1509_v47, %v1508_v16  ;;  %vm14021_vm4 = vcmp.gt.s32.totalorder %v11054_v24, 0  ;;  %v1900_v38 = vrot.slane %v1898_v34, 7  ;;  %v11071_v60 = vrot.slane %v1907_v63, 7  ;;  %vm11081_vm13 = vmpackc.low %vm13995_vm1, %vm13995_vm1 }
 0x1ae   :  { %vm1536_vm10 = vcmp.ne.s32.totalorder %v1510_v13, 0  ;;  %vm1549_vm5 = vcmp.lt.s32.totalorder %v1510_v13, 0  ;;  %v1575_v45 = vadd.s32 7, %v1510_v13  ;;  %vm11067_vm9 = vmand %vm1600_vm8, %vm14021_vm4  ;;  %v3357_v28 = vsel %vm3344_vm3, 65537, %v10342_v10 }
 0x1af   :  { %vm1562_vm14 = vmand %vm1549_vm5, %vm1536_vm10  ;;  %v1903_v16 = vor.u32 %v1901_v18, %v1900_v38  ;;  %v1905_v19 = vrot.slane %v1900_v38, 4  ;;  %v11076_v47 = vsel %vm3492_vm0, %v3295_v14, 0  ;;  %v1912_v63 = vor.u32 %v1910_v30, %v11071_v60 }
 0x1b0   :  { %v11085_v20 = vsel %vm1562_vm14, %v1575_v45, %v1510_v13  ;;  %v11089_v41 = vsub.s32 %v10886_v27, %v1274_v55  ;;  %v11092_v38 = vor.u32 %v2116_v9, %v10853_v36  ;;  %v3444_v18 = vshll.u32 %v3356_v53, 16  ;;  %vm1704_vm6 = vmpackc.low %vm11067_vm9, %vm11067_vm9  ;;  %v11111_v9 = vld [vmem:[#allocation2 + $0x10] sm:$0xff] }
 0x1b1   :  { %14318 = vst [vmem:[#allocation73_spill] sm:$0xff] %v11085_v20  ;;  %vm14007_vm0 = vcmp.gt.s32.totalorder %v11085_v20, 0  ;;  %v1904_v27 = vsel %vm9112_vm12, %v1896_v61, %v1903_v16  ;;  %v3448_v45 = vshrl.u32 %v3356_v53, 16  ;;  %v3454_v55 = vshll.u32 %v3357_v28, 16  ;;  %14320 = vst [vmem:[#allocation74_spill] sm:$0xff] %v11111_v9 }
 0x1b2   :  { %vm14319_vm11 = vcmp.ge.s32.totalorder %v10835_v58, 7  ;;  %v1913_v36 = vsel %vm9112_vm12, %v1905_v19, %v1912_v63  ;;  %vm1933_vm10 = vcmp.ne.s16.totalorder %v1904_v27, 0  ;;  %v3458_v30 = vshrl.u32 %v3357_v28, 16 }
 0x1b3   :  { %vm1666_vm3 = vmand %vm14319_vm11, %vm14007_vm0  ;;  %v11116_v13 = vsel %vm11081_vm13, 65537, %v10342_v10  ;;  %vm1639_vm5 = vcmp.lt.s32.totalorder %v11054_v24, 6  ;;  %vm1934_vm14 = vcmp.ne.s16.totalorder %v1913_v36, 0  ;;  %vm14322_vm1 = vcmp.lt.s32.totalorder %v10894_v54, 6 }
 0x1b4   :  { %14321 = vst [vmem:[#allocation75_spill] sm:$0xff] %v11116_v13  ;;  %vm1705_vm9 = vmpackc.low %vm1666_vm3, %vm1666_vm3  ;;  %v1717_v53 = vsel %vm1704_vm6, %v11096_v0, 0  ;;  %v1946_v28 = vsel %vm1933_vm10, %v11096_v0, 0  ;;  %v1947_v16 = vsel %vm1934_vm14, %v11098_v25, 0  ;;  %v14325_v19 = vsel %vm10626_vm15, %v14257_v15, %v14256_v49 }
 0x1b5   :  { %vm11122_vm11 = vmpackc.low %vm14322_vm1, %vm14322_vm1  ;;  %v1718_v51 = vsel %vm1705_vm9, %v11098_v25, 0  ;;  %vm11135_vm13 = vcmp.ne.s16.totalorder %v14325_v19, 0  ;;  %v14328_v63 = vsel %vm10626_vm15, %v14260_v4, %v14259_v40  ;;  %v11148_v21 = vcombine.high %v1946_v28, %v1947_v16 }
 0x1b6   :  { %vm11144_vm1 = vcmp.ne.s16.totalorder %v14328_v63, 0  ;;  %v7264_v36 = vcombine.high %v1717_v53, %v1718_v51  ;;  %v7263_v14 = vcombine.low %v1717_v53, %v1718_v51  ;;  %v3507_v49 = vsel %vm11039_vm7, %v11111_v9, 0  ;;  %vm11160_vm3 = vmand %vm1600_vm8, %vm1639_vm5 }
 0x1b7   :  { %v11153_v15 = vrot.slane %v3444_v18, 5  ;;  %v3450_v19 = vrot.slane %v3448_v45, 4  ;;  %vm14039_vm6 = vcmp.lt.s32.totalorder %v11085_v20, 6  ;;  %v11164_v40 = vcombine.low %v1946_v28, %v1947_v16  ;;  %vm3345_vm7 = vmpackc.low %vm14021_vm4, %vm14021_vm4 }
 0x1b8   :  { %v11166_v53 = vrot.slane %v3454_v55, 5  ;;  %v3460_v51 = vrot.slane %v3458_v30, 4  ;;  %v11171_v31 = vsel %vm11122_vm11, 65537, %v10342_v10  ;;  %2730 = vmatprep.mubr.bf16.mxu1 %v7264_v36  ;;  %v2120_v18 = vshll.u32 %v11148_v21, 16  ;;  %vm3346_vm8 = vmpackc.low %vm14007_vm0, %vm14007_vm0 }
 0x1b9   :  { %v4547_v45 = vshrl.u32 %v11116_v13, 16  ;;  %v3358_v55 = vsel %vm3345_vm7, 65537, %v10342_v10  ;;  %2731 = vmatmul.mubr.bf16.gmra.mxu1 %v7263_v14  ;;  %v2112_v30 = vshll.u32 %v11164_v40, 16  ;;  %v11184_v61 = vcombine.low %v11076_v47, %v3507_v49  ;;  %vm2799_vm14 = vmpackc.low %vm11160_vm3, %vm11160_vm3 }
 0x1ba   :  { %vm14333_vm10 = vcmp.ge.s32.totalorder %v10835_v58, 7  ;;  %v3359_v16 = vsel %vm3346_vm8, 65537, %v10342_v10  ;;  %v3464_v63 = vshll.u32 %v3358_v55, 16  ;;  %v3468_v36 = vshrl.u32 %v3358_v55, 16 }
 0x1bb   :  { %vm11190_vm9 = vmand %vm14333_vm10, %vm14039_vm6  ;;  %v2122_v33 = vrot.slane %v2120_v18, 1  ;;  %v3451_v14 = vor.u32 %v3450_v19, %v11153_v15  ;;  %v3474_v59 = vshll.u32 %v3359_v16, 16  ;;  %v3478_v46 = vshrl.u32 %v3359_v16, 16  ;;  %v11214_v16 = vld [vmem:[#allocation2 + $0x20] sm:$0xff] }
 0x1bc   :  { %v11199_v1 = vrot.slane %v2112_v30, 1  ;;  %v3461_v44 = vor.u32 %v3460_v51, %v11166_v53  ;;  %v14336_v55 = vshrl.u32 %v10811_v62, 16  ;;  %v11207_v9 = vrot.slane %v4547_v45, 7  ;;  %v11212_v30 = vld [vmem:[#allocation2 + $0x18] sm:$0xff]  ;;  %14339 = vst [vmem:[#allocation78_spill] sm:$0xff] %v11214_v16  ;;  %vm2800_vm8 = vmpackc.low %vm11190_vm9, %vm11190_vm9 }
 0x1bd   :  { %vm1290_vm11 = vcmp.ne.s32.totalorder %v11089_v41, 0  ;;  %vm1303_vm7 = vcmp.lt.s32.totalorder %v11089_v41, 0  ;;  %v1329_v19 = vadd.s32 49, %v11089_v41  ;;  %14338 = vst [vmem:[#allocation77_spill] sm:$0xff] %v11212_v30  ;;  %v11225_v62 = vsel %vm2799_vm14, 65537, %v10342_v10 }
 0x1be   :  { %v2110_v18 = vor.u32 %v14336_v55, %v10856_v39  ;;  %14337 = vst [vmem:[#allocation76_spill] sm:$0xff] %v11207_v9  ;;  %v11227_v39 = vrot.slane %v3464_v63, 5  ;;  %v11229_v51 = vrot.slane %v3468_v36, 4  ;;  %vm14340_vm10 = vsmask.f32 7424  ;;  %vm1316_vm3 = vmand %vm1303_vm7, %vm1290_vm11  ;;  %v11262_v63 = vld [vmem:[#allocation2] sm:$0xff] }
 0x1bf   :  { %v2123_v45 = vsel %vm14340_vm10, %v11092_v38, %v2122_v33  ;;  %v11233_v55 = vrot.slane %v3451_v14, 4  ;;  %v11235_v20 = vrot.slane %v3474_v59, 5  ;;  %v11237_v24 = vrot.slane %v3478_v46, 4  ;;  %vm14341_vm0 = vmmov %vm14340_vm10  ;;  %v14342_v38 = vld [vmem:[#allocation9_spill] sm:$0xff] }
 0x1c0   :  { %2392 = vmatprep.mubr.bf16.mxu0 %v2123_v45  ;;  %v2115_v4 = vsel %vm14341_vm0, %v2110_v18, %v11199_v1  ;;  %v11241_v13 = vrot.slane %v3461_v44, 4  ;;  %v1914_v10 = vrot.slane %v11071_v60, 4  ;;  %v3508_v59 = vsel %vm11135_vm13, %v11212_v30, 0  ;;  %v14344_v44 = vld [vmem:[#allocation4_spill] sm:$0xff] }
 0x1c1   :  { %2393 = vmatmul.mubr.bf16.gmra.mxu0 %v2115_v4  ;;  %v3509_v46 = vsel %vm11144_vm1, %v11214_v16, 0  ;;  %vm14343_vm0 = vcmp.lt.s32.totalorder %v14342_v38, 6  ;;  %vm14345_vm14 = vcmp.ge.s32.totalorder %v14344_v44, 7  ;;  %v11270_v34 = vsel %vm2800_vm8, 65537, %v11262_v63 }
 0x1c2   :  { %vm11258_vm10 = vmand %vm14345_vm14, %vm14343_vm0  ;;  %v11274_v36 = vsel %vm1316_vm3, %v1329_v19, %v11089_v41  ;;  %v7411_v14 = vcombine.high %v11076_v47, %v3507_v49  ;;  %v2132_v4 = vshrl.u32 %v11148_v21, 16  ;;  %v11287_v41 = vcombine.low %v3508_v59, %v3509_v46 }
 0x1c3   :  { %14348 = vst [vmem:[#allocation79_spill] sm:$0xff] %v11274_v36  ;;  %v1512_v45 = vsub.s32 0, %v11274_v36  ;;  %vm1602_vm13 = vcmp.ge.s32.totalorder %v11274_v36, 7  ;;  %v7413_v19 = vcombine.high %v3508_v59, %v3509_v46  ;;  %vm2789_vm9 = vmpackc.low %vm11258_vm10, %vm11258_vm10  ;;  %vm14041_vm11 = vsmask.f32 4352 }
 0x1c4   :  { %vm1791_vm1 = vmpackc.low %vm1602_vm13, %vm1602_vm13  ;;  %v3628_v47 = vshrl.u32 %v7411_v14, 16  ;;  %v11294_v21 = vor.u32 %v2132_v4, %v2122_v33  ;;  %v3631_v18 = vshll.u32 %v7411_v14, 16  ;;  %v2802_v29 = vsel %vm2789_vm9, 65537, %v11262_v63 }
 0x1c5   :  { %v7174_v49 = vmin.u32 %v1512_v45, %v11274_v36  ;;  %v1804_v27 = vsel %vm1791_vm1, 65537, %v11262_v63  ;;  %v3636_v44 = vshrl.u32 %v7413_v19, 16  ;;  %v3639_v46 = vshll.u32 %v7413_v19, 16  ;;  %v14353_v19 = vld [vmem:[#allocation32_spill] sm:$0xff] }
 0x1c6   :  { %v1916_v28 = vshrl.u32 %v1804_v27, 16  ;;  %v1919_v38 = vshll.u32 %v1804_v27, 16  ;;  %v3630_v9 = vrot.slane %v3628_v47, 3  ;;  %v3633_v59 = vrot.slane %v3631_v18, 4  ;;  %v11302_v47 = vld [vmem:[#allocation2 + $0x68] sm:$0x33] }
 0x1c7   :  { %v11296_v16 = vmul.u32.u64.low 2454267026, %v7174_v49  ;;  %v11297_v30 = vmul.u32.u64.high 2454267026, %v7174_v49, %v11296_v16  ;;  %v3638_v60 = vrot.slane %v3636_v44, 3  ;;  %v3641_v8 = vrot.slane %v3639_v46, 4  ;;  %v14351_v44 = vld [vmem:[#allocation13_spill] sm:$0xff] }
 0x1c8   :  { %v1918_v32 = vrot.slane %v1916_v28, 7  ;;  %v3634_v45 = vor.u32 %v3633_v59, %v3630_v9  ;;  %vm2815_vm8 = vcmask 1040384   ;;  %vm2816_vm3 = vcmask 1044484   ;;  %v8251_v28 = vld [vmem:[%s13877_s3 + $0x400] ss:$8 sps:$4 sm:$0xff]  }
 0x1c9   :  { %vm1517_vm7 = vc.u32 %v11296_v16, 2454267026  ;;  %v2818_v27 = vrot.slane %v2802_v29, 7  ;;  %v11304_v18 = vor.u32 %v3641_v8, %v3638_v60  ;;  %vm11306_vm0 = vmor %vm2815_vm8, %vm2816_vm3  ;;  %v14352_v16 = vrot.slane %v14351_v44, 7 }
 0x1ca   :  { %v1518_v33 = vsel %vm1517_vm7, 1, %v11262_v63  ;;  %v1921_v14 = vor.u32 %v1919_v38, %v1918_v32  ;;  %v14354_v59 = vrot.slane %v14353_v19, 7  ;;  %v2124_v29 = vshrl.u32 %v11164_v40, 16 }
 0x1cb   :  { %v1519_v4 = vadd.s32 %v11297_v30, %v1518_v33  ;;  %v2822_v9 = vrot.slane %v14352_v16, 4  ;;  %v2819_v30 = vrot.slane %v2818_v27, 4  ;;  %vm11317_vm14 = vcmp.ne.s16.totalorder %v2818_v27, 0  ;;  %v2749_v33 = vld [vmem:[#allocation2 + $0x8] sm:$0xee] }
 0x1cc   :  { %v2825_v46 = vrot.slane %v14354_v59, 4  ;;  %v1922_v32 = vsel %vm9112_vm12, %v1914_v10, %v1921_v14  ;;  %v11323_v60 = vsel %vm14041_vm11, %v3634_v45, %v11304_v18  ;;  %v14357_v16 = vmov %v14354_v59  ;;  %v14359_v27 = vld [vmem:[#allocation35_spill] sm:$0xff] }
 0x1cd   :  { %v1520_v8 = vshrl.u32 %v1519_v4, 2  ;;  %vm1935_vm10 = vcmp.ne.s16.totalorder %v1922_v32, 0  ;;  %v2824_v59 = vsel %vm11306_vm0, %v2822_v9, %v14357_v16  ;;  %v14358_v40 = vrot.slane %v14351_v44, 7  ;;  %v8455_v9 = vld [vmem:[#allocation2 + $0x10] sm:$0xff] }
 0x1ce   :  { %v1948_v10 = vsel %vm1935_vm10, %v11302_v47, 0  ;;  %v14360_v4 = vrot.slane %v14359_v27, 7  ;;  %vm2857_vm1 = vcmp.ne.s16.totalorder %v2824_v59, 0  ;;  %vm1511_vm7 = vcmp.lt.s32.totalorder %v11274_v36, 0  ;;  %v8456_v59 = vld [vmem:[#allocation2 + $0x18] sm:$0xff] }
 0x1cf   :  { %v2821_v14 = vsel %vm11306_vm0, %v2819_v30, %v14358_v40  ;;  %v1521_v45 = vmul.u32 7, %v1520_v8  ;;  %v7220_v6 = vcombine.high %v1948_v10, %v1948_v10  ;;  %v11338_v54 = vcombine.low %v1948_v10, %v1948_v10  ;;  %v8457_v40 = vld [vmem:[#allocation2 + $0x20] sm:$0xff] }
 0x1d0   :  { %v2827_v32 = vsel %vm11306_vm0, %v2825_v46, %v14360_v4  ;;  %vm2856_vm9 = vcmp.ne.s16.totalorder %v2821_v14, 0  ;;  %v11343_v44 = vsel %vm11317_vm14, %v2749_v33, 0  ;;  %v2126_v46 = vor.u32 %v2124_v29, %v11199_v1 }
 0x1d1   :  { %vm2858_vm8 = vcmp.ne.s16.totalorder %v2827_v32, 0  ;;  %v11345_v19 = vsel %vm2856_vm9, %v8455_v9, 0  ;;  %v1522_v30 = vsub.s32 %v7174_v49, %v1521_v45  ;;  %v2136_v16 = vshll.u32 %v7220_v6, 16 }
 0x1d2   :  { %v2128_v8 = vshll.u32 %v11338_v54, 16  ;;  %v11349_v10 = vsel %vm2857_vm1, %v8456_v59, 0  ;;  %v11351_v14 = vsel %vm2858_vm8, %v8457_v40, 0  ;;  %v7332_v33 = vcombine.high %v11343_v44, %v11345_v19 }
 0x1d3   :  { %v1523_v4 = vsub.s32 0, %v1522_v30  ;;  %v2138_v32 = vrot.slane %v2136_v16, 1  ;;  %v2143_v29 = vshrl.u32 %v7220_v6, 16  ;;  %v7334_v45 = vcombine.high %v11349_v10, %v11351_v14 }
 0x1d4   :  { %v2130_v49 = vrot.slane %v2128_v8, 1  ;;  %vm2967_vm3 = vcmask 1046528   ;;  %v3611_v9 = vshrl.u32 %v11184_v61, 16  ;;  %vm14361_vm14 = vsmask.f32 7424 }
 0x1d5   :  { %v1524_v59 = vsel %vm1511_vm7, %v1523_v4, %v1522_v30  ;;  %v2139_v40 = vsel %vm14361_vm14, %v11294_v21, %v2138_v32  ;;  %vm14362_vm10 = vmmov %vm14361_vm14  ;;  %v2140_v16 = vshrl.u32 %v11338_v54, 16  ;;  %v2145_v6 = vor.u32 %v2143_v29, %v2138_v32  ;;  %v11385_v29 = vld [vmem:[#allocation2 + $0x30] sm:$0xff] }
 0x1d6   :  { %v2131_v38 = vsel %vm14362_vm10, %v2126_v46, %v2130_v49  ;;  %vm1537_vm1 = vcmp.ne.s32.totalorder %v1524_v59, 0  ;;  %vm1550_vm9 = vcmp.lt.s32.totalorder %v1524_v59, 0  ;;  %v1576_v8 = vadd.s32 7, %v1524_v59  ;;  %2402 = vmatprep.mubr.bf16.mxu0 %v2139_v40  ;;  %v11375_v46 = vld [vmem:[#allocation2 + $0x28] sm:$0xff]  ;;  %v14364_v40 = vld [vmem:[#allocation46_spill] sm:$0xff] }
 0x1d7   :  { %vm1563_vm8 = vmand %vm1550_vm9, %vm1537_vm1  ;;  %2403 = vmatmul.mubr.bf16.gmra.mxu0 %v2131_v38  ;;  %v2971_v1 = vrot.slane %v7332_v33, 1  ;;  %v11368_v48 = vrot.slane %v7334_v45, 1  ;;  %v3613_v50 = vrot.slane %v3611_v9, 3  ;;  %v3614_v30 = vshll.u32 %v11184_v61, 16  ;;  %v1654_v33 = vld [vmem:[#allocation2 + $0x68] sm:$0x11] }
 0x1d8   :  { %v11371_v4 = vsel %vm1563_vm8, %v1576_v8, %v1524_v59  ;;  %2412 = vmatprep.mubr.bf16.mxu0 %v2145_v6  ;;  %v3619_v21 = vshrl.u32 %v11287_v41, 16  ;;  %v3622_v54 = vshll.u32 %v11287_v41, 16  ;;  %v3407_v38 = vsel %vm10626_vm15, %v14364_v40, %v10277_v42 }
 0x1d9   :  { %14363 = vst [vmem:[#allocation13_spill] sm:$0xff] %v11371_v4  ;;  %vm14022_vm7 = vcmp.gt.s32.totalorder %v11371_v4, 0  ;;  %vm14023_vm14 = vcmp.lt.s32.totalorder %v11371_v4, 6  ;;  %v2973_v61 = vsel %vm2967_vm3, %v2971_v1, %v11368_v48  ;;  %v3616_v32 = vrot.slane %v3614_v30, 4 }
 0x1da   :  { %vm1667_vm10 = vmand %vm1602_vm13, %vm14022_vm7  ;;  %v3621_v41 = vrot.slane %v3619_v21, 3  ;;  %v3624_v45 = vrot.slane %v3622_v54, 4  ;;  %v3417_v42 = vsel %vm10626_vm15, %v10447_v17, %v10368_v57  ;;  %vm3496_vm1 = vcmp.ne.s16.totalorder %v3407_v38, 0 }
 0x1db   :  { %vm1706_vm9 = vmpackc.low %vm1667_vm10, %vm1667_vm10  ;;  %v3617_v9 = vor.u32 %v3616_v32, %v3613_v50  ;;  %vm3497_vm8 = vcmp.ne.s16.totalorder %v3417_v42, 0  ;;  %v3510_v1 = vsel %vm3496_vm1, %v11375_v46, 0  ;;  %v3427_v59 = vsel %vm10626_vm15, %v10472_v26, %v10730_v43 }
 0x1dc   :  { %v1719_v8 = vsel %vm1706_vm9, %v1654_v33, 0  ;;  %vm11404_vm4 = vmand %vm1602_vm13, %vm14023_vm14  ;;  %v11408_v57 = vor.u32 %v3624_v45, %v3621_v41  ;;  %v3511_v17 = vsel %vm3497_vm8, %v11385_v29, 0  ;;  %v3437_v50 = vsel %vm10626_vm15, %v10983_v11, %v10908_v56 }
 0x1dd   :  { %v7266_v30 = vcombine.high %v1719_v8, %v1719_v8  ;;  %vm2801_vm10 = vmpackc.low %vm11404_vm4, %vm11404_vm4  ;;  %v2142_v26 = vor.u32 %v2140_v16, %v2130_v49  ;;  %v7415_v43 = vcombine.high %v3510_v1, %v3511_v17  ;;  %v7414_v21 = vcombine.low %v3510_v1, %v3511_v17 }
 0x1de   :  { %v2850_v54 = vrot.slane %v11270_v34, 7  ;;  %v14367_v40 = vor.u32 %v11229_v51, %v11227_v39  ;;  %vm3347_vm13 = vmpackc.low %vm14022_vm7, %vm14022_vm7  ;;  %v7265_v56 = vcombine.low %v1719_v8, %v1719_v8  ;;  %v3626_v11 = vsel %vm14041_vm11, %v3617_v9, %v11408_v57  ;;  %v11441_v9 = vld [vmem:[#allocation2 + $0x38] sm:$0xff] }
 0x1df   :  { %2740 = vmatprep.mubr.bf16.mxu1 %v7266_v30  ;;  %v11430_v49 = vsel %vm2801_vm10, 65537, %v11262_v63  ;;  %v11433_v16 = vsel %vm3347_vm13, 65537, %v11262_v63  ;;  %2413 = vmatmul.mubr.bf16.gmra.mxu0 %v2142_v26  ;;  %v3654_v33 = vshrl.u32 %v7415_v43, 16  ;;  %v3657_v51 = vshll.u32 %v7415_v43, 16  ;;  %v11449_v30 = vld [vmem:[#allocation2 + $0x40] sm:$0xff] }
 0x1e0   :  { %v11422_v38 = vrot.slane %v14367_v40, 4  ;;  %v3484_v32 = vshll.u32 %v11433_v16, 16  ;;  %2741 = vmatmul.mubr.bf16.gmra.mxu1 %v7265_v56  ;;  %v14368_v41 = vcombine.low %v11349_v10, %v11351_v14  ;;  %3200 = vmatprep.mubr.bf16.mxu0 %v2973_v61  ;;  %v3645_v42 = vshrl.u32 %v7414_v21, 16 }
 0x1e1   :  { %vm3498_vm4 = vcmp.ne.s16.totalorder %v3427_v59, 0  ;;  %v14369_v1 = vor.u32 %v11237_v24, %v11235_v20  ;;  %3940 = vmatprep.mubr.bf16.mxu1 %v11323_v60  ;;  %v3656_v6 = vrot.slane %v3654_v33, 3  ;;  %v3659_v17 = vrot.slane %v3657_v51, 4  ;;  %v8188_v51 = vld [vmem:[%s13877_s3 + $0x570] ss:$8 sps:$4 sm:$0xff]  }
 0x1e2   :  { %v11439_v45 = vrot.slane %v14368_v41, 1  ;;  %vm3499_vm1 = vcmp.ne.s16.totalorder %v3437_v50, 0  ;;  %v2853_v10 = vrot.slane %v11430_v49, 7  ;;  %v14370_v14 = vcombine.low %v11343_v44, %v11345_v19  ;;  %v8209_v44 = vld [vmem:[%s13877_s3 + $0x470] ss:$8 sps:$4 sm:$0xff]  }
 0x1e3   :  { %v11446_v8 = vrot.slane %v14369_v1, 4  ;;  %v3647_v26 = vrot.slane %v3645_v42, 3  ;;  %v3648_v59 = vshll.u32 %v7414_v21, 16  ;;  %v11455_v43 = vrot.slane %v3484_v32, 5 }
 0x1e4   :  { %v2968_v61 = vrot.slane %v14370_v14, 1  ;;  %v3488_v24 = vshrl.u32 %v11433_v16, 16  ;;  %v3660_v40 = vor.u32 %v3659_v17, %v3656_v6  ;;  %v3512_v60 = vsel %vm3498_vm4, %v11441_v9, 0  ;;  %v8196_v17 = vld [vmem:[%s13877_s3 + $0x564] ss:$8 sps:$4 sm:$0xff]  }
 0x1e5   :  { %v3650_v56 = vrot.slane %v3648_v59, 4  ;;  %v3513_v33 = vsel %vm3499_vm1, %v11449_v30, 0  ;;  %v14371_v19 = vrot.slane %v14359_v27, 7  ;;  %v14372_v42 = vrot.slane %v10350_v22, 7  ;;  %v8194_v22 = vld [vmem:[%s13877_s3 + $0x560] ss:$8 sps:$4 sm:$0xff]  }
 0x1e6   :  { %v2970_v50 = vsel %vm2967_vm3, %v2968_v61, %v11439_v45  ;;  %v3661_v32 = vsel %vm14041_vm11, %v11304_v18, %v3660_v40  ;;  %v7417_v41 = vcombine.high %v3512_v60, %v3513_v33  ;;  %v7416_v6 = vcombine.low %v3512_v60, %v3513_v33  ;;  %v8217_v60 = vld [vmem:[%s13877_s3 + $0x464] ss:$8 sps:$4 sm:$0xff]  }
 0x1e7   :  { %v2828_v21 = vrot.slane %v14371_v19, 4  ;;  %v2831_v1 = vrot.slane %v14372_v42, 4  ;;  %v3651_v14 = vor.u32 %v3650_v56, %v3647_v26  ;;  %v14373_v27 = vmov %v14372_v42  ;;  %3201 = vmatmul.mubr.bf16.vlgmr.msra.gmra.mxu0 %v2970_v50  ;;  %v11503_v42 = vld [vmem:[#allocation2 + $0x50] sm:$0xff]  ;;  %v8215_v50 = vld [vmem:[%s13877_s3 + $0x460] ss:$8 sps:$4 sm:$0xff]  }
 0x1e8   :  { %v3447_v18 = vsel %vm10626_vm15, %v10985_v3, %v11153_v15  ;;  %v3457_v59 = vsel %vm10626_vm15, %v11233_v55, %v11166_v53  ;;  %v3672_v26 = vshrl.u32 %v7417_v41, 16  ;;  %v3675_v56 = vshll.u32 %v7417_v41, 16  ;;  %v11499_v15 = vld [vmem:[#allocation2 + $0x48] sm:$0xff]  ;;  %3941 = vmatmul.mubr.bf16.vlgmr.msra.gmra.mxu1 %v3626_v11  ;;  %4296 = vmatpush1.bf16.msra.mxu0 %v8209_v44  ;;  %v8202_v44 = vld [vmem:[%s13877_s3 + $0x554] ss:$8 sps:$4 sm:$0xff]  }
 0x1e9   :  { %v2830_v61 = vsel %vm11306_vm0, %v2828_v21, %v14373_v27  ;;  %v14374_v33 = vrot.slane %v10364_v37, 7  ;;  %v3652_v53 = vsel %vm14041_vm11, %v11408_v57, %v3651_v14  ;;  %v8458_v55 = vld [vmem:[#allocation2 + $0x28] sm:$0xff]  ;;  %v3663_v21 = vshrl.u32 %v7416_v6, 16  ;;  %3950 = vmatprep.mubr.bf16.mxu1 %v3661_v32  ;;  %4987 = vmatpush1.bf16.msra.mxu1 %v8188_v51  ;;  %v8459_v27 = vld [vmem:[#allocation2 + $0x30] sm:$0xff] }
 0x1ea   :  { %vm2859_vm9 = vcmp.ne.s16.totalorder %v2830_v61, 0  ;;  %v3674_v41 = vrot.slane %v3672_v26, 3  ;;  %v3666_v61 = vshll.u32 %v7416_v6, 16  ;;  %v8223_v57 = vld [vmem:[%s13877_s3 + $0x454] ss:$8 sps:$4 sm:$0xff]   ;;  %4988 = vmatprep.subr.bf16.mxu1 %v8196_v17  ;;  %vm3500_vm10 = vcmp.ne.s16.totalorder %v3447_v18, 0  ;;  %4297 = vmatprep.subr.bf16.mxu0 %v8217_v60 }
 0x1eb   :  { %v2833_v3 = vsel %vm11306_vm0, %v2831_v1, %v14374_v33  ;;  %v2872_v19 = vsel %vm2859_vm9, %v8458_v55, 0  ;;  %v3677_v1 = vrot.slane %v3675_v56, 4  ;;  %vm3501_vm13 = vcmp.ne.s16.totalorder %v3457_v59, 0  ;;  %v8200_v59 = vld [vmem:[%s13877_s3 + $0x550] ss:$8 sps:$4 sm:$0xff]  }
 0x1ec   :  { %vm2860_vm8 = vcmp.ne.s16.totalorder %v2833_v3, 0  ;;  %v3665_v3 = vrot.slane %v3663_v21, 3  ;;  %v3668_v32 = vrot.slane %v3666_v61, 4  ;;  %v3514_v26 = vsel %vm3500_vm10, %v11499_v15, 0  ;;  %4298 = vmatpush1.bf16.msra.mxu0 %v8215_v50 }
 0x1ed   :  { %v2873_v11 = vsel %vm2860_vm8, %v8459_v27, 0  ;;  %v3678_v51 = vor.u32 %v3677_v1, %v3674_v41  ;;  %v3515_v6 = vsel %vm3501_vm13, %v11503_v42, 0  ;;  %v8221_v27 = vld [vmem:[%s13877_s3 + $0x450] ss:$8 sps:$4 sm:$0xff]   ;;  %v14375_v21 = vrot.slane %v10364_v37, 7  ;;  %4989 = vmatpush1.bf16.msra.mxu1 %v8194_v22  ;;  %4299 = vmatprep.subr.bf16.mxu0 %v8223_v57 }
 0x1ee   :  { %v7336_v33 = vcombine.high %v2872_v19, %v2873_v11  ;;  %v7419_v55 = vcombine.high %v3514_v26, %v3515_v6  ;;  %v7335_v17 = vcombine.low %v2872_v19, %v2873_v11  ;;  %v11527_v41 = vor.u32 %v3668_v32, %v3665_v3  ;;  %4990 = vmatprep.subr.bf16.mxu1 %v8202_v44  ;;  %v8208_v37 = vld [vmem:[%s13877_s3 + $0x544] ss:$8 sps:$4 sm:$0xff]  }
 0x1ef   :  { %v2834_v18 = vrot.slane %v14375_v21, 4  ;;  %v3679_v60 = vsel %vm14041_vm11, %v3660_v40, %v3678_v51  ;;  %v14376_v50 = vrot.slane %v10612_v12, 7  ;;  %v7418_v1 = vcombine.low %v3514_v26, %v3515_v6  ;;  %v8206_v40 = vld [vmem:[%s13877_s3 + $0x540] ss:$8 sps:$4 sm:$0xff]   ;;  %v11552_v6 = vld [vmem:[#allocation2 + $0x58] sm:$0xff] }
 0x1f0   :  { %v11516_v56 = vrot.slane %v7336_v33, 1  ;;  %v3690_v11 = vshrl.u32 %v7419_v55, 16  ;;  %v3693_v61 = vshll.u32 %v7419_v55, 16  ;;  %v11537_v33 = vrot.slane %v7335_v17, 1  ;;  %v8229_v55 = vld [vmem:[%s13877_s3 + $0x444] ss:$8 sps:$4 sm:$0xff]   ;;  %3951 = vmatmul.mubr.bf16.gmra.mxu1 %v3652_v53  ;;  %4300 = vmatpush1.bf16.msra.mxu0 %v8221_v27 }
 0x1f1   :  { %v2837_v19 = vrot.slane %v14376_v50, 4  ;;  %v3670_v57 = vsel %vm14041_vm11, %v3651_v14, %v11527_v41  ;;  %v14377_v44 = vmov %v14376_v50  ;;  %v14378_v32 = vrot.slane %v10620_v5, 7  ;;  %v11560_v21 = vld [vmem:[#allocation2 + $0x60] sm:$0xff]  ;;  %3960 = vmatprep.mubr.bf16.mxu1 %v3679_v60  ;;  %4991 = vmatpush1.bf16.msra.mxu1 %v8200_v59  ;;  %v8460_v50 = vld [vmem:[#allocation2 + $0x38] sm:$0xff] }
 0x1f2   :  { %v2977_v22 = vsel %vm2967_vm3, %v11368_v48, %v11516_v56  ;;  %v2836_v3 = vsel %vm11306_vm0, %v2834_v18, %v14377_v44  ;;  %v3681_v26 = vshrl.u32 %v7418_v1, 16  ;;  %v3692_v17 = vrot.slane %v3690_v11, 3  ;;  %v8227_v18 = vld [vmem:[%s13877_s3 + $0x440] ss:$8 sps:$4 sm:$0xff]   ;;  %v8235_v11 = vld [vmem:[%s13877_s3 + $0x434] ss:$8 sps:$4 sm:$0xff]   ;;  %4992 = vmatprep.subr.bf16.mxu1 %v8208_v37  ;;  %4301 = vmatprep.subr.bf16.mxu0 %v8229_v55 }
 0x1f3   :  { %3210 = vmatprep.mubr.bf16.mxu0 %v2977_v22  ;;  %v2839_v48 = vsel %vm11306_vm0, %v2837_v19, %v14378_v32  ;;  %v3695_v14 = vrot.slane %v3693_v61, 4  ;;  %v2975_v12 = vsel %vm2967_vm3, %v11439_v45, %v11537_v33  ;;  %vm2861_vm4 = vcmp.ne.s16.totalorder %v2836_v3, 0  ;;  %v8214_v45 = vld [vmem:[%s13877_s3 + $0x534] ss:$8 sps:$4 sm:$0xff]   ;;  %v8461_v61 = vld [vmem:[#allocation2 + $0x40] sm:$0xff] }
 0x1f4   :  { %vm2862_vm1 = vcmp.ne.s16.totalorder %v2839_v48, 0  ;;  %v2874_v19 = vsel %vm2861_vm4, %v8460_v50, 0  ;;  %v3683_v53 = vrot.slane %v3681_v26, 3  ;;  %v3684_v22 = vshll.u32 %v7418_v1, 16  ;;  %3211 = vmatmul.mubr.bf16.gmra.mxu0 %v2975_v12 }
 0x1f5   :  { %v11571_v27 = vor.u32 %v3695_v14, %v3692_v17  ;;  %v2875_v60 = vsel %vm2862_vm1, %v8461_v61, 0  ;;  %v3467_v59 = vsel %vm10626_vm15, %v11241_v13, %v11227_v39  ;;  %v3477_v1 = vsel %vm10626_vm15, %v11422_v38, %v11235_v20  ;;  %4302 = vmatpush1.bf16.msra.mxu0 %v8227_v18  ;;  %4993 = vmatpush1.bf16.msra.mxu1 %v8206_v40  ;;  %v8212_v13 = vld [vmem:[%s13877_s3 + $0x530] ss:$8 sps:$4 sm:$0xff]   ;;  %v8220_v40 = vld [vmem:[%s13877_s3 + $0x524] ss:$8 sps:$4 sm:$0xff]  }
 0x1f6   :  { %v7338_v37 = vcombine.high %v2874_v19, %v2875_v60  ;;  %v3686_v44 = vrot.slane %v3684_v22, 4  ;;  %vm3502_vm9 = vcmp.ne.s16.totalorder %v3467_v59, 0  ;;  %vm3503_vm8 = vcmp.ne.s16.totalorder %v3477_v1, 0  ;;  %4303 = vmatprep.subr.bf16.mxu0 %v8235_v11  ;;  %4994 = vmatprep.subr.bf16.mxu1 %v8214_v45  ;;  %v8233_v11 = vld [vmem:[%s13877_s3 + $0x430] ss:$8 sps:$4 sm:$0xff]  }
 0x1f7   :  { %v3697_v3 = vsel %vm14041_vm11, %v3678_v51, %v11571_v27  ;;  %v3516_v32 = vsel %vm3502_vm9, %v11552_v6, 0  ;;  %v3517_v48 = vsel %vm3503_vm8, %v11560_v21, 0  ;;  %v7337_v26 = vcombine.low %v2874_v19, %v2875_v60  ;;  %v8218_v45 = vld [vmem:[%s13877_s3 + $0x520] ss:$8 sps:$4 sm:$0xff]   ;;  %v8241_v59 = vld [vmem:[%s13877_s3 + $0x424] ss:$8 sps:$4 sm:$0xff]  }
 0x1f8   :  { %v11588_v20 = vrot.slane %v7338_v37, 1  ;;  %v11590_v39 = vor.u32 %v3686_v44, %v3683_v53  ;;  %v7421_v38 = vcombine.high %v3516_v32, %v3517_v48  ;;  %v14379_v55 = vrot.slane %v10620_v5, 7  ;;  %3961 = vmatmul.mubr.bf16.gmra.mxu1 %v3670_v57  ;;  %v11629_v60 = vld [vmem:[#allocation2 + $0x68] sm:$0xff]  ;;  %v8226_v37 = vld [vmem:[%s13877_s3 + $0x514] ss:$8 sps:$4 sm:$0xff]  }
 0x1f9   :  { %vm1613_vm10 = vcmp.lt.s32.totalorder %v10823_v23, 42  ;;  %v11598_v17 = vrot.slane %v7337_v26, 1  ;;  %v14380_v14 = vrot.slane %v10998_v7, 7  ;;  %v7420_v18 = vcombine.low %v3516_v32, %v3517_v48  ;;  %3970 = vmatprep.mubr.bf16.mxu1 %v3697_v3  ;;  %4995 = vmatpush1.bf16.msra.mxu1 %v8212_v13  ;;  %v3308_v7 = vld [vmem:[#allocation2 + $0x70] sm:$0x11]  ;;  %v8462_v44 = vld [vmem:[#allocation2 + $0x48] sm:$0xff] }
 0x1fa   :  { %v2840_v51 = vrot.slane %v14379_v55, 4  ;;  %v3487_v50 = vsel %vm10626_vm15, %v11446_v8, %v11455_v43  ;;  %v2981_v5 = vsel %vm2967_vm3, %v11516_v56, %v11588_v20  ;;  %v3688_v19 = vsel %vm14041_vm11, %v11527_v41, %v11590_v39  ;;  %4996 = vmatprep.subr.bf16.mxu1 %v8220_v40  ;;  %v8463_v48 = vld [vmem:[#allocation2 + $0x50] sm:$0xff]  ;;  %4304 = vmatpush1.bf16.msra.mxu0 %v8233_v11  ;;  %v8239_v13 = vld [vmem:[%s13877_s3 + $0x420] ss:$8 sps:$4 sm:$0xff]   ;;  %v8232_v11 = vld [vmem:[%s13877_s3 + $0x504] ss:$8 sps:$4 sm:$0xff]  }
 0x1fb   :  { %v2843_v12 = vrot.slane %v14380_v14, 4  ;;  %v3708_v53 = vshrl.u32 %v7421_v38, 16  ;;  %v3711_v22 = vshll.u32 %v7421_v38, 16  ;;  %3220 = vmatprep.mubr.bf16.mxu0 %v2981_v5  ;;  %v2979_v8 = vsel %vm2967_vm3, %v11537_v33, %v11598_v17  ;;  %4305 = vmatprep.subr.bf16.mxu0 %v8241_v59 }
 0x1fc   :  { %v14381_v43 = vmov %v14380_v14  ;;  %v14382_v41 = vrot.slane %v11049_v52, 7  ;;  %v3699_v57 = vshrl.u32 %v7420_v18, 16  ;;  %3221 = vmatmul.mubr.bf16.gmra.mxu0 %v2979_v8  ;;  %v3702_v55 = vshll.u32 %v7420_v18, 16  ;;  %v8224_v18 = vld [vmem:[%s13877_s3 + $0x510] ss:$8 sps:$4 sm:$0xff]  }
 0x1fd   :  { %v2842_v56 = vsel %vm11306_vm0, %v2840_v51, %v14381_v43  ;;  %v3710_v33 = vrot.slane %v3708_v53, 3  ;;  %v3713_v1 = vrot.slane %v3711_v22, 4  ;;  %vm3504_vm1 = vcmp.ne.s16.totalorder %v3487_v50, 0  ;;  %4997 = vmatpush1.bf16.msra.mxu1 %v8218_v45 }
 0x1fe   :  { %v2845_v61 = vsel %vm11306_vm0, %v2843_v12, %v14382_v41  ;;  %vm2863_vm13 = vcmp.ne.s16.totalorder %v2842_v56, 0  ;;  %v3701_v38 = vrot.slane %v3699_v57, 3  ;;  %vm3505_vm9 = vcmp.ne.s16.totalorder %v3488_v24, 0  ;;  %4998 = vmatprep.subr.bf16.mxu1 %v8226_v37  ;;  %4306 = vmatpush1.bf16.msra.mxu0 %v8239_v13  ;;  %v8247_v57 = vld [vmem:[%s13877_s3 + $0x414] ss:$8 sps:$4 sm:$0xff]  }
 0x1ff   :  { %vm2864_vm4 = vcmp.ne.s16.totalorder %v2845_v61, 0  ;;  %v2876_v32 = vsel %vm2863_vm13, %v8462_v44, 0  ;;  %v11637_v51 = vor.u32 %v3713_v1, %v3710_v33  ;;  %v3704_v40 = vrot.slane %v3702_v55, 4  ;;  %v8230_v1 = vld [vmem:[%s13877_s3 + $0x500] ss:$8 sps:$4 sm:$0xff]   ;;  %4307 = vmatprep.subr.bf16.mxu0 %v8247_v57 }
 0x200   :  { %v2877_v26 = vsel %vm2864_vm4, %v8463_v48, 0  ;;  %v3518_v14 = vsel %vm3504_vm1, %v11629_v60, 0  ;;  %v3519_v12 = vsel %vm3505_vm9, %v3308_v7, 0  ;;  %v14383_v53 = vmov %v14382_v41  ;;  %3971 = vmatmul.mubr.bf16.gmra.mxu1 %v3688_v19  ;;  %vm11691_vm4 = vmpackc.low %vm1613_vm10, %vm1613_vm10  ;;  %v8238_v48 = vld [vmem:[%s13877_s3 + $0x5f4] ss:$8 sps:$4 sm:$0xff]  }
 0x201   :  { %v7340_v3 = vcombine.high %v2876_v32, %v2877_v26  ;;  %v7339_v5 = vcombine.low %v2876_v32, %v2877_v26  ;;  %v3715_v16 = vsel %vm14041_vm11, %v11571_v27, %v11637_v51  ;;  %v7423_v50 = vcombine.high %v3518_v14, %v3519_v12  ;;  %4999 = vmatpush1.bf16.msra.mxu1 %v8224_v18  ;;  %v8253_v32 = vld [vmem:[%s13877_s3 + $0x404] ss:$8 sps:$4 sm:$0xff]  }
 0x202   :  { %v2846_v22 = vrot.slane %v14383_v53, 4  ;;  %vm14024_vm8 = vcmp.lt.s32.totalorder %v10835_v58, 42  ;;  %v11659_v45 = vor.u32 %v3704_v40, %v3701_v38  ;;  %v14384_v43 = vrot.slane %v11225_v62, 7  ;;  %v8245_v62 = vld [vmem:[%s13877_s3 + $0x410] ss:$8 sps:$4 sm:$0xff]   ;;  %3980 = vmatprep.mubr.bf16.mxu1 %v3715_v16  ;;  %5000 = vmatprep.subr.bf16.mxu1 %v8232_v11 }
 0x203   :  { %v11651_v24 = vrot.slane %v7340_v3, 1  ;;  %v2982_v8 = vrot.slane %v7339_v5, 1  ;;  %v7422_v27 = vcombine.low %v3518_v14, %v3519_v12  ;;  %v3726_v52 = vshrl.u32 %v7423_v50, 16  ;;  %v14388_v14 = vld [vmem:[#allocation22_spill] sm:$0xff]  ;;  %4308 = vmatpush1.bf16.msra.mxu0 %v8245_v62  ;;  %v8269_v62 = vld [vmem:[%s13877_s3 + $0x4d0] ss:$8 sps:$4 sm:$0xff]  }
 0x204   :  { %v2849_v56 = vrot.slane %v14384_v43, 4  ;;  %v3729_v61 = vshll.u32 %v7423_v50, 16  ;;  %v14385_v59 = vmov %v14384_v43  ;;  %v2852_v3 = vrot.slane %v2850_v54, 4  ;;  %v8244_v50 = vld [vmem:[%s13877_s3 + $0x5e4] ss:$8 sps:$4 sm:$0xff]   ;;  %4309 = vmatprep.subr.bf16.mxu0 %v8253_v32 }
 0x205   :  { %v2985_v41 = vsel %vm2967_vm3, %v11588_v20, %v11651_v24  ;;  %v2848_v33 = vsel %vm11306_vm0, %v2846_v22, %v14385_v59  ;;  %v3706_v20 = vsel %vm14041_vm11, %v11590_v39, %v11659_v45  ;;  %v2983_v7 = vsel %vm2967_vm3, %v11598_v17, %v2982_v8  ;;  %5001 = vmatpush1.bf16.msra.mxu1 %v8230_v1  ;;  %v14395_v59 = vld [vmem:[#allocation29_spill] sm:$0xff] }
 0x206   :  { %3230 = vmatprep.mubr.bf16.mxu0 %v2985_v41  ;;  %v2851_v19 = vsel %vm11306_vm0, %v2849_v56, %v2850_v54  ;;  %vm2865_vm13 = vcmp.ne.s16.totalorder %v2848_v33, 0  ;;  %v3728_v39 = vrot.slane %v3726_v52, 3  ;;  %v3731_v17 = vrot.slane %v3729_v61, 4  ;;  %5002 = vmatprep.subr.bf16.mxu1 %v8238_v48 }
 0x207   :  { %vm2866_vm1 = vcmp.ne.s16.totalorder %v2851_v19, 0  ;;  %v2878_v44 = vsel %vm2865_vm13, %v11096_v0, 0  ;;  %3231 = vmatmul.mubr.bf16.gmra.mxu0 %v2983_v7  ;;  %v3717_v38 = vshrl.u32 %v7422_v27, 16  ;;  %v3720_v55 = vshll.u32 %v7422_v27, 16  ;;  %v14391_v27 = vld [vmem:[#allocation15_spill] sm:$0xff] }
 0x208   :  { %v2879_v26 = vsel %vm2866_vm1, %v11098_v25, 0  ;;  %v14389_v12 = vshrl.u32 %v14388_v14, 16  ;;  %v11711_v18 = vsel %vm11691_vm4, 65537, %v11262_v63  ;;  %v8236_v25 = vld [vmem:[%s13877_s3 + $0x5f0] ss:$8 sps:$4 sm:$0xff]   ;;  %v11716_v16 = vor.u32 %v3731_v17, %v3728_v39  ;;  %v14397_v7 = vld [vmem:[#allocation27_spill] sm:$0xff]  ;;  %3981 = vmatmul.mubr.bf16.gmra.mxu1 %v3706_v20  ;;  %4310 = vmatpush1.bf16.msra.mxu0 %v8251_v28 }
 0x209   :  { %v7342_v0 = vcombine.high %v2878_v44, %v2879_v26  ;;  %v7341_v40 = vcombine.low %v2878_v44, %v2879_v26  ;;  %v2854_v34 = vsel %vm11306_vm0, %v2852_v3, %v2853_v10  ;;  %v4479_v54 = vshll.u32 %v14388_v14, 16  ;;  %v14403_v39 = vld [vmem:[#allocation45_spill] sm:$0xff]  ;;  %v14404_v17 = vld [vmem:[#allocation38_spill] sm:$0xff]  ;;  %5003 = vmatpush2.bf16.msra.mxu1 %v8236_v25  ;;  %v14461_v19 = vld [vmem:[#allocation51_spill] sm:$0xff] }
 0x20a   :  { %v4478_v5 = vrot.slane %v14389_v12, 7  ;;  %v3719_v22 = vrot.slane %v3717_v38, 3  ;;  %vm2867_vm9 = vcmp.ne.s16.totalorder %v2854_v34, 0  ;;  %v3722_v43 = vrot.slane %v3720_v55, 4  ;;  %v14408_v38 = vld [vmem:[#allocation48_spill] sm:$0xff]  ;;  %v14409_v55 = vld [vmem:[#allocation41_spill] sm:$0xff]  ;;  %5004 = vmatprep.subr.bf16.mxu1 %v8244_v50 }
 0x20b   :  { %v2988_v53 = vrot.slane %v7342_v0, 1  ;;  %v11726_v11 = vrot.slane %v7341_v40, 1  ;;  %v2880_v49 = vsel %vm2867_vm9, %v11302_v47, 0  ;;  %vm14390_vm0 = vcmp.gt.s32.totalorder %v10845_v2, 0  ;;  %v8259_v47 = vld [vmem:[%s13877_s3 + $0x4f4] ss:$8 sps:$4 sm:$0xff]  }
 0x20c   :  { %v4481_v10 = vor.u32 %v4479_v54, %v4478_v5  ;;  %v4482_v56 = vrot.slane %v4478_v5, 4  ;;  %vm14392_vm13 = vcmp.lt.s32.totalorder %v14391_v27, 42  ;;  %v7344_v57 = vcombine.high %v2880_v49, %v2880_v49  ;;  %v8250_v14 = vld [vmem:[%s13877_s3 + $0x5d4] ss:$8 sps:$4 sm:$0xff]   ;;  %v8257_v12 = vld [vmem:[%s13877_s3 + $0x4f0] ss:$8 sps:$4 sm:$0xff]   ;;  %4311 = vmatprep.subr.bf16.mxu0 %v8259_v47 }
 0x20d   :  { %vm11736_vm4 = vmand %vm14392_vm13, %vm14390_vm0  ;;  %v2989_v52 = vsel %vm2967_vm3, %v11651_v24, %v2988_v53  ;;  %v2987_v61 = vsel %vm2967_vm3, %v2982_v8, %v11726_v11  ;;  %v4491_v33 = vrot.slane %v14395_v59, 4  ;;  %vm14398_vm1 = vcmp.lt.s32.totalorder %v14397_v7, 42  ;;  %v14401_v8 = vld [vmem:[#allocation28_spill] sm:$0xff]  ;;  %v14411_v25 = vld [vmem:[#allocation77_spill] sm:$0xff]  ;;  %4312 = vmatpush2.bf16.msra.mxu0 %v8257_v12 }
 0x20e   :  { %vm11752_vm9 = vmand %vm14398_vm1, %vm1625_vm2  ;;  %v3733_v24 = vsel %vm14041_vm11, %v11637_v51, %v11716_v16  ;;  %3240 = vmatprep.mubr.bf16.mxu0 %v2989_v52  ;;  %v4490_v37 = vsel %vm9112_vm12, %v4482_v56, %v14401_v8  ;;  %v14405_v44 = vshll.u32 %v14404_v17, 16  ;;  %v4500_v48 = vrot.slane %v14403_v39, 4  ;;  %v8242_v51 = vld [vmem:[%s13877_s3 + $0x5e0] ss:$8 sps:$4 sm:$0xff]   ;;  %v14413_v56 = vld [vmem:[#allocation72_spill] sm:$0xff] }
 0x20f   :  { %vm11769_vm2 = vmpackc.low %vm14024_vm8, %vm14024_vm8  ;;  %3990 = vmatprep.mubr.bf16.mxu1 %v3733_v24  ;;  %v11776_v26 = vrot.slane %v7344_v57, 1  ;;  %v14410_v3 = vshll.u32 %v14409_v55, 16  ;;  %vm4590_vm0 = vcmp.ne.s16.totalorder %v4481_v10, 0  ;;  %vm4591_vm13 = vcmp.ne.s16.totalorder %v4490_v37, 0  ;;  %3241 = vmatmul.mubr.bf16.gmra.mxu0 %v2987_v61  ;;  %v14412_v28 = vld [vmem:[#allocation74_spill] sm:$0xff]  ;;  %v14418_v20 = vld [vmem:[#allocation73_spill] sm:$0xff] }
 0x210   :  { %v4498_v32 = vor.u32 %v14405_v44, %v14403_v39  ;;  %vm5162_vm1 = vmpackc.low %vm11736_vm4, %vm11736_vm4  ;;  %v11784_v40 = vor.u32 %v3722_v43, %v3719_v22  ;;  %v4604_v34 = vsel %vm4591_vm13, %v14411_v25, 0  ;;  %v7343_v54 = vcombine.low %v2880_v49, %v2880_v49  ;;  %v8265_v22 = vld [vmem:[%s13877_s3 + $0x4e4] ss:$8 sps:$4 sm:$0xff]   ;;  %v8248_v61 = vld [vmem:[%s13877_s3 + $0x5d0] ss:$8 sps:$4 sm:$0xff]   ;;  %5005 = vmatpush2.bf16.msra.mxu1 %v8242_v51 }
 0x211   :  { %v4507_v0 = vor.u32 %v14410_v3, %v14408_v38  ;;  %vm5163_vm7 = vmpackc.low %vm11752_vm9, %vm11752_vm9  ;;  %v2993_v50 = vsel %vm2967_vm3, %v2988_v53, %v11776_v26  ;;  %v4603_v49 = vsel %vm4590_vm0, %v14412_v28, 0  ;;  %v11817_v53 = vsel %vm11769_vm2, 65537, %v11262_v63  ;;  %v8256_v24 = vld [vmem:[%s13877_s3 + $0x5c4] ss:$8 sps:$4 sm:$0xff]   ;;  %5006 = vmatprep.subr.bf16.mxu1 %v8250_v14  ;;  %v8263_v44 = vld [vmem:[%s13877_s3 + $0x4e0] ss:$8 sps:$4 sm:$0xff]   ;;  %4313 = vmatprep.subr.bf16.mxu0 %v8265_v22 }
 0x212   :  { %v4499_v5 = vsel %vm9112_vm12, %v4491_v33, %v4498_v32  ;;  %vm11810_vm13 = vmpackc.low %vm1639_vm5, %vm1639_vm5  ;;  %3250 = vmatprep.mubr.bf16.mxu0 %v2993_v50  ;;  %v11822_v10 = vcombine.high %v4603_v49, %v4604_v34  ;;  %v11824_v47 = vrot.slane %v7343_v54, 1  ;;  %v14416_v57 = vshrl.u32 %v11171_v31, 16  ;;  %v14417_v8 = vld [vmem:[#allocation78_spill] sm:$0xff]  ;;  %v8271_v14 = vld [vmem:[%s13877_s3 + $0x4d4] ss:$8 sps:$4 sm:$0xff]   ;;  %4314 = vmatpush2.bf16.msra.mxu0 %v8263_v44 }
 0x213   :  { %v4508_v43 = vsel %vm9112_vm12, %v4500_v48, %v4507_v0  ;;  %vm4592_vm14 = vcmp.ne.s16.totalorder %v4499_v5, 0  ;;  %v11836_v33 = vsel %vm5162_vm1, 65537, %v11262_v63  ;;  %v11849_v17 = vsel %vm5163_vm7, 65537, %v11262_v63  ;;  %v14421_v25 = vld [vmem:[#allocation24_spill] sm:$0xff]  ;;  %v14422_v54 = vld [vmem:[#allocation34_spill] sm:$0xff]  ;;  %4315 = vmatprep.subr.bf16.mxu0 %v8271_v14  ;;  %v5661_v2 = vld [vmem:[#allocation2 + $0x18] sm:$0xff] }
 0x214   :  { %vm4593_vm8 = vcmp.ne.s16.totalorder %v4508_v43, 0  ;;  %v11828_v59 = vrot.slane %v14416_v57, 7  ;;  %v4605_v37 = vsel %vm4592_vm14, %v14417_v8, 0  ;;  %v5830_v41 = vshrl.u32 %v11711_v18, 16  ;;  %vm11861_vm14 = vmpackc.low %vm14039_vm6, %vm14039_vm6  ;;  %5007 = vmatpush2.bf16.msra.mxu1 %v8248_v61  ;;  %v8262_v52 = vld [vmem:[%s13877_s3 + $0x5b4] ss:$8 sps:$4 sm:$0xff]  }
 0x215   :  { %v4606_v39 = vsel %vm4593_vm8, %v11375_v46, 0  ;;  %v4717_v48 = vshll.u32 %v11822_v10, 16  ;;  %v11868_v51 = vsel %vm11810_vm13, 65537, %v11262_v63  ;;  %v5840_v55 = vshrl.u32 %v11817_v53, 16  ;;  %v14427_v8 = vld [vmem:[#allocation31_spill] sm:$0xff]  ;;  %5008 = vmatprep.subr.bf16.mxu1 %v8256_v24 }
 0x216   :  { %v11855_v32 = vcombine.high %v4605_v37, %v4606_v39  ;;  %v3724_v3 = vsel %vm14041_vm11, %v11659_v45, %v11784_v40  ;;  %v2991_v0 = vsel %vm2967_vm3, %v11726_v11, %v11824_v47  ;;  %v4509_v5 = vrot.slane %v14408_v38, 4  ;;  %v8254_v38 = vld [vmem:[%s13877_s3 + $0x5c0] ss:$8 sps:$4 sm:$0xff]   ;;  %4316 = vmatpush2.bf16.msra.mxu0 %v8269_v62 }
 0x217   :  { %3991 = vmatmul.mubr.bf16.gmra.mxu1 %v3724_v3  ;;  %v14423_v50 = vshll.u32 %v14422_v54, 16  ;;  %v4518_v45 = vrot.slane %v14421_v25, 4  ;;  %vm14424_vm3 = vcmp.gt.s32.totalorder %v14413_v56, 0  ;;  %v11903_v57 = vcombine.low %v4603_v49, %v4604_v34  ;;  %v14428_v3 = vld [vmem:[#allocation47_spill] sm:$0xff]  ;;  %3251 = vmatmul.mubr.bf16.gmra.mxu0 %v2991_v0 }
 0x218   :  { %v4722_v12 = vshll.u32 %v11855_v32, 16  ;;  %vm11892_vm7 = vmand %vm1613_vm10, %vm14424_vm3  ;;  %4000 = vmatprep.mubr.bf16.mxu1 %v11716_v16  ;;  %vm14430_vm8 = vcmp.gt.s32.totalorder %v14418_v20, 0  ;;  %vm14431_vm4 = vcmp.lt.s32.totalorder %v10835_v58, 42  ;;  %v11922_v49 = vrot.slane %v5830_v41, 4  ;;  %v8277_v41 = vld [vmem:[%s13877_s3 + $0x4c4] ss:$8 sps:$4 sm:$0xff]   ;;  %3260 = vmatprep.mubr.bf16.mxu0 %v11776_v26 }
 0x219   :  { %v4516_v43 = vor.u32 %v14423_v50, %v14421_v25  ;;  %v14429_v25 = vshll.u32 %v14428_v3, 16  ;;  %v11911_v50 = vsel %vm11861_vm14, 65537, %v11262_v63  ;;  %vm11917_vm9 = vmand %vm14431_vm4, %vm14430_vm8  ;;  %v4719_v61 = vrot.slane %v4717_v48, 1  ;;  %5009 = vmatpush2.bf16.msra.mxu1 %v8254_v38  ;;  %v8268_v38 = vld [vmem:[%s13877_s3 + $0x5a4] ss:$8 sps:$4 sm:$0xff]   ;;  %4317 = vmatprep.subr.bf16.mxu0 %v8277_v41  ;;  %v14449_v20 = vld [vmem:[#allocation4_spill] sm:$0xff] }
 0x21a   :  { %v4565_v3 = vshrl.u32 %v11868_v51, 16  ;;  %v11929_v28 = vrot.slane %v5840_v55, 4  ;;  %vm5164_vm2 = vmpackc.low %vm11892_vm7, %vm11892_vm7  ;;  %v4715_v48 = vshrl.u32 %v11822_v10, 16  ;;  %v11941_v22 = vrot.slane %v4722_v12, 1  ;;  %v8260_v10 = vld [vmem:[%s13877_s3 + $0x5b0] ss:$8 sps:$4 sm:$0xff]   ;;  %5010 = vmatprep.subr.bf16.mxu1 %v8262_v52 }
 0x21b   :  { %v4525_v54 = vor.u32 %v14429_v25, %v14427_v8  ;;  %v4517_v55 = vsel %vm9112_vm12, %v4509_v5, %v4516_v43  ;;  %v4574_v0 = vshrl.u32 %v11911_v50, 16  ;;  %vm5165_vm0 = vmpackc.low %vm11917_vm9, %vm11917_vm9  ;;  %vm14037_vm1 = vcmp.lt.s32.totalorder %v11274_v36, 42  ;;  %v14434_v12 = vld [vmem:[#allocation69_spill] sm:$0xff]  ;;  %v14438_v25 = vld [vmem:[#allocation70_spill] sm:$0xff] }
 0x21c   :  { %v4705_v14 = vshll.u32 %v11903_v57, 16  ;;  %v4536_v26 = vrot.slane %v14434_v12, 4  ;;  %vm14435_vm13 = vcmp.lt.s32.totalorder %v11371_v4, 6  ;;  %v11963_v43 = vcombine.low %v4605_v37, %v4606_v39  ;;  %v14439_v34 = vld [vmem:[#allocation63_spill] sm:$0xff]  ;;  %v8283_v37 = vld [vmem:[%s13877_s3 + $0x4b4] ss:$8 sps:$4 sm:$0xff]  }
 0x21d   :  { %v4526_v24 = vsel %vm9112_vm12, %v4518_v45, %v4525_v54  ;;  %vm11959_vm14 = vmpackc.low %vm14435_vm13, %vm14435_vm13  ;;  %v4720_v45 = vor.u32 %v4719_v61, %v4715_v48  ;;  %v8275_v54 = vld [vmem:[%s13877_s3 + $0x4c0] ss:$8 sps:$4 sm:$0xff]   ;;  %v14440_v44 = vshll.u32 %v14439_v34, 16  ;;  %v11974_v58 = vrot.slane %v4565_v3, 7  ;;  %v14441_v52 = vld [vmem:[#allocation37_spill] sm:$0xff]  ;;  %5011 = vmatpush2.bf16.msra.mxu1 %v8260_v10 }
 0x21e   :  { %vm4595_vm3 = vcmp.ne.s16.totalorder %v4526_v24, 0  ;;  %vm4594_vm8 = vcmp.ne.s16.totalorder %v4517_v55, 0  ;;  %v4527_v39 = vrot.slane %v14427_v8, 4  ;;  %v14442_v61 = vshll.u32 %v14441_v52, 16  ;;  %v12011_v41 = vld [vmem:[#allocation2] sm:$0xff]  ;;  %5012 = vmatprep.subr.bf16.mxu1 %v8268_v38  ;;  %4318 = vmatpush2.bf16.msra.mxu0 %v8275_v54  ;;  %v14450_v55 = vld [vmem:[#allocation76_spill] sm:$0xff] }
 0x21f   :  { %v4543_v13 = vor.u32 %v14440_v44, %v14438_v25  ;;  %v11990_v34 = vsel %vm5164_vm2, 65537, %v11262_v63  ;;  %v11998_v8 = vsel %vm5165_vm0, 65537, %v11262_v63  ;;  %vm14445_vm4 = vcmp.gt.s32.totalorder %v11371_v4, 0  ;;  %4001 = vmatmul.mubr.bf16.gmra.mxu1 %v11784_v40  ;;  %v8266_v16 = vld [vmem:[%s13877_s3 + $0x5a0] ss:$8 sps:$4 sm:$0xff]   ;;  %v12024_v44 = vld [vmem:[#allocation2 + $0x10] sm:$0xff]  ;;  %3261 = vmatmul.mubr.bf16.gmra.mxu0 %v11824_v47 }
 0x220   :  { %v4534_v62 = vor.u32 %v14442_v61, %v14434_v12  ;;  %14443 = vst [vmem:[#allocation32_spill] sm:$0xff] %v11990_v34  ;;  %14444 = vst [vmem:[#allocation35_spill] sm:$0xff] %v11998_v8  ;;  %vm14448_vm7 = vsmask.f32 7424  ;;  %v12016_v63 = vsel %vm11959_vm14, 65537, %v12011_v41  ;;  %v12026_v12 = vld [vmem:[#allocation2 + $0x18] sm:$0xff]  ;;  %4319 = vmatprep.subr.bf16.mxu0 %v8283_v37 }
 0x221   :  { %vm12004_vm13 = vmand %vm14037_vm1, %vm14445_vm4  ;;  %v4725_v11 = vsel %vm14448_vm7, %v4720_v45, %v11941_v22  ;;  %v8274_v40 = vld [vmem:[%s13877_s3 + $0x594] ss:$8 sps:$4 sm:$0xff]   ;;  %v7489_v45 = vcombine.high %v12024_v44, %v12026_v12  ;;  %v4608_v5 = vsel %vm4595_vm3, %v11441_v9, 0  ;;  %v4544_v10 = vsel %vm9112_vm12, %v4536_v26, %v4543_v13  ;;  %v8290_v13 = vld [vmem:[%s13877_s3 + $0x4a4] ss:$8 sps:$4 sm:$0xff]   ;;  %5013 = vmatpush2.bf16.msra.mxu1 %v8266_v16 }
 0x222   :  { %5018 = vmatprep.mubr.bf16.mxu1 %v4725_v11  ;;  %v4707_v52 = vrot.slane %v4705_v14, 1  ;;  %v4710_v61 = vshll.u32 %v11963_v43, 16  ;;  %v8281_v11 = vld [vmem:[%s13877_s3 + $0x4b0] ss:$8 sps:$4 sm:$0xff]   ;;  %v4607_v48 = vsel %vm4594_vm8, %v11385_v29, 0  ;;  %v4545_v4 = vrot.slane %v14438_v25, 4  ;;  %vm5166_vm2 = vmpackc.low %vm12004_vm13, %vm12004_vm13  ;;  %5014 = vmatprep.subr.bf16.mxu1 %v8274_v40 }
 0x223   :  { %vm14038_vm9 = vcmp.lt.s32.totalorder %v14449_v20, 42  ;;  %v4535_v24 = vsel %vm9112_vm12, %v4527_v39, %v4534_v62  ;;  %v14451_v29 = vld [vmem:[#allocation75_spill] sm:$0xff]  ;;  %v4554_v26 = vrot.slane %v14450_v55, 4  ;;  %v14453_v38 = vshll.u32 %v11171_v31, 16  ;;  %4327 = vmatprep.mubr.bf16.mxu0 %v7489_v45  ;;  %4320 = vmatpush2.bf16.msra.mxu0 %v8281_v11  ;;  %vm14455_vm4 = vmmov %vm14448_vm7  ;;  %v12277_v20 = vpop.f32.mrf.mxu0 }
 0x224   :  { %v14452_v14 = vshll.u32 %v14451_v29, 16  ;;  %v12058_v23 = vrot.slane %v4574_v0, 7  ;;  %v12061_v37 = vcombine.high %v4607_v48, %v4608_v5  ;;  %vm4597_vm0 = vcmp.ne.s16.totalorder %v4544_v10, 0  ;;  %v8280_v31 = vld [vmem:[%s13877_s3 + $0x584] ss:$8 sps:$4 sm:$0xff]   ;;  %4321 = vmatprep.subr.bf16.mxu0 %v8290_v13  ;;  %vm12145_vm13 = vmpackc.low %vm14038_vm9, %vm14038_vm9 }
 0x225   :  { %v4561_v54 = vor.u32 %v14453_v38, %v11828_v59  ;;  %v4703_v62 = vshrl.u32 %v11903_v57, 16  ;;  %v12071_v0 = vcombine.low %v4607_v48, %v4608_v5  ;;  %v4583_v29 = vshrl.u32 %v12016_v63, 16  ;;  %v8288_v48 = vld [vmem:[%s13877_s3 + $0x4a0] ss:$8 sps:$4 sm:$0xff]  }
 0x226   :  { %v4552_v25 = vor.u32 %v14452_v14, %v14450_v55  ;;  %v8272_v55 = vld [vmem:[%s13877_s3 + $0x590] ss:$8 sps:$4 sm:$0xff]   ;;  %v4586_v14 = vshll.u32 %v12016_v63, 16  ;;  %v12083_v57 = vsel %vm5166_vm2, 65537, %v12011_v41  ;;  %vm4596_vm14 = vcmp.ne.s16.totalorder %v4535_v24, 0  ;;  %vm14459_vm2 = vmmov %vm14455_vm4  ;;  %v5663_v8 = vld [vmem:[#allocation2 + $0x28] sm:$0xff] }
 0x227   :  { %v4562_v45 = vsel %vm9112_vm12, %v4554_v26, %v4561_v54  ;;  %v4708_v16 = vor.u32 %v4707_v52, %v4703_v62  ;;  %v4712_v5 = vrot.slane %v4710_v61, 1  ;;  %v8296_v26 = vld [vmem:[%s13877_s3 + $0x494] ss:$8 sps:$4 sm:$0xff]   ;;  %v4610_v3 = vsel %vm4597_vm0, %v11499_v15, 0  ;;  %5015 = vmatpush2.bf16.msra.mxu1 %v8272_v55  ;;  %v8278_v52 = vld [vmem:[%s13877_s3 + $0x580] ss:$8 sps:$4 sm:$0xff]   ;;  %4322 = vmatpush2.bf16.msra.mxu0 %v8288_v48 }
 0x228   :  { %v4553_v38 = vsel %vm9112_vm12, %v4545_v4, %v4552_v25  ;;  %v4734_v40 = vshrl.u32 %v11855_v32, 16  ;;  %v4738_v11 = vshll.u32 %v12061_v37, 16  ;;  %v4726_v54 = vshrl.u32 %v11963_v43, 16  ;;  %5016 = vmatprep.subr.bf16.mxu1 %v8280_v31  ;;  %v8287_v43 = vld [vmem:[%s13877_s3 + $0x774] ss:$8 sps:$4 sm:$0xff]   ;;  %4323 = vmatprep.subr.bf16.mxu0 %v8296_v26 }
 0x229   :  { %vm4599_vm3 = vcmp.ne.s16.totalorder %v4562_v45, 0  ;;  %v4730_v61 = vshll.u32 %v12071_v0, 16  ;;  %v4609_v10 = vsel %vm4596_vm14, %v11449_v30, 0  ;;  %v4563_v13 = vrot.slane %v11828_v59, 4  ;;  %v8294_v24 = vld [vmem:[%s13877_s3 + $0x490] ss:$8 sps:$4 sm:$0xff]   ;;  %vm14460_vm14 = vmmov %vm14459_vm2 }
 0x22a   :  { %v14454_v4 = vshll.u32 %v11868_v51, 16  ;;  %v12113_v25 = vcombine.high %v4609_v10, %v4610_v3  ;;  %v12115_v62 = vcombine.low %v4609_v10, %v4610_v3  ;;  %vm4598_vm8 = vcmp.ne.s16.totalorder %v4553_v38, 0  ;;  %v8302_v55 = vld [vmem:[%s13877_s3 + $0x484] ss:$8 sps:$4 sm:$0xff]   ;;  %v8300_v26 = vld [vmem:[%s13877_s3 + $0x480] ss:$8 sps:$4 sm:$0xff]  }
 0x22b   :  { %v4572_v30 = vrot.slane %v11974_v58, 4  ;;  %v4585_v59 = vrot.slane %v4583_v29, 7  ;;  %v4713_v51 = vsel %vm14455_vm4, %v4708_v16, %v4712_v5  ;;  %v4612_v31 = vsel %vm4599_vm3, %v11552_v6, 0  ;;  %5017 = vmatpush2.bf16.msra.mxu1 %v8278_v52  ;;  %v8285_v29 = vld [vmem:[%s13877_s3 + $0x770] ss:$8 sps:$4 sm:$0xff]   ;;  %4324 = vmatpush2.bf16.msra.mxu0 %v8294_v24  ;;  %vm14464_vm3 = vmmov %vm14459_vm2 }
 0x22c   :  { %v4570_v32 = vor.u32 %v14454_v4, %v11974_v58  ;;  %v14456_v48 = vshll.u32 %v11911_v50, 16  ;;  %v4736_v3 = vor.u32 %v4734_v40, %v11941_v22  ;;  %v4740_v10 = vrot.slane %v4738_v11, 1  ;;  %v8293_v45 = vld [vmem:[%s13877_s3 + $0x764] ss:$8 sps:$4 sm:$0xff]   ;;  %6269 = vmatprep.subr.bf16.mxu1 %v8287_v43  ;;  %4325 = vmatprep.subr.bf16.mxu0 %v8302_v55  ;;  %v8309_v52 = vld [vmem:[%s13877_s3 + $0x674] ss:$8 sps:$4 sm:$0xff]  }
 0x22d   :  { %v4728_v39 = vor.u32 %v4726_v54, %v4712_v5  ;;  %v7488_v58 = vcombine.low %v12024_v44, %v12026_v12  ;;  %v4732_v16 = vrot.slane %v4730_v61, 1  ;;  %v4611_v50 = vsel %vm4598_vm8, %v11503_v42, 0  ;;  %v12160_v61 = vld [vmem:[#allocation2 + $0x20] sm:$0xff]  ;;  %v14589_v36 = vld [vmem:[#allocation32_spill] sm:$0xff] }
 0x22e   :  { %v4579_v4 = vor.u32 %v14456_v48, %v12058_v23  ;;  %v4571_v22 = vsel %vm9112_vm12, %v4563_v13, %v4570_v32  ;;  %v4754_v38 = vshll.u32 %v12113_v25, 16  ;;  %v4746_v40 = vshll.u32 %v12115_v62, 16  ;;  %5019 = vmatmul.mubr.bf16.vlgmr.msra.gmra.mxu1 %v4713_v51  ;;  %v8291_v55 = vld [vmem:[%s13877_s3 + $0x760] ss:$8 sps:$4 sm:$0xff]  }
 0x22f   :  { %v12154_v11 = vcombine.high %v4611_v50, %v4612_v31  ;;  %v4750_v54 = vshrl.u32 %v12061_v37, 16  ;;  %v7491_v13 = vcombine.high %v12160_v61, %v11375_v46  ;;  %v4742_v32 = vshrl.u32 %v12071_v0, 16  ;;  %6270 = vmatpush1.bf16.msra.mxu1 %v8285_v29  ;;  %4326 = vmatpush2.bf16.msra.mxu0 %v8300_v26  ;;  %v12203_v26 = vld [vmem:[#allocation2 + $0x28] sm:$0xff] }
 0x230   :  { %v4580_v5 = vsel %vm9112_vm12, %v4572_v30, %v4579_v4  ;;  %v12165_v43 = vcombine.low %v4611_v50, %v4612_v31  ;;  %v4741_v24 = vsel %vm14459_vm2, %v4736_v3, %v4740_v10  ;;  %vm4600_vm0 = vcmp.ne.s16.totalorder %v4571_v22, 0  ;;  %6271 = vmatprep.subr.bf16.mxu1 %v8293_v45  ;;  %5533 = vmatprep.subr.bf16.mxu0 %v8309_v52  ;;  %v8297_v22 = vld [vmem:[%s13877_s3 + $0x750] ss:$8 sps:$4 sm:$0xff]  }
 0x231   :  { %vm4601_vm7 = vcmp.ne.s16.totalorder %v4580_v5, 0  ;;  %v4581_v30 = vrot.slane %v12058_v23, 4  ;;  %v4588_v37 = vor.u32 %v4586_v14, %v4585_v59  ;;  %5028 = vmatprep.mubr.bf16.mxu1 %v4741_v24  ;;  %v4733_v46 = vsel %vm14460_vm14, %v4728_v39, %v4732_v16  ;;  %v8299_v23 = vld [vmem:[%s13877_s3 + $0x754] ss:$8 sps:$4 sm:$0xff]   ;;  %v8307_v39 = vld [vmem:[%s13877_s3 + $0x670] ss:$8 sps:$4 sm:$0xff]  }
 0x232   :  { %v4752_v0 = vor.u32 %v4750_v54, %v4740_v10  ;;  %v4614_v51 = vsel %vm4601_vm7, %v11629_v60, 0  ;;  %v5713_v31 = vsel %vm12145_vm13, 65537, %v12011_v41  ;;  %v4756_v63 = vrot.slane %v4754_v38, 1  ;;  %4328 = vmatmul.mubr.bf16.vlgmr.msra.gmra.mxu0 %v7488_v58  ;;  %v12207_v38 = vld [vmem:[#allocation2 + $0x30] sm:$0xff]  ;;  %v8305_v58 = vld [vmem:[%s13877_s3 + $0x744] ss:$8 sps:$4 sm:$0xff]  }
 0x233   :  { %v4744_v14 = vor.u32 %v4742_v32, %v4732_v16  ;;  %v4748_v59 = vrot.slane %v4746_v40, 1  ;;  %v4770_v48 = vshll.u32 %v12154_v11, 16  ;;  %v4762_v4 = vshll.u32 %v12165_v43, 16  ;;  %v8316_v16 = vld [vmem:[%s13877_s3 + $0x664] ss:$8 sps:$4 sm:$0xff]   ;;  %6272 = vmatpush1.bf16.msra.mxu1 %v8291_v55  ;;  %4337 = vmatprep.mubr.bf16.mxu0 %v7491_v13 }
 0x234   :  { %v4613_v3 = vsel %vm4600_vm0, %v11560_v21, 0  ;;  %v5727_v10 = vshll.u32 %v5713_v31, 16  ;;  %v5730_v29 = vshrl.u32 %v5713_v31, 16  ;;  %v4766_v45 = vshrl.u32 %v12113_v25, 16  ;;  %6273 = vmatprep.subr.bf16.mxu1 %v8299_v23  ;;  %v14465_v55 = vld [vmem:[#allocation23_spill] sm:$0xff]  ;;  %v14467_v23 = vld [vmem:[#allocation9_spill] sm:$0xff]  ;;  %5534 = vmatpush1.bf16.msra.mxu0 %v8307_v39  ;;  %vm14473_vm0 = vmmov %vm14459_vm2 }
 0x235   :  { %v12194_v50 = vcombine.high %v4613_v3, %v4614_v51  ;;  %v12196_v5 = vcombine.low %v4613_v3, %v4614_v51  ;;  %v4589_v44 = vsel %vm9112_vm12, %v4581_v30, %v4588_v37  ;;  %v7490_v25 = vcombine.low %v12160_v61, %v12203_v26  ;;  %vm14463_vm12 = vmmov %vm14459_vm2  ;;  %5535 = vmatprep.subr.bf16.mxu0 %v8316_v16  ;;  %v8303_v39 = vld [vmem:[%s13877_s3 + $0x740] ss:$8 sps:$4 sm:$0xff]  }
 0x236   :  { %v4758_v54 = vshrl.u32 %v12115_v62, 16  ;;  %v14462_v52 = vshll.u32 %v14461_v19, 16  ;;  %v4757_v24 = vsel %vm14463_vm12, %v4752_v0, %v4756_v63  ;;  %v12221_v30 = vsel %vm14464_vm3, %v4744_v14, %v4748_v59  ;;  %v8314_v62 = vld [vmem:[%s13877_s3 + $0x660] ss:$8 sps:$4 sm:$0xff]   ;;  %v4422_v14 = vld [vmem:[#allocation2 + $0x70] sm:$0x33]  ;;  %5029 = vmatmul.mubr.bf16.gmra.mxu1 %v4733_v46  ;;  %vm14481_vm3 = vmmov %vm14473_vm0 }
 0x237   :  { %v4772_v37 = vrot.slane %v4770_v48, 1  ;;  %v14466_v51 = vshll.u32 %v14465_v55, 16  ;;  %vm14468_vm8 = vcmp.gt.s32.totalorder %v14467_v23, 0  ;;  %v4764_v13 = vrot.slane %v4762_v4, 1  ;;  %5038 = vmatprep.mubr.bf16.mxu1 %v4757_v24  ;;  %6274 = vmatpush1.bf16.msra.mxu1 %v8297_v22  ;;  %v12249_v46 = vld [vmem:[#allocation2 + $0x38] sm:$0xff]  ;;  %v12263_v16 = vld [vmem:[#allocation2 + $0x40] sm:$0xff] }
 0x238   :  { %v12214_v32 = vrot.slane %v14462_v52, 5  ;;  %vm12234_vm4 = vmand %vm14038_vm9, %vm14468_vm8  ;;  %vm4602_vm13 = vcmp.ne.s16.totalorder %v4589_v44, 0  ;;  %v12238_v48 = vrot.slane %v5727_v10, 5  ;;  %v5732_v3 = vrot.slane %v5730_v29, 4  ;;  %v8323_v52 = vld [vmem:[%s13877_s3 + $0x654] ss:$8 sps:$4 sm:$0xff]   ;;  %6275 = vmatprep.subr.bf16.mxu1 %v8305_v58  ;;  %5536 = vmatpush1.bf16.msra.mxu0 %v8314_v62 }
 0x239   :  { %v12228_v31 = vrot.slane %v14466_v51, 5  ;;  %v4768_v19 = vor.u32 %v4766_v45, %v4756_v63  ;;  %v4760_v55 = vor.u32 %v4758_v54, %v4748_v59  ;;  %v4786_v51 = vshll.u32 %v12194_v50, 16  ;;  %v14471_v59 = vld [vmem:[#allocation53_spill] sm:$0xff]  ;;  %vm5154_vm7 = vmpackc.low %vm12234_vm4, %vm12234_vm4  ;;  %v14472_v54 = vld [vmem:[#allocation30_spill] sm:$0xff]  ;;  %5537 = vmatprep.subr.bf16.mxu0 %v8323_v52 }
 0x23a   :  { %v4778_v47 = vshll.u32 %v12196_v5, 16  ;;  %v4782_v4 = vshrl.u32 %v12154_v11, 16  ;;  %v4774_v10 = vshrl.u32 %v12165_v43, 16  ;;  %v5753_v29 = vor.u32 %v14471_v59, %v12214_v32  ;;  %v8313_v45 = vld [vmem:[%s13877_s3 + $0x734] ss:$8 sps:$4 sm:$0xff]   ;;  %4338 = vmatmul.mubr.bf16.gmra.mxu0 %v7490_v25  ;;  %vm14482_vm8 = vmmov %vm14473_vm0 }
 0x23b   :  { %v4773_v11 = vsel %vm14459_vm2, %v4768_v19, %v4772_v37  ;;  %v4615_v43 = vsel %vm4602_vm13, %v4422_v14, 0  ;;  %v5743_v24 = vor.u32 %v14472_v54, %v12228_v31  ;;  %v8321_v58 = vld [vmem:[%s13877_s3 + $0x650] ss:$8 sps:$4 sm:$0xff]   ;;  %v12274_v59 = vsel %vm14473_vm0, %v4760_v55, %v4764_v13  ;;  %v8330_v14 = vld [vmem:[%s13877_s3 + $0x644] ss:$8 sps:$4 sm:$0xff]   ;;  %6276 = vmatpush1.bf16.msra.mxu1 %v8303_v39  ;;  %v12303_v39 = vpop.f32.mrf.mxu1 }
 0x23c   :  { %v4784_v63 = vor.u32 %v4782_v4, %v4772_v37  ;;  %v4776_v19 = vor.u32 %v4774_v10, %v4764_v13  ;;  %v5733_v40 = vor.u32 %v5732_v3, %v12238_v48  ;;  %v4788_v44 = vrot.slane %v4786_v51, 1  ;;  %v12282_v54 = vld [vmem:[#allocation2 + $0x48] sm:$0xff]  ;;  %v8311_v13 = vld [vmem:[%s13877_s3 + $0x730] ss:$8 sps:$4 sm:$0xff]   ;;  %6277 = vmatprep.subr.bf16.mxu1 %v8313_v45  ;;  %5538 = vmatpush1.bf16.msra.mxu0 %v8321_v58 }
 0x23d   :  { %v4780_v62 = vrot.slane %v4778_v47, 1  ;;  %v12291_v3 = vcombine.high %v4615_v43, %v4615_v43  ;;  %v5754_v52 = vrot.slane %v5753_v29, 4  ;;  %v14474_v55 = vld [vmem:[#allocation52_spill] sm:$0xff]  ;;  %v5167_v4 = vsel %vm5154_vm7, 65537, %v12011_v41  ;;  %v8319_v25 = vld [vmem:[%s13877_s3 + $0x724] ss:$8 sps:$4 sm:$0xff]   ;;  %5539 = vmatprep.subr.bf16.mxu0 %v8330_v14 }
 0x23e   :  { %v14475_v51 = vshll.u32 %v14474_v55, 16  ;;  %v14476_v10 = vcombine.high %v12207_v38, %v11441_v9  ;;  %v12311_v29 = vcombine.low %v4615_v43, %v4615_v43  ;;  %v12313_v55 = vld [vmem:[#allocation2 + $0x50] sm:$0xff]  ;;  %v8328_v45 = vld [vmem:[%s13877_s3 + $0x640] ss:$8 sps:$4 sm:$0xff]   ;;  %v5734_v37 = vrot.slane %v5733_v40, 4  ;;  %v12322_v43 = vpop.f32.mrf.mxu0  ;;  %5039 = vmatmul.mubr.bf16.gmra.mxu1 %v12221_v30  ;;  %v14477_v41 = vld [vmem:[#allocation25_spill] sm:$0xff] }
 0x23f   :  { %vm5180_vm14 = vcmask 1042432   ;;  %vm5181_vm12 = vcmask 1046532   ;;  %v5183_v9 = vrot.slane %v5167_v4, 5  ;;  %v4790_v58 = vshrl.u32 %v12196_v5, 16  ;;  %v14479_v40 = vld [vmem:[#allocation49_spill] sm:$0xff]  ;;  %5048 = vmatprep.mubr.bf16.mxu1 %v4773_v11  ;;  %6278 = vmatpush1.bf16.msra.mxu1 %v8311_v13 }
 0x240   :  { %v12295_v47 = vrot.slane %v14475_v51, 5  ;;  %4347 = vmatprep.mubr.bf16.mxu0 %v14476_v10  ;;  %v5744_v51 = vrot.slane %v5743_v24, 4  ;;  %v8337_v10 = vld [vmem:[%s13877_s3 + $0x634] ss:$8 sps:$4 sm:$0xff]   ;;  %v4798_v24 = vshrl.u32 %v12194_v50, 16  ;;  %v14478_v0 = vrot.slane %v14477_v41, 5  ;;  %6279 = vmatprep.subr.bf16.mxu1 %v8319_v25  ;;  %vm12358_vm4 = vmor %vm5180_vm14, %vm5181_vm12  ;;  %v12381_v1 = vpop.f32.mrf.mxu0 }
 0x241   :  { %v14480_v23 = vrot.slane %v14479_v40, 5  ;;  %v8317_v30 = vld [vmem:[%s13877_s3 + $0x720] ss:$8 sps:$4 sm:$0xff]   ;;  %v4789_v14 = vsel %vm14481_vm3, %v4784_v63, %v4788_v44  ;;  %v12339_v4 = vsel %vm14482_vm8, %v4776_v19, %v4780_v62  ;;  %v4802_v50 = vshll.u32 %v12291_v3, 16  ;;  %5540 = vmatpush1.bf16.msra.mxu0 %v8328_v45 }
 0x242   :  { %v5187_v22 = vrot.slane %v14478_v0, 4  ;;  %v5759_v5 = vsel %vm10626_vm15, %v5754_v52, %v12295_v47  ;;  %v12345_v0 = vpop.f32.mrf.mxu1  ;;  %v12350_v11 = vor.u32 %v4798_v24, %v4788_v44  ;;  %v12352_v13 = vor.u32 %v4790_v58, %v4780_v62  ;;  %v8325_v52 = vld [vmem:[%s13877_s3 + $0x710] ss:$8 sps:$4 sm:$0xff]   ;;  %v8344_v62 = vld [vmem:[%s13877_s3 + $0x624] ss:$8 sps:$4 sm:$0xff]   ;;  %5541 = vmatprep.subr.bf16.mxu0 %v8337_v10 }
 0x243   :  { %v5190_v56 = vrot.slane %v14480_v23, 4  ;;  %v8327_v23 = vld [vmem:[%s13877_s3 + $0x714] ss:$8 sps:$4 sm:$0xff]   ;;  %v4794_v63 = vshll.u32 %v12311_v29, 16  ;;  %v8335_v44 = vld [vmem:[%s13877_s3 + $0x630] ss:$8 sps:$4 sm:$0xff]   ;;  %v5739_v25 = vsel %vm10626_vm15, %v5734_v37, %v12228_v31  ;;  %v5749_v24 = vsel %vm10626_vm15, %v5744_v51, %v12214_v32  ;;  %6280 = vmatpush1.bf16.msra.mxu1 %v8317_v30 }
 0x244   :  { %v5184_v58 = vrot.slane %v5183_v9, 4  ;;  %v14485_v19 = vrot.slane %v14479_v40, 5  ;;  %vm12384_vm13 = vcmp.ne.s16.totalorder %v5759_v5, 0  ;;  %v5113_v31 = vld [vmem:[#allocation2 + $0x10] sm:$0x88]  ;;  %v14488_v37 = vld [vmem:[#allocation50_spill] sm:$0xff]  ;;  %v14492_v10 = vcombine.low %v12207_v38, %v12249_v46  ;;  %6281 = vmatprep.subr.bf16.mxu1 %v8327_v23 }
 0x245   :  { %v14489_v32 = vrot.slane %v14488_v37, 5  ;;  %vm12392_vm7 = vcmp.ne.s16.totalorder %v5183_v9, 0  ;;  %v12402_v5 = vrot.slane %v4802_v50, 1  ;;  %v14493_v27 = vrot.slane %v14477_v41, 5  ;;  %v12408_v9 = vpop.f32.mrf.mxu1  ;;  %v8342_v50 = vld [vmem:[%s13877_s3 + $0x620] ss:$8 sps:$4 sm:$0xff]   ;;  %5542 = vmatpush1.bf16.msra.mxu0 %v8335_v44 }
 0x246   :  { %v5189_v45 = vsel %vm12358_vm4, %v5187_v22, %v14485_v19  ;;  %v8333_v22 = vld [vmem:[%s13877_s3 + $0x704] ss:$8 sps:$4 sm:$0xff]   ;;  %4348 = vmatmul.mubr.bf16.gmra.mxu0 %v14492_v10  ;;  %14494 = vst [vmem:[#allocation46_spill] sm:$0xff] %v12408_v9  ;;  %v14495_v30 = vcombine.high %v12263_v16, %v11499_v15  ;;  %vm5854_vm14 = vcmp.ne.s16.totalorder %v12238_v48, 0  ;;  %vm12417_vm12 = vcmp.ne.s16.totalorder %v5739_v25, 0  ;;  %5049 = vmatmul.mubr.bf16.gmra.mxu1 %v12274_v59 }
 0x247   :  { %v5192_v51 = vsel %vm12358_vm4, %v5190_v56, %v14489_v32  ;;  %v5662_v19 = vld [vmem:[#allocation2 + $0x20] sm:$0xff]  ;;  %v5186_v56 = vsel %vm12358_vm4, %v5184_v58, %v14493_v27  ;;  %vm5222_vm2 = vcmp.ne.s16.totalorder %v5189_v45, 0  ;;  %vm12421_vm3 = vcmp.ne.s16.totalorder %v5749_v24, 0  ;;  %v5660_v23 = vld [vmem:[#allocation2 + $0x10] sm:$0x88]  ;;  %5543 = vmatprep.subr.bf16.mxu0 %v8344_v62  ;;  %5058 = vmatprep.mubr.bf16.mxu1 %v4789_v14  ;;  %v12454_v45 = vpop.f32.mrf.mxu1 }
 0x248   :  { %vm5223_vm0 = vcmp.ne.s16.totalorder %v5192_v51, 0  ;;  %4357 = vmatprep.mubr.bf16.mxu0 %v14495_v30  ;;  %vm5221_vm8 = vcmp.ne.s16.totalorder %v5186_v56, 0  ;;  %v12427_v15 = vsel %vm12384_vm13, %v5663_v8, 0  ;;  %v5233_v58 = vsel %vm12392_vm7, %v5113_v31, 0  ;;  %v12433_v51 = vpop.f32.mrf.mxu0  ;;  %v8351_v44 = vld [vmem:[%s13877_s3 + $0x614] ss:$8 sps:$4 sm:$0xff]   ;;  %6282 = vmatpush1.bf16.msra.mxu1 %v8325_v52 }
 0x249   :  { %v5234_v32 = vsel %vm5221_vm8, %v12026_v12, 0  ;;  %v5236_v25 = vsel %vm5223_vm0, %v12203_v26, 0  ;;  %14500 = vst [vmem:[#allocation22_spill] sm:$0xff] %v12433_v51  ;;  %v12439_v24 = vrot.slane %v4794_v63, 1  ;;  %v5235_v34 = vsel %vm5222_vm2, %v12160_v61, 0  ;;  %14501 = vst [vmem:[#allocation29_spill] sm:$0xff] %v12454_v45  ;;  %6283 = vmatprep.subr.bf16.mxu1 %v8333_v22  ;;  %5544 = vmatpush1.bf16.msra.mxu0 %v8342_v50 }
 0x24a   :  { %v7644_v8 = vcombine.low %v5233_v58, %v5234_v32  ;;  %v7645_v31 = vcombine.high %v5233_v58, %v5234_v32  ;;  %v8331_v12 = vld [vmem:[%s13877_s3 + $0x700] ss:$8 sps:$4 sm:$0xff]   ;;  %v12448_v26 = vsel %vm12417_vm12, %v5661_v2, 0  ;;  %v12452_v59 = vsel %vm12421_vm3, %v5662_v19, 0  ;;  %v8341_v61 = vld [vmem:[%s13877_s3 + $0x7f4] ss:$8 sps:$4 sm:$0xff]   ;;  %v12479_v48 = vpop.f32.mrf.mxu0  ;;  %5545 = vmatprep.subr.bf16.mxu0 %v8351_v44 }
 0x24b   :  { %v7646_v63 = vcombine.low %v5235_v34, %v5236_v25  ;;  %v7647_v62 = vcombine.high %v5235_v34, %v5236_v25  ;;  %vm14502_vm13 = vsmask.f32 7424  ;;  %v5868_v2 = vsel %vm5854_vm14, %v5660_v23, 0  ;;  %v8349_v40 = vld [vmem:[%s13877_s3 + $0x610] ss:$8 sps:$4 sm:$0xff]   ;;  %14505 = vst [vmem:[#allocation28_spill] sm:$0xff] %v12479_v48 }
 0x24c   :  { %v4805_v14 = vsel %vm14502_vm13, %v12350_v11, %v12402_v5  ;;  %v12466_v52 = vcombine.high %v12452_v59, %v12427_v15  ;;  %vm14040_vm7 = vcmask 1044480   ;;  %v5336_v10 = vrot.slane %v7645_v31, 3  ;;  %v14503_v56 = vld [vmem:[#allocation57_spill] sm:$0xff]  ;;  %v8358_v50 = vld [vmem:[%s13877_s3 + $0x604] ss:$8 sps:$4 sm:$0xff]   ;;  %v14509_v34 = vld [vmem:[#allocation60_spill] sm:$0xff]  ;;  %6284 = vmatpush1.bf16.msra.mxu1 %v8331_v12 }
 0x24d   :  { %v12471_v22 = vrot.slane %v7646_v63, 3  ;;  %v12473_v19 = vrot.slane %v7647_v62, 3  ;;  %v14504_v11 = vshll.u32 %v14503_v56, 16  ;;  %v12485_v41 = vcombine.high %v5868_v2, %v12448_v26  ;;  %v14506_v27 = vld [vmem:[#allocation54_spill] sm:$0xff]  ;;  %v8339_v44 = vld [vmem:[%s13877_s3 + $0x7f0] ss:$8 sps:$4 sm:$0xff]   ;;  %6285 = vmatprep.subr.bf16.mxu1 %v8341_v61  ;;  %5546 = vmatpush1.bf16.msra.mxu0 %v8349_v40  ;;  %vm14532_vm12 = vmmov %vm14502_vm13 }
 0x24e   :  { %v5763_v23 = vor.u32 %v14506_v27, %v12295_v47  ;;  %v14507_v58 = vld [vmem:[#allocation58_spill] sm:$0xff]  ;;  %v14510_v31 = vshll.u32 %v14509_v34, 16  ;;  %v14511_v62 = vcombine.low %v12263_v16, %v12282_v54  ;;  %v5333_v56 = vrot.slane %v7644_v8, 3  ;;  %v14518_v48 = vld [vmem:[#allocation36_spill] sm:$0xff]  ;;  %5059 = vmatmul.mubr.bf16.gmra.mxu1 %v12339_v4  ;;  %5547 = vmatprep.subr.bf16.mxu0 %v8358_v50 }
 0x24f   :  { %v12477_v30 = vrot.slane %v14504_v11, 5  ;;  %v14508_v32 = vshll.u32 %v14507_v58, 16  ;;  %v12505_v47 = vsel %vm14040_vm7, %v5336_v10, %v12473_v19  ;;  %v14512_v11 = vld [vmem:[#allocation59_spill] sm:$0xff]  ;;  %v12509_v58 = vpop.f32.mrf.mxu1  ;;  %v14514_v12 = vrot.slane %v14488_v37, 5  ;;  %v8365_v40 = vld [vmem:[%s13877_s3 + $0x6f4] ss:$8 sps:$4 sm:$0xff]   ;;  %5068 = vmatprep.mubr.bf16.mxu1 %v4805_v14 }
 0x250   :  { %v12495_v63 = vrot.slane %v14510_v31, 5  ;;  %4358 = vmatmul.mubr.bf16.gmra.mxu0 %v14511_v62  ;;  %14513 = vst [vmem:[#allocation12_spill] sm:$0xff] %v12509_v58  ;;  %v8347_v34 = vld [vmem:[%s13877_s3 + $0x7e4] ss:$8 sps:$4 sm:$0xff]   ;;  %v14515_v8 = vcombine.high %v11503_v42, %v11552_v6  ;;  %v5997_v10 = vshrl.u32 %v12466_v52, 16  ;;  %v14516_v31 = vld [vmem:[#allocation61_spill] sm:$0xff]  ;;  %6286 = vmatpush2.bf16.msra.mxu1 %v8339_v44  ;;  %v12571_v44 = vcombine.low %v5868_v2, %v12448_v26 }
 0x251   :  { %v12491_v25 = vrot.slane %v14508_v32, 5  ;;  %v5773_v27 = vor.u32 %v14512_v11, %v12477_v30  ;;  %v5193_v32 = vrot.slane %v14514_v12, 4  ;;  %v14517_v11 = vld [vmem:[#allocation33_spill] sm:$0xff]  ;;  %v14519_v37 = vrot.slane %v14518_v48, 5  ;;  %v8356_v61 = vld [vmem:[%s13877_s3 + $0x600] ss:$8 sps:$4 sm:$0xff]   ;;  %6287 = vmatprep.subr.bf16.mxu1 %v8347_v34 }
 0x252   :  { %4367 = vmatprep.mubr.bf16.mxu0 %v14515_v8  ;;  %v5793_v58 = vor.u32 %v14517_v11, %v12495_v63  ;;  %v6000_v45 = vshll.u32 %v12466_v52, 16  ;;  %v12532_v8 = vsel %vm14040_vm7, %v5333_v56, %v12471_v22  ;;  %v12538_v11 = vpop.f32.mrf.mxu0  ;;  %v14522_v56 = vrot.slane %v14518_v48, 5  ;;  %v8355_v14 = vld [vmem:[%s13877_s3 + $0x7d4] ss:$8 sps:$4 sm:$0xff]   ;;  %5548 = vmatpush1.bf16.msra.mxu0 %v8356_v61  ;;  %v12586_v26 = vld [vmem:[#allocation2 + $0x60] sm:$0xff]  ;;  %v12588_v2 = vld [vmem:[#allocation2 + $0x68] sm:$0xff] }
 0x253   :  { %v5783_v62 = vor.u32 %v14516_v31, %v12491_v25  ;;  %v5196_v12 = vrot.slane %v14519_v37, 4  ;;  %v5774_v42 = vrot.slane %v5773_v27, 4  ;;  %v12536_v31 = vadd.f32 %v12303_v39, %v12277_v20  ;;  %v14520_v27 = vld [vmem:[#allocation62_spill] sm:$0xff]  ;;  %5549 = vmatprep.subr.bf16.mxu0 %v8365_v40 }
 0x254   :  { %v5764_v37 = vrot.slane %v5763_v23, 4  ;;  %v5794_v52 = vrot.slane %v5793_v58, 4  ;;  %v14521_v51 = vshll.u32 %v14520_v27, 16  ;;  %v5195_v20 = vsel %vm12358_vm4, %v5193_v32, %v14522_v56  ;;  %v8345_v39 = vld [vmem:[%s13877_s3 + $0x7e0] ss:$8 sps:$4 sm:$0xff]   ;;  %v12557_v23 = vpop.f32.mrf.mxu1  ;;  %v14523_v58 = vld [vmem:[#allocation21_spill] sm:$0xff]  ;;  %v12592_v34 = vpop.f32.mrf.mxu0 }
 0x255   :  { %v5989_v4 = vshrl.u32 %v12485_v41, 16  ;;  %v5992_v50 = vshll.u32 %v12485_v41, 16  ;;  %v12565_v32 = vadd.f32 %v12345_v0, %v12322_v43  ;;  %v5779_v41 = vsel %vm10626_vm15, %v5774_v42, %v12491_v25  ;;  %v8363_v43 = vld [vmem:[%s13877_s3 + $0x6f0] ss:$8 sps:$4 sm:$0xff]   ;;  %14526 = vst [vmem:[#allocation45_spill] sm:$0xff] %v12592_v34  ;;  %6288 = vmatpush2.bf16.msra.mxu1 %v8345_v39  ;;  %v14552_v34 = vld [vmem:[#allocation67_spill] sm:$0xff] }
 0x256   :  { %v12546_v9 = vrot.slane %v14521_v51, 5  ;;  %v14524_v51 = vrot.slane %v14523_v58, 5  ;;  %v5784_v27 = vrot.slane %v5783_v62, 4  ;;  %v12584_v0 = vcombine.low %v12452_v59, %v12427_v15  ;;  %6289 = vmatprep.subr.bf16.mxu1 %v8355_v14  ;;  %5550 = vmatpush2.bf16.msra.mxu0 %v8363_v43  ;;  %v8379_v43 = vld [vmem:[%s13877_s3 + $0x6d4] ss:$8 sps:$4 sm:$0xff]  }
 0x257   :  { %vm5224_vm0 = vcmp.ne.s16.totalorder %v5195_v20, 0  ;;  %v5999_v15 = vrot.slane %v5997_v10, 3  ;;  %v6002_v59 = vrot.slane %v6000_v45, 4  ;;  %v5769_v62 = vsel %vm10626_vm15, %v5764_v37, %v12477_v30  ;;  %v12615_v45 = vpop.f32.mrf.mxu1  ;;  %v12656_v20 = vpop.f32.mrf.mxu0 }
 0x258   :  { %v5198_v48 = vsel %vm12358_vm4, %v5196_v12, %v14524_v51  ;;  %v14525_v12 = vshrl.u32 %v12291_v3, 16  ;;  %v8353_v3 = vld [vmem:[%s13877_s3 + $0x7d0] ss:$8 sps:$4 sm:$0xff]   ;;  %v5799_v61 = vsel %vm10626_vm15, %v5794_v52, %v12546_v9  ;;  %v14527_v42 = vcombine.low %v12313_v55, %v11552_v6  ;;  %14530 = vst [vmem:[#allocation38_spill] sm:$0xff] %v12615_v45  ;;  %v8361_v6 = vld [vmem:[%s13877_s3 + $0x7c4] ss:$8 sps:$4 sm:$0xff]  }
 0x259   :  { %vm5225_vm2 = vcmp.ne.s16.totalorder %v5198_v48, 0  ;;  %v5991_v40 = vrot.slane %v5989_v4, 3  ;;  %v5994_v51 = vrot.slane %v5992_v50, 4  ;;  %vm12611_vm14 = vcmp.ne.s16.totalorder %v5779_v41, 0  ;;  %14537 = vst [vmem:[#allocation48_spill] sm:$0xff] %v12656_v20  ;;  %6290 = vmatpush2.bf16.msra.mxu1 %v8353_v3 }
 0x25a   :  { %v4811_v56 = vor.u32 %v14525_v12, %v12402_v5  ;;  %v8372_v5 = vld [vmem:[%s13877_s3 + $0x6e4] ss:$8 sps:$4 sm:$0xff]   ;;  %4368 = vmatmul.mubr.bf16.gmra.mxu0 %v14527_v42  ;;  %v12609_v12 = vld [vmem:[#allocation2 + $0x38] sm:$0xff]  ;;  %v12619_v30 = vsel %vm5225_vm2, %v12249_v46, 0  ;;  %v14531_v37 = vcombine.high %v11560_v21, %v11629_v60  ;;  %v5972_v52 = vshrl.u32 %v12571_v44, 16  ;;  %v12642_v60 = vld [vmem:[#allocation2 + $0x30] sm:$0xff]  ;;  %v12682_v42 = vpop.f32.mrf.mxu1  ;;  %6291 = vmatprep.subr.bf16.mxu1 %v8361_v6 }
 0x25b   :  { %v5975_v39 = vshll.u32 %v12571_v44, 16  ;;  %v5789_v4 = vsel %vm10626_vm15, %v5784_v27, %v12495_v63  ;;  %v12634_v46 = vsel %vm5224_vm0, %v12207_v38, 0  ;;  %v4797_v50 = vsel %vm14532_vm12, %v12352_v13, %v12439_v24  ;;  %v8370_v21 = vld [vmem:[%s13877_s3 + $0x6e0] ss:$8 sps:$4 sm:$0xff]   ;;  %5551 = vmatprep.subr.bf16.mxu0 %v8372_v5  ;;  %14541 = vst [vmem:[#allocation41_spill] sm:$0xff] %v12682_v42 }
 0x25c   :  { %4377 = vmatprep.mubr.bf16.mxu0 %v14531_v37  ;;  %vm12644_vm3 = vcmp.ne.s16.totalorder %v5769_v62, 0  ;;  %v12648_v63 = vld [vmem:[#allocation2 + $0x48] sm:$0xff]  ;;  %vm12650_vm8 = vcmp.ne.s16.totalorder %v5799_v61, 0  ;;  %v7649_v13 = vcombine.high %v12634_v46, %v12619_v30  ;;  %5069 = vmatmul.mubr.bf16.gmra.mxu1 %v4797_v50  ;;  %v14538_v14 = vshrl.u32 %v12311_v29, 16  ;;  %v12674_v61 = vld [vmem:[#allocation2 + $0x40] sm:$0xff] }
 0x25d   :  { %v5980_v41 = vshrl.u32 %v12584_v0, 16  ;;  %v12662_v27 = vor.u32 %v6002_v59, %v5999_v15  ;;  %v5873_v62 = vsel %vm12611_vm14, %v12609_v12, 0  ;;  %5078 = vmatprep.mubr.bf16.mxu1 %v4811_v56  ;;  %v8359_v29 = vld [vmem:[%s13877_s3 + $0x7c0] ss:$8 sps:$4 sm:$0xff]   ;;  %v5995_v5 = vor.u32 %v5994_v51, %v5991_v40  ;;  %v8369_v56 = vld [vmem:[%s13877_s3 + $0x7b4] ss:$8 sps:$4 sm:$0xff]   ;;  %5552 = vmatpush2.bf16.msra.mxu0 %v8370_v21  ;;  %v12713_v21 = vpop.f32.mrf.mxu0 }
 0x25e   :  { %v4808_v44 = vor.u32 %v14538_v14, %v12439_v24  ;;  %v5983_v24 = vshll.u32 %v12584_v0, 16  ;;  %vm12676_vm13 = vcmp.ne.s16.totalorder %v5789_v4, 0  ;;  %v12680_v59 = vrot.slane %v7649_v13, 3  ;;  %v8377_v51 = vld [vmem:[%s13877_s3 + $0x6d0] ss:$8 sps:$4 sm:$0xff]   ;;  %14544 = vst [vmem:[#allocation77_spill] sm:$0xff] %v12713_v21  ;;  %5553 = vmatprep.subr.bf16.mxu0 %v8379_v43  ;;  %6292 = vmatpush2.bf16.msra.mxu1 %v8359_v29  ;;  %v12735_v21 = vpop.f32.mrf.mxu1 }
 0x25f   :  { %v12687_v3 = vrot.slane %v5972_v52, 3  ;;  %v12689_v10 = vrot.slane %v5975_v39, 4  ;;  %v5872_v0 = vsel %vm12644_vm3, %v12642_v60, 0  ;;  %v5875_v40 = vsel %vm12650_vm8, %v12648_v63, 0  ;;  %v12700_v6 = vld [vmem:[#allocation2 + $0x70] sm:$0x11]  ;;  %6293 = vmatprep.subr.bf16.mxu1 %v8369_v56  ;;  %vm12904_vm8 = vmpackc.low %vm14037_vm1, %vm14037_vm1 }
 0x260   :  { %v7501_v37 = vcombine.high %v12700_v6, %v12700_v6  ;;  %v7728_v52 = vcombine.high %v5872_v0, %v5873_v62  ;;  %v12707_v39 = vsel %vm14040_vm7, %v12473_v19, %v12680_v59  ;;  %v14542_v4 = vld [vmem:[#allocation65_spill] sm:$0xff]  ;;  %v6004_v38 = vsel %vm14041_vm11, %v5995_v5, %v12662_v27  ;;  %v8386_v13 = vld [vmem:[%s13877_s3 + $0x6c4] ss:$8 sps:$4 sm:$0xff]   ;;  %14546 = vst [vmem:[#allocation74_spill] sm:$0xff] %v12735_v21 }
 0x261   :  { %v14543_v50 = vshll.u32 %v14542_v4, 16  ;;  %v7500_v14 = vcombine.low %v12700_v6, %v12700_v6  ;;  %v5982_v25 = vrot.slane %v5980_v41, 3  ;;  %v5874_v19 = vsel %vm12676_vm13, %v12674_v61, 0  ;;  %v8367_v4 = vld [vmem:[%s13877_s3 + $0x7b0] ss:$8 sps:$4 sm:$0xff]   ;;  %v14547_v41 = vld [vmem:[#allocation14_spill] sm:$0xff]  ;;  %5554 = vmatpush2.bf16.msra.mxu0 %v8377_v51 }
 0x262   :  { %v14545_v43 = vcombine.low %v12586_v26, %v12588_v2  ;;  %v12731_v5 = vcombine.low %v5872_v0, %v5873_v62  ;;  %v14548_v15 = vrot.slane %v14523_v58, 5  ;;  %v8375_v42 = vld [vmem:[%s13877_s3 + $0x7a4] ss:$8 sps:$4 sm:$0xff]   ;;  %v5985_v0 = vrot.slane %v5983_v24, 4  ;;  %v8384_v58 = vld [vmem:[%s13877_s3 + $0x6c0] ss:$8 sps:$4 sm:$0xff]   ;;  %5555 = vmatprep.subr.bf16.mxu0 %v8386_v13  ;;  %6294 = vmatpush2.bf16.msra.mxu1 %v8367_v4 }
 0x263   :  { %v12711_v48 = vrot.slane %v14543_v50, 5  ;;  %v12733_v50 = vcombine.high %v5874_v19, %v5875_v40  ;;  %v7648_v21 = vcombine.low %v12634_v46, %v12619_v30  ;;  %v6015_v56 = vshrl.u32 %v7728_v52, 16  ;;  %v8393_v30 = vld [vmem:[%s13877_s3 + $0x6b4] ss:$8 sps:$4 sm:$0xff]   ;;  %6295 = vmatprep.subr.bf16.mxu1 %v8375_v42  ;;  %v8391_v42 = vld [vmem:[%s13877_s3 + $0x6b0] ss:$8 sps:$4 sm:$0xff]  }
 0x264   :  { %4378 = vmatmul.mubr.bf16.gmra.mxu0 %v14545_v43  ;;  %v5199_v29 = vrot.slane %v14548_v15, 4  ;;  %v14549_v43 = vld [vmem:[#allocation3_spill] sm:$0xff]  ;;  %v14550_v15 = vld [vmem:[#allocation66_spill] sm:$0xff]  ;;  %v14553_v62 = vrot.slane %v14552_v34, 5  ;;  %5079 = vmatmul.mubr.bf16.gmra.mxu1 %v4808_v44  ;;  %v6018_v46 = vshll.u32 %v7728_v52, 16  ;;  %v12766_v51 = vcombine.low %v5874_v19, %v5875_v40  ;;  %v12778_v52 = vpop.f32.mrf.mxu1 }
 0x265   :  { %v5813_v6 = vor.u32 %v14547_v41, %v12711_v48  ;;  %4387 = vmatprep.mubr.bf16.mxu0 %v7501_v37  ;;  %v5803_v20 = vor.u32 %v14549_v43, %v12546_v9  ;;  %v14551_v45 = vshll.u32 %v14550_v15, 16  ;;  %v12761_v9 = vpop.f32.mrf.mxu0  ;;  %6301 = vmatprep.mubr.bf16.mxu1 %v6004_v38  ;;  %v6006_v44 = vshrl.u32 %v12731_v5, 16  ;;  %14555 = vst [vmem:[#allocation78_spill] sm:$0xff] %v12778_v52  ;;  %v8383_v34 = vld [vmem:[%s13877_s3 + $0x794] ss:$8 sps:$4 sm:$0xff]  }
 0x266   :  { %v5201_v24 = vsel %vm12358_vm4, %v5199_v29, %v14553_v62  ;;  %v8373_v29 = vld [vmem:[%s13877_s3 + $0x7a0] ss:$8 sps:$4 sm:$0xff]   ;;  %v6009_v13 = vshll.u32 %v12731_v5, 16  ;;  %v14556_v38 = vld [vmem:[#allocation68_spill] sm:$0xff]  ;;  %v14558_v5 = vshll.u32 %v11711_v18, 16  ;;  %5556 = vmatpush2.bf16.msra.mxu0 %v8384_v58  ;;  %v6020_v58 = vrot.slane %v6018_v46, 4 }
 0x267   :  { %v5814_v41 = vrot.slane %v5813_v6, 4  ;;  %v12755_v37 = vrot.slane %v14551_v45, 5  ;;  %v12768_v6 = vrot.slane %v7648_v21, 3  ;;  %v14554_v45 = vmov %v14553_v62  ;;  %v12803_v52 = vpop.f32.mrf.mxu0  ;;  %5557 = vmatprep.subr.bf16.mxu0 %v8393_v30  ;;  %v8396_v18 = vld [vmem:[%s13877_s3 + $0x6a4] ss:$8 sps:$4 sm:$0xff]   ;;  %6296 = vmatpush2.bf16.msra.mxu1 %v8373_v29 }
 0x268   :  { %v5202_v43 = vrot.slane %v14554_v45, 4  ;;  %v6033_v62 = vshrl.u32 %v12733_v50, 16  ;;  %vm5226_vm2 = vcmp.ne.s16.totalorder %v5201_v24, 0  ;;  %v5804_v40 = vrot.slane %v5803_v20, 4  ;;  %6297 = vmatprep.subr.bf16.mxu1 %v8383_v34 }
 0x269   :  { %v12786_v21 = vsel %vm14040_vm7, %v12471_v22, %v12768_v6  ;;  %v14557_v19 = vrot.slane %v14556_v38, 5  ;;  %v12794_v15 = vrot.slane %v14558_v5, 5  ;;  %v6017_v20 = vrot.slane %v6015_v56, 3  ;;  %v12828_v5 = vld [vmem:[#allocation2 + $0x58] sm:$0xff] }
 0x26a   :  { %v6036_v45 = vshll.u32 %v12733_v50, 16  ;;  %v5819_v22 = vsel %vm10626_vm15, %v5814_v41, %v12755_v37  ;;  %v8381_v41 = vld [vmem:[%s13877_s3 + $0x790] ss:$8 sps:$4 sm:$0xff]   ;;  %v12817_v30 = vor.u32 %v5985_v0, %v5982_v25  ;;  %v6024_v29 = vshrl.u32 %v12766_v51, 16  ;;  %5558 = vmatpush2.bf16.msra.mxu0 %v8391_v42  ;;  %v8394_v0 = vld [vmem:[%s13877_s3 + $0x6a0] ss:$8 sps:$4 sm:$0xff]  }
 0x26b   :  { %v5204_v4 = vsel %vm12358_vm4, %v5202_v43, %v14557_v19  ;;  %v5239_v43 = vsel %vm5226_vm2, %v12263_v16, 0  ;;  %v5833_v50 = vor.u32 %v11922_v49, %v12794_v15  ;;  %v14560_v16 = vld [vmem:[#allocation71_spill] sm:$0xff]  ;;  %v5809_v25 = vsel %vm10626_vm15, %v5804_v40, %v12711_v48  ;;  %v12848_v48 = vpop.f32.mrf.mxu0  ;;  %5559 = vmatprep.subr.bf16.mxu0 %v8396_v18  ;;  %v8399_v42 = vld [vmem:[%s13877_s3 + $0x694] ss:$8 sps:$4 sm:$0xff]   ;;  %6298 = vmatpush2.bf16.msra.mxu1 %v8381_v41 }
 0x26c   :  { %vm5227_vm0 = vcmp.ne.s16.totalorder %v5204_v4, 0  ;;  %4388 = vmatmul.mubr.bf16.gmra.mxu0 %v7500_v14  ;;  %v12819_v4 = vpop.f32.mrf.mxu1  ;;  %v5823_v24 = vor.u32 %v14560_v16, %v12755_v37  ;;  %v8389_v49 = vld [vmem:[%s13877_s3 + $0x784] ss:$8 sps:$4 sm:$0xff]   ;;  %vm12833_vm14 = vcmp.ne.s16.totalorder %v5819_v22, 0  ;;  %v14564_v16 = vmov %v14557_v19  ;;  %v12869_v41 = vld [vmem:[#allocation2 + $0x50] sm:$0xff] }
 0x26d   :  { %v5240_v56 = vsel %vm5227_vm0, %v12282_v54, 0  ;;  %14559 = vst [vmem:[#allocation24_spill] sm:$0xff] %v12819_v4  ;;  %5565 = vmatprep.mubr.bf16.mxu0 %v12505_v47  ;;  %v6008_v54 = vrot.slane %v6006_v44, 3  ;;  %v5834_v47 = vrot.slane %v5833_v50, 4  ;;  %v14563_v44 = vshll.u32 %v11817_v53, 16  ;;  %6299 = vmatprep.subr.bf16.mxu1 %v8389_v49 }
 0x26e   :  { %v7651_v46 = vcombine.high %v5239_v43, %v5240_v56  ;;  %v5205_v19 = vrot.slane %v14564_v16, 4  ;;  %v6021_v40 = vor.u32 %v6020_v58, %v6017_v20  ;;  %v6011_v22 = vrot.slane %v6009_v13, 4  ;;  %v8387_v53 = vld [vmem:[%s13877_s3 + $0x780] ss:$8 sps:$4 sm:$0xff]   ;;  %v12866_v18 = vpop.f32.mrf.mxu1  ;;  %5560 = vmatpush2.bf16.msra.mxu0 %v8394_v0  ;;  %v8402_v0 = vld [vmem:[%s13877_s3 + $0x684] ss:$8 sps:$4 sm:$0xff]  }
 0x26f   :  { %v12844_v34 = vrot.slane %v14563_v44, 5  ;;  %v6035_v4 = vrot.slane %v6033_v62, 3  ;;  %v14565_v38 = vor.u32 %v12689_v10, %v12687_v3  ;;  %v5824_v13 = vrot.slane %v5823_v24, 4  ;;  %5561 = vmatprep.subr.bf16.mxu0 %v8399_v42  ;;  %6300 = vmatpush2.bf16.msra.mxu1 %v8387_v53  ;;  %v12923_v53 = vld [vmem:[#allocation2 + $0x68] sm:$0xff]  ;;  %v8478_v44 = vld [vmem:[#allocation2] sm:$0xff] }
 0x270   :  { %v12840_v37 = vrot.slane %v7651_v46, 3  ;;  %v6038_v46 = vrot.slane %v6036_v45, 4  ;;  %v7650_v62 = vcombine.low %v5239_v43, %v5240_v56  ;;  %v6026_v45 = vrot.slane %v6024_v29, 3  ;;  %v2384_v29 = vpop.f32.mrf.mxu0 }
 0x271   :  { %v5987_v50 = vsel %vm14041_vm11, %v14565_v38, %v12817_v30  ;;  %v6027_v58 = vshll.u32 %v12766_v51, 16  ;;  %vm12871_vm12 = vcmp.ne.s16.totalorder %v5809_v25, 0  ;;  %v5877_v3 = vsel %vm12833_vm14, %v12828_v5, 0 }
 0x272   :  { %v12864_v20 = vsel %vm14040_vm7, %v12680_v59, %v12840_v37  ;;  %v8397_v59 = vld [vmem:[%s13877_s3 + $0x690] ss:$8 sps:$4 sm:$0xff]   ;;  %v5839_v10 = vsel %vm10626_vm15, %v5834_v47, %v12844_v34  ;;  %v12884_v51 = vrot.slane %v7650_v62, 3  ;;  %v14568_v43 = vrot.slane %v11836_v33, 5  ;;  %6302 = vmatmul.mubr.bf16.vlgmr.msra.gmra.mxu1 %v5987_v50 }
 0x273   :  { %v6022_v25 = vsel %vm14041_vm11, %v12662_v27, %v6021_v40  ;;  %v12894_v14 = vor.u32 %v6011_v22, %v6008_v54  ;;  %v12899_v47 = vor.u32 %v6038_v46, %v6035_v4  ;;  %v5876_v27 = vsel %vm12871_vm12, %v12869_v41, 0  ;;  %5562 = vmatpush2.bf16.msra.mxu0 %v8397_v59 }
 0x274   :  { %v5207_v56 = vsel %vm12358_vm4, %v5205_v19, %v14568_v43  ;;  %v14569_v24 = vmov %v14568_v43  ;;  %v2712_v19 = vpop.f32.mrf.mxu1  ;;  %v5829_v54 = vsel %vm10626_vm15, %v5824_v13, %v12794_v15  ;;  %v12917_v4 = vsel %vm14040_vm7, %v12768_v6, %v12884_v51  ;;  %v8400_v6 = vld [vmem:[%s13877_s3 + $0x680] ss:$8 sps:$4 sm:$0xff]   ;;  %v8477_v13 = vld [vmem:[#allocation2 + $0x58] sm:$0xff]  ;;  %v2386_v43 = vpop.f32.mrf.mxu0  ;;  %5563 = vmatprep.subr.bf16.mxu0 %v8402_v0  ;;  %6311 = vmatprep.mubr.bf16.mxu1 %v6022_v25 }
 0x275   :  { %v5208_v49 = vrot.slane %v14569_v24, 4  ;;  %vm5228_vm3 = vcmp.ne.s16.totalorder %v5207_v56, 0  ;;  %v14572_v16 = vrot.slane %v11849_v17, 5  ;;  %v6029_v22 = vrot.slane %v6027_v58, 4  ;;  %v12945_v24 = vld [vmem:[#allocation2 + $0x60] sm:$0xff] }
 0x276   :  { %v7732_v46 = vcombine.high %v5876_v27, %v5877_v3  ;;  %vm12925_vm13 = vcmp.ne.s16.totalorder %v5839_v10, 0  ;;  %v5241_v15 = vsel %vm5228_vm3, %v12313_v55, 0  ;;  %v5725_v58 = vsel %vm12904_vm8, 65537, %v8478_v44  ;;  %v8405_v55 = vld [vmem:[%s13877_s3 + $0x874] ss:$8 sps:$4 sm:$0xff]  }
 0x277   :  { %v5210_v42 = vsel %vm12358_vm4, %v5208_v49, %v14572_v16  ;;  %v5843_v10 = vor.u32 %v11929_v28, %v12844_v34  ;;  %v6013_v59 = vsel %vm14041_vm11, %v12817_v30, %v12894_v14  ;;  %v12943_v56 = vcombine.low %v5876_v27, %v5877_v3  ;;  %v2714_v30 = vpop.f32.mrf.mxu1  ;;  %5564 = vmatpush2.bf16.msra.mxu0 %v8400_v6  ;;  %v8403_v25 = vld [vmem:[%s13877_s3 + $0x870] ss:$8 sps:$4 sm:$0xff]  }
 0x278   :  { %vm5229_vm2 = vcmp.ne.s16.totalorder %v5210_v42, 0  ;;  %vm5864_vm0 = vcmp.ne.s16.totalorder %v5829_v54, 0  ;;  %v6040_v28 = vsel %vm14041_vm11, %v6021_v40, %v12899_v47  ;;  %v12952_v34 = vsel %vm12925_vm13, %v12923_v53, 0  ;;  %6721 = vmatprep.subr.bf16.mxu0 %v8405_v55 }
 0x279   :  { %v5242_v62 = vsel %vm5229_vm2, %v8477_v13, 0  ;;  %v5844_v50 = vrot.slane %v5843_v10, 4  ;;  %v5846_v0 = vshll.u32 %v5725_v58, 16  ;;  %v12954_v33 = vor.u32 %v6029_v22, %v6026_v45  ;;  %v2388_v13 = vpop.f32.mrf.mxu0  ;;  %v8408_v45 = vld [vmem:[%s13877_s3 + $0x864] ss:$8 sps:$4 sm:$0xff]   ;;  %v2716_v55 = vpop.f32.mrf.mxu1 }
 0x27a   :  { %v7653_v49 = vcombine.high %v5241_v15, %v5242_v62  ;;  %v6051_v3 = vshrl.u32 %v7732_v46, 16  ;;  %v6054_v27 = vshll.u32 %v7732_v46, 16  ;;  %v12962_v40 = vsel %vm5864_vm0, %v12945_v24, 0  ;;  %5566 = vmatmul.mubr.bf16.vlgmr.msra.gmra.mxu0 %v12532_v8  ;;  %6312 = vmatmul.mubr.bf16.gmra.mxu1 %v6013_v59  ;;  %v14604_v59 = vld [vmem:[#allocation19_spill] sm:$0xff] }
 0x27b   :  { %v5848_v54 = vrot.slane %v5846_v0, 5  ;;  %v5850_v42 = vshrl.u32 %v5725_v58, 16  ;;  %v7652_v38 = vcombine.low %v5241_v15, %v5242_v62  ;;  %v6042_v22 = vshrl.u32 %v12943_v56, 16  ;;  %v14576_v58 = vld [vmem:[#allocation55_spill] sm:$0xff]  ;;  %v14578_v15 = vld [vmem:[#allocation42_spill] sm:$0xff]  ;;  %5575 = vmatprep.mubr.bf16.mxu0 %v12707_v39  ;;  %6722 = vmatpush1.bf16.msra.mxu0 %v8403_v25 }
 0x27c   :  { %v12956_v16 = vrot.slane %v7653_v49, 3  ;;  %v7734_v46 = vcombine.high %v12962_v40, %v12952_v34  ;;  %v12975_v44 = vadd.f32 %v2712_v19, %v2384_v29  ;;  %vm14577_vm14 = vcmp.lt.s32.totalorder %v14576_v58, 6  ;;  %v14583_v19 = vld [vmem:[#allocation56_spill] sm:$0xff]  ;;  %v14585_v58 = vld [vmem:[#allocation43_spill] sm:$0xff]  ;;  %6723 = vmatprep.subr.bf16.mxu0 %v8408_v45  ;;  %6321 = vmatprep.mubr.bf16.mxu1 %v6040_v28 }
 0x27d   :  { %vm14579_vm12 = vcmp.lt.s32.totalorder %v14578_v15, 42  ;;  %v6045_v10 = vshll.u32 %v12943_v56, 16  ;;  %v5849_v49 = vsel %vm10626_vm15, %v5844_v50, %v5848_v54  ;;  %v12988_v0 = vrot.slane %v7652_v38, 3  ;;  %v8406_v38 = vld [vmem:[%s13877_s3 + $0x860] ss:$8 sps:$4 sm:$0xff]   ;;  %v14606_v45 = vld [vmem:[#allocation44_spill] sm:$0xff] }
 0x27e   :  { %v12973_v6 = vsel %vm14040_vm7, %v12840_v37, %v12956_v16  ;;  %14575 = vst [vmem:[#allocation34_spill] sm:$0xff] %v12975_v44  ;;  %vm12981_vm3 = vmand %vm14579_vm12, %vm14577_vm14  ;;  %v14582_v37 = vrot.slane %v11849_v17, 5  ;;  %vm14584_vm8 = vcmp.lt.s32.totalorder %v14583_v19, 6  ;;  %vm14586_vm13 = vcmp.lt.s32.totalorder %v14585_v58, 42 }
 0x27f   :  { %vm12996_vm2 = vmand %vm14586_vm13, %vm14584_vm8  ;;  %v6053_v56 = vrot.slane %v6051_v3, 3  ;;  %v14590_v44 = vrot.slane %v14589_v36, 5  ;;  %v13003_v50 = vadd.f32 %v2714_v30, %v2386_v43  ;;  %v13005_v54 = vadd.f32 %v2716_v55, %v2388_v13  ;;  %v14594_v3 = vld [vmem:[#allocation18_spill] sm:$0xff]  ;;  %v13037_v13 = vld [vmem:[#allocation2 + $0x70] sm:$0xff]  ;;  %6724 = vmatpush1.bf16.msra.mxu0 %v8406_v38 }
 0x280   :  { %v5211_v29 = vrot.slane %v14582_v37, 4  ;;  %v6056_v17 = vrot.slane %v6054_v27, 4  ;;  %v13011_v37 = vld [vmem:[#allocation2 + $0x78] sm:$0x11]  ;;  %vm13013_vm15 = vcmp.ne.s16.totalorder %v5850_v42, 0  ;;  %v13020_v43 = vsel %vm14040_vm7, %v12884_v51, %v12988_v0 }
 0x281   :  { %v5214_v35 = vrot.slane %v14590_v44, 4  ;;  %v14593_v30 = vmov %v14590_v44  ;;  %vm14595_vm0 = vcmp.lt.s32.totalorder %v14594_v3, 6  ;;  %v14596_v27 = vld [vmem:[#allocation17_spill] sm:$0xff]  ;;  %v6069_v42 = vshrl.u32 %v7734_v46, 16  ;;  %v14602_v44 = vld [vmem:[#allocation35_spill] sm:$0xff] }
 0x282   :  { %v5213_v39 = vsel %vm12358_vm4, %v5211_v29, %v14593_v30  ;;  %vm14597_vm14 = vcmp.lt.s32.totalorder %v14596_v27, 42  ;;  %v8411_v51 = vld [vmem:[%s13877_s3 + $0x854] ss:$8 sps:$4 sm:$0xff]   ;;  %vm13039_vm8 = vcmp.ne.s16.totalorder %v5849_v49, 0  ;;  %v14603_v55 = vrot.slane %v14602_v44, 5  ;;  %v14613_v3 = vld [vmem:[#allocation15_spill] sm:$0xff]  ;;  %5576 = vmatmul.mubr.bf16.gmra.mxu0 %v12786_v21 }
 0x283   :  { %vm13030_vm12 = vmand %vm14597_vm14, %vm14595_vm0  ;;  %vm5230_vm13 = vcmp.ne.s16.totalorder %v5213_v39, 0  ;;  %vm14605_vm1 = vcmp.lt.s32.totalorder %v14604_v59, 6  ;;  %vm14607_vm9 = vcmp.lt.s32.totalorder %v14606_v45, 42  ;;  %v6044_v19 = vrot.slane %v6042_v22, 3  ;;  %v14611_v39 = vld [vmem:[#allocation16_spill] sm:$0xff]  ;;  %6725 = vmatprep.subr.bf16.mxu0 %v8411_v51  ;;  %v14620_v51 = vld [vmem:[#allocation27_spill] sm:$0xff]  ;;  %5585 = vmatprep.mubr.bf16.mxu0 %v12864_v20 }
 0x284   :  { %v5216_v29 = vsel %vm12358_vm4, %v5214_v35, %v14603_v55  ;;  %vm13057_vm6 = vmand %vm14607_vm9, %vm14605_vm1  ;;  %v6072_v58 = vshll.u32 %v7734_v46, 16  ;;  %v14610_v35 = vmov %v14603_v55  ;;  %vm14612_vm0 = vcmp.lt.s32.totalorder %v14611_v39, 6  ;;  %v8409_v46 = vld [vmem:[%s13877_s3 + $0x850] ss:$8 sps:$4 sm:$0xff]   ;;  %v8414_v36 = vld [vmem:[%s13877_s3 + $0x844] ss:$8 sps:$4 sm:$0xff]  }
 0x285   :  { %vm5231_vm7 = vcmp.ne.s16.totalorder %v5216_v29, 0  ;;  %v5217_v30 = vrot.slane %v14610_v35, 4  ;;  %vm14614_vm11 = vcmp.lt.s32.totalorder %v14613_v3, 42  ;;  %v6047_v55 = vrot.slane %v6045_v10, 4  ;;  %vm6441_vm1 = vmpackc.low %vm13030_vm12, %vm13030_vm12  ;;  %6726 = vmatpush1.bf16.msra.mxu0 %v8409_v46  ;;  %v8412_v21 = vld [vmem:[%s13877_s3 + $0x840] ss:$8 sps:$4 sm:$0xff]  }
 0x286   :  { %vm13067_vm14 = vmand %vm14614_vm11, %vm14612_vm0  ;;  %v13074_v59 = vsel %vm13013_vm15, %v13011_v37, 0  ;;  %v5243_v28 = vsel %vm5230_vm13, %v12586_v26, 0  ;;  %v5244_v22 = vsel %vm5231_vm7, %v12588_v2, 0  ;;  %v13087_v10 = vsel %vm13039_vm8, %v13037_v13, 0  ;;  %6727 = vmatprep.subr.bf16.mxu0 %v8414_v36  ;;  %v8418_v39 = vld [vmem:[%s13877_s3 + $0x820] ss:$8 sps:$4 sm:$0xff]  }
 0x287   :  { %v7655_v8 = vcombine.high %v5243_v28, %v5244_v22  ;;  %v7654_v44 = vcombine.low %v5243_v28, %v5244_v22  ;;  %v14617_v26 = vrot.slane %v12083_v57, 5  ;;  %vm6442_vm11 = vmpackc.low %vm13057_vm6, %vm13057_vm6  ;;  %v13096_v38 = vor.u32 %v6056_v17, %v6053_v56  ;;  %v14618_v17 = vld [vmem:[#allocation64_spill] sm:$0xff] }
 0x288   :  { %v6071_v29 = vrot.slane %v6069_v42, 3  ;;  %v13103_v45 = vcombine.low %v12962_v40, %v12952_v34  ;;  %v6074_v7 = vrot.slane %v6072_v58, 4  ;;  %vm14619_vm7 = vcmp.lt.s32.totalorder %v14618_v17, 6  ;;  %vm13126_vm13 = vmand %vm1613_vm10, %vm1639_vm5  ;;  %v13170_v17 = vpop.f32.mrf.mxu1 }
 0x289   :  { %v5219_v2 = vsel %vm12358_vm4, %v5217_v30, %v14617_v26  ;;  %vm6443_vm4 = vmpackc.low %vm13067_vm14, %vm13067_vm14  ;;  %v5353_v57 = vrot.slane %v7655_v8, 3  ;;  %v5351_v35 = vrot.slane %v7654_v44, 3  ;;  %vm14621_vm15 = vcmp.lt.s32.totalorder %v14620_v51, 42  ;;  %v14631_v44 = vld [vmem:[#allocation73_spill] sm:$0xff]  ;;  %v14633_v26 = vld [vmem:[#allocation40_spill] sm:$0xff]  ;;  %6728 = vmatpush1.bf16.msra.mxu0 %v8412_v21 }
 0x28a   :  { %vm5232_vm9 = vcmp.ne.s16.totalorder %v5219_v2, 0  ;;  %vm13113_vm8 = vmand %vm14621_vm15, %vm14619_vm7  ;;  %v13120_v34 = vcombine.high %v13087_v10, %v13074_v59  ;;  %vm14628_vm0 = vsmask.f32 4352  ;;  %vm14632_vm10 = vcmp.lt.s32.totalorder %v14631_v44, 6  ;;  %v2722_v49 = vpop.f32.mrf.mxu1  ;;  %5586 = vmatmul.mubr.bf16.gmra.mxu0 %v12917_v4 }
 0x28b   :  { %v5245_v56 = vsel %vm5232_vm9, %v13037_v13, 0  ;;  %v6031_v28 = vsel %vm14628_vm0, %v12894_v14, %v12954_v33  ;;  %vm14629_vm9 = vcmask 1044480   ;;  %vm14634_vm7 = vcmp.lt.s32.totalorder %v14633_v26, 42  ;;  %5595 = vmatprep.mubr.bf16.mxu0 %v12973_v6 }
 0x28c   :  { %v7657_v40 = vcombine.high %v5245_v56, %v5245_v56  ;;  %v7656_v58 = vcombine.low %v5245_v56, %v5245_v56  ;;  %v13139_v22 = vsel %vm14629_vm9, %v12956_v16, %v5353_v57  ;;  %vm14630_vm5 = vmmov %vm14629_vm9  ;;  %6322 = vmatmul.mubr.bf16.gmra.mxu1 %v6031_v28  ;;  %v6058_v20 = vsel %vm14628_vm0, %v12899_v47, %v13096_v38  ;;  %v8417_v16 = vld [vmem:[%s13877_s3 + $0x834] ss:$8 sps:$4 sm:$0xff]   ;;  %v2724_v6 = vpop.f32.mrf.mxu1 }
 0x28d   :  { %v13143_v8 = vsel %vm14630_vm5, %v12988_v0, %v5351_v35  ;;  %vm13149_vm15 = vmand %vm14634_vm7, %vm14632_vm10  ;;  %6331 = vmatprep.mubr.bf16.mxu1 %v6058_v20  ;;  %v13166_v2 = vor.u32 %v6047_v55, %v6044_v19  ;;  %v13168_v56 = vor.u32 %v6074_v7, %v6071_v29  ;;  %v6060_v47 = vshrl.u32 %v13103_v45, 16  ;;  %v8415_v29 = vld [vmem:[%s13877_s3 + $0x830] ss:$8 sps:$4 sm:$0xff]   ;;  %6729 = vmatprep.subr.bf16.mxu0 %v8417_v16 }
 0x28e   :  { %v13159_v0 = vrot.slane %v7657_v40, 3  ;;  %v13161_v46 = vrot.slane %v7656_v58, 3  ;;  %vm6444_vm9 = vmpackc.low %vm13113_vm8, %vm13113_vm8  ;;  %v6063_v36 = vshll.u32 %v13103_v45, 16  ;;  %v6087_v51 = vshrl.u32 %v13120_v34, 16  ;;  %6730 = vmatpush1.bf16.msra.mxu0 %v8415_v29 }
 0x28f   :  { %vm6445_vm5 = vmpackc.low %vm13126_vm13, %vm13126_vm13  ;;  %v6090_v40 = vshll.u32 %v13120_v34, 16  ;;  %vm14637_vm10 = vcmask 1044480   ;;  %v13252_v34 = vsel %vm6444_vm9, %v12945_v24, 0  ;;  %vm14641_vm6 = vsmask.f32 4352 }
 0x290   :  { %v13181_v19 = vsel %vm14637_vm10, %v5353_v57, %v13159_v0  ;;  %vm14638_vm7 = vmmov %vm14637_vm10  ;;  %v13215_v57 = vsel %vm6441_vm1, %v12648_v63, 0  ;;  %v13260_v58 = vsel %vm6445_vm5, %v12923_v53, 0  ;;  %v6049_v30 = vsel %vm14641_vm6, %v12954_v33, %v13166_v2  ;;  %v8423_v33 = vld [vmem:[%s13877_s3 + $0x814] ss:$8 sps:$4 sm:$0xff]  }
 0x291   :  { %v13185_v55 = vsel %vm14638_vm7, %v5351_v35, %v13161_v46  ;;  %vm6446_vm0 = vmpackc.low %vm13149_vm15, %vm13149_vm15  ;;  %v13244_v35 = vsel %vm6443_vm4, %v12828_v5, 0  ;;  %v6062_v4 = vrot.slane %v6060_v47, 3  ;;  %v7735_v3 = vcombine.low %v13087_v10, %v13074_v59  ;;  %v8421_v59 = vld [vmem:[%s13877_s3 + $0x810] ss:$8 sps:$4 sm:$0xff]  }
 0x292   :  { %vm14639_vm10 = vmpackc.low %vm12981_vm3, %vm12981_vm3  ;;  %v13268_v5 = vsel %vm6446_vm0, %v13037_v13, 0  ;;  %v7809_v24 = vcombine.low %v13244_v35, %v13252_v34  ;;  %v7810_v27 = vcombine.high %v13244_v35, %v13252_v34  ;;  %v6065_v13 = vrot.slane %v6063_v36, 4  ;;  %v8426_v36 = vld [vmem:[%s13877_s3 + $0x804] ss:$8 sps:$4 sm:$0xff]   ;;  %5596 = vmatmul.mubr.bf16.gmra.mxu0 %v13020_v43  ;;  %v8429_v43 = vld [vmem:[%s13877_s3 + $0x8f4] ss:$8 sps:$4 sm:$0xff]  }
 0x293   :  { %v13199_v45 = vsel %vm14639_vm10, %v12609_v12, 0  ;;  %vm14640_vm7 = vmpackc.low %vm12996_vm2, %vm12996_vm2  ;;  %v13223_v12 = vsel %vm6442_vm11, %v12869_v41, 0  ;;  %v13236_v41 = vpop.f32.mrf.mxu0  ;;  %v7811_v53 = vcombine.low %v13260_v58, %v13268_v5  ;;  %v7812_v42 = vcombine.high %v13260_v58, %v13268_v5  ;;  %5605 = vmatprep.mubr.bf16.mxu0 %v13139_v22  ;;  %v8427_v22 = vld [vmem:[%s13877_s3 + $0x8f0] ss:$8 sps:$4 sm:$0xff]  }
 0x294   :  { %v13207_v7 = vsel %vm14640_vm7, %v12674_v61, 0  ;;  %v8420_v61 = vld [vmem:[%s13877_s3 + $0x824] ss:$8 sps:$4 sm:$0xff]   ;;  %v7807_v15 = vcombine.low %v13215_v57, %v13223_v12  ;;  %v7808_v25 = vcombine.high %v13215_v57, %v13223_v12  ;;  %6332 = vmatmul.mubr.bf16.gmra.mxu1 %v6049_v30  ;;  %vm14642_vm3 = vmmov %vm14641_vm6  ;;  %v6089_v21 = vrot.slane %v6087_v51, 3  ;;  %v14684_v57 = vld [vmem:[#allocation13_spill] sm:$0xff] }
 0x295   :  { %v7805_v62 = vcombine.low %v13199_v45, %v13207_v7  ;;  %v7806_v63 = vcombine.high %v13199_v45, %v13207_v7  ;;  %v6076_v28 = vsel %vm14642_vm3, %v13096_v38, %v13168_v56  ;;  %v6092_v44 = vrot.slane %v6090_v40, 4  ;;  %6731 = vmatprep.subr.bf16.mxu0 %v8420_v61  ;;  %v2394_v26 = vpop.f32.mrf.mxu0  ;;  %v2726_v40 = vpop.f32.mrf.mxu1  ;;  %vm14643_vm2 = vmmov %vm14642_vm3  ;;  %v14683_v45 = vld [vmem:[#allocation34_spill] sm:$0xff]  ;;  %v14686_v12 = vld [vmem:[#allocation79_spill] sm:$0xff] }
 0x296   :  { %6341 = vmatprep.mubr.bf16.mxu1 %v6076_v28  ;;  %v13294_v14 = vadd.f32 %v2722_v49, %v2394_v26  ;;  %v6066_v20 = vor.u32 %v6065_v13, %v6062_v4  ;;  %6732 = vmatpush1.bf16.msra.mxu0 %v8418_v39  ;;  %v6078_v10 = vshrl.u32 %v7735_v3, 16  ;;  %v6081_v38 = vshll.u32 %v7735_v3, 16  ;;  %v8424_v13 = vld [vmem:[%s13877_s3 + $0x800] ss:$8 sps:$4 sm:$0xff]   ;;  %vm14644_vm12 = vmmov %vm14643_vm2  ;;  %v8432_v28 = vld [vmem:[%s13877_s3 + $0x8e4] ss:$8 sps:$4 sm:$0xff]  }
 0x297   :  { %v2396_v16 = vpop.f32.mrf.mxu0  ;;  %v6093_v47 = vor.u32 %v6092_v44, %v6089_v21  ;;  %6733 = vmatprep.subr.bf16.mxu0 %v8423_v33  ;;  %v13321_v3 = vpop.f32.mrf.mxu1  ;;  %vm14645_vm14 = vmmov %vm14643_vm2  ;;  %v8430_v21 = vld [vmem:[%s13877_s3 + $0x8e0] ss:$8 sps:$4 sm:$0xff]   ;;  %v8435_v33 = vld [vmem:[%s13877_s3 + $0x8d4] ss:$8 sps:$4 sm:$0xff]  }
 0x298   :  { %v13302_v51 = vadd.f32 %v2724_v6, %v2396_v16  ;;  %v6067_v49 = vsel %vm14643_vm2, %v13166_v2, %v6066_v20  ;;  %v6080_v30 = vrot.slane %v6078_v10, 3  ;;  %v6083_v4 = vrot.slane %v6081_v38, 4  ;;  %v8438_v26 = vld [vmem:[%s13877_s3 + $0x8c4] ss:$8 sps:$4 sm:$0xff]   ;;  %v14652_v38 = vld [vmem:[#allocation9_spill] sm:$0xff]  ;;  %v14654_v16 = vld [vmem:[#allocation4_spill] sm:$0xff] }
 0x299   :  { %v2398_v29 = vpop.f32.mrf.mxu0  ;;  %v6094_v39 = vsel %vm14644_vm12, %v13168_v56, %v6093_v47  ;;  %v2732_v44 = vpop.f32.mrf.mxu1  ;;  %vm14653_vm8 = vcmp.lt.s32.totalorder %v14652_v38, 6  ;;  %vm14655_vm13 = vcmp.lt.s32.totalorder %v14654_v16, 42 }
 0x29a   :  { %v13305_v61 = vadd.f32 %v2726_v40, %v2398_v29  ;;  %6734 = vmatpush1.bf16.msra.mxu0 %v8421_v59  ;;  %v6084_v2 = vor.u32 %v6083_v4, %v6080_v30  ;;  %v14648_v59 = vld [vmem:[#allocation5_spill] sm:$0xff]  ;;  %vm13356_vm15 = vmand %vm14655_vm13, %vm14653_vm8  ;;  %v8436_v40 = vld [vmem:[%s13877_s3 + $0x8c0] ss:$8 sps:$4 sm:$0xff]   ;;  %vm7043_vm13 = vcmask 519168  }
 0x29b   :  { %6735 = vmatprep.subr.bf16.mxu0 %v8426_v36  ;;  %5606 = vmatmul.mubr.bf16.gmra.mxu0 %v13143_v8  ;;  %v13335_v6 = vpop.f32.mrf.mxu0  ;;  %v8433_v8 = vld [vmem:[%s13877_s3 + $0x8d0] ss:$8 sps:$4 sm:$0xff]   ;;  %vm14649_vm11 = vcmp.lt.s32.totalorder %v14648_v59, 42  ;;  %vm6435_vm5 = vmpackc.low %vm13356_vm15, %vm13356_vm15  ;;  %v8479_v4 = vld [vmem:[#allocation2 + $0x20] sm:$0xff]  ;;  %vm7056_vm15 = vcmask 516096  }
 0x29c   :  { %6342 = vmatmul.mubr.bf16.gmra.mxu1 %v6067_v49  ;;  %v6085_v56 = vsel %vm14645_vm14, %v6066_v20, %v6084_v2  ;;  %5615 = vmatprep.mubr.bf16.mxu0 %v13181_v19  ;;  %v2734_v19 = vpop.f32.mrf.mxu1  ;;  %v14646_v20 = vld [vmem:[#allocation8_spill] sm:$0xff] }
 0x29d   :  { %6351 = vmatprep.mubr.bf16.mxu1 %v6094_v39  ;;  %vm14647_vm1 = vcmp.lt.s32.totalorder %v14646_v20, 6  ;;  %v2404_v36 = vpop.f32.mrf.mxu0  ;;  %v8441_v49 = vld [vmem:[%s13877_s3 + $0x8b4] ss:$8 sps:$4 sm:$0xff]  }
 0x29e   :  { %6736 = vmatpush1.bf16.msra.mxu0 %v8424_v13  ;;  %vm13347_vm4 = vmand %vm14649_vm11, %vm14647_vm1  ;;  %v13367_v29 = vadd.f32 %v2732_v44, %v2404_v36  ;;  %v8447_v59 = vld [vmem:[%s13877_s3 + $0x894] ss:$8 sps:$4 sm:$0xff]   ;;  %v8445_v36 = vld [vmem:[%s13877_s3 + $0x890] ss:$8 sps:$4 sm:$0xff]   ;;  %vm14685_vm1 = vcmp.lt.s32.totalorder %v14684_v57, 6  ;;  %vm14687_vm11 = vcmp.lt.s32.totalorder %v14686_v12, 42 }
 0x29f   :  { %6737 = vmatprep.subr.bf16.mxu0 %v8429_v43  ;;  %vm6436_vm9 = vmpackc.low %vm13347_vm4, %vm13347_vm4  ;;  %v2406_v30 = vpop.f32.mrf.mxu0  ;;  %v8439_v43 = vld [vmem:[%s13877_s3 + $0x8b0] ss:$8 sps:$4 sm:$0xff]  }
 0x2a0   :  { %v6449_v13 = vsel %vm6436_vm9, %v8479_v4, 0  ;;  %vm13506_vm4 = vmand %vm14687_vm11, %vm14685_vm1 }
 0x2a1   :  { %v2408_v39 = vpop.f32.mrf.mxu0  ;;  %vm6447_vm8 = vmpackc.low %vm13506_vm4, %vm13506_vm4 }
 0x2a2   :  { %6738 = vmatpush2.bf16.msra.mxu0 %v8427_v22 }
 0x2a3   :  { %6739 = vmatprep.subr.bf16.mxu0 %v8432_v28  ;;  %5616 = vmatmul.mubr.bf16.gmra.mxu0 %v13185_v55  ;;  %v2736_v55 = vpop.f32.mrf.mxu1  ;;  %v8480_v28 = vld [vmem:[#allocation2 + $0x18] sm:$0xff]  ;;  %v2410_v44 = vpop.f32.mrf.mxu0 }
 0x2a4   :  { %6352 = vmatmul.mubr.bf16.gmra.mxu1 %v6085_v56  ;;  %5625 = vmatprep.mubr.bf16.mxu0 %v13159_v0  ;;  %v13375_v0 = vadd.f32 %v2734_v19, %v2406_v30  ;;  %v13380_v22 = vadd.f32 %v2736_v55, %v2408_v39  ;;  %v6448_v56 = vsel %vm6435_vm5, %v8480_v28, 0  ;;  %v8450_v55 = vld [vmem:[%s13877_s3 + $0x884] ss:$8 sps:$4 sm:$0xff]  }
 0x2a5   :  { %6361 = vmatprep.mubr.bf16.mxu1 %v6093_v47  ;;  %v2414_v19 = vpop.f32.mrf.mxu0  ;;  %v14660_v30 = vld [vmem:[#allocation7_spill] sm:$0xff]  ;;  %v14666_v28 = vld [vmem:[#allocation6_spill] sm:$0xff]  ;;  %v7801_v4 = vcombine.low %v6448_v56, %v6449_v13 }
 0x2a6   :  { %6740 = vmatpush2.bf16.msra.mxu0 %v8430_v21  ;;  %v8444_v21 = vld [vmem:[%s13877_s3 + $0x8a4] ss:$8 sps:$4 sm:$0xff]   ;;  %vm14661_vm10 = vcmp.lt.s32.totalorder %v14660_v30, 42  ;;  %vm14667_vm3 = vcmp.lt.s32.totalorder %v14666_v28, 42  ;;  %v14672_v30 = vld [vmem:[#allocation29_spill] sm:$0xff] }
 0x2a7   :  { %6741 = vmatprep.subr.bf16.mxu0 %v8435_v33  ;;  %v7802_v33 = vcombine.high %v6448_v56, %v6449_v13  ;;  %v2416_v38 = vpop.f32.mrf.mxu0 }
 0x2aa   :  { %6742 = vmatpush2.bf16.msra.mxu0 %v8433_v8 }
 0x2ab   :  { %6743 = vmatprep.subr.bf16.mxu0 %v8438_v26  ;;  %5626 = vmatmul.mubr.bf16.gmra.mxu0 %v13161_v46  ;;  %v8442_v26 = vld [vmem:[%s13877_s3 + $0x8a0] ss:$8 sps:$4 sm:$0xff]   ;;  %v2418_v46 = vpop.f32.mrf.mxu0 }
 0x2ac   :  { %6362 = vmatmul.mubr.bf16.gmra.mxu1 %v6084_v2  ;;  %v2738_v2 = vpop.f32.mrf.mxu1  ;;  %6753 = vmatprep.mubr.bf16.mxu0 %v7802_v33 }
 0x2ad   :  { %v13385_v8 = vadd.f32 %v2738_v2, %v2410_v44  ;;  %v2419_v39 = vpop.f32.mrf.mxu0  ;;  %v14664_v2 = vld [vmem:[#allocation20_spill] sm:$0xff]  ;;  %v8448_v44 = vld [vmem:[%s13877_s3 + $0x880] ss:$8 sps:$4 sm:$0xff]  }
 0x2ae   :  { %6744 = vmatpush2.bf16.msra.mxu0 %v8436_v40  ;;  %v2742_v20 = vpop.f32.mrf.mxu1  ;;  %vm14665_vm6 = vcmp.lt.s32.totalorder %v14664_v2, 6 }
 0x2af   :  { %6745 = vmatprep.subr.bf16.mxu0 %v8441_v49  ;;  %v13394_v10 = vadd.f32 %v2742_v20, %v2414_v19  ;;  %v14658_v49 = vld [vmem:[#allocation26_spill] sm:$0xff]  ;;  %vm13416_vm2 = vmand %vm14667_vm3, %vm14665_vm6  ;;  %v3202_v33 = vpop.f32.mrf.mxu0 }
 0x2b0   :  { %v2744_v16 = vpop.f32.mrf.mxu1  ;;  %vm14659_vm0 = vcmp.lt.s32.totalorder %v14658_v49, 6  ;;  %vm6437_vm14 = vmpackc.low %vm13416_vm2, %vm13416_vm2  ;;  %v14671_v49 = vld [vmem:[#allocation22_spill] sm:$0xff] }
 0x2b1   :  { %v13396_v47 = vadd.f32 %v2744_v16, %v2416_v38  ;;  %vm13408_vm7 = vmand %vm14661_vm10, %vm14659_vm0  ;;  %v3204_v20 = vpop.f32.mrf.mxu0 }
 0x2b2   :  { %6746 = vmatpush2.bf16.msra.mxu0 %v8439_v43  ;;  %v2746_v40 = vpop.f32.mrf.mxu1  ;;  %vm6438_vm12 = vmpackc.low %vm13408_vm7, %vm13408_vm7 }
 0x2b3   :  { %6747 = vmatprep.subr.bf16.mxu0 %v8444_v21  ;;  %v6451_v46 = vsel %vm6438_vm12, %v12642_v60, 0 }
 0x2b4   :  { %v2747_v43 = vpop.f32.mrf.mxu1 }
 0x2b5   :  { %v8481_v43 = vld [vmem:[#allocation2 + $0x28] sm:$0xff] }
 0x2b6   :  { %6748 = vmatpush2.bf16.msra.mxu0 %v8442_v26  ;;  %v3942_v19 = vpop.f32.mrf.mxu1  ;;  %v3269_v26 = vadd.f32 %v3202_v33, %v12536_v31  ;;  %v3206_v31 = vpop.f32.mrf.mxu0  ;;  %v6450_v2 = vsel %vm6437_vm14, %v8481_v43, 0 }
 0x2b7   :  { %6749 = vmatprep.subr.bf16.mxu0 %v8447_v59  ;;  %v14670_v59 = vld [vmem:[#allocation46_spill] sm:$0xff] }
 0x2b8   :  { %v2687_v38 = vadd.f32 %v14670_v59, %v12381_v1  ;;  %v3944_v16 = vpop.f32.mrf.mxu1  ;;  %v13434_v40 = vadd.f32 %v3942_v19, %v3269_v26  ;;  %v7804_v1 = vcombine.high %v6450_v2, %v6451_v46  ;;  %v3208_v33 = vpop.f32.mrf.mxu0 }
 0x2ba   :  { %6750 = vmatpush2.bf16.msra.mxu0 %v8445_v36  ;;  %v3270_v36 = vadd.f32 %v3204_v20, %v12565_v32  ;;  %v3946_v39 = vpop.f32.mrf.mxu1  ;;  %v3271_v28 = vadd.f32 %v3206_v31, %v2687_v38  ;;  %v14674_v20 = vld [vmem:[#allocation12_spill] sm:$0xff]  ;;  %v2695_v38 = vadd.f32 %v12557_v23, %v12538_v11 }
 0x2bb   :  { %6751 = vmatprep.subr.bf16.mxu0 %v8450_v55  ;;  %v2689_v55 = vadd.f32 %v14672_v30, %v14671_v49  ;;  %v3212_v49 = vpop.f32.mrf.mxu0  ;;  %v7803_v30 = vcombine.low %v6450_v2, %v6451_v46 }
 0x2bc   :  { %v13438_v21 = vadd.f32 %v3944_v16, %v3270_v36  ;;  %v3948_v59 = vpop.f32.mrf.mxu1  ;;  %v13440_v32 = vadd.f32 %v3946_v39, %v3271_v28 }
 0x2bd   :  { %v3272_v60 = vadd.f32 %v3208_v33, %v2689_v55  ;;  %v3214_v31 = vpop.f32.mrf.mxu0  ;;  %v14676_v55 = vld [vmem:[#allocation38_spill] sm:$0xff] }
 0x2be   :  { %6752 = vmatpush2.bf16.msra.mxu0 %v8448_v44  ;;  %v3952_v19 = vpop.f32.mrf.mxu1  ;;  %v14673_v44 = vld [vmem:[#allocation28_spill] sm:$0xff]  ;;  %v3274_v43 = vadd.f32 %v3214_v31, %v2695_v38  ;;  %v14681_v31 = vld [vmem:[#allocation78_spill] sm:$0xff] }
 0x2bf   :  { %v13442_v26 = vadd.f32 %v3948_v59, %v3272_v60  ;;  %v2693_v13 = vadd.f32 %v14674_v20, %v14673_v44  ;;  %v3216_v33 = vpop.f32.mrf.mxu0  ;;  %v14677_v59 = vld [vmem:[#allocation48_spill] sm:$0xff]  ;;  %v14678_v60 = vld [vmem:[#allocation41_spill] sm:$0xff] }
 0x2c0   :  { %v3954_v56 = vpop.f32.mrf.mxu1  ;;  %v2699_v44 = vadd.f32 %v14678_v60, %v14677_v59  ;;  %v14679_v20 = vld [vmem:[#allocation77_spill] sm:$0xff] }
 0x2c1   :  { %6754 = vmatmul.mubr.bf16.vlgmr.msra.gmra.mxu0 %v7801_v4  ;;  %v3273_v16 = vadd.f32 %v3212_v49, %v2693_v13  ;;  %v14675_v4 = vld [vmem:[#allocation45_spill] sm:$0xff]  ;;  %v13457_v23 = vadd.f32 %v3954_v56, %v3274_v43  ;;  %v3218_v2 = vpop.f32.mrf.mxu0  ;;  %v14680_v13 = vld [vmem:[#allocation74_spill] sm:$0xff]  ;;  %v14682_v56 = vld [vmem:[#allocation24_spill] sm:$0xff] }
 0x2c2   :  { %6763 = vmatprep.mubr.bf16.mxu0 %v7804_v1  ;;  %v3956_v36 = vpop.f32.mrf.mxu1  ;;  %v2697_v39 = vadd.f32 %v14676_v55, %v14675_v4  ;;  %v2703_v49 = vadd.f32 %v14680_v13, %v14679_v20  ;;  %v2705_v4 = vadd.f32 %v14681_v31, %v12761_v9  ;;  %v2707_v43 = vadd.f32 %v14682_v56, %v12803_v52 }
 0x2c3   :  { %v13450_v28 = vadd.f32 %v3952_v19, %v3273_v16  ;;  %v3276_v19 = vadd.f32 %v3218_v2, %v2699_v44  ;;  %v2709_v9 = vadd.f32 %v12866_v18, %v12848_v48  ;;  %v2719_v31 = vadd.f32 %v13170_v17, %v13236_v41 }
 0x2c4   :  { %v3958_v1 = vpop.f32.mrf.mxu1  ;;  %v3275_v11 = vadd.f32 %v3216_v33, %v2697_v39 }
 0x2c5   :  { %v13465_v59 = vadd.f32 %v3958_v1, %v3276_v19 }
 0x2c6   :  { %v3962_v46 = vpop.f32.mrf.mxu1  ;;  %v13461_v38 = vadd.f32 %v3956_v36, %v3275_v11 }
 0x2c8   :  { %v3964_v16 = vpop.f32.mrf.mxu1 }
 0x2c9   :  { %6764 = vmatmul.mubr.bf16.gmra.mxu0 %v7803_v30  ;;  %v3222_v30 = vpop.f32.mrf.mxu0 }
 0x2ca   :  { %6773 = vmatprep.mubr.bf16.mxu0 %v7806_v63  ;;  %v3277_v55 = vadd.f32 %v3222_v30, %v2703_v49  ;;  %v3966_v63 = vpop.f32.mrf.mxu1 }
 0x2cb   :  { %v3224_v39 = vpop.f32.mrf.mxu0 }
 0x2cc   :  { %v3278_v33 = vadd.f32 %v3224_v39, %v2705_v4  ;;  %v13469_v60 = vadd.f32 %v3962_v46, %v3277_v55  ;;  %v3968_v20 = vpop.f32.mrf.mxu1 }
 0x2cd   :  { %v3226_v36 = vpop.f32.mrf.mxu0 }
 0x2ce   :  { %v3279_v1 = vadd.f32 %v3226_v36, %v2707_v43  ;;  %v13479_v44 = vadd.f32 %v3964_v16, %v3278_v33  ;;  %v3972_v52 = vpop.f32.mrf.mxu1 }
 0x2cf   :  { %v3228_v11 = vpop.f32.mrf.mxu0 }
 0x2d0   :  { %v3280_v46 = vadd.f32 %v3228_v11, %v2709_v9  ;;  %v13481_v2 = vadd.f32 %v3966_v63, %v3279_v1  ;;  %v3974_v13 = vpop.f32.mrf.mxu1 }
 0x2d1   :  { %6774 = vmatmul.mubr.bf16.gmra.mxu0 %v7805_v62  ;;  %v3232_v49 = vpop.f32.mrf.mxu0 }
 0x2d2   :  { %6783 = vmatprep.mubr.bf16.mxu0 %v7808_v25  ;;  %v3281_v7 = vadd.f32 %v3232_v49, %v14683_v45  ;;  %v13484_v62 = vadd.f32 %v3968_v20, %v3280_v46  ;;  %v3976_v19 = vpop.f32.mrf.mxu1  ;;  %v6460_v46 = vsel %vm6447_vm8, %v13011_v37, 0 }
 0x2d3   :  { %v3234_v48 = vpop.f32.mrf.mxu0  ;;  %v7814_v45 = vcombine.high %v6460_v46, %v6460_v46 }
 0x2d4   :  { %v3282_v18 = vadd.f32 %v3234_v48, %v13003_v50  ;;  %v13487_v30 = vadd.f32 %v3972_v52, %v3281_v7  ;;  %v3978_v25 = vpop.f32.mrf.mxu1 }
 0x2d5   :  { %v3236_v16 = vpop.f32.mrf.mxu0 }
 0x2d6   :  { %v3283_v4 = vadd.f32 %v3236_v16, %v13005_v54  ;;  %v13498_v55 = vadd.f32 %v3974_v13, %v3282_v18  ;;  %v3982_v50 = vpop.f32.mrf.mxu1 }
 0x2d7   :  { %v3238_v63 = vpop.f32.mrf.mxu0 }
 0x2d8   :  { %v3284_v39 = vadd.f32 %v3238_v63, %v2719_v31  ;;  %v13500_v56 = vadd.f32 %v3976_v19, %v3283_v4  ;;  %v3984_v43 = vpop.f32.mrf.mxu1 }
 0x2d9   :  { %6784 = vmatmul.mubr.bf16.gmra.mxu0 %v7807_v15  ;;  %v3242_v15 = vpop.f32.mrf.mxu0 }
 0x2da   :  { %6793 = vmatprep.mubr.bf16.mxu0 %v7810_v27  ;;  %v13510_v41 = vadd.f32 %v3978_v25, %v3284_v39  ;;  %v3986_v54 = vpop.f32.mrf.mxu1  ;;  %v3285_v27 = vadd.f32 %v3242_v15, %v13294_v14  ;;  %v2729_v14 = vadd.f32 %v13321_v3, %v13335_v6 }
 0x2db   :  { %v3244_v33 = vpop.f32.mrf.mxu0 }
 0x2dc   :  { %v3988_v20 = vpop.f32.mrf.mxu1  ;;  %v3286_v36 = vadd.f32 %v3244_v33, %v13302_v51  ;;  %v13520_v9 = vadd.f32 %v3982_v50, %v3285_v27  ;;  %v7813_v50 = vcombine.low %v6460_v46, %v6460_v46 }
 0x2dd   :  { %v3246_v1 = vpop.f32.mrf.mxu0 }
 0x2de   :  { %v3992_v52 = vpop.f32.mrf.mxu1  ;;  %v3287_v11 = vadd.f32 %v3246_v1, %v13305_v61  ;;  %v13529_v13 = vadd.f32 %v3984_v43, %v3286_v36 }
 0x2df   :  { %v3248_v35 = vpop.f32.mrf.mxu0 }
 0x2e0   :  { %v3994_v34 = vpop.f32.mrf.mxu1  ;;  %v13531_v51 = vadd.f32 %v3986_v54, %v3287_v11 }
 0x2e1   :  { %6794 = vmatmul.mubr.bf16.gmra.mxu0 %v7809_v24  ;;  %v3288_v24 = vadd.f32 %v3248_v35, %v2729_v14  ;;  %v3252_v49 = vpop.f32.mrf.mxu0 }
 0x2e2   :  { %6803 = vmatprep.mubr.bf16.mxu0 %v7812_v42  ;;  %v3996_v7 = vpop.f32.mrf.mxu1  ;;  %v3289_v42 = vadd.f32 %v3252_v49, %v13367_v29 }
 0x2e3   :  { %v13534_v19 = vadd.f32 %v3988_v20, %v3288_v24  ;;  %v3254_v3 = vpop.f32.mrf.mxu0 }
 0x2e4   :  { %v3998_v6 = vpop.f32.mrf.mxu1  ;;  %v3290_v37 = vadd.f32 %v3254_v3, %v13375_v0  ;;  %v13540_v61 = vadd.f32 %v3992_v52, %v3289_v42 }
 0x2e5   :  { %v3256_v48 = vpop.f32.mrf.mxu0 }
 0x2e6   :  { %v4002_v18 = vpop.f32.mrf.mxu1  ;;  %v3291_v25 = vadd.f32 %v3256_v48, %v13380_v22  ;;  %v13543_v16 = vadd.f32 %v3994_v34, %v3290_v37 }
 0x2e7   :  { %v3258_v29 = vpop.f32.mrf.mxu0 }
 0x2e8   :  { %v4004_v31 = vpop.f32.mrf.mxu1  ;;  %v3292_v4 = vadd.f32 %v3258_v29, %v13385_v8  ;;  %v13546_v63 = vadd.f32 %v3996_v7, %v3291_v25 }
 0x2e9   :  { %6804 = vmatmul.mubr.bf16.gmra.mxu0 %v7811_v53  ;;  %v3262_v58 = vpop.f32.mrf.mxu0 }
 0x2ea   :  { %6813 = vmatprep.mubr.bf16.mxu0 %v7814_v45  ;;  %v4006_v5 = vpop.f32.mrf.mxu1  ;;  %v3293_v53 = vadd.f32 %v3262_v58, %v13394_v10  ;;  %v13549_v0 = vadd.f32 %v3998_v6, %v3292_v4 }
 0x2eb   :  { %v3264_v39 = vpop.f32.mrf.mxu0 }
 0x2ec   :  { %v4007_v43 = vpop.f32.mrf.mxu1  ;;  %v3294_v22 = vadd.f32 %v3264_v39, %v13396_v47  ;;  %v13552_v57 = vadd.f32 %v4002_v18, %v3293_v53 }
 0x2ed   :  { %v3266_v12 = vpop.f32.mrf.mxu0 }
 0x2ee   :  { %v13554_v17 = vadd.f32 %v4004_v31, %v3294_v22  ;;  %v5020_v15 = vpop.f32.mrf.mxu1 }
 0x2ef   :  { %v3267_v8 = vpop.f32.mrf.mxu0 }
 0x2f0   :  { %v5022_v54 = vpop.f32.mrf.mxu1 }
 0x2f1   :  { %6814 = vmatmul.mubr.bf16.gmra.mxu0 %v7813_v50 }
 0x2f2   :  { %v5024_v27 = vpop.f32.mrf.mxu1  ;;  %v4329_v33 = vpop.f32.mrf.mxu0 }
 0x2f3   :  { %v4396_v10 = vadd.f32 %v4329_v33, %v13434_v40 }
 0x2f4   :  { %v5026_v20 = vpop.f32.mrf.mxu1  ;;  %v4331_v36 = vpop.f32.mrf.mxu0 }
 0x2f5   :  { %v4397_v14 = vadd.f32 %v4331_v36, %v13438_v21  ;;  %v13558_v52 = vadd.f32 %v5020_v15, %v4396_v10 }
 0x2f6   :  { %v5030_v1 = vpop.f32.mrf.mxu1  ;;  %v4333_v47 = vpop.f32.mrf.mxu0 }
 0x2f7   :  { %v4398_v46 = vadd.f32 %v4333_v47, %v13440_v32  ;;  %v13561_v35 = vadd.f32 %v5022_v54, %v4397_v14 }
 0x2f8   :  { %v5032_v11 = vpop.f32.mrf.mxu1  ;;  %v4335_v34 = vpop.f32.mrf.mxu0 }
 0x2f9   :  { %v4399_v49 = vadd.f32 %v4335_v34, %v13442_v26  ;;  %v13564_v45 = vadd.f32 %v5024_v27, %v4398_v46 }
 0x2fa   :  { %v5034_v24 = vpop.f32.mrf.mxu1  ;;  %v4339_v7 = vpop.f32.mrf.mxu0 }
 0x2fb   :  { %v4400_v42 = vadd.f32 %v4339_v7, %v13450_v28  ;;  %v13567_v3 = vadd.f32 %v5026_v20, %v4399_v49 }
 0x2fc   :  { %v5036_v40 = vpop.f32.mrf.mxu1  ;;  %v4341_v21 = vpop.f32.mrf.mxu0 }
 0x2fd   :  { %v4401_v37 = vadd.f32 %v4341_v21, %v13457_v23  ;;  %v13570_v48 = vadd.f32 %v5030_v1, %v4400_v42 }
 0x2fe   :  { %v5040_v6 = vpop.f32.mrf.mxu1  ;;  %v4343_v32 = vpop.f32.mrf.mxu0 }
 0x2ff   :  { %v4402_v25 = vadd.f32 %v4343_v32, %v13461_v38  ;;  %v13573_v29 = vadd.f32 %v5032_v11, %v4401_v37 }
 0x300   :  { %v5042_v18 = vpop.f32.mrf.mxu1  ;;  %v4345_v26 = vpop.f32.mrf.mxu0 }
 0x301   :  { %v4403_v4 = vadd.f32 %v4345_v26, %v13465_v59  ;;  %v13576_v50 = vadd.f32 %v5034_v24, %v4402_v25 }
 0x302   :  { %v5044_v31 = vpop.f32.mrf.mxu1 }
 0x303   :  { %v13579_v53 = vadd.f32 %v5036_v40, %v4403_v4 }
 0x304   :  { %v5046_v58 = vpop.f32.mrf.mxu1 }
 0x306   :  { %v4349_v28 = vpop.f32.mrf.mxu0  ;;  %v5050_v39 = vpop.f32.mrf.mxu1 }
 0x307   :  { %v4404_v5 = vadd.f32 %v4349_v28, %v13469_v60 }
 0x308   :  { %v4351_v23 = vpop.f32.mrf.mxu0  ;;  %v5052_v12 = vpop.f32.mrf.mxu1 }
 0x309   :  { %v4405_v43 = vadd.f32 %v4351_v23, %v13479_v44  ;;  %v13582_v22 = vadd.f32 %v5040_v6, %v4404_v5 }
 0x30a   :  { %v4353_v38 = vpop.f32.mrf.mxu0  ;;  %v5054_v54 = vpop.f32.mrf.mxu1 }
 0x30b   :  { %v4406_v8 = vadd.f32 %v4353_v38, %v13481_v2  ;;  %v13585_v15 = vadd.f32 %v5042_v18, %v4405_v43 }
 0x30c   :  { %v4355_v59 = vpop.f32.mrf.mxu0  ;;  %v5056_v20 = vpop.f32.mrf.mxu1 }
 0x30d   :  { %v4407_v27 = vadd.f32 %v4355_v59, %v13484_v62  ;;  %v13588_v33 = vadd.f32 %v5044_v31, %v4406_v8 }
 0x30e   :  { %v5060_v1 = vpop.f32.mrf.mxu1 }
 0x30f   :  { %v13591_v36 = vadd.f32 %v5046_v58, %v4407_v27 }
 0x310   :  { %v4359_v60 = vpop.f32.mrf.mxu0  ;;  %v5062_v11 = vpop.f32.mrf.mxu1 }
 0x311   :  { %v4408_v10 = vadd.f32 %v4359_v60, %v13487_v30 }
 0x312   :  { %v4361_v44 = vpop.f32.mrf.mxu0  ;;  %v5064_v24 = vpop.f32.mrf.mxu1 }
 0x313   :  { %v4409_v14 = vadd.f32 %v4361_v44, %v13498_v55  ;;  %v13594_v47 = vadd.f32 %v5050_v39, %v4408_v10 }
 0x314   :  { %v4363_v2 = vpop.f32.mrf.mxu0  ;;  %v5066_v40 = vpop.f32.mrf.mxu1 }
 0x315   :  { %v4410_v46 = vadd.f32 %v4363_v2, %v13500_v56  ;;  %v13597_v34 = vadd.f32 %v5052_v12, %v4409_v14 }
 0x316   :  { %v4365_v62 = vpop.f32.mrf.mxu0 }
 0x317   :  { %v4411_v49 = vadd.f32 %v4365_v62, %v13510_v41  ;;  %v13600_v7 = vadd.f32 %v5054_v54, %v4410_v46 }
 0x319   :  { %v13603_v21 = vadd.f32 %v5056_v20, %v4411_v49 }
 0x31a   :  { %v4369_v30 = vpop.f32.mrf.mxu0 }
 0x31b   :  { %v4412_v42 = vadd.f32 %v4369_v30, %v13520_v9 }
 0x31c   :  { %v4371_v55 = vpop.f32.mrf.mxu0  ;;  %v5070_v6 = vpop.f32.mrf.mxu1 }
 0x31d   :  { %v4413_v37 = vadd.f32 %v4371_v55, %v13529_v13  ;;  %v13606_v32 = vadd.f32 %v5060_v1, %v4412_v42 }
 0x31e   :  { %v4373_v56 = vpop.f32.mrf.mxu0  ;;  %v5072_v18 = vpop.f32.mrf.mxu1 }
 0x31f   :  { %v4414_v25 = vadd.f32 %v4373_v56, %v13531_v51  ;;  %v13609_v26 = vadd.f32 %v5062_v11, %v4413_v37 }
 0x320   :  { %v4375_v41 = vpop.f32.mrf.mxu0  ;;  %v5074_v31 = vpop.f32.mrf.mxu1 }
 0x321   :  { %v4415_v4 = vadd.f32 %v4375_v41, %v13534_v19  ;;  %v13612_v28 = vadd.f32 %v5064_v24, %v4414_v25 }
 0x322   :  { %v5076_v58 = vpop.f32.mrf.mxu1 }
 0x323   :  { %v13615_v23 = vadd.f32 %v5066_v40, %v4415_v4 }
 0x324   :  { %v4379_v9 = vpop.f32.mrf.mxu0  ;;  %v5080_v39 = vpop.f32.mrf.mxu1 }
 0x325   :  { %v4416_v5 = vadd.f32 %v4379_v9, %v13540_v61 }
 0x326   :  { %v4381_v13 = vpop.f32.mrf.mxu0  ;;  %v5082_v12 = vpop.f32.mrf.mxu1 }
 0x327   :  { %v4417_v43 = vadd.f32 %v4381_v13, %v13543_v16  ;;  %v13618_v38 = vadd.f32 %v5070_v6, %v4416_v5 }
 0x328   :  { %v4383_v51 = vpop.f32.mrf.mxu0  ;;  %v5084_v54 = vpop.f32.mrf.mxu1 }
 0x329   :  { %v4418_v8 = vadd.f32 %v4383_v51, %v13546_v63  ;;  %v13621_v59 = vadd.f32 %v5072_v18, %v4417_v43 }
 0x32a   :  { %v4385_v19 = vpop.f32.mrf.mxu0  ;;  %v5085_v20 = vpop.f32.mrf.mxu1 }
 0x32b   :  { %v4419_v27 = vadd.f32 %v4385_v19, %v13549_v0  ;;  %v13624_v60 = vadd.f32 %v5074_v31, %v4418_v8 }
 0x32c   :  { %v4389_v61 = vpop.f32.mrf.mxu0 }
 0x32d   :  { %v4420_v10 = vadd.f32 %v4389_v61, %v13552_v57  ;;  %v13627_v44 = vadd.f32 %v5076_v58, %v4419_v27 }
 0x32e   :  { %v4391_v16 = vpop.f32.mrf.mxu0 }
 0x32f   :  { %v4421_v1 = vadd.f32 %v4391_v16, %v13554_v17  ;;  %v13630_v14 = vadd.f32 %v5080_v39, %v4420_v10 }
 0x330   :  { %v4393_v63 = vpop.f32.mrf.mxu0 }
 0x331   :  { %v13632_v2 = vadd.f32 %v5082_v12, %v4421_v1 }
 0x332   :  { %v4394_v11 = vpop.f32.mrf.mxu0  ;;  %v6303_v46 = vpop.f32.mrf.mxu1 }
 0x334   :  { %v6305_v62 = vpop.f32.mrf.mxu1 }
 0x336   :  { %v6307_v0 = vpop.f32.mrf.mxu1 }
 0x338   :  { %v6309_v24 = vpop.f32.mrf.mxu1 }
 0x33a   :  { %v5567_v49 = vpop.f32.mrf.mxu0  ;;  %v6313_v40 = vpop.f32.mrf.mxu1 }
 0x33b   :  { %v5634_v30 = vadd.f32 %v5567_v49, %v13558_v52 }
 0x33c   :  { %v5569_v57 = vpop.f32.mrf.mxu0  ;;  %v6315_v17 = vpop.f32.mrf.mxu1 }
 0x33d   :  { %v5635_v42 = vadd.f32 %v5569_v57, %v13561_v35  ;;  %v13636_v55 = vadd.f32 %v6303_v46, %v5634_v30 }
 0x33e   :  { %v5571_v6 = vpop.f32.mrf.mxu0  ;;  %v6317_v18 = vpop.f32.mrf.mxu1 }
 0x33f   :  { %v5636_v37 = vadd.f32 %v5571_v6, %v13564_v45  ;;  %v13639_v56 = vadd.f32 %v6305_v62, %v5635_v42 }
 0x340   :  { %v5573_v25 = vpop.f32.mrf.mxu0  ;;  %v6319_v4 = vpop.f32.mrf.mxu1 }
 0x341   :  { %v5637_v41 = vadd.f32 %v5573_v25, %v13567_v3  ;;  %v13642_v31 = vadd.f32 %v6307_v0, %v5636_v37 }
 0x342   :  { %v5577_v52 = vpop.f32.mrf.mxu0 }
 0x343   :  { %v5638_v9 = vadd.f32 %v5577_v52, %v13570_v48  ;;  %v13645_v58 = vadd.f32 %v6309_v24, %v5637_v41 }
 0x344   :  { %v5579_v5 = vpop.f32.mrf.mxu0 }
 0x345   :  { %v5639_v13 = vadd.f32 %v5579_v5, %v13573_v29  ;;  %v13648_v39 = vadd.f32 %v6313_v40, %v5638_v9 }
 0x346   :  { %v5581_v43 = vpop.f32.mrf.mxu0 }
 0x347   :  { %v5640_v51 = vadd.f32 %v5581_v43, %v13576_v50  ;;  %v13651_v12 = vadd.f32 %v6315_v17, %v5639_v13 }
 0x348   :  { %v5583_v8 = vpop.f32.mrf.mxu0 }
 0x349   :  { %v5641_v19 = vadd.f32 %v5583_v8, %v13579_v53  ;;  %v13654_v54 = vadd.f32 %v6317_v18, %v5640_v51 }
 0x34a   :  { %v5587_v27 = vpop.f32.mrf.mxu0 }
 0x34b   :  { %v5642_v61 = vadd.f32 %v5587_v27, %v13582_v22  ;;  %v13657_v20 = vadd.f32 %v6319_v4, %v5641_v19 }
 0x34c   :  { %v6323_v35 = vpop.f32.mrf.mxu1  ;;  %v5589_v10 = vpop.f32.mrf.mxu0 }
 0x34d   :  { %v5643_v16 = vadd.f32 %v5589_v10, %v13585_v15  ;;  %v13660_v1 = vadd.f32 %v6323_v35, %v5642_v61 }
 0x34e   :  { %v6325_v45 = vpop.f32.mrf.mxu1  ;;  %v5591_v63 = vpop.f32.mrf.mxu0 }
 0x34f   :  { %v5644_v11 = vadd.f32 %v5591_v63, %v13588_v33  ;;  %v13663_v46 = vadd.f32 %v6325_v45, %v5643_v16 }
 0x350   :  { %v6327_v3 = vpop.f32.mrf.mxu1  ;;  %v5593_v62 = vpop.f32.mrf.mxu0 }
 0x351   :  { %v5645_v0 = vadd.f32 %v5593_v62, %v13591_v36  ;;  %v13666_v24 = vadd.f32 %v6327_v3, %v5644_v11 }
 0x352   :  { %v6329_v48 = vpop.f32.mrf.mxu1  ;;  %v5597_v49 = vpop.f32.mrf.mxu0 }
 0x353   :  { %v5646_v30 = vadd.f32 %v5597_v49, %v13594_v47  ;;  %v13669_v40 = vadd.f32 %v6329_v48, %v5645_v0 }
 0x354   :  { %v6333_v29 = vpop.f32.mrf.mxu1  ;;  %v5599_v57 = vpop.f32.mrf.mxu0 }
 0x355   :  { %v5647_v42 = vadd.f32 %v5599_v57, %v13597_v34  ;;  %v13672_v17 = vadd.f32 %v6333_v29, %v5646_v30 }
 0x356   :  { %v6335_v50 = vpop.f32.mrf.mxu1  ;;  %v5601_v6 = vpop.f32.mrf.mxu0 }
 0x357   :  { %v5648_v37 = vadd.f32 %v5601_v6, %v13600_v7  ;;  %v13675_v18 = vadd.f32 %v6335_v50, %v5647_v42 }
 0x358   :  { %v6337_v53 = vpop.f32.mrf.mxu1  ;;  %v5603_v25 = vpop.f32.mrf.mxu0 }
 0x359   :  { %v5649_v41 = vadd.f32 %v5603_v25, %v13603_v21  ;;  %v13678_v4 = vadd.f32 %v6337_v53, %v5648_v37  ;;  %v14690_v37 = vld [vmem:[#allocation10_spill] sm:$0xff] }
 0x35a   :  { %v6339_v22 = vpop.f32.mrf.mxu1 }
 0x35b   :  { %v5607_v52 = vpop.f32.mrf.mxu0  ;;  %v13681_v35 = vadd.f32 %v6339_v22, %v5649_v41  ;;  %v14691_v41 = vld [vmem:[#allocation11_spill] sm:$0xff] }
 0x35c   :  { %v6343_v15 = vpop.f32.mrf.mxu1  ;;  %v5650_v9 = vadd.f32 %v5607_v52, %v13606_v32 }
 0x35d   :  { %v5609_v5 = vpop.f32.mrf.mxu0 }
 0x35e   :  { %v6345_v33 = vpop.f32.mrf.mxu1  ;;  %v5651_v13 = vadd.f32 %v5609_v5, %v13609_v26  ;;  %v13684_v45 = vadd.f32 %v6343_v15, %v5650_v9 }
 0x35f   :  { %v5611_v43 = vpop.f32.mrf.mxu0 }
 0x360   :  { %v6347_v36 = vpop.f32.mrf.mxu1  ;;  %v5652_v51 = vadd.f32 %v5611_v43, %v13612_v28  ;;  %v13687_v3 = vadd.f32 %v6345_v33, %v5651_v13 }
 0x361   :  { %v5613_v8 = vpop.f32.mrf.mxu0 }
 0x362   :  { %v6349_v47 = vpop.f32.mrf.mxu1  ;;  %v5653_v19 = vadd.f32 %v5613_v8, %v13615_v23  ;;  %v13690_v48 = vadd.f32 %v6347_v36, %v5652_v51 }
 0x363   :  { %v5617_v27 = vpop.f32.mrf.mxu0 }
 0x364   :  { %v6353_v34 = vpop.f32.mrf.mxu1  ;;  %v5654_v61 = vadd.f32 %v5617_v27, %v13618_v38  ;;  %v13693_v29 = vadd.f32 %v6349_v47, %v5653_v19 }
 0x365   :  { %v5619_v10 = vpop.f32.mrf.mxu0 }
 0x366   :  { %v6355_v7 = vpop.f32.mrf.mxu1  ;;  %v5655_v16 = vadd.f32 %v5619_v10, %v13621_v59  ;;  %v13696_v50 = vadd.f32 %v6353_v34, %v5654_v61 }
 0x367   :  { %v5621_v63 = vpop.f32.mrf.mxu0 }
 0x368   :  { %v6357_v21 = vpop.f32.mrf.mxu1  ;;  %v5656_v11 = vadd.f32 %v5621_v63, %v13624_v60  ;;  %v13699_v53 = vadd.f32 %v6355_v7, %v5655_v16 }
 0x369   :  { %v5623_v62 = vpop.f32.mrf.mxu0 }
 0x36a   :  { %v6359_v32 = vpop.f32.mrf.mxu1  ;;  %v5657_v0 = vadd.f32 %v5623_v62, %v13627_v44  ;;  %v13702_v22 = vadd.f32 %v6357_v21, %v5656_v11  ;;  %v6848_v44 = vld [vmem:[%s13879_s4] sm:$0x3]  ;;  %s8483_s4 = smov 64  }
 0x36b   :  { %v5627_v49 = vpop.f32.mrf.mxu0  ;;  %v13716_v36 = vrot.slane %v6848_v44, %v14690_v37  ;;  %v13720_v47 = vrot.slane %v6848_v44, %v14691_v41 }
 0x36c   :  { %v6363_v26 = vpop.f32.mrf.mxu1  ;;  %v5658_v30 = vadd.f32 %v5627_v49, %v13630_v14  ;;  %v13705_v15 = vadd.f32 %v6359_v32, %v5657_v0 }
 0x36d   :  { %v5629_v59 = vpop.f32.mrf.mxu0 }
 0x36e   :  { %v6365_v28 = vpop.f32.mrf.mxu1  ;;  %v5659_v57 = vadd.f32 %v5629_v59, %v13632_v2  ;;  %v13708_v42 = vadd.f32 %v6363_v26, %v5658_v30 }
 0x36f   :  { %v5631_v60 = vpop.f32.mrf.mxu0 }
 0x370   :  { %v6367_v23 = vpop.f32.mrf.mxu1  ;;  %v13710_v33 = vadd.f32 %v6365_v28, %v5659_v57 }
 0x371   :  { %v5632_v6 = vpop.f32.mrf.mxu0 }
 0x372   :  { %v6368_v38 = vpop.f32.mrf.mxu1 }
 0x381   :  { %v6755_v25 = vpop.f32.mrf.mxu0 }
 0x382   :  { %v6822_v14 = vadd.f32 %v6755_v25, %v13636_v55 }
 0x383   :  { %v6757_v2 = vpop.f32.mrf.mxu0 }
 0x384   :  { %v6860_v52 = vadd.f32 %v13716_v36, %v6822_v14  ;;  %v6823_v9 = vadd.f32 %v6757_v2, %v13639_v56 }
 0x385   :  { %v6759_v34 = vpop.f32.mrf.mxu0 }
 0x386   :  { %v6861_v5 = vadd.f32 %v13720_v47, %v6823_v9  ;;  %v6824_v13 = vadd.f32 %v6759_v34, %v13642_v31  ;;  %v6886_v43 = vmax.f32 %v6860_v52, 0.0 }
 0x387   :  { %v6761_v7 = vpop.f32.mrf.mxu0 }
 0x388   :  { %v6887_v51 = vmax.f32 %v6861_v5, 0.0  ;;  %v6862_v21 = vadd.f32 %v13716_v36, %v6824_v13  ;;  %v6825_v55 = vadd.f32 %v6761_v7, %v13645_v58 }
 0x389   :  { %v6765_v8 = vpop.f32.mrf.mxu0 }
 0x38a   :  { %v6863_v19 = vadd.f32 %v13720_v47, %v6825_v55  ;;  %v6826_v32 = vadd.f32 %v6765_v8, %v13648_v39  ;;  %v13730_v27 = vmax.f32 %v6886_v43, %v6887_v51  ;;  %v6888_v61 = vmax.f32 %v6862_v21, 0.0 }
 0x38b   :  { %v6767_v56 = vpop.f32.mrf.mxu0 }
 0x38c   :  { %v6889_v26 = vmax.f32 %v6863_v19, 0.0  ;;  %v6864_v10 = vadd.f32 %v13716_v36, %v6826_v32  ;;  %v6827_v31 = vadd.f32 %v6767_v56, %v13651_v12 }
 0x38d   :  { %v6769_v16 = vpop.f32.mrf.mxu0 }
 0x38e   :  { %v6865_v28 = vadd.f32 %v13720_v47, %v6827_v31  ;;  %v6828_v63 = vadd.f32 %v6769_v16, %v13654_v54  ;;  %v13736_v58 = vmax.f32 %v6888_v61, %v6889_v26  ;;  %v6890_v11 = vmax.f32 %v6864_v10, 0.0 }
 0x38f   :  { %v6771_v23 = vpop.f32.mrf.mxu0 }
 0x390   :  { %v6891_v62 = vmax.f32 %v6865_v28, 0.0  ;;  %v6866_v39 = vadd.f32 %v13716_v36, %v6828_v63  ;;  %v6829_v0 = vadd.f32 %v6771_v23, %v13657_v20  ;;  %v7961_v38 = vpack.i.bf16 %v13736_v58, %v13730_v27 }
 0x391   :  { %v6775_v49 = vpop.f32.mrf.mxu0 }
 0x392   :  { %v13742_v30 = vmax.f32 %v6890_v11, %v6891_v62  ;;  %v6867_v12 = vadd.f32 %v13720_v47, %v6829_v0  ;;  %v6830_v59 = vadd.f32 %v6775_v49, %v13660_v1  ;;  %7962 = vrot.lane.b32.xlu0 %v7961_v38, %s8483_s4  ;;  %v6892_v57 = vmax.f32 %v6866_v39, 0.0 }
 0x393   :  { %v6777_v54 = vpop.f32.mrf.mxu0 }
 0x394   :  { %v6893_v60 = vmax.f32 %v6867_v12, 0.0  ;;  %v6868_v6 = vadd.f32 %v13716_v36, %v6830_v59  ;;  %v6831_v20 = vadd.f32 %v6777_v54, %v13663_v46 }
 0x395   :  { %v6779_v44 = vpop.f32.mrf.mxu0 }
 0x396   :  { %v13749_v37 = vmax.f32 %v6892_v57, %v6893_v60  ;;  %v6869_v25 = vadd.f32 %v13720_v47, %v6831_v20  ;;  %v6832_v14 = vadd.f32 %v6779_v44, %v13666_v24  ;;  %v6894_v41 = vmax.f32 %v6868_v6, 0.0 }
 0x397   :  { %v6781_v2 = vpop.f32.mrf.mxu0 }
 0x398   :  { %v6895_v1 = vmax.f32 %v6869_v25, 0.0  ;;  %v6870_v52 = vadd.f32 %v13716_v36, %v6832_v14  ;;  %v6833_v9 = vadd.f32 %v6781_v2, %v13669_v40  ;;  %v7966_v34 = vpack.i.bf16 %v13749_v37, %v13742_v30 }
 0x399   :  { %v6785_v5 = vpop.f32.mrf.mxu0 }
 0x39a   :  { %v6871_v46 = vadd.f32 %v13720_v47, %v6833_v9  ;;  %v6834_v13 = vadd.f32 %v6785_v5, %v13672_v17  ;;  %7967 = vrot.lane.b32.xlu0 %v7966_v34, %s8483_s4  ;;  %v13760_v7 = vmax.f32 %v6894_v41, %v6895_v1  ;;  %v6896_v43 = vmax.f32 %v6870_v52, 0.0 }
 0x39b   :  { %v6787_v24 = vpop.f32.mrf.mxu0 }
 0x39c   :  { %v6897_v51 = vmax.f32 %v6871_v46, 0.0  ;;  %v6872_v21 = vadd.f32 %v13716_v36, %v6834_v13  ;;  %v6835_v55 = vadd.f32 %v6787_v24, %v13675_v18 }
 0x39d   :  { %v6789_v40 = vpop.f32.mrf.mxu0 }
 0x39e   :  { %v6873_v8 = vadd.f32 %v13720_v47, %v6835_v55  ;;  %v6836_v19 = vadd.f32 %v6789_v40, %v13678_v4  ;;  %v13766_v32 = vmax.f32 %v6896_v43, %v6897_v51  ;;  %v6898_v56 = vmax.f32 %v6872_v21, 0.0 }
 0x39f   :  { %v6791_v17 = vpop.f32.mrf.mxu0 }
 0x3a0   :  { %v6899_v61 = vmax.f32 %v6873_v8, 0.0  ;;  %v6874_v26 = vadd.f32 %v13716_v36, %v6836_v19  ;;  %v6837_v10 = vadd.f32 %v6791_v17, %v13681_v35  ;;  %v7971_v31 = vpack.i.bf16 %v13766_v32, %v13760_v7 }
 0x3a1   :  { %v6795_v16 = vpop.f32.mrf.mxu0 }
 0x3a2   :  { %v13772_v28 = vmax.f32 %v6898_v56, %v6899_v61  ;;  %v6875_v18 = vadd.f32 %v13720_v47, %v6837_v10  ;;  %v6838_v63 = vadd.f32 %v6795_v16, %v13684_v45  ;;  %7972 = vrot.lane.b32.xlu1 %v7971_v31, %s8483_s4  ;;  %v6900_v11 = vmax.f32 %v6874_v26, 0.0 }
 0x3a3   :  { %v6797_v4 = vpop.f32.mrf.mxu0 }
 0x3a4   :  { %v6901_v23 = vmax.f32 %v6875_v18, 0.0  ;;  %v6876_v62 = vadd.f32 %v13716_v36, %v6838_v63  ;;  %v6839_v39 = vadd.f32 %v6797_v4, %v13687_v3 }
 0x3a5   :  { %v6799_v35 = vpop.f32.mrf.mxu0 }
 0x3a6   :  { %v13779_v0 = vmax.f32 %v6900_v11, %v6901_v23  ;;  %v6877_v38 = vadd.f32 %v13720_v47, %v6839_v39  ;;  %v6840_v49 = vadd.f32 %v6799_v35, %v13690_v48  ;;  %v6902_v12 = vmax.f32 %v6876_v62, 0.0 }
 0x3a7   :  { %v6801_v59 = vpop.f32.mrf.mxu0 }
 0x3a8   :  { %v6903_v54 = vmax.f32 %v6877_v38, 0.0  ;;  %v6878_v45 = vadd.f32 %v13716_v36, %v6840_v49  ;;  %v6841_v57 = vadd.f32 %v6801_v59, %v13693_v29  ;;  %v7976_v60 = vpack.i.bf16 %v13779_v0, %v13772_v28 }
 0x3a9   :  { %v6805_v6 = vpop.f32.mrf.mxu0 }
 0x3aa   :  { %v13787_v20 = vmax.f32 %v6902_v12, %v6903_v54  ;;  %v6879_v3 = vadd.f32 %v13720_v47, %v6841_v57  ;;  %v6842_v44 = vadd.f32 %v6805_v6, %v13696_v50  ;;  %7977 = vrot.lane.b32.xlu1 %v7976_v60, %s8483_s4  ;;  %v6904_v25 = vmax.f32 %v6878_v45, 0.0 }
 0x3ab   :  { %v6807_v48 = vpop.f32.mrf.mxu0 }
 0x3ac   :  { %v6905_v14 = vmax.f32 %v6879_v3, 0.0  ;;  %v6880_v41 = vadd.f32 %v13716_v36, %v6842_v44  ;;  %v6843_v2 = vadd.f32 %v6807_v48, %v13699_v53 }
 0x3ad   :  { %v6809_v29 = vpop.f32.mrf.mxu0 }
 0x3ae   :  { %v13794_v1 = vmax.f32 %v6904_v25, %v6905_v14  ;;  %v6881_v52 = vadd.f32 %v13720_v47, %v6843_v2  ;;  %v6844_v9 = vadd.f32 %v6809_v29, %v13702_v22  ;;  %v6906_v34 = vmax.f32 %v6880_v41, 0.0 }
 0x3af   :  { %v6811_v5 = vpop.f32.mrf.mxu0 }
 0x3b0   :  { %v6907_v46 = vmax.f32 %v6881_v52, 0.0  ;;  %v6882_v50 = vadd.f32 %v13716_v36, %v6844_v9  ;;  %v6845_v13 = vadd.f32 %v6811_v5, %v13705_v15  ;;  %v7981_v24 = vpack.i.bf16 %v13794_v1, %v13787_v20 }
 0x3b1   :  { %v6815_v43 = vpop.f32.mrf.mxu0 }
 0x3b2   :  { %v13802_v51 = vmax.f32 %v6906_v34, %v6907_v46  ;;  %v6883_v53 = vadd.f32 %v13720_v47, %v6845_v13  ;;  %v6846_v21 = vadd.f32 %v6815_v43, %v13708_v42  ;;  %7982 = vrot.lane.b32.xlu0 %v7981_v24, %s8483_s4  ;;  %v6908_v55 = vmax.f32 %v6882_v50, 0.0 }
 0x3b3   :  { %v6817_v22 = vpop.f32.mrf.mxu0 }
 0x3b4   :  { %v6909_v40 = vmax.f32 %v6883_v53, 0.0  ;;  %v6884_v8 = vadd.f32 %v13716_v36, %v6846_v21  ;;  %v6847_v19 = vadd.f32 %v6817_v22, %v13710_v33 }
 0x3b5   :  { %v6819_v15 = vpop.f32.mrf.mxu0 }
 0x3b6   :  { %v6923_v56 = vmax.f32 %v6908_v55, %v6909_v40  ;;  %v6885_v17 = vadd.f32 %v13720_v47, %v6847_v19  ;;  %v6910_v26 = vmax.f32 %v6884_v8, 0.0 }
 0x3b7   :  { %v6820_v61 = vpop.f32.mrf.mxu0 }
 0x3b8   :  { %v6911_v10 = vmax.f32 %v6885_v17, 0.0  ;;  %v7986_v31 = vpack.i.bf16 %v6923_v56, %v13802_v51 }
 0x3ba   :  { %7987 = vrot.lane.b32.xlu1 %v7986_v31, %s8483_s4  ;;  %v6924_v42 = vmax.f32 %v6910_v26, %v6911_v10 }
 0x3bc   :  { %6962 = vrot.lane.b32.xlu0 %v6924_v42, %s8483_s4 }
 0x404   :  { %v7963_v16 = vpop.permute.xlu0 %7962 }
 0x405   :  { %v7965_v18 = vunpack.i.h.bf16 %v7963_v16  ;;  %v7964_v63 = vunpack.i.l.bf16 %v7963_v16 }
 0x407   :  { %v6978_v36 = vmax.f32 %v13736_v58, %v7965_v18  ;;  %v6977_v33 = vmax.f32 %v13730_v27, %v7964_v63 }
 0x409   :  { %v7887_v4 = vpack.c.bf16 %v6978_v36, %v6978_v36  ;;  %v7886_v47 = vpack.c.bf16 %v6977_v33, %v6977_v33 }
 0x40b   :  { %7045 = vst.msk [vmem:[%s13880_s5 + $0x4] sm:$0xf] %vm7043_vm13, %v7887_v4  ;;  %7044 = vst.msk [vmem:[%s13880_s5] sm:$0xf] %vm7043_vm13, %v7886_v47 }
 0x40c   :  { %v7968_v11 = vpop.permute.xlu0 %7967 }
 0x40d   :  { %v7970_v23 = vunpack.i.h.bf16 %v7968_v11  ;;  %v7969_v62 = vunpack.i.l.bf16 %v7968_v11 }
 0x40f   :  { %v6980_v58 = vmax.f32 %v13749_v37, %v7970_v23  ;;  %v6979_v27 = vmax.f32 %v13742_v30, %v7969_v62 }
 0x411   :  { %v7889_v39 = vpack.c.bf16 %v6980_v58, %v6980_v58  ;;  %v7888_v35 = vpack.c.bf16 %v6979_v27, %v6979_v27 }
 0x413   :  { %7047 = vst.msk [vmem:[%s13880_s5 + $0xc] sm:$0xf] %vm7043_vm13, %v7889_v39  ;;  %7046 = vst.msk [vmem:[%s13880_s5 + $0x8] sm:$0xf] %vm7043_vm13, %v7888_v35 }
 0x414   :  { %v7973_v38 = vpop.permute.xlu1 %7972 }
 0x415   :  { %v7975_v49 = vunpack.i.h.bf16 %v7973_v38  ;;  %v7974_v12 = vunpack.i.l.bf16 %v7973_v38 }
 0x417   :  { %v6982_v59 = vmax.f32 %v13766_v32, %v7975_v49  ;;  %v6981_v37 = vmax.f32 %v13760_v7, %v7974_v12 }
 0x419   :  { %v7891_v30 = vpack.c.bf16 %v6982_v59, %v6982_v59  ;;  %v7890_v54 = vpack.c.bf16 %v6981_v37, %v6981_v37 }
 0x41b   :  { %7049 = vst.msk [vmem:[%s13880_s5 + $0x14] sm:$0xf] %vm7043_vm13, %v7891_v30  ;;  %7048 = vst.msk [vmem:[%s13880_s5 + $0x10] sm:$0xf] %vm7043_vm13, %v7890_v54 }
 0x41c   :  { %v7978_v45 = vpop.permute.xlu1 %7977 }
 0x41d   :  { %v7980_v57 = vunpack.i.h.bf16 %v7978_v45  ;;  %v7979_v60 = vunpack.i.l.bf16 %v7978_v45 }
 0x41f   :  { %v6984_v6 = vmax.f32 %v13779_v0, %v7980_v57  ;;  %v6983_v32 = vmax.f32 %v13772_v28, %v7979_v60 }
 0x421   :  { %v7893_v7 = vpack.c.bf16 %v6984_v6, %v6984_v6  ;;  %v7892_v3 = vpack.c.bf16 %v6983_v32, %v6983_v32 }
 0x423   :  { %7051 = vst.msk [vmem:[%s13880_s5 + $0x1c] sm:$0xf] %vm7043_vm13, %v7893_v7  ;;  %7050 = vst.msk [vmem:[%s13880_s5 + $0x18] sm:$0xf] %vm7043_vm13, %v7892_v3 }
 0x424   :  { %v7983_v44 = vpop.permute.xlu0 %7982 }
 0x425   :  { %v7985_v48 = vunpack.i.h.bf16 %v7983_v44  ;;  %v7984_v25 = vunpack.i.l.bf16 %v7983_v44 }
 0x427   :  { %v6986_v14 = vmax.f32 %v13794_v1, %v7985_v48  ;;  %v6985_v0 = vmax.f32 %v13787_v20, %v7984_v25 }
 0x429   :  { %v7895_v28 = vpack.c.bf16 %v6986_v14, %v6986_v14  ;;  %v7894_v41 = vpack.c.bf16 %v6985_v0, %v6985_v0 }
 0x42b   :  { %7053 = vst.msk [vmem:[%s13880_s5 + $0x24] sm:$0xf] %vm7043_vm13, %v7895_v28  ;;  %7052 = vst.msk [vmem:[%s13880_s5 + $0x20] sm:$0xf] %vm7043_vm13, %v7894_v41 }
 0x42c   :  { %v7988_v2 = vpop.permute.xlu1 %7987 }
 0x42d   :  { %v7990_v29 = vunpack.i.h.bf16 %v7988_v2  ;;  %v7989_v52 = vunpack.i.l.bf16 %v7988_v2 }
 0x42e   :  { %v6963_v9 = vpop.permute.xlu0 %6962 }
 0x42f   :  { %v6988_v34 = vmax.f32 %v6923_v56, %v7990_v29  ;;  %v6987_v1 = vmax.f32 %v13802_v51, %v7989_v52  ;;  %v6989_v20 = vmax.f32 %v6924_v42, %v6963_v9 }
 0x431   :  { %v7897_v5 = vpack.c.bf16 %v6988_v34, %v6988_v34  ;;  %v7896_v46 = vpack.c.bf16 %v6987_v1, %v6987_v1  ;;  %v7898_v50 = vpack.c.bf16 %v6989_v20, %v6989_v20 }
 0x433   :  { %7055 = vst.msk [vmem:[%s13880_s5 + $0x2c] sm:$0xf] %vm7043_vm13, %v7897_v5  ;;  %7054 = vst.msk [vmem:[%s13880_s5 + $0x28] sm:$0xf] %vm7043_vm13, %v7896_v46 }
 0x434   :  { %7057 = vst.msk [vmem:[%s13880_s5 + $0x30] sm:$0x1] %vm7056_vm15, %v7898_v50 }

</bundles_post_ra>
